<compile_context>
chip_gen: v6e
topology: v6e:2x2x1
jax: 0.10.0
libtpu: 0.0.40
codegen_flags: <defaults>
</compile_context>

<pallas_src>
import numpy as np
import jax
import jax.numpy as jnp
from jax.experimental import pallas as pl
from jax.experimental.pallas import tpu as pltpu

_EPS = 1e-5  # PyTorch GroupNorm default eps


# ---------------------------------------------------------------------------
# In-kernel helpers
# ---------------------------------------------------------------------------
def _gn(x, gamma, beta):
    """GroupNorm(num_groups=1, C) on [N, C]: per-row normalize + affine (f32).

    Single traversal (sum / sum-of-squares); variance clamped at 0 because the
    E[x^2]-E[x]^2 form can go slightly negative from cancellation on
    near-constant rows (would NaN through rsqrt otherwise).
    """
    inv_n = 1.0 / x.shape[-1]
    s = jnp.sum(x, axis=-1, keepdims=True)
    ss = jnp.sum(x * x, axis=-1, keepdims=True)
    mean = s * inv_n
    var = jnp.maximum(ss * inv_n - mean * mean, 0.0)
    return (x - mean) * jax.lax.rsqrt(var + _EPS) * gamma + beta


def _dot(a, b):
    # Default (single-pass) MXU precision; f32 accumulation.
    return jnp.dot(a, b, preferred_element_type=jnp.float32)


def _default_pair_dtype():
    """bf16 pair-grid activations on chips with bf16 VPU ALUs (v6e / v7x);
    keep f32 on v5e and earlier (no bf16 VALU -> no elementwise win there)."""
    kind = jax.devices()[0].device_kind.lower()
    if "v6" in kind or "v7" in kind:
        return jnp.bfloat16
    return jnp.float32


# ---------------------------------------------------------------------------
# One Att layer, gridded over the agent axis i (TM-row tiles)
# ---------------------------------------------------------------------------
def _make_att_kernel(dist_th, tm, pair_dtype):
    th2 = float(dist_th) * float(dist_th)

    def kernel(meta_ref, metat_ref, x_ref, vec_ref, mats_ref, wqa_ref, out_ref):
        Mp, C = x_ref.shape
        pd = pair_dtype
        i0 = pl.multiple_of(pl.program_id(0) * tm, tm)

        # ---- packed per-layer params (static slices of resident refs) ----
        vec = vec_ref[...]                                      # [13, C]
        wdx, wdy, bd1 = vec[0:1], vec[1:2], vec[2:3]
        gd2, bd2 = vec[3:4], vec[4:5]
        gq, bq = vec[5:6], vec[6:7]
        gc1, bc1 = vec[7:8], vec[8:9]
        gng, bng = vec[9:10], vec[10:11]
        glin, blin = vec[11:12], vec[12:13]
        wd2 = mats_ref[0 * C:1 * C, :]
        wc1d = mats_ref[1 * C:2 * C, :]
        wc1q = mats_ref[2 * C:3 * C, :]
        wc1x = mats_ref[3 * C:4 * C, :]
        wc2 = mats_ref[4 * C:5 * C, :]
        wlin = mats_ref[5 * C:6 * C, :]

        # ---- pairwise mask for this i-tile: dense 2-D [TM, Mp], j on lanes --
        meta_i = meta_ref[pl.ds(i0, tm), :]                     # [TM, 3]
        cx_i, cy_i, bi_i = meta_i[:, 0:1], meta_i[:, 1:2], meta_i[:, 2:3]
        mt = metat_ref[...]                                     # [3, Mp]
        cx_j, cy_j, bi_j = mt[0:1, :], mt[1:2, :], mt[2:3, :]
        dx = cx_i - cx_j
        dy = cy_i - cy_j
        # squared-distance compare (no sqrt); batch ids exact in f32 for ids
        # < 2^24 (padded actors carry id -1 and are masked out here).
        mask = jnp.where((dx * dx + dy * dy <= th2) & (bi_i == bi_j), 1.0, 0.0)
        maskb = mask.astype(pd)[:, :, None]   # broadcast to C only at use site

        x_full = x_ref[...]                                     # [Mp, C] (ctx j)
        x_i = x_ref[pl.ds(i0, tm), :]                           # [TM, C] (agents)
        res = x_i

        # ---- self.dist[0]: Linear(2,C)+ReLU, split into agent/context terms --
        # t = cx*wdx + cy*wdy computed once over all actors (context term);
        # the agent term only needs the TM-row tile.
        meta_all = meta_ref[...]
        t_all = meta_all[:, 0:1] * wdx + meta_all[:, 1:2] * wdy  # [Mp, C]
        b_j = (-t_all).astype(pd)
        a_i = (cx_i * wdx + cy_i * wdy + bd1).astype(pd)         # [TM, C]
        d1 = jnp.maximum(a_i[:, None, :] + b_j[None, :, :], 0.0)  # [TM,Mp,C] pd
        # self.dist[2]: Linear(C,C)+GN+ReLU over all pairs of the tile
        demb = jnp.maximum(
            _gn(_dot(d1.reshape(tm * Mp, C), wd2.astype(pd)), gd2, bd2),
            0.0).astype(pd)                                      # [TM*Mp, C]

        # ---- query + self.agt share LHS = x_i: one [TM,C]@[C,2C] MXU push ----
        fused = _dot(x_i, wqa_ref[...])                          # [TM, 2C]
        q_i = jnp.maximum(_gn(fused[:, :C], gq, bq), 0.0)        # self.query
        agt = fused[:, C:]                                       # self.agt

        # ---- self.ctx[0]: Linear(3C,C) = 3 block matmuls broadcast on pairs --
        pre_q = _dot(q_i, wc1q)                                  # [TM, C]
        pre_x = _dot(x_full, wc1x)                               # [Mp, C]
        pre_d = _dot(demb, wc1d.astype(pd))                      # [TM*Mp, C]
        pre = (pre_d.reshape(tm, Mp, C)
               + pre_q[:, None, :]     # broadcast over context j
               + pre_x[None, :, :])    # broadcast over agent i
        h = jnp.maximum(_gn(pre.reshape(tm * Mp, C), gc1, bc1), 0.0).astype(pd)

        # ---- index_add_ == dense masked sum over j, hoisted before ctx[1]:
        #      sum_j(mask*h) @ wc2 == sum_j(mask * (h @ wc2))
        ctx_h = jnp.sum((h.reshape(tm, Mp, C) * maskb).astype(jnp.float32),
                        axis=1)                                  # [TM, C]
        agt = agt + _dot(ctx_h, wc2)

        # ---- self.norm -> ReLU -> self.linear (act=False) -> +res -> ReLU ----
        agt = jnp.maximum(_gn(agt, gng, bng), 0.0)
        lin = _gn(_dot(agt, wlin), glin, blin)
        out_ref[...] = jnp.maximum(lin + res, 0.0)

    return kernel


def _att_layer_call(Mp, C, dist_th, tm, pair_dtype):
    kernel = _make_att_kernel(dist_th, tm, pair_dtype)

    def resident(shape):
        # full-array block, constant index map -> stays VMEM-resident across
        # the i-tile grid (no re-DMA per step).
        return pl.BlockSpec(shape, lambda i: (0,) * len(shape))

    return pl.pallas_call(
        kernel,
        out_shape=jax.ShapeDtypeStruct((Mp, C), jnp.float32),
        grid=(Mp // tm,),
        in_specs=[
            resident((Mp, 3)),        # meta = [ctrs | batch id], column layout
            resident((3, Mp)),        # meta^T, row layout (j on lanes)
            resident((Mp, C)),        # actor features (full set, context side)
            resident((13, C)),        # packed [1,C] params + wd1
            resident((6 * C, C)),     # packed CxC weight matrices
            resident((C, 2 * C)),     # concat(wq, wagt)
        ],
        out_specs=pl.BlockSpec((tm, C), lambda i: (i, 0)),
        compiler_params=pltpu.CompilerParams(
            dimension_semantics=("parallel",)),  # shard i-tiles across TCs (v7x)
    )


def _pack_layer(p):
    vecs = jnp.concatenate(
        [p["wd1"], p["bd1"], p["gd2"], p["bd2"], p["gq"], p["bq"],
         p["gc1"], p["bc1"], p["gng"], p["bng"], p["glin"], p["blin"]],
        axis=0)                                                  # [13, C]
    mats = jnp.concatenate(
        [p["wd2"], p["wc1d"], p["wc1q"], p["wc1x"], p["wc2"], p["wlin"]],
        axis=0)                                                  # [6C, C]
    wqa = jnp.concatenate([p["wq"], p["wagt"]], axis=1)          # [C, 2C]
    return vecs, mats, wqa


def a2a_forward(actors, ctrs, batch_id, att_params, dist_th, *,
                tm=16, pair_dtype=None):
    """A2A.forward: two stacked Att layers, one pallas_call per layer,
    each gridded over TM-row agent tiles."""
    M, C = actors.shape
    if pair_dtype is None:
        pair_dtype = _default_pair_dtype()
    # tm must be a sublane multiple so the [TM,Mp,C] <-> [TM*Mp,C] reshapes are
    # free relayouts (8 for f32, 16 for bf16 pair slabs); 16 covers both.
    assert tm % (16 if pair_dtype == jnp.bfloat16 else 8) == 0

    Mp = int(pl.cdiv(M, tm)) * tm
    pad = Mp - M
    actors_p = jnp.pad(actors.astype(jnp.float32), ((0, pad), (0, 0)))
    ctrs_p = jnp.pad(ctrs.astype(jnp.float32), ((0, pad), (0, 0)))
    # padded actors get batch id -1 -> masked out of every real actor's context
    bid_p = jnp.pad(batch_id.astype(jnp.float32), (0, pad), constant_values=-1.0)
    meta = jnp.concatenate([ctrs_p, bid_p[:, None]], axis=1)     # [Mp, 3]
    metat = meta.T                                               # [3, Mp]

    call = _att_layer_call(Mp, C, float(dist_th), tm, pair_dtype)
    x = actors_p
    for p in att_params:
        vecs, mats, wqa = _pack_layer(p)
        x = call(meta, metat, x, vecs, mats, wqa)
    return x[:M]


# ---------------------------------------------------------------------------
# Deterministic parameter init (shapes from Att.__init__; weights pre-transposed
# to [in, out] so the kernel computes x @ W; GN affine = PyTorch default 1/0)
# ---------------------------------------------------------------------------
def _uniform(key, shape, fan_in):
    bound = 1.0 / np.sqrt(fan_in)
    return jax.random.uniform(key, shape, jnp.float32, -bound, bound)


def init_att_params(key, C):
    ks = jax.random.split(key, 8)
    p = {}
    p["wd1"] = _uniform(ks[0], (2, C), 2)                 # nn.Linear(2, C)
    p["bd1"] = _uniform(ks[1], (1, C), 2)
    p["wd2"] = _uniform(ks[2], (C, C), C)                 # Linear(C, C, GN)
    p["gd2"], p["bd2"] = jnp.ones((1, C)), jnp.zeros((1, C))
    p["wq"] = _uniform(ks[3], (C, C), C)                  # query Linear(C, C, GN)
    p["gq"], p["bq"] = jnp.ones((1, C)), jnp.zeros((1, C))
    wc1 = _uniform(ks[4], (3 * C, C), 3 * C)              # ctx[0] Linear(3C, C, GN)
    p["wc1d"], p["wc1q"], p["wc1x"] = wc1[:C], wc1[C:2 * C], wc1[2 * C:]
    p["gc1"], p["bc1"] = jnp.ones((1, C)), jnp.zeros((1, C))
    p["wc2"] = _uniform(ks[5], (C, C), C)                 # ctx[1] Linear(C, C, bias=False)
    p["wagt"] = _uniform(ks[6], (C, C), C)                # self.agt (bias=False)
    p["gng"], p["bng"] = jnp.ones((1, C)), jnp.zeros((1, C))   # self.norm
    p["wlin"] = _uniform(ks[7], (C, C), C)                # self.linear (act=False)
    p["glin"], p["blin"] = jnp.ones((1, C)), jnp.zeros((1, C))
    return p


# ---------------------------------------------------------------------------
# NumPy reference with the true gather / index_add semantics (mirrors torch)
# ---------------------------------------------------------------------------
def _gn_np(x, g, b):
    mean = x.mean(-1, keepdims=True)
    var = ((x - mean) ** 2).mean(-1, keepdims=True)
    return (x - mean) / np.sqrt(var + _EPS) * g + b


def att_reference_np(actors, ctrs, batch_id, p, dist_th):
    actors = np.asarray(actors, np.float64)
    ctrs = np.asarray(ctrs, np.float64)
    batch_id = np.asarray(batch_id)
    pn = {k: np.asarray(v, np.float64) for k, v in p.items()}
    delta = ctrs[:, None, :] - ctrs[None, :, :]
    dist = np.sqrt((delta ** 2).sum(-1))
    mask = (dist <= dist_th) & (batch_id[:, None] == batch_id[None, :])
    hi, wi = np.nonzero(mask)
    res = actors
    d = ctrs[hi] - ctrs[wi]
    d1 = np.maximum(d @ pn["wd1"] + pn["bd1"], 0.0)
    demb = np.maximum(_gn_np(d1 @ pn["wd2"], pn["gd2"], pn["bd2"]), 0.0)
    q = np.maximum(_gn_np(actors @ pn["wq"], pn["gq"], pn["bq"]), 0.0)[hi]
    xj = actors[wi]
    pre = demb @ pn["wc1d"] + q @ pn["wc1q"] + xj @ pn["wc1x"]
    h = np.maximum(_gn_np(pre, pn["gc1"], pn["bc1"]), 0.0)
    ctxp = h @ pn["wc2"]
    agt = actors @ pn["wagt"]
    np.add.at(agt, hi, ctxp)
    agt = np.maximum(_gn_np(agt, pn["gng"], pn["bng"]), 0.0)
    lin = _gn_np(agt @ pn["wlin"], pn["glin"], pn["blin"])
    return np.maximum(lin + res, 0.0)


if __name__ == "__main__":
    key = jax.random.PRNGKey(0)
    M = 24          # total actors (two scenes: 14 + 10); padded to 32 in-kernel
    C = 128         # n_actor feature size
    dist_th = 2.0   # config['actor2actor_dist']

    k_act, k_ctr, k_p0, k_p1 = jax.random.split(key, 4)
    actors = jax.random.normal(k_act, (M, C), jnp.float32) * 0.5
    ctrs = jax.random.uniform(k_ctr, (M, 2), jnp.float32, -3.0, 3.0)
    # actor_idcs: scene 0 -> actors [0..13], scene 1 -> actors [14..23]
    batch_id = jnp.array([0] * 14 + [1] * 10, dtype=jnp.int32)

    att_params = [init_att_params(k_p0, C), init_att_params(k_p1, C)]

    out = a2a_forward(actors, ctrs, batch_id, att_params, dist_th, tm=16)
    out = jax.block_until_ready(out)

    ref = np.asarray(actors, np.float64)
    for p in att_params:
        ref = att_reference_np(ref, ctrs, batch_id, p, dist_th)

    # Tolerance accounts for default single-pass MXU precision across ~13
    # chained matmuls + GroupNorms vs. the float64 reference; the bf16
    # pair-slab path (v6e/v7x) adds ~1-2% more.  Structural errors would show
    # up as O(1) discrepancies.
    tol = 1e-1 if _default_pair_dtype() == jnp.bfloat16 else 5e-2
    np.testing.assert_allclose(np.asarray(out), ref, rtol=tol, atol=tol)

    print("KERNEL_OK")
</pallas_src>

<mosaic_0001>
module attributes {stable_mosaic.version = 11 : i64} {
  func.func @kernel(%arg0: i32, %arg1: memref<32x3xf32, #tpu.memory_space<vmem>>, %arg2: memref<3x32xf32, #tpu.memory_space<vmem>>, %arg3: memref<32x128xf32, #tpu.memory_space<vmem>>, %arg4: memref<13x128xf32, #tpu.memory_space<vmem>>, %arg5: memref<768x128xf32, #tpu.memory_space<vmem>>, %arg6: memref<128x256xf32, #tpu.memory_space<vmem>>, %arg7: memref<16x128xf32, #tpu.memory_space<vmem>>) attributes {dimension_semantics = [#tpu.dimension_semantics<parallel>], iteration_bounds = array<i64: 2>, scalar_prefetch = 0 : i64, scratch_operands = 0 : i64, tpu.core_type = #tpu.core_type<tc>, window_params = [{pipeline_mode = #tpu.pipeline_mode<synchronous>, transform_indices = @transform_0, window_bounds = array<i64: 32, 3>}, {pipeline_mode = #tpu.pipeline_mode<synchronous>, transform_indices = @transform_1, window_bounds = array<i64: 3, 32>}, {pipeline_mode = #tpu.pipeline_mode<synchronous>, transform_indices = @transform_2, window_bounds = array<i64: 32, 128>}, {pipeline_mode = #tpu.pipeline_mode<synchronous>, transform_indices = @transform_3, window_bounds = array<i64: 13, 128>}, {pipeline_mode = #tpu.pipeline_mode<synchronous>, transform_indices = @transform_4, window_bounds = array<i64: 768, 128>}, {pipeline_mode = #tpu.pipeline_mode<synchronous>, transform_indices = @transform_5, window_bounds = array<i64: 128, 256>}, {transform_indices = @transform_6, window_bounds = array<i64: 16, 128>}]} {
    %c16_i32 = arith.constant 16 : i32
    %0 = arith.muli %arg0, %c16_i32 : i32
    %1 = tpu.assume_multiple %0, 16 : i32
    %c0 = arith.constant 0 : index
    %c0_0 = arith.constant 0 : index
    %2 = vector.load %arg4[%c0, %c0_0] : memref<13x128xf32, #tpu.memory_space<vmem>>, vector<13x128xf32>
    %3 = vector.extract_strided_slice %2 {offsets = [0, 0], sizes = [1, 128], strides = [1, 1]} : vector<13x128xf32> to vector<1x128xf32>
    %4 = vector.extract_strided_slice %2 {offsets = [1, 0], sizes = [1, 128], strides = [1, 1]} : vector<13x128xf32> to vector<1x128xf32>
    %5 = vector.extract_strided_slice %2 {offsets = [2, 0], sizes = [1, 128], strides = [1, 1]} : vector<13x128xf32> to vector<1x128xf32>
    %6 = vector.extract_strided_slice %2 {offsets = [3, 0], sizes = [1, 128], strides = [1, 1]} : vector<13x128xf32> to vector<1x128xf32>
    %7 = vector.extract_strided_slice %2 {offsets = [4, 0], sizes = [1, 128], strides = [1, 1]} : vector<13x128xf32> to vector<1x128xf32>
    %8 = vector.extract_strided_slice %2 {offsets = [5, 0], sizes = [1, 128], strides = [1, 1]} : vector<13x128xf32> to vector<1x128xf32>
    %9 = vector.extract_strided_slice %2 {offsets = [6, 0], sizes = [1, 128], strides = [1, 1]} : vector<13x128xf32> to vector<1x128xf32>
    %10 = vector.extract_strided_slice %2 {offsets = [7, 0], sizes = [1, 128], strides = [1, 1]} : vector<13x128xf32> to vector<1x128xf32>
    %11 = vector.extract_strided_slice %2 {offsets = [8, 0], sizes = [1, 128], strides = [1, 1]} : vector<13x128xf32> to vector<1x128xf32>
    %12 = vector.extract_strided_slice %2 {offsets = [9, 0], sizes = [1, 128], strides = [1, 1]} : vector<13x128xf32> to vector<1x128xf32>
    %13 = vector.extract_strided_slice %2 {offsets = [10, 0], sizes = [1, 128], strides = [1, 1]} : vector<13x128xf32> to vector<1x128xf32>
    %14 = vector.extract_strided_slice %2 {offsets = [11, 0], sizes = [1, 128], strides = [1, 1]} : vector<13x128xf32> to vector<1x128xf32>
    %15 = vector.extract_strided_slice %2 {offsets = [12, 0], sizes = [1, 128], strides = [1, 1]} : vector<13x128xf32> to vector<1x128xf32>
    %c0_1 = arith.constant 0 : index
    %c0_2 = arith.constant 0 : index
    %16 = vector.load %arg5[%c0_1, %c0_2] : memref<768x128xf32, #tpu.memory_space<vmem>>, vector<128x128xf32>
    %c128 = arith.constant 128 : index
    %c0_3 = arith.constant 0 : index
    %17 = vector.load %arg5[%c128, %c0_3] : memref<768x128xf32, #tpu.memory_space<vmem>>, vector<128x128xf32>
    %c256 = arith.constant 256 : index
    %c0_4 = arith.constant 0 : index
    %18 = vector.load %arg5[%c256, %c0_4] : memref<768x128xf32, #tpu.memory_space<vmem>>, vector<128x128xf32>
    %c384 = arith.constant 384 : index
    %c0_5 = arith.constant 0 : index
    %19 = vector.load %arg5[%c384, %c0_5] : memref<768x128xf32, #tpu.memory_space<vmem>>, vector<128x128xf32>
    %c512 = arith.constant 512 : index
    %c0_6 = arith.constant 0 : index
    %20 = vector.load %arg5[%c512, %c0_6] : memref<768x128xf32, #tpu.memory_space<vmem>>, vector<128x128xf32>
    %c640 = arith.constant 640 : index
    %c0_7 = arith.constant 0 : index
    %21 = vector.load %arg5[%c640, %c0_7] : memref<768x128xf32, #tpu.memory_space<vmem>>, vector<128x128xf32>
    %22 = arith.index_cast %1 : i32 to index
    %c0_8 = arith.constant 0 : index
    %23 = vector.load %arg1[%22, %c0_8] : memref<32x3xf32, #tpu.memory_space<vmem>>, vector<16x3xf32>
    %24 = vector.extract_strided_slice %23 {offsets = [0, 0], sizes = [16, 1], strides = [1, 1]} : vector<16x3xf32> to vector<16x1xf32>
    %25 = vector.extract_strided_slice %23 {offsets = [0, 1], sizes = [16, 1], strides = [1, 1]} : vector<16x3xf32> to vector<16x1xf32>
    %26 = vector.extract_strided_slice %23 {offsets = [0, 2], sizes = [16, 1], strides = [1, 1]} : vector<16x3xf32> to vector<16x1xf32>
    %c0_9 = arith.constant 0 : index
    %c0_10 = arith.constant 0 : index
    %27 = vector.load %arg2[%c0_9, %c0_10] : memref<3x32xf32, #tpu.memory_space<vmem>>, vector<3x32xf32>
    %28 = vector.extract_strided_slice %27 {offsets = [0, 0], sizes = [1, 32], strides = [1, 1]} : vector<3x32xf32> to vector<1x32xf32>
    %29 = vector.extract_strided_slice %27 {offsets = [1, 0], sizes = [1, 32], strides = [1, 1]} : vector<3x32xf32> to vector<1x32xf32>
    %30 = vector.extract_strided_slice %27 {offsets = [2, 0], sizes = [1, 32], strides = [1, 1]} : vector<3x32xf32> to vector<1x32xf32>
    %31 = vector.broadcast %24 : vector<16x1xf32> to vector<16x32xf32>
    %32 = vector.broadcast %28 : vector<1x32xf32> to vector<16x32xf32>
    %33 = arith.subf %31, %32 : vector<16x32xf32>
    %34 = vector.broadcast %25 : vector<16x1xf32> to vector<16x32xf32>
    %35 = vector.broadcast %29 : vector<1x32xf32> to vector<16x32xf32>
    %36 = arith.subf %34, %35 : vector<16x32xf32>
    %37 = arith.mulf %33, %33 : vector<16x32xf32>
    %38 = arith.mulf %36, %36 : vector<16x32xf32>
    %39 = arith.addf %37, %38 : vector<16x32xf32>
    %cst = arith.constant 4.000000e+00 : f32
    %40 = vector.broadcast %cst : f32 to vector<16x32xf32>
    %41 = arith.cmpf ole, %39, %40 : vector<16x32xf32>
    %42 = vector.broadcast %26 : vector<16x1xf32> to vector<16x32xf32>
    %43 = vector.broadcast %30 : vector<1x32xf32> to vector<16x32xf32>
    %44 = arith.cmpf oeq, %42, %43 : vector<16x32xf32>
    %45 = arith.andi %41, %44 : vector<16x32xi1>
    %cst_11 = arith.constant 1.000000e+00 : f32
    %cst_12 = arith.constant 0.000000e+00 : f32
    %46 = vector.broadcast %cst_11 : f32 to vector<16x32xf32>
    %47 = vector.broadcast %cst_12 : f32 to vector<16x32xf32>
    %48 = arith.select %45, %46, %47 : vector<16x32xi1>, vector<16x32xf32>
    %49 = vector.shape_cast %48 : vector<16x32xf32> to vector<16x32x1xf32>
    %c0_13 = arith.constant 0 : index
    %c0_14 = arith.constant 0 : index
    %50 = vector.load %arg3[%c0_13, %c0_14] : memref<32x128xf32, #tpu.memory_space<vmem>>, vector<32x128xf32>
    %51 = arith.index_cast %1 : i32 to index
    %c0_15 = arith.constant 0 : index
    %52 = vector.load %arg3[%51, %c0_15] : memref<32x128xf32, #tpu.memory_space<vmem>>, vector<16x128xf32>
    %c0_16 = arith.constant 0 : index
    %c0_17 = arith.constant 0 : index
    %53 = vector.load %arg1[%c0_16, %c0_17] : memref<32x3xf32, #tpu.memory_space<vmem>>, vector<32x3xf32>
    %54 = vector.extract_strided_slice %53 {offsets = [0, 0], sizes = [32, 1], strides = [1, 1]} : vector<32x3xf32> to vector<32x1xf32>
    %55 = vector.broadcast %54 : vector<32x1xf32> to vector<32x128xf32>
    %56 = vector.broadcast %3 : vector<1x128xf32> to vector<32x128xf32>
    %57 = arith.mulf %55, %56 : vector<32x128xf32>
    %58 = vector.extract_strided_slice %53 {offsets = [0, 1], sizes = [32, 1], strides = [1, 1]} : vector<32x3xf32> to vector<32x1xf32>
    %59 = vector.broadcast %58 : vector<32x1xf32> to vector<32x128xf32>
    %60 = vector.broadcast %4 : vector<1x128xf32> to vector<32x128xf32>
    %61 = arith.mulf %59, %60 : vector<32x128xf32>
    %62 = arith.addf %57, %61 : vector<32x128xf32>
    %cst_18 = arith.constant 0.000000e+00 : f32
    %63 = vector.broadcast %cst_18 : f32 to vector<32x128xf32>
    %64 = arith.subf %63, %62 : vector<32x128xf32>
    %65 = vector.broadcast %24 : vector<16x1xf32> to vector<16x128xf32>
    %66 = vector.broadcast %3 : vector<1x128xf32> to vector<16x128xf32>
    %67 = arith.mulf %65, %66 : vector<16x128xf32>
    %68 = vector.broadcast %25 : vector<16x1xf32> to vector<16x128xf32>
    %69 = vector.broadcast %4 : vector<1x128xf32> to vector<16x128xf32>
    %70 = arith.mulf %68, %69 : vector<16x128xf32>
    %71 = arith.addf %67, %70 : vector<16x128xf32>
    %72 = vector.broadcast %5 : vector<1x128xf32> to vector<16x128xf32>
    %73 = arith.addf %71, %72 : vector<16x128xf32>
    %74 = vector.shape_cast %73 : vector<16x128xf32> to vector<16x1x128xf32>
    %75 = vector.shape_cast %64 : vector<32x128xf32> to vector<1x32x128xf32>
    %76 = vector.broadcast %74 : vector<16x1x128xf32> to vector<16x32x128xf32>
    %77 = vector.broadcast %75 : vector<1x32x128xf32> to vector<16x32x128xf32>
    %78 = arith.addf %76, %77 : vector<16x32x128xf32>
    %cst_19 = arith.constant 0.000000e+00 : f32
    %79 = vector.broadcast %cst_19 : f32 to vector<16x32x128xf32>
    %80 = arith.maximumf %78, %79 : vector<16x32x128xf32>
    %81 = vector.shape_cast %80 : vector<16x32x128xf32> to vector<512x128xf32>
    %cst_20 = arith.constant dense<0.000000e+00> : vector<512x128xf32>
    %82 = tpu.matmul %81, %16, %cst_20 {dimension_numbers = #tpu.dot_dimension_numbers<[1], [0], [0], [1], [0, 0, 1, 1], [], []>} : vector<512x128xf32>, vector<128x128xf32>, vector<512x128xf32> -> vector<512x128xf32>
    %cst_21 = arith.constant dense<0.000000e+00> : vector<512xf32>
    %83 = vector.multi_reduction <add>, %82, %cst_21 [1] : vector<512x128xf32> to vector<512xf32>
    %84 = vector.shape_cast %83 : vector<512xf32> to vector<512x1xf32>
    %85 = arith.mulf %82, %82 : vector<512x128xf32>
    %cst_22 = arith.constant dense<0.000000e+00> : vector<512xf32>
    %86 = vector.multi_reduction <add>, %85, %cst_22 [1] : vector<512x128xf32> to vector<512xf32>
    %87 = vector.shape_cast %86 : vector<512xf32> to vector<512x1xf32>
    %cst_23 = arith.constant 7.812500e-03 : f32
    %88 = vector.broadcast %cst_23 : f32 to vector<512x1xf32>
    %89 = arith.mulf %84, %88 : vector<512x1xf32>
    %cst_24 = arith.constant 7.812500e-03 : f32
    %90 = vector.broadcast %cst_24 : f32 to vector<512x1xf32>
    %91 = arith.mulf %87, %90 : vector<512x1xf32>
    %92 = arith.mulf %89, %89 : vector<512x1xf32>
    %93 = arith.subf %91, %92 : vector<512x1xf32>
    %cst_25 = arith.constant 0.000000e+00 : f32
    %94 = vector.broadcast %cst_25 : f32 to vector<512x1xf32>
    %95 = arith.maximumf %93, %94 : vector<512x1xf32>
    %96 = vector.broadcast %89 : vector<512x1xf32> to vector<512x128xf32>
    %97 = arith.subf %82, %96 : vector<512x128xf32>
    %cst_26 = arith.constant 9.99999974E-6 : f32
    %98 = vector.broadcast %cst_26 : f32 to vector<512x1xf32>
    %99 = arith.addf %95, %98 : vector<512x1xf32>
    %100 = math.rsqrt %99 : vector<512x1xf32>
    %101 = vector.broadcast %100 : vector<512x1xf32> to vector<512x128xf32>
    %102 = arith.mulf %97, %101 : vector<512x128xf32>
    %103 = vector.broadcast %6 : vector<1x128xf32> to vector<512x128xf32>
    %104 = arith.mulf %102, %103 : vector<512x128xf32>
    %105 = vector.broadcast %7 : vector<1x128xf32> to vector<512x128xf32>
    %106 = arith.addf %104, %105 : vector<512x128xf32>
    %cst_27 = arith.constant 0.000000e+00 : f32
    %107 = vector.broadcast %cst_27 : f32 to vector<512x128xf32>
    %108 = arith.maximumf %106, %107 : vector<512x128xf32>
    %c0_28 = arith.constant 0 : index
    %c0_29 = arith.constant 0 : index
    %109 = vector.load %arg6[%c0_28, %c0_29] : memref<128x256xf32, #tpu.memory_space<vmem>>, vector<128x256xf32>
    %cst_30 = arith.constant dense<0.000000e+00> : vector<16x256xf32>
    %110 = tpu.matmul %52, %109, %cst_30 {dimension_numbers = #tpu.dot_dimension_numbers<[1], [0], [0], [1], [0, 0, 1, 1], [], []>} : vector<16x128xf32>, vector<128x256xf32>, vector<16x256xf32> -> vector<16x256xf32>
    %111 = vector.extract_strided_slice %110 {offsets = [0, 0], sizes = [16, 128], strides = [1, 1]} : vector<16x256xf32> to vector<16x128xf32>
    %cst_31 = arith.constant dense<0.000000e+00> : vector<16xf32>
    %112 = vector.multi_reduction <add>, %111, %cst_31 [1] : vector<16x128xf32> to vector<16xf32>
    %113 = vector.shape_cast %112 : vector<16xf32> to vector<16x1xf32>
    %114 = arith.mulf %111, %111 : vector<16x128xf32>
    %cst_32 = arith.constant dense<0.000000e+00> : vector<16xf32>
    %115 = vector.multi_reduction <add>, %114, %cst_32 [1] : vector<16x128xf32> to vector<16xf32>
    %116 = vector.shape_cast %115 : vector<16xf32> to vector<16x1xf32>
    %cst_33 = arith.constant 7.812500e-03 : f32
    %117 = vector.broadcast %cst_33 : f32 to vector<16x1xf32>
    %118 = arith.mulf %113, %117 : vector<16x1xf32>
    %cst_34 = arith.constant 7.812500e-03 : f32
    %119 = vector.broadcast %cst_34 : f32 to vector<16x1xf32>
    %120 = arith.mulf %116, %119 : vector<16x1xf32>
    %121 = arith.mulf %118, %118 : vector<16x1xf32>
    %122 = arith.subf %120, %121 : vector<16x1xf32>
    %cst_35 = arith.constant 0.000000e+00 : f32
    %123 = vector.broadcast %cst_35 : f32 to vector<16x1xf32>
    %124 = arith.maximumf %122, %123 : vector<16x1xf32>
    %125 = vector.broadcast %118 : vector<16x1xf32> to vector<16x128xf32>
    %126 = arith.subf %111, %125 : vector<16x128xf32>
    %cst_36 = arith.constant 9.99999974E-6 : f32
    %127 = vector.broadcast %cst_36 : f32 to vector<16x1xf32>
    %128 = arith.addf %124, %127 : vector<16x1xf32>
    %129 = math.rsqrt %128 : vector<16x1xf32>
    %130 = vector.broadcast %129 : vector<16x1xf32> to vector<16x128xf32>
    %131 = arith.mulf %126, %130 : vector<16x128xf32>
    %132 = vector.broadcast %8 : vector<1x128xf32> to vector<16x128xf32>
    %133 = arith.mulf %131, %132 : vector<16x128xf32>
    %134 = vector.broadcast %9 : vector<1x128xf32> to vector<16x128xf32>
    %135 = arith.addf %133, %134 : vector<16x128xf32>
    %cst_37 = arith.constant 0.000000e+00 : f32
    %136 = vector.broadcast %cst_37 : f32 to vector<16x128xf32>
    %137 = arith.maximumf %135, %136 : vector<16x128xf32>
    %138 = vector.extract_strided_slice %110 {offsets = [0, 128], sizes = [16, 128], strides = [1, 1]} : vector<16x256xf32> to vector<16x128xf32>
    %cst_38 = arith.constant dense<0.000000e+00> : vector<16x128xf32>
    %139 = tpu.matmul %137, %18, %cst_38 {dimension_numbers = #tpu.dot_dimension_numbers<[1], [0], [0], [1], [0, 0, 1, 1], [], []>} : vector<16x128xf32>, vector<128x128xf32>, vector<16x128xf32> -> vector<16x128xf32>
    %cst_39 = arith.constant dense<0.000000e+00> : vector<32x128xf32>
    %140 = tpu.matmul %50, %19, %cst_39 {dimension_numbers = #tpu.dot_dimension_numbers<[1], [0], [0], [1], [0, 0, 1, 1], [], []>} : vector<32x128xf32>, vector<128x128xf32>, vector<32x128xf32> -> vector<32x128xf32>
    %cst_40 = arith.constant dense<0.000000e+00> : vector<512x128xf32>
    %141 = tpu.matmul %108, %17, %cst_40 {dimension_numbers = #tpu.dot_dimension_numbers<[1], [0], [0], [1], [0, 0, 1, 1], [], []>} : vector<512x128xf32>, vector<128x128xf32>, vector<512x128xf32> -> vector<512x128xf32>
    %142 = vector.shape_cast %141 : vector<512x128xf32> to vector<16x32x128xf32>
    %143 = vector.shape_cast %139 : vector<16x128xf32> to vector<16x1x128xf32>
    %144 = vector.broadcast %143 : vector<16x1x128xf32> to vector<16x32x128xf32>
    %145 = arith.addf %142, %144 : vector<16x32x128xf32>
    %146 = vector.shape_cast %140 : vector<32x128xf32> to vector<1x32x128xf32>
    %147 = vector.broadcast %146 : vector<1x32x128xf32> to vector<16x32x128xf32>
    %148 = arith.addf %145, %147 : vector<16x32x128xf32>
    %149 = vector.shape_cast %148 : vector<16x32x128xf32> to vector<512x128xf32>
    %cst_41 = arith.constant dense<0.000000e+00> : vector<512xf32>
    %150 = vector.multi_reduction <add>, %149, %cst_41 [1] : vector<512x128xf32> to vector<512xf32>
    %151 = vector.shape_cast %150 : vector<512xf32> to vector<512x1xf32>
    %152 = arith.mulf %149, %149 : vector<512x128xf32>
    %cst_42 = arith.constant dense<0.000000e+00> : vector<512xf32>
    %153 = vector.multi_reduction <add>, %152, %cst_42 [1] : vector<512x128xf32> to vector<512xf32>
    %154 = vector.shape_cast %153 : vector<512xf32> to vector<512x1xf32>
    %cst_43 = arith.constant 7.812500e-03 : f32
    %155 = vector.broadcast %cst_43 : f32 to vector<512x1xf32>
    %156 = arith.mulf %151, %155 : vector<512x1xf32>
    %cst_44 = arith.constant 7.812500e-03 : f32
    %157 = vector.broadcast %cst_44 : f32 to vector<512x1xf32>
    %158 = arith.mulf %154, %157 : vector<512x1xf32>
    %159 = arith.mulf %156, %156 : vector<512x1xf32>
    %160 = arith.subf %158, %159 : vector<512x1xf32>
    %cst_45 = arith.constant 0.000000e+00 : f32
    %161 = vector.broadcast %cst_45 : f32 to vector<512x1xf32>
    %162 = arith.maximumf %160, %161 : vector<512x1xf32>
    %163 = vector.broadcast %156 : vector<512x1xf32> to vector<512x128xf32>
    %164 = arith.subf %149, %163 : vector<512x128xf32>
    %cst_46 = arith.constant 9.99999974E-6 : f32
    %165 = vector.broadcast %cst_46 : f32 to vector<512x1xf32>
    %166 = arith.addf %162, %165 : vector<512x1xf32>
    %167 = math.rsqrt %166 : vector<512x1xf32>
    %168 = vector.broadcast %167 : vector<512x1xf32> to vector<512x128xf32>
    %169 = arith.mulf %164, %168 : vector<512x128xf32>
    %170 = vector.broadcast %10 : vector<1x128xf32> to vector<512x128xf32>
    %171 = arith.mulf %169, %170 : vector<512x128xf32>
    %172 = vector.broadcast %11 : vector<1x128xf32> to vector<512x128xf32>
    %173 = arith.addf %171, %172 : vector<512x128xf32>
    %cst_47 = arith.constant 0.000000e+00 : f32
    %174 = vector.broadcast %cst_47 : f32 to vector<512x128xf32>
    %175 = arith.maximumf %173, %174 : vector<512x128xf32>
    %176 = vector.shape_cast %175 : vector<512x128xf32> to vector<16x32x128xf32>
    %177 = vector.broadcast %49 : vector<16x32x1xf32> to vector<16x32x128xf32>
    %178 = arith.mulf %176, %177 : vector<16x32x128xf32>
    %cst_48 = arith.constant dense<0.000000e+00> : vector<16x128xf32>
    %179 = vector.multi_reduction <add>, %178, %cst_48 [1] : vector<16x32x128xf32> to vector<16x128xf32>
    %cst_49 = arith.constant dense<0.000000e+00> : vector<16x128xf32>
    %180 = tpu.matmul %179, %20, %cst_49 {dimension_numbers = #tpu.dot_dimension_numbers<[1], [0], [0], [1], [0, 0, 1, 1], [], []>} : vector<16x128xf32>, vector<128x128xf32>, vector<16x128xf32> -> vector<16x128xf32>
    %181 = arith.addf %138, %180 : vector<16x128xf32>
    %cst_50 = arith.constant dense<0.000000e+00> : vector<16xf32>
    %182 = vector.multi_reduction <add>, %181, %cst_50 [1] : vector<16x128xf32> to vector<16xf32>
    %183 = vector.shape_cast %182 : vector<16xf32> to vector<16x1xf32>
    %184 = arith.mulf %181, %181 : vector<16x128xf32>
    %cst_51 = arith.constant dense<0.000000e+00> : vector<16xf32>
    %185 = vector.multi_reduction <add>, %184, %cst_51 [1] : vector<16x128xf32> to vector<16xf32>
    %186 = vector.shape_cast %185 : vector<16xf32> to vector<16x1xf32>
    %cst_52 = arith.constant 7.812500e-03 : f32
    %187 = vector.broadcast %cst_52 : f32 to vector<16x1xf32>
    %188 = arith.mulf %183, %187 : vector<16x1xf32>
    %cst_53 = arith.constant 7.812500e-03 : f32
    %189 = vector.broadcast %cst_53 : f32 to vector<16x1xf32>
    %190 = arith.mulf %186, %189 : vector<16x1xf32>
    %191 = arith.mulf %188, %188 : vector<16x1xf32>
    %192 = arith.subf %190, %191 : vector<16x1xf32>
    %cst_54 = arith.constant 0.000000e+00 : f32
    %193 = vector.broadcast %cst_54 : f32 to vector<16x1xf32>
    %194 = arith.maximumf %192, %193 : vector<16x1xf32>
    %195 = vector.broadcast %188 : vector<16x1xf32> to vector<16x128xf32>
    %196 = arith.subf %181, %195 : vector<16x128xf32>
    %cst_55 = arith.constant 9.99999974E-6 : f32
    %197 = vector.broadcast %cst_55 : f32 to vector<16x1xf32>
    %198 = arith.addf %194, %197 : vector<16x1xf32>
    %199 = math.rsqrt %198 : vector<16x1xf32>
    %200 = vector.broadcast %199 : vector<16x1xf32> to vector<16x128xf32>
    %201 = arith.mulf %196, %200 : vector<16x128xf32>
    %202 = vector.broadcast %12 : vector<1x128xf32> to vector<16x128xf32>
    %203 = arith.mulf %201, %202 : vector<16x128xf32>
    %204 = vector.broadcast %13 : vector<1x128xf32> to vector<16x128xf32>
    %205 = arith.addf %203, %204 : vector<16x128xf32>
    %cst_56 = arith.constant 0.000000e+00 : f32
    %206 = vector.broadcast %cst_56 : f32 to vector<16x128xf32>
    %207 = arith.maximumf %205, %206 : vector<16x128xf32>
    %cst_57 = arith.constant dense<0.000000e+00> : vector<16x128xf32>
    %208 = tpu.matmul %207, %21, %cst_57 {dimension_numbers = #tpu.dot_dimension_numbers<[1], [0], [0], [1], [0, 0, 1, 1], [], []>} : vector<16x128xf32>, vector<128x128xf32>, vector<16x128xf32> -> vector<16x128xf32>
    %cst_58 = arith.constant dense<0.000000e+00> : vector<16xf32>
    %209 = vector.multi_reduction <add>, %208, %cst_58 [1] : vector<16x128xf32> to vector<16xf32>
    %210 = vector.shape_cast %209 : vector<16xf32> to vector<16x1xf32>
    %211 = arith.mulf %208, %208 : vector<16x128xf32>
    %cst_59 = arith.constant dense<0.000000e+00> : vector<16xf32>
    %212 = vector.multi_reduction <add>, %211, %cst_59 [1] : vector<16x128xf32> to vector<16xf32>
    %213 = vector.shape_cast %212 : vector<16xf32> to vector<16x1xf32>
    %cst_60 = arith.constant 7.812500e-03 : f32
    %214 = vector.broadcast %cst_60 : f32 to vector<16x1xf32>
    %215 = arith.mulf %210, %214 : vector<16x1xf32>
    %cst_61 = arith.constant 7.812500e-03 : f32
    %216 = vector.broadcast %cst_61 : f32 to vector<16x1xf32>
    %217 = arith.mulf %213, %216 : vector<16x1xf32>
    %218 = arith.mulf %215, %215 : vector<16x1xf32>
    %219 = arith.subf %217, %218 : vector<16x1xf32>
    %cst_62 = arith.constant 0.000000e+00 : f32
    %220 = vector.broadcast %cst_62 : f32 to vector<16x1xf32>
    %221 = arith.maximumf %219, %220 : vector<16x1xf32>
    %222 = vector.broadcast %215 : vector<16x1xf32> to vector<16x128xf32>
    %223 = arith.subf %208, %222 : vector<16x128xf32>
    %cst_63 = arith.constant 9.99999974E-6 : f32
    %224 = vector.broadcast %cst_63 : f32 to vector<16x1xf32>
    %225 = arith.addf %221, %224 : vector<16x1xf32>
    %226 = math.rsqrt %225 : vector<16x1xf32>
    %227 = vector.broadcast %226 : vector<16x1xf32> to vector<16x128xf32>
    %228 = arith.mulf %223, %227 : vector<16x128xf32>
    %229 = vector.broadcast %14 : vector<1x128xf32> to vector<16x128xf32>
    %230 = arith.mulf %228, %229 : vector<16x128xf32>
    %231 = vector.broadcast %15 : vector<1x128xf32> to vector<16x128xf32>
    %232 = arith.addf %230, %231 : vector<16x128xf32>
    %233 = arith.addf %232, %52 : vector<16x128xf32>
    %cst_64 = arith.constant 0.000000e+00 : f32
    %234 = vector.broadcast %cst_64 : f32 to vector<16x128xf32>
    %235 = arith.maximumf %233, %234 : vector<16x128xf32>
    %c0_65 = arith.constant 0 : index
    %c0_66 = arith.constant 0 : index
    %236 = vector.load %arg7[%c0_65, %c0_66] : memref<16x128xf32, #tpu.memory_space<vmem>>, vector<16x128xf32>
    tpu.vector_store %arg7[%c0_65, %c0_66], %235 {strides = array<i32>} : memref<16x128xf32, #tpu.memory_space<vmem>>, vector<16x128xf32>,
    return
  }
  func.func @transform_0(%arg0: i32) -> (i32, i32) {
    %c0_i32 = arith.constant 0 : i32
    %c0_i32_0 = arith.constant 0 : i32
    %c0_i32_1 = arith.constant 0 : i32
    return %c0_i32, %c0_i32_0 : i32, i32
  }
  func.func @transform_1(%arg0: i32) -> (i32, i32) {
    %c0_i32 = arith.constant 0 : i32
    %c0_i32_0 = arith.constant 0 : i32
    %c0_i32_1 = arith.constant 0 : i32
    return %c0_i32, %c0_i32_0 : i32, i32
  }
  func.func @transform_2(%arg0: i32) -> (i32, i32) {
    %c0_i32 = arith.constant 0 : i32
    %c0_i32_0 = arith.constant 0 : i32
    %c0_i32_1 = arith.constant 0 : i32
    return %c0_i32, %c0_i32_0 : i32, i32
  }
  func.func @transform_3(%arg0: i32) -> (i32, i32) {
    %c0_i32 = arith.constant 0 : i32
    %c0_i32_0 = arith.constant 0 : i32
    %c0_i32_1 = arith.constant 0 : i32
    return %c0_i32, %c0_i32_0 : i32, i32
  }
  func.func @transform_4(%arg0: i32) -> (i32, i32) {
    %c0_i32 = arith.constant 0 : i32
    %c0_i32_0 = arith.constant 0 : i32
    %c0_i32_1 = arith.constant 0 : i32
    return %c0_i32, %c0_i32_0 : i32, i32
  }
  func.func @transform_5(%arg0: i32) -> (i32, i32) {
    %c0_i32 = arith.constant 0 : i32
    %c0_i32_0 = arith.constant 0 : i32
    %c0_i32_1 = arith.constant 0 : i32
    return %c0_i32, %c0_i32_0 : i32, i32
  }
  func.func @transform_6(%arg0: i32) -> (i32, i32) {
    %c0_i32 = arith.constant 0 : i32
    %c0_i32_0 = arith.constant 0 : i32
    return %arg0, %c0_i32 : i32, i32
  }
}

</mosaic_0001>

<bundles_post_ra>
// kernel: tpu_custom_call.1
= control target key start
LH: loop header
LB: loop body
LE: loop exit
PB: predicated region body
PF: predicated region fallthrough
CT: control target
= control target key end

     0   :  { %11 = vsyncpa [#allocation3], 0  ;;  %s10152_s0 = inlined_call_operand.vmem [shape: f32[32,3], index: 0, kind: input, shape index: {}]   ;;  %s10153_s1 = inlined_call_operand.vmem [shape: f32[3,32], index: 1, kind: input, shape index: {}]   ;;  %s10154_s2 = inlined_call_operand.vmem [shape: f32[32,128], index: 2, kind: input, shape index: {}]   ;;  %s10155_s3 = inlined_call_operand.hbm [shape: f32[13,128], index: 3, kind: input, shape index: {}]   ;;  %s10156_s4 = inlined_call_operand.hbm [shape: f32[768,128], index: 4, kind: input, shape index: {}]   ;;  %s10157_s5 = inlined_call_operand.hbm [shape: f32[128,256], index: 5, kind: input, shape index: {}]   ;;  %s10158_s6 = inlined_call_operand.hbm [shape: f32[32,128], index: 6, kind: output, shape index: {}]  }
   0x1   :  { %12 = vsyncpa [#allocation6], 0 }
   0x2   :  { %13 = vsyncpa [#allocation4], 0 }
   0x3   :  { %15 = vsyncpa [#allocation4 + $0x1], 0  ;;  %s6508_s21 = smov 0   ;;  %s6510_s22 = smov 0  }
   0x4   :  { %s6512_s23 = smov 0   ;;  %s6514_s24 = smov 0  }
   0x5 LB: > { %s6529_s25 = sadd.s32 4294967295, %s6456_s24   ;;  %s5296_s26 = sadd.s32 4294967294, %s6456_s24   ;;  %s6456_s24 = sphi %s6514_s24, %s10868_s24   ;;  %s6452_s23 = sphi %s6512_s23, %s10867_s23   ;;  %s6448_s22 = sphi %s6510_s22, %s10866_s22   ;;  %s6444_s21 = sphi %s6508_s21, %s10865_s21  }
   0x6   : > { %s6533_s27 = sadd.s32 1, %s6456_s24   ;;  %s154_s28 = sadd.s32 1, %s6452_s23 }
   0x7   : > { %s151_s29 = ssub.s32 %s6456_s24, %s6533_s27  ;;  %p164_p0 = scmp.ne.s32.totalorder %s6452_s23, %s6448_s22 }
   0x8   : > { %p152_p1 = scmp.eq.s32.totalorder %s151_s29, 0  ;;  %p165_p2 = scmp.eq.s32.totalorder %s6529_s25, 1 }
   0x9   : > { %p170_p3 = scmp.ne.s32.totalorder %s6448_s22, %s6444_s21  ;;  %p171_p4 = scmp.eq.s32.totalorder %s5296_s26, 1 }
   0xa   : > { %s6544_s30 = scalar_select %p152_p1, %s6452_s23, %s154_s28  }
   0xb   : > { %p6546_p5 = por %p165_p2, %p164_p0  ;;  %p6550_p6 = por %p171_p4, %p170_p3 }
   0xc   : > { %p5297_p7 = scmp.ge.s32.totalorder %s6456_s24, 1  ;;  %p178_p8 = scmp.lt.s32.totalorder %s6456_s24, 3 }
   0xd   : > { %s10307_s7 = scalar_select %p6546_p5, 1, 0 }
   0xe   : > { %s10308_s8 = scalar_select %p6550_p6, 1, 0 }
   0xf   : > { %p10159_p9 = scmp.eq.s32.totalorder %s6529_s25, 0  ;;  %p6557_p10 = pnand %p5297_p7, %p178_p8 }
  0x10   : > { %s6458_s10 = smov [#allocation5]   ;;  %s6459_s13 = smov [#allocation2]  }
  0x11   : > { %p5960_p11 = pneg %p6557_p10  ;;  %s212_s11 = sshll.u32 %s6458_s10, 4  ;;  %s213_s11 = int_to_ptr.vmem [resolvable:$true] %s212_s11 }
  0x12   : > { %s199_s14 = sshll.u32 %s6459_s13, 4  ;;  %s6460_s15 = smov [#allocation7]   ;;  %s200_s14 = int_to_ptr.vmem [resolvable:$true] %s199_s14 }
  0x13   : > { %p6565_p12 = pnand %p10159_p9, %p5960_p11  ;;  %s225_s16 = sshll.u32 %s6460_s15, 4  ;;  %s226_s16 = int_to_ptr.vmem [resolvable:$true] %s225_s16 }
  0x14   : > { %s6321_s17 = scalar_lea.vmem %s213_s11, 12288  ;;  %p6329_p3 = scmp.lt.s32.totalorder %s213_s11, %s213_s11 }
  0x15   : > { %p6312_p13 = pneg %p6565_p12  ;;  %p6322_p0 = scmp.ne.s32.totalorder %s213_s11, %s6321_s17 }
  0x16   : > { %p6330_p4 = scmp.lt.s32.totalorder %s6321_s17, %s6321_s17 }
  0x17   : > { %p6324_p1 = pnand %p6322_p0, %p6312_p13 }
  0x18   : > { %p6331_p7 = por %p6330_p4, %p6329_p3 }
  0x19   : > { %p6325_p2 = pneg %p6324_p1 }
  0x1b   : > { %p6332_p8 = pnand %p6331_p7, %p6325_p2 }
  0x1d   : > { %6335 = shalt.err (!%p6332_p8)
}
  0x1e   : > { %s6461_s18 = smov 128   ;;  %s6462_s19 = smov 8  }
  0x1f   : > { %5966 = dma.hbm_to_vmem [thread:$0]  (!%p6565_p12), %s10156_s4, 12288, %s213_s11, [#allocation6], %s6461_s18, %s6461_s18, %s6462_s19  }
  0x20   : > { %s6347_s28 = scalar_lea.vmem %s200_s14, 256  ;;  %p6355_p9 = scmp.lt.s32.totalorder %s200_s14, %s200_s14 }
  0x21   : > { %p6348_p11 = scmp.ne.s32.totalorder %s200_s14, %s6347_s28  ;;  %p6356_p6 = scmp.lt.s32.totalorder %s6347_s28, %s6347_s28 }
  0x23   : > { %p6350_p0 = pnand %p6348_p11, %p6312_p13  ;;  %p6357_p3 = por %p6356_p6, %p6355_p9 }
  0x25   : > { %p6351_p1 = pneg %p6350_p0 }
  0x27   : > { %p6358_p2 = pnand %p6357_p3, %p6351_p1 }
  0x29   : > { %6361 = shalt.err (!%p6358_p2)
}
  0x2a   : > { %5963 = dma.hbm_to_vmem [thread:$0]  (!%p6565_p12), %s10155_s3, 256, %s200_s14, [#allocation3], %s6461_s18, %s6461_s18, %s6462_s19  }
  0x2b   : > { %s6373_s11 = scalar_lea.vmem %s226_s16, 4096  ;;  %p6381_p11 = scmp.lt.s32.totalorder %s226_s16, %s226_s16 }
  0x2c   : > { %p6374_p4 = scmp.ne.s32.totalorder %s226_s16, %s6373_s11  ;;  %p6382_p0 = scmp.lt.s32.totalorder %s6373_s11, %s6373_s11 }
  0x2e   : > { %p6376_p7 = pnand %p6374_p4, %p6312_p13  ;;  %p6383_p5 = por %p6382_p0, %p6381_p11 }
  0x30   : > { %p6377_p8 = pneg %p6376_p7 }
  0x32   : > { %p6384_p6 = pnand %p6383_p5, %p6377_p8 }
  0x34   : > { %6387 = shalt.err (!%p6384_p6)
}
  0x35   : > { %s6463_s13 = smov 256   ;;  %s6464_s15 = smov 16  }
  0x36   : > { %5969 = dma.hbm_to_vmem [thread:$0]  (!%p6565_p12), %s10157_s5, 4096, %s226_s16, [#allocation6], %s6463_s13, %s6463_s13, %s6464_s15  }
  0x37   : > { %241 = sbr.rel (%p6557_p10) target bundleno = 2245 (0x8c5), region = 44 }
  0x3c   : > { %p10311_p9 = scmp.eq.s32.totalorder %s6529_s25, 0 }
  0x3e   : > { %6431 = dma.done.wait (%p10311_p9), [#allocation3], 256   ;;  %p10312_p13 = pmov %p10311_p9 }
  0x3f   : > { %p10313_p5 = pmov %p10311_p9 }
  0x40   : > { %6433 = vsyncadd (%p10312_p13), [#allocation3], 4294967040 }
  0x41   : > { %6435 = dma.done.wait (%p10313_p5), [#allocation6], 16384   ;;  %p10314_p1 = pmov %p10313_p5 }
  0x42   : > { %v6465_v0 = vmov 0   ;;  %s5306_s12 = sshll.u32 %s6529_s25, 4  ;;  %v745_v1 = vld [vmem:[%s10152_s0] sm:$0xff]  ;;  %v293_v3 = vld [vmem:[#allocation5 + $0x78] sm:$0xff]  ;;  %v10163_v5 = vmov 1   ;;  %v291_v6 = vld [vmem:[#allocation5 + $0x68] sm:$0xff]  ;;  %v388_v25 = vlaneseq }
  0x43   : > { %6437 = vsyncadd (%p10314_p1), [#allocation6], 4294950912  ;;  %6029 = vset.pattern.permute.xlu1 %v6465_v0  ;;  %6027 = vset.pattern.permute.xlu0 %v6465_v0  ;;  %s6611_s16 = scalar_lea.vmem %s10152_s0, %s5306_s12  ;;  %v292_v4 = vld [vmem:[#allocation5 + $0x70] sm:$0xff]  ;;  %v746_v7 = vld [vmem:[%s10152_s0 + $0x8] sm:$0xff]  ;;  %v6467_v32 = vmov 1966171168   ;;  %s6895_s20 = scalar_lea.vmem %s10154_s2, %s5306_s12 }
  0x44   : > { %v375_v2 = vld [vmem:[%s6611_s16] sm:$0xff]  ;;  %751 = vperm.xlu1 %6029, %v745_v1   ;;  %5547 = vmatprep.subr.mxu0 %v293_v3  ;;  %v290_v8 = vld [vmem:[#allocation5 + $0x60] sm:$0xff]  ;;  %v289_v10 = vld [vmem:[#allocation5 + $0x58] sm:$0xff]  ;;  %v6629_v26 = vshrl.u32 %v388_v25, 7  ;;  %v825_v33 = vunpack.c.l.s4 %v6467_v32  ;;  %vm4934_vm6 = vcmask 1041409   ;;  %vm4936_vm7 = vcmask 1042434  }
  0x45   : > { %380 = vperm.xlu0 %6027, %v375_v2   ;;  %5548 = vmatpush3.msra.mxu0 %v293_v3  ;;  %v747_v9 = vld [vmem:[%s10152_s0 + $0x10] sm:$0xff]  ;;  %v288_v11 = vld [vmem:[#allocation5 + $0x50] sm:$0xff]  ;;  %v748_v12 = vld [vmem:[%s10152_s0 + $0x18] sm:$0xff]  ;;  %vm4938_vm8 = vcmask 1043459   ;;  %vm4940_vm9 = vcmask 1044484   ;;  %vm4942_vm10 = vcmask 1045509  }
  0x46   : > { %5549 = vmatprep.subr.mxu0 %v292_v4  ;;  %v287_v13 = vld [vmem:[#allocation5 + $0x48] sm:$0xff]  ;;  %v286_v14 = vld [vmem:[#allocation5 + $0x40] sm:$0xff]  ;;  %v376_v15 = vld [vmem:[%s6611_s16 + $0x8] sm:$0xff]  ;;  %10315 = vst [vmem:[#allocation12_spill] sm:$0xff] %v6629_v26  ;;  %v6632_v27 = vsub.s32 0, %v6629_v26  ;;  %v6635_v28 = vsub.s32 1, %v6629_v26  ;;  %v826_v37 = vunpack.c.0.s8 %v825_v33 }
  0x47   : > { %5550 = vmatpush3.msra.mxu0 %v292_v4  ;;  %v285_v16 = vld [vmem:[#allocation5 + $0x38] sm:$0xff]  ;;  %v284_v17 = vld [vmem:[#allocation5 + $0x30] sm:$0xff]  ;;  %v283_v18 = vld [vmem:[#allocation5 + $0x28] sm:$0xff]  ;;  %v6642_v36 = vsub.s32 2, %v6629_v26  ;;  %vm4944_vm11 = vcmask 1046534   ;;  %vm4946_vm12 = vcmask 1047559  }
  0x48   : > { %6030 = vset.pattern.permute.xlu1 %v10163_v5  ;;  %5551 = vmatprep.subr.mxu0 %v291_v6  ;;  %v282_v19 = vld [vmem:[#allocation5 + $0x20] sm:$0xff]  ;;  %v281_v20 = vld [vmem:[#allocation5 + $0x18] sm:$0xff]  ;;  %v280_v21 = vld [vmem:[#allocation5 + $0x10] sm:$0xff]  ;;  %10316 = vst [vmem:[#allocation13_spill] sm:$0xff] %v6632_v27  ;;  %v6650_v43 = vsub.s32 %v826_v37, %v6629_v26  ;;  %s271_s11 = sand.u32 1, %s6448_s22   ;;  %s5312_s15 = sshll.u32 %s6529_s25, 8 }
  0x49   : > { %6028 = vset.pattern.permute.xlu0 %v10163_v5  ;;  %778 = vperm.xlu1 %6030, %v745_v1   ;;  %v279_v22 = vld [vmem:[#allocation5 + $0x8] sm:$0xff]  ;;  %v278_v23 = vld [vmem:[#allocation5] sm:$0xff]  ;;  %v2641_v24 = vld [vmem:[#allocation7 + $0xf8] sm:$0xff]  ;;  %10317 = vst [vmem:[#allocation14_spill] sm:$0xff] %v6635_v28  ;;  %s5305_s13 = sshll.u32 %s271_s11, 4  ;;  %s10112_s18 = scalar_lea.sflag [#allocation4], %s271_s11 }
  0x4a   : > { %395 = vperm.xlu0 %6028, %v375_v2   ;;  %5552 = vmatpush3.msra.mxu0 %v291_v6  ;;  %v276_v29 = vld [vmem:[#allocation2] sm:$0xff]  ;;  %10319 = vst [vmem:[#allocation16_spill] sm:$0xff] %v6642_v36  ;;  %10321 = vst [vmem:[#allocation18_spill] sm:$0xff] %v6650_v43  ;;  %s273_s17 = scalar_lea.vmem [#allocation8], %s5305_s13  ;;  %p10863_p12 = scmp.ne.s32.totalorder %s10307_s7, 0 }
  0x4b   : > { %5553 = vmatprep.subr.mxu0 %v290_v8  ;;  %v772_v34 = vrot.slane %v276_v29, %v6632_v27  ;;  %v796_v35 = vrot.slane %v276_v29, %v6635_v28  ;;  %v818_v42 = vrot.slane %v276_v29, %v6642_v36  ;;  %s5211_s12 = sshll.u32 %s273_s17, 4  ;;  %s10110_s12 = int_to_ptr.vmem [resolvable:$true] %s5211_s12 }
  0x4c   : > { %5554 = vmatpush3.msra.mxu0 %v290_v8  ;;  %s6388_s25 = scalar_lea.vmem %s10110_s12, 256 }
  0x4d   : > { %6031 = vset.pattern.permute.xlu1 %v6465_v0  ;;  %5555 = vmatprep.subr.mxu0 %v289_v10  ;;  %p6389_p10 = scmp.ne.s32.totalorder %s10110_s12, %s6388_s25 }
  0x4e   : > { %782 = vperm.xlu0 %6028, %v746_v7   ;;  %756 = vperm.xlu1 %6031, %v746_v7  }
  0x4f   : > { %5556 = vmatpush3.msra.mxu0 %v289_v10  ;;  %p6390_p3 = pnand %p6389_p10, %p10863_p12 }
  0x50   : > { %5557 = vmatprep.subr.mxu0 %v288_v11 }
  0x51   : > { %5558 = vmatpush3.msra.mxu0 %v288_v11  ;;  %p6391_p2 = pneg %p6390_p3 }
  0x52   : > { %786 = vperm.xlu0 %6028, %v747_v9   ;;  %761 = vperm.xlu1 %6031, %v747_v9  }
  0x53   : > { %5559 = vmatprep.subr.mxu0 %v287_v13 }
  0x54   : > { %5560 = vmatpush3.msra.mxu0 %v287_v13 }
  0x55   : > { %5561 = vmatprep.subr.mxu0 %v286_v14 }
  0x56   : > { %790 = vperm.xlu0 %6028, %v748_v12   ;;  %766 = vperm.xlu1 %6031, %v748_v12  }
  0x57   : > { %5562 = vmatpush3.msra.mxu0 %v286_v14 }
  0x58   : > { %5563 = vmatprep.subr.mxu0 %v285_v16 }
  0x59   : > { %5564 = vmatpush3.msra.mxu0 %v285_v16 }
  0x5a   : > { %399 = vperm.xlu0 %6028, %v376_v15   ;;  %385 = vperm.xlu1 %6031, %v376_v15  }
  0x5b   : > { %5565 = vmatprep.subr.mxu0 %v284_v17 }
  0x5c   : > { %5566 = vmatpush3.msra.mxu0 %v284_v17 }
  0x5d   : > { %5567 = vmatprep.subr.mxu0 %v283_v18 }
  0x5e   : > { %5568 = vmatpush3.msra.mxu0 %v283_v18 }
  0x5f   : > { %5569 = vmatprep.subr.mxu0 %v282_v19 }
  0x60   : > { %5570 = vmatpush3.msra.mxu0 %v282_v19 }
  0x61   : > { %5571 = vmatprep.subr.mxu0 %v281_v20 }
  0x62   : > { %5572 = vmatpush3.msra.mxu0 %v281_v20 }
  0x63   : > { %5573 = vmatprep.subr.mxu0 %v280_v21 }
  0x64   : > { %5574 = vmatpush3.msra.mxu0 %v280_v21  ;;  %v2640_v21 = vld [vmem:[#allocation7 + $0xf0] sm:$0xff] }
  0x65   : > { %5575 = vmatprep.subr.mxu0 %v279_v22 }
  0x66   : > { %5576 = vmatpush3.msra.mxu0 %v279_v22 }
  0x67   : > { %5577 = vmatprep.subr.mxu0 %v278_v23 }
  0x68   : > { %5578 = vmatpush3.msra.mxu0 %v278_v23 }
  0x69   : > { %2642 = vmatprep.subr.mxu0 %v2641_v24  ;;  %v2639_v24 = vld [vmem:[#allocation7 + $0xe8] sm:$0xff] }
  0xbf   : > { %v752_v31 = vpop.permute.xlu1 %751 }
  0xc0   : > { %v6637_v30 = vpop.permute.xlu0 %380  ;;  %v773_v50 = vmul.f32 %v772_v34, %v752_v31  ;;  %v2638_v31 = vld [vmem:[#allocation7 + $0xe0] sm:$0xff] }
  0xc1   : > { %10318 = vst [vmem:[#allocation15_spill] sm:$0xff] %v6637_v30  ;;  %v809_v40 = vmul.f32 %v772_v34, %v6637_v30 }
  0xc4   : > { %v779_v38 = vpop.permute.xlu1 %778 }
  0xc5   : > { %v6644_v39 = vpop.permute.xlu0 %395  ;;  %v797_v45 = vmul.f32 %v796_v35, %v779_v38 }
  0xc6   : > { %10320 = vst [vmem:[#allocation17_spill] sm:$0xff] %v6644_v39  ;;  %v811_v41 = vmul.f32 %v796_v35, %v6644_v39 }
  0xc7   : > { %v801_v53 = vadd.f32 %v797_v45, %v773_v50  ;;  %v2635_v45 = vld [vmem:[#allocation7 + $0xc8] sm:$0xff] }
  0xc8   : > { %v813_v44 = vadd.f32 %v811_v41, %v809_v40  ;;  %v2636_v41 = vld [vmem:[#allocation7 + $0xd0] sm:$0xff] }
  0xc9   : > { %v783_v46 = vpop.permute.xlu0 %782  ;;  %v757_v49 = vpop.permute.xlu1 %756  ;;  %v6662_v63 = vsub.f32 0.0, %v801_v53 }
  0xca   : > { %v6652_v47 = vadd.f32 %v818_v42, %v813_v44  ;;  %v798_v48 = vmul.f32 %v796_v35, %v783_v46  ;;  %v774_v51 = vmul.f32 %v772_v34, %v757_v49 }
  0xcc   : > { %v830_v52 = vrot.slane %v6652_v47, %v6650_v43  ;;  %v802_v54 = vadd.f32 %v798_v48, %v774_v51  ;;  %v823_v46 = vcombine.high %v6652_v47, %v6652_v47  ;;  %v2634_v51 = vld [vmem:[#allocation7 + $0xc0] sm:$0xff]  ;;  %v2632_v47 = vld [vmem:[#allocation7 + $0xb0] sm:$0xff] }
  0xcd   : > { %v787_v55 = vpop.permute.xlu0 %786  ;;  %v762_v58 = vpop.permute.xlu1 %761 }
  0xce   : > { %v838_v56 = vcombine.high %v830_v52, %v830_v52  ;;  %v799_v57 = vmul.f32 %v796_v35, %v787_v55  ;;  %v846_v59 = vrot.slane %v830_v52, %v6650_v43  ;;  %v6657_v60 = vsub.f32 0.0, %v802_v54  ;;  %v2633_v55 = vld [vmem:[#allocation7 + $0xb8] sm:$0xff] }
  0xcf   : > { %v775_v61 = vmul.f32 %v772_v34, %v762_v58 }
  0xd0   : > { %v6660_v62 = vrot.slane %v838_v56, %v6650_v43  ;;  %v924_v2 = vrot.slane %v846_v59, %v6632_v27  ;;  %v868_v22 = vcombine.high %v846_v59, %v846_v59  ;;  %v837_v56 = vrot.slane %v823_v46, %v6650_v43 }
  0xd1   : > { %v803_v0 = vadd.f32 %v799_v57, %v775_v61  ;;  %v791_v1 = vpop.permute.xlu0 %790  ;;  %v767_v4 = vpop.permute.xlu1 %766 }
  0xd2   : > { %v800_v3 = vmul.f32 %v796_v35, %v791_v1  ;;  %v776_v7 = vmul.f32 %v772_v34, %v767_v4  ;;  %v1001_v8 = vadd.f32 %v924_v2, %v6662_v63  ;;  %v1002_v9 = vadd.f32 %v924_v2, %v6657_v60 }
  0xd3   : > { %v6665_v6 = vsub.f32 0.0, %v803_v0  ;;  %v928_v10 = vrot.slane %v6660_v62, %v6632_v27  ;;  %v932_v40 = vrot.slane %v868_v22, %v6632_v27  ;;  %v870_v54 = vcombine.high %v6660_v62, %v6660_v62 }
  0xd4   : > { %v804_v11 = vadd.f32 %v800_v3, %v776_v7  ;;  %v1065_v13 = vmax.f32 %v1001_v8, 0.0  ;;  %v1066_v14 = vmax.f32 %v1002_v9, 0.0  ;;  %v2631_v3 = vld [vmem:[#allocation7 + $0xa8] sm:$0xff] }
  0xd5   : > { %v6671_v12 = vpop.permute.xlu0 %399  ;;  %v1003_v15 = vadd.f32 %v924_v2, %v6665_v6  ;;  %v6675_v17 = vpop.permute.xlu1 %385  ;;  %v1005_v23 = vadd.f32 %v928_v10, %v6662_v63  ;;  %v1007_v38 = vadd.f32 %v928_v10, %v6665_v6  ;;  %v1009_v53 = vadd.f32 %v932_v40, %v6662_v63 }
  0xd6   : > { %10322 = vst [vmem:[#allocation19_spill] sm:$0xff] %v6671_v12  ;;  %v812_v16 = vmul.f32 %v796_v35, %v6671_v12  ;;  %10323 = vst [vmem:[#allocation20_spill] sm:$0xff] %v6675_v17  ;;  %v6677_v18 = vsub.f32 0.0, %v804_v11  ;;  %v810_v19 = vmul.f32 %v772_v34, %v6675_v17  ;;  %5579 = vmatprep.mubr.f32.mxu0 %v1065_v13  ;;  %v2637_v34 = vld [vmem:[#allocation7 + $0xd8] sm:$0xff] }
  0xd7   : > { %v1067_v20 = vmax.f32 %v1003_v15, 0.0  ;;  %5580 = vmatmul.mubr.f32.vlgmr.msra.gmra.mxu0 %v1066_v14  ;;  %v1006_v35 = vadd.f32 %v928_v10, %v6657_v60  ;;  %v1069_v37 = vmax.f32 %v1005_v23, 0.0  ;;  %v1071_v52 = vmax.f32 %v1007_v38, 0.0  ;;  %v2629_v14 = vld [vmem:[#allocation7 + $0x98] sm:$0xff] }
  0xd8   : > { %v814_v25 = vadd.f32 %v812_v16, %v810_v19  ;;  %v1004_v29 = vadd.f32 %v924_v2, %v6677_v18  ;;  %2643 = vmatpush1.msra.mxu0 %v2640_v21  ;;  %v1008_v50 = vadd.f32 %v928_v10, %v6677_v18  ;;  %v1010_v59 = vadd.f32 %v932_v40, %v6657_v60  ;;  %v2630_v10 = vld [vmem:[#allocation7 + $0xa0] sm:$0xff] }
  0xd9   : > { %5582 = vmatprep.mubr.f32.mxu0 %v1067_v20  ;;  %2644 = vmatprep.subr.mxu0 %v2639_v24  ;;  %v1070_v49 = vmax.f32 %v1006_v35, 0.0  ;;  %v1073_v1 = vmax.f32 %v1009_v53, 0.0  ;;  %v1011_v62 = vadd.f32 %v932_v40, %v6665_v6  ;;  %v936_v2 = vrot.slane %v870_v54, %v6632_v27  ;;  %v2628_v20 = vld [vmem:[#allocation7 + $0x90] sm:$0xff]  ;;  %v2627_v24 = vld [vmem:[#allocation7 + $0x88] sm:$0xff] }
  0xda   : > { %v820_v32 = vadd.f32 %v818_v42, %v814_v25  ;;  %v1068_v33 = vmax.f32 %v1004_v29, 0.0  ;;  %2645 = vmatpush1.msra.mxu0 %v2638_v31  ;;  %v1072_v58 = vmax.f32 %v1008_v50, 0.0  ;;  %v6714_v11 = vrot.slane %v837_v56, %v6650_v43  ;;  %v2626_v29 = vld [vmem:[#allocation7 + $0x80] sm:$0xff] }
  0xdb   : > { %2646 = vmatprep.subr.mxu0 %v2637_v34  ;;  %v1012_v13 = vadd.f32 %v932_v40, %v6677_v18  ;;  %v1074_v16 = vmax.f32 %v1010_v59, 0.0  ;;  %v1075_v22 = vmax.f32 %v1011_v62, 0.0  ;;  %v1013_v23 = vadd.f32 %v936_v2, %v6662_v63  ;;  %v2625_v34 = vld [vmem:[#allocation7 + $0x78] sm:$0xff] }
  0xdc   : > { %v879_v44 = vrot.slane %v820_v32, %v6650_v43  ;;  %5583 = vmatmul.mubr.f32.gmra.mxu0 %v1068_v33  ;;  %v872_v0 = vcombine.high %v820_v32, %v820_v32  ;;  %v839_v25 = vcombine.high %v837_v56, %v837_v56  ;;  %v1014_v32 = vadd.f32 %v936_v2, %v6657_v60  ;;  %v2621_v56 = vld [vmem:[#allocation7 + $0x58] sm:$0xff] }
  0xdd   : > { %5585 = vmatprep.mubr.f32.mxu0 %v1069_v37  ;;  %2647 = vmatpush1.msra.mxu0 %v2636_v41  ;;  %v1076_v31 = vmax.f32 %v1012_v13, 0.0  ;;  %v1015_v33 = vadd.f32 %v936_v2, %v6665_v6  ;;  %v6725_v35 = vrot.slane %v6714_v11, %v6632_v27  ;;  %v1077_v46 = vmax.f32 %v1013_v23, 0.0  ;;  %v2617_v23 = vld [vmem:[#allocation7 + $0x38] sm:$0xff] }
  0xde   : > { %v887_v42 = vcombine.high %v879_v44, %v879_v44  ;;  %v895_v48 = vrot.slane %v879_v44, %v6650_v43  ;;  %2648 = vmatprep.subr.mxu0 %v2635_v45  ;;  %v886_v21 = vrot.slane %v872_v0, %v6650_v43  ;;  %v2624_v44 = vld [vmem:[#allocation7 + $0x70] sm:$0xff]  ;;  %v6741_v50 = vrot.slane %v839_v25, %v6650_v43 }
  0xdf   : > { %2649 = vmatpush1.msra.mxu0 %v2634_v51  ;;  %v1078_v53 = vmax.f32 %v1014_v32, 0.0  ;;  %v1016_v54 = vadd.f32 %v936_v2, %v6677_v18  ;;  %v2620_v0 = vld [vmem:[#allocation7 + $0x50] sm:$0xff] }
  0xe0   : > { %5586 = vmatmul.mubr.f32.gmra.mxu0 %v1070_v49  ;;  %v6695_v57 = vrot.slane %v887_v42, %v6650_v43  ;;  %v956_v61 = vrot.slane %v895_v48, %v6632_v27  ;;  %2650 = vmatprep.subr.mxu0 %v2633_v55  ;;  %v917_v15 = vcombine.high %v895_v48, %v895_v48  ;;  %v2623_v48 = vld [vmem:[#allocation7 + $0x68] sm:$0xff]  ;;  %v2616_v32 = vld [vmem:[#allocation7 + $0x30] sm:$0xff] }
  0xe1   : > { %5588 = vmatprep.mubr.f32.mxu0 %v1071_v52  ;;  %2651 = vmatpush1.msra.mxu0 %v2632_v47  ;;  %v902_v45 = vrot.slane %v886_v21, %v6650_v43  ;;  %v888_v49 = vcombine.high %v886_v21, %v886_v21  ;;  %v2622_v52 = vld [vmem:[#allocation7 + $0x60] sm:$0xff]  ;;  %v1017_v55 = vadd.f32 %v6725_v35, %v6662_v63 }
  0xe2   : > { %v6702_v4 = vadd.f32 %v956_v61, %v6662_v63  ;;  %v6705_v7 = vadd.f32 %v956_v61, %v6657_v60  ;;  %v6708_v8 = vadd.f32 %v956_v61, %v6665_v6  ;;  %v6711_v9 = vadd.f32 %v956_v61, %v6677_v18  ;;  %2652 = vmatprep.subr.mxu0 %v2631_v3 }
  0xe3   : > { %v960_v19 = vrot.slane %v6695_v57, %v6632_v27  ;;  %2653 = vmatpush1.msra.mxu0 %v2630_v10  ;;  %v964_v41 = vrot.slane %v917_v15, %v6632_v27  ;;  %v919_v42 = vcombine.high %v6695_v57, %v6695_v57  ;;  %v1018_v47 = vadd.f32 %v6725_v35, %v6657_v60  ;;  %v2619_v10 = vld [vmem:[#allocation7 + $0x48] sm:$0xff] }
  0xe4   : > { %5589 = vmatmul.mubr.f32.gmra.mxu0 %v1072_v58  ;;  %2654 = vmatprep.subr.mxu0 %v2629_v14  ;;  %v1079_v57 = vmax.f32 %v1015_v33, 0.0  ;;  %v972_v3 = vrot.slane %v902_v45, %v6632_v27  ;;  %v6769_v13 = vrot.slane %v6741_v50, %v6632_v27  ;;  %v916_v14 = vrot.slane %v888_v49, %v6650_v43 }
  0xe5   : > { %5591 = vmatprep.mubr.f32.mxu0 %v1073_v1  ;;  %2655 = vmatpush1.msra.mxu0 %v2628_v20  ;;  %v6728_v37 = vadd.f32 %v960_v19, %v6662_v63  ;;  %v6731_v38 = vadd.f32 %v960_v19, %v6657_v60  ;;  %v6734_v40 = vadd.f32 %v960_v19, %v6665_v6  ;;  %v1081_v33 = vmax.f32 %v1017_v55, 0.0  ;;  %v2613_v55 = vld [vmem:[#allocation7 + $0x18] sm:$0xff] }
  0xe6   : > { %2656 = vmatprep.subr.mxu0 %v2627_v24  ;;  %v6744_v51 = vadd.f32 %v960_v19, %v6677_v18  ;;  %v6752_v58 = vadd.f32 %v964_v41, %v6662_v63  ;;  %v6755_v59 = vadd.f32 %v964_v41, %v6657_v60  ;;  %v6758_v61 = vadd.f32 %v964_v41, %v6665_v6 }
  0xe7   : > { %2657 = vmatpush1.msra.mxu0 %v2626_v29  ;;  %v1019_v1 = vadd.f32 %v6725_v35, %v6665_v6  ;;  %v6763_v62 = vadd.f32 %v964_v41, %v6677_v18  ;;  %v968_v2 = vrot.slane %v919_v42, %v6632_v27  ;;  %v918_v15 = vcombine.high %v902_v45, %v902_v45  ;;  %v2615_v41 = vld [vmem:[#allocation7 + $0x28] sm:$0xff] }
  0xe8   : > { %5592 = vmatmul.mubr.f32.gmra.mxu0 %v1074_v16  ;;  %2658 = vmatprep.subr.mxu0 %v2625_v34  ;;  %v2618_v16 = vld [vmem:[#allocation7 + $0x40] sm:$0xff]  ;;  %v1080_v19 = vmax.f32 %v1016_v54, 0.0  ;;  %v6785_v25 = vadd.f32 %v972_v3, %v6662_v63  ;;  %v6788_v29 = vadd.f32 %v972_v3, %v6657_v60  ;;  %v6794_v34 = vadd.f32 %v972_v3, %v6677_v18 }
  0xe9   : > { %5594 = vmatprep.mubr.f32.mxu0 %v1075_v22  ;;  %2659 = vmatpush1.msra.mxu0 %v2624_v44  ;;  %v6773_v20 = vadd.f32 %v968_v2, %v6662_v63  ;;  %v6776_v21 = vadd.f32 %v968_v2, %v6657_v60  ;;  %v6779_v22 = vadd.f32 %v968_v2, %v6665_v6  ;;  %v2614_v44 = vld [vmem:[#allocation7 + $0x20] sm:$0xff]  ;;  %v1082_v45 = vmax.f32 %v1018_v47, 0.0 }
  0xea   : > { %2660 = vmatprep.subr.mxu0 %v2623_v48  ;;  %v6782_v24 = vadd.f32 %v968_v2, %v6677_v18  ;;  %v976_v42 = vrot.slane %v916_v14, %v6632_v27  ;;  %v980_v48 = vrot.slane %v918_v15, %v6632_v27  ;;  %v1020_v49 = vadd.f32 %v6725_v35, %v6677_v18 }
  0xeb   : > { %2661 = vmatpush1.msra.mxu0 %v2622_v52  ;;  %v1021_v52 = vadd.f32 %v6769_v13, %v6662_v63  ;;  %v920_v54 = vcombine.high %v916_v14, %v916_v14  ;;  %v1022_v15 = vadd.f32 %v6769_v13, %v6657_v60 }
  0xec   : > { %5595 = vmatmul.mubr.f32.gmra.mxu0 %v1076_v31  ;;  %2662 = vmatprep.subr.mxu0 %v2621_v56  ;;  %v6791_v31 = vadd.f32 %v972_v3, %v6665_v6  ;;  %v6805_v47 = vadd.f32 %v976_v42, %v6662_v63  ;;  %v6808_v56 = vadd.f32 %v976_v42, %v6657_v60  ;;  %v1084_v14 = vmax.f32 %v1020_v49, 0.0 }
  0xed   : > { %5597 = vmatprep.mubr.f32.mxu0 %v1077_v46  ;;  %2663 = vmatpush1.msra.mxu0 %v2620_v0  ;;  %v1083_v46 = vmax.f32 %v1019_v1, 0.0  ;;  %v6814_v35 = vadd.f32 %v976_v42, %v6677_v18  ;;  %v2612_v0 = vld [vmem:[#allocation7 + $0x10] sm:$0xff]  ;;  %v6820_v1 = vadd.f32 %v980_v48, %v6657_v60  ;;  %v6823_v2 = vadd.f32 %v980_v48, %v6665_v6 }
  0xee   : > { %2664 = vmatprep.subr.mxu0 %v2619_v10  ;;  %v6826_v3 = vadd.f32 %v980_v48, %v6677_v18  ;;  %v2611_v10 = vld [vmem:[#allocation7 + $0x8] sm:$0xff] }
  0xef   : > { %2665 = vmatpush1.msra.mxu0 %v2618_v16  ;;  %v1085_v16 = vmax.f32 %v1021_v52, 0.0 }
  0xf0   : > { %5598 = vmatmul.mubr.f32.gmra.mxu0 %v1078_v53  ;;  %2666 = vmatprep.subr.mxu0 %v2617_v23  ;;  %v869_v53 = vcombine.high %v6714_v11, %v6714_v11  ;;  %v6817_v11 = vadd.f32 %v980_v48, %v6662_v63  ;;  %v1024_v48 = vadd.f32 %v6769_v13, %v6677_v18 }
  0xf1   : > { %5600 = vmatprep.mubr.f32.mxu0 %v1079_v57  ;;  %2667 = vmatpush1.msra.mxu0 %v2616_v32  ;;  %v6811_v57 = vadd.f32 %v976_v42, %v6665_v6  ;;  %v984_v32 = vrot.slane %v920_v54, %v6632_v27  ;;  %v1086_v42 = vmax.f32 %v1022_v15, 0.0 }
  0xf2   : > { %2668 = vmatprep.subr.mxu0 %v2615_v41  ;;  %v948_v23 = vrot.slane %v869_v53, %v6632_v27  ;;  %v871_v53 = vcombine.high %v6741_v50, %v6741_v50  ;;  %v1088_v54 = vmax.f32 %v1024_v48, 0.0 }
  0xf3   : > { %2669 = vmatpush1.msra.mxu0 %v2614_v44  ;;  %v6835_v41 = vadd.f32 %v984_v32, %v6662_v63  ;;  %v6838_v44 = vadd.f32 %v984_v32, %v6657_v60 }
  0xf4   : > { %5601 = vmatmul.mubr.f32.gmra.mxu0 %v1080_v19  ;;  %2670 = vmatprep.subr.mxu0 %v2613_v55  ;;  %v1023_v19 = vadd.f32 %v6769_v13, %v6665_v6  ;;  %v1025_v52 = vadd.f32 %v948_v23, %v6662_v63  ;;  %v1026_v55 = vadd.f32 %v948_v23, %v6657_v60 }
  0xf5   : > { %5603 = vmatprep.mubr.f32.mxu0 %v1081_v33  ;;  %2671 = vmatpush1.msra.mxu0 %v2612_v0  ;;  %v2610_v33 = vld [vmem:[#allocation7] sm:$0xff]  ;;  %v1028_v15 = vadd.f32 %v948_v23, %v6677_v18 }
  0xf6   : > { %2672 = vmatprep.subr.mxu0 %v2611_v10  ;;  %v1087_v49 = vmax.f32 %v1023_v19, 0.0  ;;  %v1089_v0 = vmax.f32 %v1025_v52, 0.0  ;;  %v1027_v10 = vadd.f32 %v948_v23, %v6665_v6  ;;  %v1090_v13 = vmax.f32 %v1026_v55, 0.0 }
  0xf7   : > { %2673 = vmatpush1.msra.mxu0 %v2610_v33  ;;  %v1092_v50 = vmax.f32 %v1028_v15, 0.0  ;;  %v1103_v55 = vmax.f32 %v6734_v40, 0.0  ;;  %v1110_v40 = vmax.f32 %v6776_v21, 0.0  ;;  %v1117_v21 = vmax.f32 %v6805_v47, 0.0 }
  0xf8   : > { %5604 = vmatmul.mubr.f32.gmra.mxu0 %v1082_v45  ;;  %v6841_v45 = vadd.f32 %v984_v32, %v6665_v6  ;;  %v1124_v47 = vmax.f32 %v6826_v3, 0.0  ;;  %v744_v3 = vld [vmem:[%s6895_s20 + $0x8] sm:$0xff] }
  0xf9   : > { %5606 = vmatprep.mubr.f32.mxu0 %v1083_v46  ;;  %v6844_v46 = vadd.f32 %v984_v32, %v6677_v18 }
  0xfc   : > { %5607 = vmatmul.mubr.f32.gmra.mxu0 %v1084_v14  ;;  %v952_v14 = vrot.slane %v871_v53, %v6632_v27  ;;  %v1097_v53 = vmax.f32 %v6702_v4, 0.0  ;;  %v1104_v4 = vmax.f32 %v6744_v51, 0.0  ;;  %v1111_v51 = vmax.f32 %v6779_v22, 0.0 }
  0xfd   : > { %5609 = vmatprep.mubr.f32.mxu0 %v1085_v16  ;;  %v1091_v16 = vmax.f32 %v1027_v10, 0.0  ;;  %v1118_v22 = vmax.f32 %v6808_v56, 0.0  ;;  %v1125_v56 = vmax.f32 %v6835_v41, 0.0 }
  0xfe   : > { %v1029_v19 = vadd.f32 %v952_v14, %v6662_v63  ;;  %v1030_v32 = vadd.f32 %v952_v14, %v6657_v60  ;;  %v1098_v63 = vmax.f32 %v6705_v7, 0.0  ;;  %v1099_v60 = vmax.f32 %v6708_v8, 0.0 }
  0xff   : > { %v1105_v7 = vmax.f32 %v6752_v58, 0.0  ;;  %v1106_v8 = vmax.f32 %v6755_v59, 0.0  ;;  %v1112_v58 = vmax.f32 %v6782_v24, 0.0  ;;  %v1113_v59 = vmax.f32 %v6785_v25, 0.0 }
 0x100   : > { %5610 = vmatmul.mubr.f32.gmra.mxu0 %v1086_v42  ;;  %v1093_v33 = vmax.f32 %v1029_v19, 0.0  ;;  %v1031_v42 = vadd.f32 %v952_v14, %v6665_v6  ;;  %v1094_v48 = vmax.f32 %v1030_v32, 0.0  ;;  %v1100_v6 = vmax.f32 %v6711_v9, 0.0 }
 0x101   : > { %5612 = vmatprep.mubr.f32.mxu0 %v1087_v49  ;;  %v1032_v49 = vadd.f32 %v952_v14, %v6677_v18  ;;  %v1102_v18 = vmax.f32 %v6731_v38, 0.0  ;;  %v1107_v9 = vmax.f32 %v6758_v61, 0.0  ;;  %v1109_v38 = vmax.f32 %v6773_v20, 0.0 }
 0x102   : > { %v1095_v52 = vmax.f32 %v1031_v42, 0.0  ;;  %v1114_v61 = vmax.f32 %v6788_v29, 0.0  ;;  %v1116_v20 = vmax.f32 %v6794_v34, 0.0  ;;  %v1119_v24 = vmax.f32 %v6811_v57, 0.0 }
 0x103   : > { %v1096_v23 = vmax.f32 %v1032_v49, 0.0  ;;  %v1120_v25 = vmax.f32 %v6814_v35, 0.0  ;;  %v1121_v29 = vmax.f32 %v6817_v11, 0.0  ;;  %v1123_v34 = vmax.f32 %v6823_v2, 0.0  ;;  %v743_v2 = vld [vmem:[%s6895_s20] sm:$0xff] }
 0x104   : > { %5613 = vmatmul.mubr.f32.gmra.mxu0 %v1088_v54  ;;  %v1101_v54 = vmax.f32 %v6728_v37, 0.0  ;;  %v1108_v37 = vmax.f32 %v6763_v62, 0.0  ;;  %v1115_v62 = vmax.f32 %v6791_v31, 0.0  ;;  %v1122_v31 = vmax.f32 %v6820_v1, 0.0 }
 0x105   : > { %5615 = vmatprep.mubr.f32.mxu0 %v1089_v0  ;;  %v1126_v57 = vmax.f32 %v6838_v44, 0.0  ;;  %v1127_v35 = vmax.f32 %v6841_v45, 0.0  ;;  %v1128_v11 = vmax.f32 %v6844_v46, 0.0  ;;  %v10161_v1 = vmov 0.0  }
 0x108   : > { %5616 = vmatmul.mubr.f32.gmra.mxu0 %v1090_v13 }
 0x109   : > { %5618 = vmatprep.mubr.f32.mxu0 %v1091_v16 }
 0x10c   : > { %5619 = vmatmul.mubr.f32.gmra.mxu0 %v1092_v50 }
 0x10d   : > { %5621 = vmatprep.mubr.f32.mxu0 %v1093_v33 }
 0x110   : > { %5622 = vmatmul.mubr.f32.gmra.mxu0 %v1094_v48 }
 0x111   : > { %5624 = vmatprep.mubr.f32.mxu0 %v1095_v52 }
 0x114   : > { %5625 = vmatmul.mubr.f32.gmra.mxu0 %v1096_v23 }
 0x115   : > { %5627 = vmatprep.mubr.f32.mxu0 %v1097_v53 }
 0x118   : > { %5628 = vmatmul.mubr.f32.gmra.mxu0 %v1098_v63 }
 0x119   : > { %5630 = vmatprep.mubr.f32.mxu0 %v1099_v60 }
 0x11c   : > { %5631 = vmatmul.mubr.f32.gmra.mxu0 %v1100_v6 }
 0x11d   : > { %5633 = vmatprep.mubr.f32.mxu0 %v1101_v54 }
 0x120   : > { %5634 = vmatmul.mubr.f32.gmra.mxu0 %v1102_v18 }
 0x121   : > { %5636 = vmatprep.mubr.f32.mxu0 %v1103_v55 }
 0x124   : > { %5637 = vmatmul.mubr.f32.gmra.mxu0 %v1104_v4 }
 0x125   : > { %5639 = vmatprep.mubr.f32.mxu0 %v1105_v7 }
 0x128   : > { %5640 = vmatmul.mubr.f32.gmra.mxu0 %v1106_v8 }
 0x129   : > { %5642 = vmatprep.mubr.f32.mxu0 %v1107_v9 }
 0x12c   : > { %5643 = vmatmul.mubr.f32.gmra.mxu0 %v1108_v37 }
 0x12d   : > { %5645 = vmatprep.mubr.f32.mxu0 %v1109_v38 }
 0x130   : > { %5646 = vmatmul.mubr.f32.gmra.mxu0 %v1110_v40 }
 0x131   : > { %5648 = vmatprep.mubr.f32.mxu0 %v1111_v51 }
 0x134   : > { %5649 = vmatmul.mubr.f32.gmra.mxu0 %v1112_v58 }
 0x135   : > { %5651 = vmatprep.mubr.f32.mxu0 %v1113_v59 }
 0x138   : > { %5652 = vmatmul.mubr.f32.gmra.mxu0 %v1114_v61 }
 0x139   : > { %5654 = vmatprep.mubr.f32.mxu0 %v1115_v62 }
 0x13c   : > { %5655 = vmatmul.mubr.f32.gmra.mxu0 %v1116_v20 }
 0x13d   : > { %5657 = vmatprep.mubr.f32.mxu0 %v1117_v21 }
 0x140   : > { %5658 = vmatmul.mubr.f32.gmra.mxu0 %v1118_v22 }
 0x141   : > { %5660 = vmatprep.mubr.f32.mxu0 %v1119_v24 }
 0x144   : > { %5661 = vmatmul.mubr.f32.gmra.mxu0 %v1120_v25 }
 0x145   : > { %5663 = vmatprep.mubr.f32.mxu0 %v1121_v29 }
 0x148   : > { %5664 = vmatmul.mubr.f32.gmra.mxu0 %v1122_v31 }
 0x149   : > { %5666 = vmatprep.mubr.f32.mxu0 %v1123_v34 }
 0x14c   : > { %5667 = vmatmul.mubr.f32.gmra.mxu0 %v1124_v47 }
 0x14d   : > { %5669 = vmatprep.mubr.f32.mxu0 %v1125_v56 }
 0x150   : > { %5670 = vmatmul.mubr.f32.gmra.mxu0 %v1126_v57 }
 0x151   : > { %5672 = vmatprep.mubr.f32.mxu0 %v1127_v35 }
 0x154   : > { %5673 = vmatmul.mubr.f32.gmra.mxu0 %v1128_v11 }
 0x155   : > { %2706 = vmatprep.mubr.f32.mxu0 %v10161_v1 }
 0x158   : > { %2707 = vmatmul.mubr.f32.vlgmr.msra.gmra.mxu0 %v743_v2 }
 0x159   : > { %2712 = vmatprep.mubr.f32.mxu0 %v10161_v1 }
 0x15c   : > { %2713 = vmatmul.mubr.f32.gmra.mxu0 %v744_v3 }
 0x197   : > { %v6902_v41 = vpop.f32.mrf.mxu0 }
 0x198   : > { %1516 = vadd.xlane.f32.xlu1 %v6902_v41  ;;  %v1643_v45 = vmul.f32 %v6902_v41, %v6902_v41 }
 0x199   : > { %v6905_v44 = vpop.f32.mrf.mxu0 }
 0x19a   : > { %1514 = vadd.xlane.f32.xlu0 %v6905_v44  ;;  %v1642_v0 = vmul.f32 %v6905_v44, %v6905_v44 }
 0x19c   : > { %1708 = vadd.xlane.f32.xlu1 %v1643_v45  ;;  %v6910_v46 = vpop.f32.mrf.mxu0 }
 0x19d   : > { %v1645_v15 = vmul.f32 %v6910_v46, %v6910_v46 }
 0x19e   : > { %1706 = vadd.xlane.f32.xlu0 %v1642_v0  ;;  %v6914_v10 = vpop.f32.mrf.mxu0 }
 0x19f   : > { %v1644_v19 = vmul.f32 %v6914_v10, %v6914_v10 }
 0x1a0   : > { %1520 = vadd.xlane.f32.xlu1 %v6910_v46  ;;  %v6917_v14 = vpop.f32.mrf.mxu0 }
 0x1a1   : > { %v1647_v42 = vmul.f32 %v6917_v14, %v6917_v14 }
 0x1a2   : > { %1518 = vadd.xlane.f32.xlu0 %v6914_v10  ;;  %v6920_v13 = vpop.f32.mrf.mxu0 }
 0x1a3   : > { %v1646_v49 = vmul.f32 %v6920_v13, %v6920_v13 }
 0x1a4   : > { %1712 = vadd.xlane.f32.xlu1 %v1645_v15  ;;  %v6924_v16 = vpop.f32.mrf.mxu0 }
 0x1a5   : > { %v1649_v63 = vmul.f32 %v6924_v16, %v6924_v16 }
 0x1a6   : > { %1710 = vadd.xlane.f32.xlu0 %v1644_v19  ;;  %v6928_v50 = vpop.f32.mrf.mxu0 }
 0x1a7   : > { %v1648_v6 = vmul.f32 %v6928_v50, %v6928_v50 }
 0x1a8   : > { %1524 = vadd.xlane.f32.xlu1 %v6917_v14  ;;  %v6931_v32 = vpop.f32.mrf.mxu0 }
 0x1a9   : > { %v1651_v4 = vmul.f32 %v6931_v32, %v6931_v32 }
 0x1aa   : > { %1522 = vadd.xlane.f32.xlu0 %v6920_v13  ;;  %v6934_v33 = vpop.f32.mrf.mxu0 }
 0x1ab   : > { %v1650_v8 = vmul.f32 %v6934_v33, %v6934_v33 }
 0x1ac   : > { %1716 = vadd.xlane.f32.xlu1 %v1647_v42  ;;  %v6938_v48 = vpop.f32.mrf.mxu0 }
 0x1ad   : > { %v1653_v40 = vmul.f32 %v6938_v48, %v6938_v48 }
 0x1ae   : > { %1714 = vadd.xlane.f32.xlu0 %v1646_v49  ;;  %v6942_v52 = vpop.f32.mrf.mxu0 }
 0x1af   : > { %v1652_v58 = vmul.f32 %v6942_v52, %v6942_v52 }
 0x1b0   : > { %1528 = vadd.xlane.f32.xlu1 %v6924_v16  ;;  %v6945_v23 = vpop.f32.mrf.mxu0 }
 0x1b1   : > { %v1655_v20 = vmul.f32 %v6945_v23, %v6945_v23 }
 0x1b2   : > { %1526 = vadd.xlane.f32.xlu0 %v6928_v50  ;;  %v6948_v53 = vpop.f32.mrf.mxu0 }
 0x1b3   : > { %v1654_v22 = vmul.f32 %v6948_v53, %v6948_v53 }
 0x1b4   : > { %1720 = vadd.xlane.f32.xlu1 %v1649_v63  ;;  %v6952_v60 = vpop.f32.mrf.mxu0 }
 0x1b5   : > { %v1657_v31 = vmul.f32 %v6952_v60, %v6952_v60 }
 0x1b6   : > { %1718 = vadd.xlane.f32.xlu0 %v1648_v6  ;;  %v6956_v54 = vpop.f32.mrf.mxu0 }
 0x1b7   : > { %v1656_v47 = vmul.f32 %v6956_v54, %v6956_v54 }
 0x1b8   : > { %1532 = vadd.xlane.f32.xlu1 %v6931_v32  ;;  %v6959_v18 = vpop.f32.mrf.mxu0 }
 0x1b9   : > { %10324 = vst [vmem:[#allocation21_spill] sm:$0xff] %v6959_v18  ;;  %v1659_v11 = vmul.f32 %v6959_v18, %v6959_v18 }
 0x1ba   : > { %1530 = vadd.xlane.f32.xlu0 %v6934_v33  ;;  %v6962_v55 = vpop.f32.mrf.mxu0 }
 0x1bb   : > { %10325 = vst [vmem:[#allocation22_spill] sm:$0xff] %v6962_v55  ;;  %v1658_v3 = vmul.f32 %v6962_v55, %v6962_v55 }
 0x1bc   : > { %1724 = vadd.xlane.f32.xlu1 %v1651_v4  ;;  %v6966_v7 = vpop.f32.mrf.mxu0 }
 0x1bd   : > { %10326 = vst [vmem:[#allocation23_spill] sm:$0xff] %v6966_v7  ;;  %v1661_v19 = vmul.f32 %v6966_v7, %v6966_v7 }
 0x1be   : > { %1722 = vadd.xlane.f32.xlu0 %v1650_v8  ;;  %v6970_v9 = vpop.f32.mrf.mxu0 }
 0x1bf   : > { %10327 = vst [vmem:[#allocation24_spill] sm:$0xff] %v6970_v9  ;;  %v1660_v49 = vmul.f32 %v6970_v9, %v6970_v9 }
 0x1c0   : > { %1536 = vadd.xlane.f32.xlu1 %v6938_v48  ;;  %v6973_v37 = vpop.f32.mrf.mxu0 }
 0x1c1   : > { %10328 = vst [vmem:[#allocation25_spill] sm:$0xff] %v6973_v37  ;;  %v1663_v8 = vmul.f32 %v6973_v37, %v6973_v37 }
 0x1c2   : > { %1534 = vadd.xlane.f32.xlu0 %v6942_v52  ;;  %v6976_v38 = vpop.f32.mrf.mxu0 }
 0x1c3   : > { %10329 = vst [vmem:[#allocation26_spill] sm:$0xff] %v6976_v38 }
 0x1c4   : > { %1728 = vadd.xlane.f32.xlu1 %v1653_v40  ;;  %v6980_v51 = vpop.f32.mrf.mxu0 }
 0x1c5   : > { %10330 = vst [vmem:[#allocation27_spill] sm:$0xff] %v6980_v51 }
 0x1c6   : > { %1726 = vadd.xlane.f32.xlu0 %v1652_v58  ;;  %v6984_v59 = vpop.f32.mrf.mxu0  ;;  %v1662_v58 = vmul.f32 %v6976_v38, %v6976_v38 }
 0x1c7   : > { %10331 = vst [vmem:[#allocation28_spill] sm:$0xff] %v6984_v59 }
 0x1c8   : > { %1540 = vadd.xlane.f32.xlu1 %v6945_v23  ;;  %v6987_v61 = vpop.f32.mrf.mxu0 }
 0x1c9   : > { %10332 = vst [vmem:[#allocation29_spill] sm:$0xff] %v6987_v61 }
 0x1ca   : > { %1538 = vadd.xlane.f32.xlu0 %v6948_v53  ;;  %v6990_v62 = vpop.f32.mrf.mxu0 }
 0x1cb   : > { %10333 = vst [vmem:[#allocation30_spill] sm:$0xff] %v6990_v62 }
 0x1cc   : > { %1732 = vadd.xlane.f32.xlu1 %v1655_v20  ;;  %v6994_v21 = vpop.f32.mrf.mxu0 }
 0x1cd   : > { %10334 = vst [vmem:[#allocation31_spill] sm:$0xff] %v6994_v21 }
 0x1ce   : > { %1730 = vadd.xlane.f32.xlu0 %v1654_v22  ;;  %v6998_v24 = vpop.f32.mrf.mxu0  ;;  %v1665_v22 = vmul.f32 %v6980_v51, %v6980_v51 }
 0x1cf   : > { %10335 = vst [vmem:[#allocation32_spill] sm:$0xff] %v6998_v24 }
 0x1d0   : > { %1544 = vadd.xlane.f32.xlu1 %v6952_v60  ;;  %v7001_v25 = vpop.f32.mrf.mxu0 }
 0x1d1   : > { %10336 = vst [vmem:[#allocation33_spill] sm:$0xff] %v7001_v25 }
 0x1d2   : > { %1542 = vadd.xlane.f32.xlu0 %v6956_v54  ;;  %v7004_v29 = vpop.f32.mrf.mxu0 }
 0x1d3   : > { %10337 = vst [vmem:[#allocation34_spill] sm:$0xff] %v7004_v29  ;;  %v1670_v5 = vmul.f32 %v7004_v29, %v7004_v29 }
 0x1d4   : > { %1736 = vadd.xlane.f32.xlu1 %v1657_v31  ;;  %v7008_v34 = vpop.f32.mrf.mxu0 }
 0x1d5   : > { %10338 = vst [vmem:[#allocation35_spill] sm:$0xff] %v7008_v34 }
 0x1d6   : > { %1734 = vadd.xlane.f32.xlu0 %v1656_v47  ;;  %v7012_v56 = vpop.f32.mrf.mxu0  ;;  %v1664_v47 = vmul.f32 %v6984_v59, %v6984_v59 }
 0x1d7   : > { %10339 = vst [vmem:[#allocation36_spill] sm:$0xff] %v7012_v56 }
 0x1d8   : > { %1548 = vadd.xlane.f32.xlu1 %v6959_v18  ;;  %v7015_v57 = vpop.f32.mrf.mxu0 }
 0x1d9   : > { %10340 = vst [vmem:[#allocation37_spill] sm:$0xff] %v7015_v57 }
 0x1da   : > { %1546 = vadd.xlane.f32.xlu0 %v6962_v55  ;;  %v7018_v35 = vpop.f32.mrf.mxu0 }
 0x1db   : > { %10341 = vst [vmem:[#allocation38_spill] sm:$0xff] %v7018_v35 }
 0x1dc   : > { %1740 = vadd.xlane.f32.xlu1 %v1659_v11  ;;  %v7022_v2 = vpop.f32.mrf.mxu0 }
 0x1dd   : > { %10342 = vst [vmem:[#allocation39_spill] sm:$0xff] %v7022_v2 }
 0x1de   : > { %1738 = vadd.xlane.f32.xlu0 %v1658_v3  ;;  %v7026_v45 = vpop.f32.mrf.mxu0  ;;  %v1667_v3 = vmul.f32 %v6987_v61, %v6987_v61 }
 0x1df   : > { %10343 = vst [vmem:[#allocation40_spill] sm:$0xff] %v7026_v45 }
 0x1e0   : > { %1552 = vadd.xlane.f32.xlu1 %v6966_v7  ;;  %v7029_v0 = vpop.f32.mrf.mxu0 }
 0x1e1   : > { %10344 = vst [vmem:[#allocation41_spill] sm:$0xff] %v7029_v0 }
 0x1e2   : > { %1550 = vadd.xlane.f32.xlu0 %v6970_v9  ;;  %v7032_v15 = vpop.f32.mrf.mxu0 }
 0x1e3   : > { %10345 = vst [vmem:[#allocation42_spill] sm:$0xff] %v7032_v15 }
 0x1e4   : > { %1744 = vadd.xlane.f32.xlu1 %v1661_v19  ;;  %v7036_v42 = vpop.f32.mrf.mxu0 }
 0x1e5   : > { %10346 = vst [vmem:[#allocation43_spill] sm:$0xff] %v7036_v42 }
 0x1e6   : > { %1742 = vadd.xlane.f32.xlu0 %v1660_v49  ;;  %v7040_v63 = vpop.f32.mrf.mxu0  ;;  %v1666_v49 = vmul.f32 %v6990_v62, %v6990_v62 }
 0x1e7   : > { %10347 = vst [vmem:[#allocation44_spill] sm:$0xff] %v7040_v63 }
 0x1e8   : > { %1556 = vadd.xlane.f32.xlu1 %v6973_v37  ;;  %v7043_v6 = vpop.f32.mrf.mxu0 }
 0x1e9   : > { %10348 = vst [vmem:[#allocation45_spill] sm:$0xff] %v7043_v6 }
 0x1ea   : > { %1554 = vadd.xlane.f32.xlu0 %v6976_v38  ;;  %v7046_v4 = vpop.f32.mrf.mxu0 }
 0x1eb   : > { %10349 = vst [vmem:[#allocation46_spill] sm:$0xff] %v7046_v4 }
 0x1ec   : > { %1748 = vadd.xlane.f32.xlu1 %v1663_v8  ;;  %v7050_v40 = vpop.f32.mrf.mxu0 }
 0x1ed   : > { %10350 = vst [vmem:[#allocation47_spill] sm:$0xff] %v7050_v40 }
 0x1ee   : > { %1746 = vadd.xlane.f32.xlu0 %v1662_v58  ;;  %v7054_v20 = vpop.f32.mrf.mxu0  ;;  %v1669_v58 = vmul.f32 %v6994_v21, %v6994_v21 }
 0x1ef   : > { %10351 = vst [vmem:[#allocation48_spill] sm:$0xff] %v7054_v20 }
 0x1f0   : > { %1560 = vadd.xlane.f32.xlu1 %v6980_v51  ;;  %v7060_v31 = vpop.f32.mrf.mxu0 }
 0x1f1   : > { %10352 = vst [vmem:[#allocation49_spill] sm:$0xff] %v7060_v31 }
 0x1f2   : > { %1558 = vadd.xlane.f32.xlu0 %v6984_v59  ;;  %v7064_v11 = vpop.f32.mrf.mxu0 }
 0x1f3   : > { %10353 = vst [vmem:[#allocation50_spill] sm:$0xff] %v7064_v11 }
 0x1f4   : > { %1752 = vadd.xlane.f32.xlu1 %v1665_v22  ;;  %v7070_v19 = vpop.f32.mrf.mxu0 }
 0x1f5   : > { %10354 = vst [vmem:[#allocation51_spill] sm:$0xff] %v7070_v19 }
 0x1f6   : > { %1750 = vadd.xlane.f32.xlu0 %v1664_v47  ;;  %v7074_v8 = vpop.f32.mrf.mxu0  ;;  %v1668_v47 = vmul.f32 %v6998_v24, %v6998_v24 }
 0x1f7   : > { %10355 = vst [vmem:[#allocation52_spill] sm:$0xff] %v7074_v8 }
 0x1f8   : > { %1564 = vadd.xlane.f32.xlu1 %v6987_v61  ;;  %v7080_v22 = vpop.f32.mrf.mxu0 }
 0x1f9   : > { %10356 = vst [vmem:[#allocation53_spill] sm:$0xff] %v7080_v22 }
 0x1fa   : > { %1562 = vadd.xlane.f32.xlu0 %v6990_v62 }
 0x1fc   : > { %1756 = vadd.xlane.f32.xlu1 %v1667_v3  ;;  %v7084_v3 = vpop.f32.mrf.mxu0 }
 0x1fd   : > { %10357 = vst [vmem:[#allocation54_spill] sm:$0xff] %v7084_v3 }
 0x1fe   : > { %1754 = vadd.xlane.f32.xlu0 %v1666_v49  ;;  %v1671_v49 = vmul.f32 %v7001_v25, %v7001_v25  ;;  %v7090_v1 = vpop.f32.mrf.mxu0 }
 0x1ff   : > { %10358 = vst [vmem:[#allocation55_spill] sm:$0xff] %v7090_v1 }
 0x200   : > { %1568 = vadd.xlane.f32.xlu1 %v6994_v21 }
 0x202   : > { %1566 = vadd.xlane.f32.xlu0 %v6998_v24  ;;  %v1677_v24 = vmul.f32 %v7022_v2, %v7022_v2 }
 0x204   : > { %1760 = vadd.xlane.f32.xlu1 %v1669_v58  ;;  %v7094_v58 = vpop.f32.mrf.mxu0 }
 0x205   : > { %10359 = vst [vmem:[#allocation56_spill] sm:$0xff] %v7094_v58 }
 0x206   : > { %1758 = vadd.xlane.f32.xlu0 %v1668_v47  ;;  %v1673_v47 = vmul.f32 %v7008_v34, %v7008_v34  ;;  %v7100_v43 = vpop.f32.mrf.mxu0 }
 0x207   : > { %10360 = vst [vmem:[#allocation57_spill] sm:$0xff] %v7100_v43 }
 0x208   : > { %1572 = vadd.xlane.f32.xlu1 %v7001_v25  ;;  %v1672_v25 = vmul.f32 %v7012_v56, %v7012_v56 }
 0x20a   : > { %1570 = vadd.xlane.f32.xlu0 %v7004_v29 }
 0x20c   : > { %1764 = vadd.xlane.f32.xlu1 %v1671_v49  ;;  %v7104_v49 = vpop.f32.mrf.mxu0 }
 0x20d   : > { %10361 = vst [vmem:[#allocation58_spill] sm:$0xff] %v7104_v49 }
 0x20e   : > { %1762 = vadd.xlane.f32.xlu0 %v1670_v5  ;;  %v1675_v5 = vmul.f32 %v7015_v57, %v7015_v57  ;;  %v7110_v29 = vpop.f32.mrf.mxu0 }
 0x20f   : > { %10362 = vst [vmem:[#allocation59_spill] sm:$0xff] %v7110_v29 }
 0x210   : > { %1576 = vadd.xlane.f32.xlu1 %v7008_v34  ;;  %v1674_v34 = vmul.f32 %v7018_v35, %v7018_v35 }
 0x212   : > { %1574 = vadd.xlane.f32.xlu0 %v7012_v56 }
 0x214   : > { %1768 = vadd.xlane.f32.xlu1 %v1673_v47  ;;  %v7114_v47 = vpop.f32.mrf.mxu0 }
 0x215   : > { %10363 = vst [vmem:[#allocation60_spill] sm:$0xff] %v7114_v47 }
 0x216   : > { %1766 = vadd.xlane.f32.xlu0 %v1672_v25 }
 0x218   : > { %1580 = vadd.xlane.f32.xlu1 %v7015_v57  ;;  %v7122_v57 = vpop.f32.mrf.mxu0 }
 0x219   : > { %10364 = vst [vmem:[#allocation61_spill] sm:$0xff] %v7122_v57 }
 0x21a   : > { %1578 = vadd.xlane.f32.xlu0 %v7018_v35  ;;  %v7130_v61 = vpop.f32.mrf.mxu0 }
 0x21b   : > { %10365 = vst [vmem:[#allocation62_spill] sm:$0xff] %v7130_v61 }
 0x21c   : > { %1772 = vadd.xlane.f32.xlu1 %v1675_v5 }
 0x21e   : > { %1770 = vadd.xlane.f32.xlu0 %v1674_v34  ;;  %v1676_v34 = vmul.f32 %v7026_v45, %v7026_v45 }
 0x220   : > { %1584 = vadd.xlane.f32.xlu1 %v7022_v2 }
 0x221   : > { %v1517_v25 = vpop.xlane.xlu1 %1516 }
 0x222   : > { %v7117_v56 = vmul.f32 0.0078125, %v1517_v25  ;;  %1582 = vadd.xlane.f32.xlu0 %v7026_v45 }
 0x223   : > { %v1515_v21 = vpop.xlane.xlu0 %1514 }
 0x224   : > { %v7124_v5 = vmul.f32 0.0078125, %v1515_v21  ;;  %1776 = vadd.xlane.f32.xlu1 %v1677_v24  ;;  %v1963_v62 = vmul.f32 %v7117_v56, %v7117_v56 }
 0x225   : > { %v1709_v35 = vpop.xlane.xlu1 %1708 }
 0x226   : > { %v1899_v25 = vmul.f32 0.0078125, %v1709_v35  ;;  %1774 = vadd.xlane.f32.xlu0 %v1676_v34  ;;  %v1962_v2 = vmul.f32 %v7124_v5, %v7124_v5  ;;  %v1679_v35 = vmul.f32 %v7029_v0, %v7029_v0  ;;  %v7140_v34 = vpop.f32.mrf.mxu0 }
 0x227   : > { %v1707_v59 = vpop.xlane.xlu0 %1706  ;;  %10366 = vst [vmem:[#allocation63_spill] sm:$0xff] %v7140_v34 }
 0x228   : > { %v2027_v51 = vsub.f32 %v1899_v25, %v1963_v62  ;;  %v1898_v38 = vmul.f32 0.0078125, %v1707_v59  ;;  %1588 = vadd.xlane.f32.xlu1 %v7029_v0  ;;  %v1678_v59 = vmul.f32 %v7032_v15, %v7032_v15 }
 0x229   : > { %v1521_v21 = vpop.xlane.xlu1 %1520 }
 0x22a   : > { %v2091_v24 = vmax.f32 %v2027_v51, 0.0  ;;  %v2026_v37 = vsub.f32 %v1898_v38, %v1962_v2  ;;  %v7135_v45 = vmul.f32 0.0078125, %v1521_v21  ;;  %1586 = vadd.xlane.f32.xlu0 %v7032_v15  ;;  %v7148_v21 = vpop.f32.mrf.mxu0  ;;  %v6469_v15 = vmov 2  }
 0x22b   : > { %v1519_v36 = vpop.xlane.xlu0 %1518  ;;  %10367 = vst [vmem:[#allocation64_spill] sm:$0xff] %v7148_v21  ;;  %6033 = vset.pattern.permute.xlu1 %v6469_v15  ;;  %6032 = vset.pattern.permute.xlu0 %v6469_v15 }
 0x22c   : > { %v2219_v9 = vadd.f32 1e-05, %v2091_v24  ;;  %v2090_v7 = vmax.f32 %v2026_v37, 0.0  ;;  %1780 = vadd.xlane.f32.xlu1 %v1679_v35  ;;  %v7144_v62 = vmul.f32 0.0078125, %v1519_v36  ;;  %v1965_v2 = vmul.f32 %v7135_v45, %v7135_v45 }
 0x22d   : > { %v1713_v51 = vpop.xlane.xlu1 %1712 }
 0x22e   : > { %6035 = vrsqrt.f32 %v2219_v9  ;;  %v2218_v38 = vadd.f32 1e-05, %v2090_v7  ;;  %v1901_v25 = vmul.f32 0.0078125, %v1713_v51  ;;  %1778 = vadd.xlane.f32.xlu0 %v1678_v59  ;;  %v1964_v24 = vmul.f32 %v7144_v62, %v7144_v62  ;;  %v7158_v51 = vpop.f32.mrf.mxu0 }
 0x22f   : > { %v1711_v37 = vpop.xlane.xlu0 %1710  ;;  %v1681_v59 = vmul.f32 %v7036_v42, %v7036_v42  ;;  %10368 = vst [vmem:[#allocation65_spill] sm:$0xff] %v7158_v51 }
 0x230   : > { %6037 = vrsqrt.f32 %v2218_v38  ;;  %v2029_v35 = vsub.f32 %v1901_v25, %v1965_v2  ;;  %v1900_v0 = vmul.f32 0.0078125, %v1711_v37  ;;  %1592 = vadd.xlane.f32.xlu1 %v7036_v42  ;;  %v1680_v37 = vmul.f32 %v7040_v63, %v7040_v63 }
 0x231   : > { %v1525_v36 = vpop.xlane.xlu1 %1524 }
 0x232   : > { %v2093_v7 = vmax.f32 %v2029_v35, 0.0  ;;  %v2028_v9 = vsub.f32 %v1900_v0, %v1964_v24  ;;  %v7153_v55 = vmul.f32 0.0078125, %v1525_v36  ;;  %1590 = vadd.xlane.f32.xlu0 %v7040_v63  ;;  %v7166_v36 = vpop.f32.mrf.mxu0 }
 0x233   : > { %v1523_v38 = vpop.xlane.xlu0 %1522  ;;  %10369 = vst [vmem:[#allocation66_spill] sm:$0xff] %v7166_v36 }
 0x234   : > { %v2221_v2 = vadd.f32 1e-05, %v2093_v7  ;;  %v2092_v25 = vmax.f32 %v2028_v9, 0.0  ;;  %1784 = vadd.xlane.f32.xlu1 %v1681_v59  ;;  %v7162_v18 = vmul.f32 0.0078125, %v1523_v38  ;;  %v1967_v24 = vmul.f32 %v7153_v55, %v7153_v55  ;;  %v7176_v30 = vpop.f32.mrf.mxu0 }
 0x235   : > { %v1717_v15 = vpop.xlane.xlu1 %1716  ;;  %10370 = vst [vmem:[#allocation67_spill] sm:$0xff] %v7176_v30 }
 0x236   : > { %6039 = vrsqrt.f32 %v2221_v2  ;;  %v2220_v0 = vadd.f32 1e-05, %v2092_v25  ;;  %v1903_v35 = vmul.f32 0.0078125, %v1717_v15  ;;  %1782 = vadd.xlane.f32.xlu0 %v1680_v37  ;;  %v1966_v7 = vmul.f32 %v7162_v18, %v7162_v18 }
 0x237   : > { %v1715_v42 = vpop.xlane.xlu0 %1714  ;;  %v1683_v37 = vmul.f32 %v7043_v6, %v7043_v6 }
 0x238   : > { %6041 = vrsqrt.f32 %v2220_v0  ;;  %v2031_v9 = vsub.f32 %v1903_v35, %v1967_v24  ;;  %v1902_v59 = vmul.f32 0.0078125, %v1715_v42  ;;  %1596 = vadd.xlane.f32.xlu1 %v7043_v6  ;;  %v2155_v0 = vsub.f32 %v6902_v41, %v7117_v56 }
 0x239   : > { %v1529_v38 = vpop.xlane.xlu1 %1528  ;;  %v2154_v42 = vsub.f32 %v6905_v44, %v7124_v5 }
 0x23a   : > { %v2095_v63 = vmax.f32 %v2031_v9, 0.0  ;;  %v2030_v2 = vsub.f32 %v1902_v59, %v1966_v7  ;;  %v7171_v25 = vmul.f32 0.0078125, %v1529_v38  ;;  %1594 = vadd.xlane.f32.xlu0 %v7046_v4  ;;  %v1682_v7 = vmul.f32 %v7046_v4, %v7046_v4 }
 0x23b   : > { %v6036_v15 = vpop.eup %6035  ;;  %v1527_v24 = vpop.xlane.xlu0 %1526 }
 0x23c   : > { %v2223_v35 = vadd.f32 1e-05, %v2095_v63  ;;  %v2094_v9 = vmax.f32 %v2030_v2, 0.0  ;;  %1788 = vadd.xlane.f32.xlu1 %v1683_v37  ;;  %v1969_v38 = vmul.f32 %v7171_v25, %v7171_v25  ;;  %v7186_v6 = vmul.f32 0.0078125, %v1527_v24  ;;  %v7192_v63 = vpop.f32.mrf.mxu0 }
 0x23d   : > { %v6038_v59 = vpop.eup %6037  ;;  %v1721_v17 = vpop.xlane.xlu1 %1720  ;;  %v7188_v12 = vmul.f32 %v6036_v15, %v2155_v0  ;;  %10373 = vst [vmem:[#allocation70_spill] sm:$0xff] %v7192_v63 }
 0x23e   : > { %6043 = vrsqrt.f32 %v2223_v35  ;;  %v2222_v41 = vadd.f32 1e-05, %v2094_v9  ;;  %v1905_v56 = vmul.f32 0.0078125, %v1721_v17  ;;  %1786 = vadd.xlane.f32.xlu0 %v1682_v7  ;;  %v7190_v44 = vmul.f32 %v6038_v59, %v2154_v42  ;;  %v7197_v15 = vpop.f32.mrf.mxu0 }
 0x23f   : > { %10371 = vst [vmem:[#allocation68_spill] sm:$0xff] %v7188_v12  ;;  %v1719_v5 = vpop.xlane.xlu0 %1718  ;;  %v1968_v2 = vmul.f32 %v7186_v6, %v7186_v6  ;;  %v2723_v42 = vmul.f32 %v7197_v15, %v7197_v15  ;;  %v2157_v7 = vsub.f32 %v6910_v46, %v7135_v45 }
 0x240   : > { %10372 = vst [vmem:[#allocation69_spill] sm:$0xff] %v7190_v44  ;;  %6045 = vrsqrt.f32 %v2222_v41  ;;  %v2033_v37 = vsub.f32 %v1905_v56, %v1969_v38  ;;  %v1904_v4 = vmul.f32 0.0078125, %v1719_v5  ;;  %1600 = vadd.xlane.f32.xlu1 %v7050_v40  ;;  %v2156_v38 = vsub.f32 %v6914_v10, %v7144_v62 }
 0x241   : > { %v1533_v24 = vpop.xlane.xlu1 %1532  ;;  %v1685_v5 = vmul.f32 %v7050_v40, %v7050_v40 }
 0x242   : > { %v2097_v0 = vmax.f32 %v2033_v37, 0.0  ;;  %v2032_v35 = vsub.f32 %v1904_v4, %v1968_v2  ;;  %v7199_v17 = vmul.f32 0.0078125, %v1533_v24  ;;  %1598 = vadd.xlane.f32.xlu0 %v7054_v20  ;;  %v7215_v24 = vpop.f32.mrf.mxu0 }
 0x243   : > { %v6040_v9 = vpop.eup %6039  ;;  %v1531_v59 = vpop.xlane.xlu0 %1530  ;;  %10374 = vst [vmem:[#allocation71_spill] sm:$0xff] %v7215_v24 }
 0x244   : > { %v2225_v41 = vadd.f32 1e-05, %v2097_v0  ;;  %v2096_v56 = vmax.f32 %v2032_v35, 0.0  ;;  %2719 = vadd.xlane.f32.xlu1 %v7197_v15  ;;  %v1971_v2 = vmul.f32 %v7199_v17, %v7199_v17  ;;  %v7213_v37 = vmul.f32 0.0078125, %v1531_v59  ;;  %v7221_v12 = vpop.f32.mrf.mxu0 }
 0x245   : > { %v6042_v4 = vpop.eup %6041  ;;  %v1725_v46 = vpop.xlane.xlu1 %1724  ;;  %v7217_v45 = vmul.f32 %v6040_v9, %v2157_v7 }
 0x246   : > { %6047 = vrsqrt.f32 %v2225_v41  ;;  %v2224_v10 = vadd.f32 1e-05, %v2096_v56  ;;  %v1907_v62 = vmul.f32 0.0078125, %v1725_v46  ;;  %2725 = vadd.xlane.f32.xlu0 %v2723_v42  ;;  %v7219_v0 = vmul.f32 %v6042_v4, %v2156_v38 }
 0x247   : > { %v1723_v35 = vpop.xlane.xlu0 %1722  ;;  %v1970_v40 = vmul.f32 %v7213_v37, %v7213_v37  ;;  %v2159_v38 = vsub.f32 %v6917_v14, %v7153_v55  ;;  %v1684_v56 = vmul.f32 %v7054_v20, %v7054_v20  ;;  %v2158_v4 = vsub.f32 %v6920_v13, %v7162_v18 }
 0x248   : > { %6049 = vrsqrt.f32 %v2224_v10  ;;  %v2035_v59 = vsub.f32 %v1907_v62, %v1971_v2  ;;  %v1906_v44 = vmul.f32 0.0078125, %v1723_v35  ;;  %1792 = vadd.xlane.f32.xlu1 %v1685_v5 }
 0x249   : > { %v1537_v24 = vpop.xlane.xlu1 %1536 }
 0x24a   : > { %v2099_v39 = vmax.f32 %v2035_v59, 0.0  ;;  %v2034_v9 = vsub.f32 %v1906_v44, %v1970_v40  ;;  %v7225_v7 = vmul.f32 0.0078125, %v1537_v24  ;;  %2721 = vadd.xlane.f32.xlu0 %v7221_v12  ;;  %v1687_v44 = vmul.f32 %v7060_v31, %v7060_v31 }
 0x24b   : > { %v6044_v42 = vpop.eup %6043  ;;  %v1535_v41 = vpop.xlane.xlu0 %1534 }
 0x24c   : > { %v2227_v2 = vadd.f32 1e-05, %v2099_v39  ;;  %v2098_v5 = vmax.f32 %v2034_v9, 0.0  ;;  %1604 = vadd.xlane.f32.xlu1 %v7060_v31  ;;  %v1973_v24 = vmul.f32 %v7225_v7, %v7225_v7  ;;  %v7239_v46 = vmul.f32 0.0078125, %v1535_v41 }
 0x24d   : > { %v6046_v40 = vpop.eup %6045  ;;  %v1729_v14 = vpop.xlane.xlu1 %1728  ;;  %v7241_v55 = vmul.f32 %v6044_v42, %v2159_v38  ;;  %v2161_v38 = vsub.f32 %v6924_v16, %v7171_v25 }
 0x24e   : > { %6051 = vrsqrt.f32 %v2227_v2  ;;  %v2226_v10 = vadd.f32 1e-05, %v2098_v5  ;;  %v1909_v62 = vmul.f32 0.0078125, %v1729_v14  ;;  %1790 = vadd.xlane.f32.xlu0 %v1684_v56  ;;  %v7243_v39 = vmul.f32 %v6046_v40, %v2158_v4 }
 0x24f   : > { %v1727_v13 = vpop.xlane.xlu0 %1726  ;;  %v1972_v18 = vmul.f32 %v7239_v46, %v7239_v46  ;;  %v1686_v4 = vmul.f32 %v7064_v11, %v7064_v11  ;;  %v2160_v2 = vsub.f32 %v6928_v50, %v7186_v6 }
 0x250   : > { %6053 = vrsqrt.f32 %v2226_v10  ;;  %v2037_v35 = vsub.f32 %v1909_v62, %v1973_v24  ;;  %v1908_v59 = vmul.f32 0.0078125, %v1727_v13  ;;  %1796 = vadd.xlane.f32.xlu1 %v1687_v44  ;;  %v1689_v24 = vmul.f32 %v7070_v19, %v7070_v19 }
 0x251   : > { %v1541_v9 = vpop.xlane.xlu1 %1540 }
 0x252   : > { %v2101_v41 = vmax.f32 %v2037_v35, 0.0  ;;  %v2036_v31 = vsub.f32 %v1908_v59, %v1972_v18  ;;  %v7247_v20 = vmul.f32 0.0078125, %v1541_v9  ;;  %1602 = vadd.xlane.f32.xlu0 %v7064_v11  ;;  %v6304_v11 = vld [vmem:[%s6611_s16] sm:$0xff] }
 0x253   : > { %v6048_v42 = vpop.eup %6047  ;;  %v1539_v56 = vpop.xlane.xlu0 %1538 }
 0x254   : > { %v2229_v5 = vadd.f32 1e-05, %v2101_v41  ;;  %v2100_v40 = vmax.f32 %v2036_v31, 0.0  ;;  %1608 = vadd.xlane.f32.xlu1 %v7070_v19  ;;  %v1975_v14 = vmul.f32 %v7247_v20, %v7247_v20  ;;  %v7261_v10 = vmul.f32 0.0078125, %v1539_v56 }
 0x255   : > { %v6050_v44 = vpop.eup %6049  ;;  %v1733_v16 = vpop.xlane.xlu1 %1732  ;;  %v7263_v25 = vmul.f32 %v6048_v42, %v2161_v38  ;;  %v2163_v38 = vsub.f32 %v6931_v32, %v7199_v17 }
 0x256   : > { %6055 = vrsqrt.f32 %v2229_v5  ;;  %v2228_v62 = vadd.f32 1e-05, %v2100_v40  ;;  %v1911_v13 = vmul.f32 0.0078125, %v1733_v16  ;;  %1794 = vadd.xlane.f32.xlu0 %v1686_v4  ;;  %v7265_v50 = vmul.f32 %v6050_v44, %v2160_v2 }
 0x257   : > { %v1731_v6 = vpop.xlane.xlu0 %1730  ;;  %v1974_v31 = vmul.f32 %v7261_v10, %v7261_v10  ;;  %v1688_v2 = vmul.f32 %v7074_v8, %v7074_v8  ;;  %v2162_v5 = vsub.f32 %v6934_v33, %v7213_v37  ;;  %v2724_v37 = vmul.f32 %v7221_v12, %v7221_v12 }
 0x258   : > { %6057 = vrsqrt.f32 %v2228_v62  ;;  %v2039_v18 = vsub.f32 %v1911_v13, %v1975_v14  ;;  %v1910_v35 = vmul.f32 0.0078125, %v1731_v6  ;;  %1800 = vadd.xlane.f32.xlu1 %v1689_v24  ;;  %v1691_v14 = vmul.f32 %v7080_v22, %v7080_v22 }
 0x259   : > { %v1545_v59 = vpop.xlane.xlu1 %1544 }
 0x25a   : > { %v2103_v9 = vmax.f32 %v2039_v18, 0.0  ;;  %v2038_v41 = vsub.f32 %v1910_v35, %v1974_v31  ;;  %v7269_v56 = vmul.f32 0.0078125, %v1545_v59  ;;  %1606 = vadd.xlane.f32.xlu0 %v7074_v8 }
 0x25b   : > { %v6052_v42 = vpop.eup %6051  ;;  %v1543_v4 = vpop.xlane.xlu0 %1542 }
 0x25c   : > { %v2231_v40 = vadd.f32 1e-05, %v2103_v9  ;;  %v2102_v44 = vmax.f32 %v2038_v41, 0.0  ;;  %1612 = vadd.xlane.f32.xlu1 %v7080_v22  ;;  %v1977_v16 = vmul.f32 %v7269_v56, %v7269_v56  ;;  %v7283_v62 = vmul.f32 0.0078125, %v1543_v4 }
 0x25d   : > { %v6054_v24 = vpop.eup %6053  ;;  %v1737_v32 = vpop.xlane.xlu1 %1736  ;;  %v7285_v17 = vmul.f32 %v6052_v42, %v2163_v38  ;;  %v2165_v4 = vsub.f32 %v6938_v48, %v7225_v7 }
 0x25e   : > { %6059 = vrsqrt.f32 %v2231_v40  ;;  %v2230_v13 = vadd.f32 1e-05, %v2102_v44  ;;  %v1913_v6 = vmul.f32 0.0078125, %v1737_v32  ;;  %1798 = vadd.xlane.f32.xlu0 %v1688_v2  ;;  %v7287_v33 = vmul.f32 %v6054_v24, %v2162_v5 }
 0x25f   : > { %v1735_v31 = vpop.xlane.xlu0 %1734  ;;  %v1976_v18 = vmul.f32 %v7283_v62, %v7283_v62  ;;  %v1690_v5 = vmul.f32 %v7084_v3, %v7084_v3  ;;  %v2164_v40 = vsub.f32 %v6942_v52, %v7239_v46  ;;  %v1693_v52 = vmul.f32 %v7090_v1, %v7090_v1 }
 0x260   : > { %6061 = vrsqrt.f32 %v2230_v13  ;;  %v2041_v35 = vsub.f32 %v1913_v6, %v1977_v16  ;;  %v1912_v59 = vmul.f32 0.0078125, %v1735_v31  ;;  %1804 = vadd.xlane.f32.xlu1 %v1691_v14 }
 0x261   : > { %v7293_v9 = vpop.xlane.xlu1 %1548 }
 0x262   : > { %v2105_v41 = vmax.f32 %v2041_v35, 0.0  ;;  %v2040_v42 = vsub.f32 %v1912_v59, %v1976_v18  ;;  %1610 = vadd.xlane.f32.xlu0 %v7084_v3  ;;  %v1692_v18 = vmul.f32 %v7094_v58, %v7094_v58  ;;  %v2166_v35 = vsub.f32 %v6948_v53, %v7261_v10  ;;  %v325_v53 = vld [vmem:[#allocation5 + $0x178] sm:$0xff]  ;;  %v324_v10 = vld [vmem:[#allocation5 + $0x170] sm:$0xff] }
 0x263   : > { %v6056_v38 = vpop.eup %6055  ;;  %v7298_v2 = vpop.xlane.xlu0 %1546  ;;  %5675 = vmatprep.subr.mxu1 %v325_v53 }
 0x264   : > { %v2233_v44 = vadd.f32 1e-05, %v2105_v41  ;;  %v2104_v24 = vmax.f32 %v2040_v42, 0.0  ;;  %2727 = vadd.xlane.f32.xlu1 %v2724_v37  ;;  %v7306_v32 = vmul.f32 %v6056_v38, %v2165_v4  ;;  %v2167_v37 = vsub.f32 %v6945_v23, %v7247_v20  ;;  %5676 = vmatpush3.msra.mxu1 %v325_v53 }
 0x265   : > { %v6058_v14 = vpop.eup %6057  ;;  %v7304_v16 = vpop.xlane.xlu1 %1740  ;;  %v1695_v20 = vmul.f32 %v7100_v43, %v7100_v43  ;;  %5677 = vmatprep.subr.mxu1 %v324_v10  ;;  %v1696_v53 = vmul.f32 %v7114_v47, %v7114_v47 }
 0x266   : > { %6063 = vrsqrt.f32 %v2233_v44  ;;  %v2232_v13 = vadd.f32 1e-05, %v2104_v24  ;;  %1802 = vadd.xlane.f32.xlu0 %v1690_v5  ;;  %v7308_v48 = vmul.f32 %v6058_v14, %v2164_v40  ;;  %v2169_v40 = vsub.f32 %v6952_v60, %v7269_v56  ;;  %5678 = vmatpush3.msra.mxu1 %v324_v10 }
 0x267   : > { %v7310_v7 = vpop.xlane.xlu0 %1738  ;;  %v1694_v24 = vmul.f32 %v7104_v49, %v7104_v49  ;;  %v2168_v14 = vsub.f32 %v6956_v54, %v7283_v62  ;;  %v321_v62 = vld [vmem:[#allocation5 + $0x158] sm:$0xff] }
 0x268   : > { %6065 = vrsqrt.f32 %v2232_v13  ;;  %1616 = vadd.xlane.f32.xlu1 %v7090_v1 }
 0x269   : > { %v7313_v6 = vpop.xlane.xlu1 %1552 }
 0x26a   : > { %1614 = vadd.xlane.f32.xlu0 %v7094_v58 }
 0x26b   : > { %v6060_v46 = vpop.eup %6059  ;;  %v7320_v31 = vpop.xlane.xlu0 %1550 }
 0x26c   : > { %1808 = vadd.xlane.f32.xlu1 %v1693_v52  ;;  %v7328_v42 = vmul.f32 %v6060_v46, %v2167_v37  ;;  %v323_v37 = vld [vmem:[#allocation5 + $0x168] sm:$0xff] }
 0x26d   : > { %v6062_v59 = vpop.eup %6061  ;;  %v7326_v41 = vpop.xlane.xlu1 %1744  ;;  %5679 = vmatprep.subr.mxu1 %v323_v37 }
 0x26e   : > { %1806 = vadd.xlane.f32.xlu0 %v1692_v18  ;;  %v7330_v38 = vmul.f32 %v6062_v59, %v2166_v35  ;;  %v322_v18 = vld [vmem:[#allocation5 + $0x160] sm:$0xff]  ;;  %5680 = vmatpush3.msra.mxu1 %v323_v37  ;;  %v1697_v35 = vmul.f32 %v7110_v29, %v7110_v29  ;;  %v1699_v37 = vmul.f32 %v7122_v57, %v7122_v57 }
 0x26f   : > { %v7332_v4 = vpop.xlane.xlu0 %1742  ;;  %5681 = vmatprep.subr.mxu1 %v322_v18 }
 0x270   : > { %1620 = vadd.xlane.f32.xlu1 %v7100_v43  ;;  %5682 = vmatpush3.msra.mxu1 %v322_v18  ;;  %v7401_v43 = vld [vmem:[#allocation5 + $0x1f8] sm:$0xff] }
 0x271   : > { %v7335_v23 = vpop.xlane.xlu1 %1556  ;;  %5683 = vmatprep.subr.mxu1 %v321_v62 }
 0x272   : > { %1618 = vadd.xlane.f32.xlu0 %v7104_v49  ;;  %5684 = vmatpush3.msra.mxu1 %v321_v62  ;;  %v316_v62 = vld [vmem:[#allocation5 + $0x130] sm:$0xff] }
 0x273   : > { %v6064_v5 = vpop.eup %6063  ;;  %v7342_v44 = vpop.xlane.xlu0 %1554 }
 0x274   : > { %1812 = vadd.xlane.f32.xlu1 %v1695_v20  ;;  %v7350_v46 = vmul.f32 %v6064_v5, %v2169_v40  ;;  %v320_v20 = vld [vmem:[#allocation5 + $0x150] sm:$0xff]  ;;  %v319_v5 = vld [vmem:[#allocation5 + $0x148] sm:$0xff] }
 0x275   : > { %v6066_v13 = vpop.eup %6065  ;;  %v7348_v52 = vpop.xlane.xlu1 %1748  ;;  %5685 = vmatprep.subr.mxu1 %v320_v20 }
 0x276   : > { %1810 = vadd.xlane.f32.xlu0 %v1694_v24  ;;  %v7352_v60 = vmul.f32 %v6066_v13, %v2168_v14  ;;  %5686 = vmatpush3.msra.mxu1 %v320_v20  ;;  %v318_v24 = vld [vmem:[#allocation5 + $0x140] sm:$0xff]  ;;  %v317_v13 = vld [vmem:[#allocation5 + $0x138] sm:$0xff] }
 0x277   : > { %v7354_v56 = vpop.xlane.xlu0 %1746  ;;  %5687 = vmatprep.subr.mxu1 %v319_v5 }
 0x278   : > { %1624 = vadd.xlane.f32.xlu1 %v7110_v29  ;;  %5688 = vmatpush3.msra.mxu1 %v319_v5  ;;  %v313_v29 = vld [vmem:[#allocation5 + $0x118] sm:$0xff] }
 0x279   : > { %v7357_v54 = vpop.xlane.xlu1 %1560  ;;  %5689 = vmatprep.subr.mxu1 %v318_v24 }
 0x27a   : > { %1622 = vadd.xlane.f32.xlu0 %v7114_v47  ;;  %5690 = vmatpush3.msra.mxu1 %v318_v24 }
 0x27b   : > { %v7362_v59 = vpop.xlane.xlu0 %1558  ;;  %5691 = vmatprep.subr.mxu1 %v317_v13 }
 0x27c   : > { %1816 = vadd.xlane.f32.xlu1 %v1697_v35  ;;  %v1698_v35 = vmul.f32 %v7130_v61, %v7130_v61  ;;  %5692 = vmatpush3.msra.mxu1 %v317_v13 }
 0x27d   : > { %v7366_v10 = vpop.xlane.xlu1 %1752  ;;  %5693 = vmatprep.subr.mxu1 %v316_v62 }
 0x27e   : > { %1814 = vadd.xlane.f32.xlu0 %v1696_v53  ;;  %v315_v53 = vld [vmem:[#allocation5 + $0x128] sm:$0xff]  ;;  %5694 = vmatpush3.msra.mxu1 %v316_v62  ;;  %v1700_v62 = vmul.f32 %v7148_v21, %v7148_v21 }
 0x27f   : > { %v7368_v40 = vpop.xlane.xlu0 %1750  ;;  %5695 = vmatprep.subr.mxu1 %v315_v53 }
 0x280   : > { %1628 = vadd.xlane.f32.xlu1 %v7122_v57  ;;  %v314_v57 = vld [vmem:[#allocation5 + $0x120] sm:$0xff]  ;;  %5696 = vmatpush3.msra.mxu1 %v315_v53  ;;  %v311_v53 = vld [vmem:[#allocation5 + $0x108] sm:$0xff] }
 0x281   : > { %v7371_v14 = vpop.xlane.xlu1 %1564  ;;  %5697 = vmatprep.subr.mxu1 %v314_v57 }
 0x282   : > { %1626 = vadd.xlane.f32.xlu0 %v7130_v61  ;;  %5698 = vmatpush3.msra.mxu1 %v314_v57 }
 0x283   : > { %v7376_v18 = vpop.xlane.xlu0 %1562  ;;  %5699 = vmatprep.subr.mxu1 %v313_v29 }
 0x284   : > { %1820 = vadd.xlane.f32.xlu1 %v1699_v37  ;;  %v1701_v37 = vmul.f32 %v7140_v34, %v7140_v34  ;;  %5700 = vmatpush3.msra.mxu1 %v313_v29 }
 0x285   : > { %v7380_v20 = vpop.xlane.xlu1 %1756 }
 0x286   : > { %1818 = vadd.xlane.f32.xlu0 %v1698_v35  ;;  %v312_v35 = vld [vmem:[#allocation5 + $0x110] sm:$0xff] }
 0x287   : > { %v7382_v5 = vpop.xlane.xlu0 %1754  ;;  %5701 = vmatprep.subr.mxu1 %v312_v35 }
 0x288   : > { %1632 = vadd.xlane.f32.xlu1 %v7140_v34  ;;  %5702 = vmatpush3.msra.mxu1 %v312_v35  ;;  %v310_v34 = vld [vmem:[#allocation5 + $0x100] sm:$0xff]  ;;  %v1702_v35 = vmul.f32 %v7166_v36, %v7166_v36 }
 0x289   : > { %v7385_v24 = vpop.xlane.xlu1 %1568  ;;  %5703 = vmatprep.subr.mxu1 %v311_v53 }
 0x28a   : > { %1630 = vadd.xlane.f32.xlu0 %v7148_v21  ;;  %5704 = vmatpush3.msra.mxu1 %v311_v53  ;;  %v1705_v21 = vmul.f32 %v7176_v30, %v7176_v30 }
 0x28b   : > { %v7390_v13 = vpop.xlane.xlu0 %1566  ;;  %5705 = vmatprep.subr.mxu1 %v310_v34 }
 0x28c   : > { %1824 = vadd.xlane.f32.xlu1 %v1701_v37  ;;  %v1703_v37 = vmul.f32 %v7158_v51, %v7158_v51  ;;  %5706 = vmatpush3.msra.mxu1 %v310_v34 }
 0x28d   : > { %v7394_v61 = vpop.xlane.xlu1 %1760  ;;  %5710 = vmatprep.subr.mxu1 %v7401_v43 }
 0x28e   : > { %1822 = vadd.xlane.f32.xlu0 %v1700_v62 }
 0x28f   : > { %v7396_v47 = vpop.xlane.xlu0 %1758 }
 0x290   : > { %1636 = vadd.xlane.f32.xlu1 %v7158_v51 }
 0x291   : > { %v7399_v57 = vpop.xlane.xlu1 %1572 }
 0x292   : > { %10375 = vst [vmem:[#allocation72_spill] sm:$0xff] %v7399_v57  ;;  %1634 = vadd.xlane.f32.xlu0 %v7166_v36 }
 0x293   : > { %v7406_v29 = vpop.xlane.xlu0 %1570 }
 0x294   : > { %10376 = vst [vmem:[#allocation73_spill] sm:$0xff] %v7406_v29  ;;  %1828 = vadd.xlane.f32.xlu1 %v1703_v37  ;;  %v1704_v37 = vmul.f32 %v7192_v63, %v7192_v63 }
 0x295   : > { %v7411_v62 = vpop.xlane.xlu1 %1764 }
 0x296   : > { %10377 = vst [vmem:[#allocation74_spill] sm:$0xff] %v7411_v62  ;;  %1826 = vadd.xlane.f32.xlu0 %v1702_v35 }
 0x297   : > { %v7413_v53 = vpop.xlane.xlu0 %1762 }
 0x298   : > { %10378 = vst [vmem:[#allocation75_spill] sm:$0xff] %v7413_v53  ;;  %1640 = vadd.xlane.f32.xlu1 %v7176_v30 }
 0x299   : > { %v7416_v51 = vpop.xlane.xlu1 %1576 }
 0x29a   : > { %10379 = vst [vmem:[#allocation76_spill] sm:$0xff] %v7416_v51  ;;  %1638 = vadd.xlane.f32.xlu0 %v7192_v63 }
 0x29b   : > { %v7421_v34 = vpop.xlane.xlu0 %1574 }
 0x29c   : > { %10380 = vst [vmem:[#allocation77_spill] sm:$0xff] %v7421_v34  ;;  %1832 = vadd.xlane.f32.xlu1 %v1705_v21  ;;  %v6303_v21 = vld [vmem:[%s6611_s16 + $0x8] sm:$0xff]  ;;  %s10108_s16 = scalar_lea.hbm %s10158_s6, %s5312_s15 }
 0x29d   : > { %v7425_v35 = vpop.xlane.xlu1 %1768 }
 0x29e   : > { %10381 = vst [vmem:[#allocation78_spill] sm:$0xff] %v7425_v35  ;;  %1830 = vadd.xlane.f32.xlu0 %v1704_v37 }
 0x29f   : > { %v7427_v36 = vpop.xlane.xlu0 %1766 }
 0x2a0   : > { %10382 = vst [vmem:[#allocation79_spill] sm:$0xff] %v7427_v36 }
 0x2a1   : > { %v7429_v49 = vpop.xlane.xlu1 %1580 }
 0x2a2   : > { %10383 = vst [vmem:[#allocation80_spill] sm:$0xff] %v7429_v49 }
 0x2a3   : > { %v7431_v1 = vpop.xlane.xlu0 %1578 }
 0x2a4   : > { %10384 = vst [vmem:[#allocation81_spill] sm:$0xff] %v7431_v1 }
 0x2a5   : > { %v7433_v58 = vpop.xlane.xlu1 %1772 }
 0x2a6   : > { %10385 = vst [vmem:[#allocation82_spill] sm:$0xff] %v7433_v58 }
 0x2a7   : > { %v7435_v30 = vpop.xlane.xlu0 %1770 }
 0x2a8   : > { %10386 = vst [vmem:[#allocation83_spill] sm:$0xff] %v7435_v30  ;;  %v10395_v30 = vmov 1  }
 0x2a9   : > { %v7437_v3 = vpop.xlane.xlu1 %1584 }
 0x2aa   : > { %10387 = vst [vmem:[#allocation84_spill] sm:$0xff] %v7437_v3 }
 0x2ab   : > { %v7439_v22 = vpop.xlane.xlu0 %1582 }
 0x2ac   : > { %10388 = vst [vmem:[#allocation85_spill] sm:$0xff] %v7439_v22 }
 0x2ad   : > { %v7441_v63 = vpop.xlane.xlu1 %1776  ;;  %421 = vperm.xlu1 %6033, %v6303_v21  }
 0x2ae   : > { %10389 = vst [vmem:[#allocation86_spill] sm:$0xff] %v7441_v63 }
 0x2af   : > { %v7444_v8 = vpop.xlane.xlu0 %1774 }
 0x2b0   : > { %10390 = vst [vmem:[#allocation87_spill] sm:$0xff] %v7444_v8 }
 0x2b1   : > { %v7446_v37 = vpop.xlane.xlu1 %1588 }
 0x2b2   : > { %10391 = vst [vmem:[#allocation88_spill] sm:$0xff] %v7446_v37 }
 0x2b3   : > { %v7448_v19 = vpop.xlane.xlu0 %1586 }
 0x2b4   : > { %10392 = vst [vmem:[#allocation89_spill] sm:$0xff] %v7448_v19  ;;  %417 = vperm.xlu0 %6032, %v6304_v11  }
 0x2b5   : > { %v7451_v1 = vpop.xlane.xlu1 %1780 }
 0x2b6   : > { %10393 = vst [vmem:[#allocation90_spill] sm:$0xff] %v7451_v1 }
 0x2b7   : > { %v7453_v58 = vpop.xlane.xlu0 %1778 }
 0x2b8   : > { %10394 = vst [vmem:[#allocation91_spill] sm:$0xff] %v7453_v58  ;;  %6034 = vset.pattern.permute.xlu0 %v10395_v30 }
 0x2b9   : > { %v7456_v3 = vpop.xlane.xlu1 %1592 }
 0x2ba   : > { %10396 = vst [vmem:[#allocation92_spill] sm:$0xff] %v7456_v3 }
 0x2bb   : > { %v7458_v22 = vpop.xlane.xlu0 %1590 }
 0x2bc   : > { %10397 = vst [vmem:[#allocation93_spill] sm:$0xff] %v7458_v22 }
 0x2bd   : > { %v7460_v63 = vpop.xlane.xlu1 %1784 }
 0x2be   : > { %10398 = vst [vmem:[#allocation94_spill] sm:$0xff] %v7460_v63 }
 0x2bf   : > { %v7462_v21 = vpop.xlane.xlu0 %1782 }
 0x2c0   : > { %10399 = vst [vmem:[#allocation95_spill] sm:$0xff] %v7462_v21 }
 0x2c1   : > { %v7464_v8 = vpop.xlane.xlu1 %1596 }
 0x2c2   : > { %10400 = vst [vmem:[#allocation96_spill] sm:$0xff] %v7464_v8 }
 0x2c3   : > { %v7466_v37 = vpop.xlane.xlu0 %1594 }
 0x2c4   : > { %10401 = vst [vmem:[#allocation97_spill] sm:$0xff] %v7466_v37 }
 0x2c5   : > { %v7468_v19 = vpop.xlane.xlu1 %1788 }
 0x2c6   : > { %10402 = vst [vmem:[#allocation98_spill] sm:$0xff] %v7468_v19 }
 0x2c7   : > { %v7470_v11 = vpop.xlane.xlu0 %1786 }
 0x2c8   : > { %10403 = vst [vmem:[#allocation99_spill] sm:$0xff] %v7470_v11 }
 0x2c9   : > { %v7472_v1 = vpop.xlane.xlu1 %1600 }
 0x2ca   : > { %10404 = vst [vmem:[#allocation100_spill] sm:$0xff] %v7472_v1 }
 0x2cb   : > { %v7474_v58 = vpop.xlane.xlu0 %1598 }
 0x2cc   : > { %10405 = vst [vmem:[#allocation101_spill] sm:$0xff] %v7474_v58 }
 0x2cd   : > { %v2720_v30 = vpop.xlane.xlu1 %2719 }
 0x2ce   : > { %v2729_v3 = vmul.f32 0.0078125, %v2720_v30 }
 0x2cf   : > { %v2726_v36 = vpop.xlane.xlu0 %2725 }
 0x2d0   : > { %v2733_v22 = vmul.f32 %v2729_v3, %v2729_v3  ;;  %v2731_v49 = vmul.f32 0.0078125, %v2726_v36 }
 0x2d1   : > { %v7476_v63 = vpop.xlane.xlu1 %1792 }
 0x2d2   : > { %10406 = vst [vmem:[#allocation102_spill] sm:$0xff] %v7476_v63  ;;  %v2735_v21 = vsub.f32 %v2731_v49, %v2733_v22  ;;  %v7493_v22 = vsub.s32 5, %v6629_v26 }
 0x2d3   : > { %v2722_v35 = vpop.xlane.xlu0 %2721 }
 0x2d4   : > { %v2737_v8 = vmax.f32 %v2735_v21, 0.0  ;;  %10414 = vst [vmem:[#allocation110_spill] sm:$0xff] %v7493_v22  ;;  %v2730_v63 = vmul.f32 0.0078125, %v2722_v35 }
 0x2d5   : > { %v7478_v34 = vpop.xlane.xlu1 %1604 }
 0x2d6   : > { %10407 = vst [vmem:[#allocation103_spill] sm:$0xff] %v7478_v34  ;;  %v2741_v37 = vadd.f32 1e-05, %v2737_v8  ;;  %v7498_v8 = vsub.s32 6, %v6629_v26 }
 0x2d7   : > { %v7480_v19 = vpop.xlane.xlu0 %1790 }
 0x2d8   : > { %10408 = vst [vmem:[#allocation104_spill] sm:$0xff] %v7480_v19  ;;  %6067 = vrsqrt.f32 %v2741_v37  ;;  %10416 = vst [vmem:[#allocation112_spill] sm:$0xff] %v7498_v8  ;;  %v2739_v37 = vsub.f32 %v7197_v15, %v2729_v3  ;;  %v2734_v15 = vmul.f32 %v2730_v63, %v2730_v63 }
 0x2d9   : > { %v7482_v11 = vpop.xlane.xlu1 %1796 }
 0x2da   : > { %10409 = vst [vmem:[#allocation105_spill] sm:$0xff] %v7482_v11 }
 0x2db   : > { %v7484_v1 = vpop.xlane.xlu0 %1602 }
 0x2dc   : > { %10410 = vst [vmem:[#allocation106_spill] sm:$0xff] %v7484_v1  ;;  %v7503_v1 = vld [vmem:[#allocation2] sm:$0xff] }
 0x2dd   : > { %v7486_v58 = vpop.xlane.xlu1 %1608  ;;  %v2756_v34 = vrot.slane %v7503_v1, %v7498_v8 }
 0x2de   : > { %10411 = vst [vmem:[#allocation107_spill] sm:$0xff] %v7486_v58  ;;  %v2750_v58 = vrot.slane %v7503_v1, %v7493_v22 }
 0x2df   : > { %v7488_v30 = vpop.xlane.xlu0 %1794 }
 0x2e0   : > { %10412 = vst [vmem:[#allocation108_spill] sm:$0xff] %v7488_v30 }
 0x2e1   : > { %v7490_v36 = vpop.xlane.xlu1 %1800 }
 0x2e2   : > { %10413 = vst [vmem:[#allocation109_spill] sm:$0xff] %v7490_v36 }
 0x2e3   : > { %v7495_v49 = vpop.xlane.xlu0 %1606 }
 0x2e4   : > { %10415 = vst [vmem:[#allocation111_spill] sm:$0xff] %v7495_v49 }
 0x2e5   : > { %v6068_v21 = vpop.eup %6067  ;;  %v7501_v11 = vpop.xlane.xlu1 %1612 }
 0x2e6   : > { %10417 = vst [vmem:[#allocation113_spill] sm:$0xff] %v7501_v11  ;;  %v2745_v36 = vmul.f32 %v6068_v21, %v2739_v37 }
 0x2e7   : > { %v7507_v30 = vpop.xlane.xlu0 %1798 }
 0x2e8   : > { %10418 = vst [vmem:[#allocation114_spill] sm:$0xff] %v7507_v30  ;;  %v2751_v19 = vmul.f32 %v2750_v58, %v2745_v36 }
 0x2e9   : > { %v7511_v49 = vpop.xlane.xlu1 %1804 }
 0x2ea   : > { %10419 = vst [vmem:[#allocation115_spill] sm:$0xff] %v7511_v49  ;;  %v2757_v3 = vadd.f32 %v2756_v34, %v2751_v19 }
 0x2eb   : > { %v7513_v51 = vpop.xlane.xlu0 %1610 }
 0x2ec   : > { %10420 = vst [vmem:[#allocation116_spill] sm:$0xff] %v7513_v51  ;;  %v2759_v53 = vmax.f32 %v2757_v3, 0.0 }
 0x2ed   : > { %v2728_v11 = vpop.xlane.xlu1 %2727 }
 0x2ee   : > { %v2732_v62 = vmul.f32 0.0078125, %v2728_v11  ;;  %5707 = vmatprep.mubr.f32.mxu1 %v2759_v53 }
 0x2ef   : > { %v7515_v29 = vpop.xlane.xlu0 %1802 }
 0x2f0   : > { %10421 = vst [vmem:[#allocation117_spill] sm:$0xff] %v7515_v29  ;;  %v2736_v22 = vsub.f32 %v2732_v62, %v2734_v15  ;;  %v336_v29 = vld [vmem:[#allocation5 + $0x1d0] sm:$0xff] }
 0x2f1   : > { %v7517_v30 = vpop.xlane.xlu1 %1616 }
 0x2f2   : > { %10422 = vst [vmem:[#allocation118_spill] sm:$0xff] %v7517_v30  ;;  %v2738_v21 = vmax.f32 %v2736_v22, 0.0  ;;  %v2740_v22 = vsub.f32 %v7221_v12, %v2730_v63  ;;  %v1915_v12 = vmul.f32 0.0078125, %v7304_v16 }
 0x2f3   : > { %v7519_v37 = vpop.xlane.xlu0 %1614 }
 0x2f4   : > { %10423 = vst [vmem:[#allocation119_spill] sm:$0xff] %v7519_v37  ;;  %v2742_v8 = vadd.f32 1e-05, %v2738_v21 }
 0x2f5   : > { %v7521_v49 = vpop.xlane.xlu1 %1808 }
 0x2f6   : > { %10424 = vst [vmem:[#allocation120_spill] sm:$0xff] %v7521_v49  ;;  %6069 = vrsqrt.f32 %v2742_v8 }
 0x2f7   : > { %v7523_v35 = vpop.xlane.xlu0 %1806 }
 0x2f8   : > { %10425 = vst [vmem:[#allocation121_spill] sm:$0xff] %v7523_v35 }
 0x2f9   : > { %v7525_v19 = vpop.xlane.xlu1 %1620 }
 0x2fa   : > { %10426 = vst [vmem:[#allocation122_spill] sm:$0xff] %v7525_v19  ;;  %v7543_v19 = vmul.f32 0.0078125, %v7293_v9 }
 0x2fb   : > { %v7527_v36 = vpop.xlane.xlu0 %1618 }
 0x2fc   : > { %10427 = vst [vmem:[#allocation123_spill] sm:$0xff] %v7527_v36  ;;  %v1979_v9 = vmul.f32 %v7543_v19, %v7543_v19 }
 0x2fd   : > { %v7529_v11 = vpop.xlane.xlu1 %1812 }
 0x2fe   : > { %10428 = vst [vmem:[#allocation124_spill] sm:$0xff] %v7529_v11 }
 0x2ff   : > { %v7531_v53 = vpop.xlane.xlu0 %1810 }
 0x300   : > { %10429 = vst [vmem:[#allocation125_spill] sm:$0xff] %v7531_v53  ;;  %v7548_v53 = vmul.f32 0.0078125, %v7298_v2  ;;  %v7564_v2 = vld [vmem:[%s10153_s1] sm:$0x7] }
 0x301   : > { %v7533_v62 = vpop.xlane.xlu1 %1624 }
 0x302   : > { %10430 = vst [vmem:[#allocation126_spill] sm:$0xff] %v7533_v62  ;;  %v1978_v16 = vmul.f32 %v7548_v53, %v7548_v53 }
 0x303   : > { %v7536_v3 = vpop.xlane.xlu0 %1622  ;;  %v6070_v15 = vpop.eup %6069 }
 0x304   : > { %10431 = vst [vmem:[#allocation127_spill] sm:$0xff] %v7536_v3  ;;  %v2746_v8 = vmul.f32 %v6070_v15, %v2740_v22  ;;  %v738_v22 = vld [vmem:[%s10154_s2] sm:$0xff] }
 0x305   : > { %v7538_v21 = vpop.xlane.xlu1 %1816  ;;  %v340_v15 = vld [vmem:[#allocation5 + $0x1f0] sm:$0xff] }
 0x306   : > { %10432 = vst [vmem:[#allocation128_spill] sm:$0xff] %v7538_v21  ;;  %v2752_v30 = vmul.f32 %v2750_v58, %v2746_v8  ;;  %v1914_v58 = vmul.f32 0.0078125, %v7310_v7  ;;  %v339_v7 = vld [vmem:[#allocation5 + $0x1e8] sm:$0xff]  ;;  %v7575_v8 = vmul.f32 0.0078125, %v7320_v31  ;;  %v1916_v21 = vmul.f32 0.0078125, %v7332_v4 }
 0x307   : > { %v7540_v49 = vpop.xlane.xlu0 %1814 }
 0x308   : > { %10433 = vst [vmem:[#allocation129_spill] sm:$0xff] %v7540_v49  ;;  %v2758_v11 = vadd.f32 %v2756_v34, %v2752_v30  ;;  %v7569_v30 = vmul.f32 0.0078125, %v7313_v6  ;;  %v338_v6 = vld [vmem:[#allocation5 + $0x1e0] sm:$0xff]  ;;  %v1980_v4 = vmul.f32 %v7575_v8, %v7575_v8 }
 0x309   : > { %v7545_v36 = vpop.xlane.xlu1 %1628  ;;  %v10443_v49 = vld [vmem:[#allocation20_spill] sm:$0xff] }
 0x30a   : > { %10434 = vst [vmem:[#allocation130_spill] sm:$0xff] %v7545_v36  ;;  %v2760_v62 = vmax.f32 %v2758_v11, 0.0  ;;  %v405_v11 = vrot.slane %v7564_v2, %v6635_v28  ;;  %v2042_v36 = vsub.f32 %v1914_v58, %v1978_v16  ;;  %v1981_v31 = vmul.f32 %v7569_v30, %v7569_v30  ;;  %v337_v58 = vld [vmem:[#allocation5 + $0x1d8] sm:$0xff] }
 0x30b   : > { %v7551_v63 = vpop.xlane.xlu0 %1626  ;;  %v2044_v51 = vsub.f32 %v1916_v21, %v1980_v4 }
 0x30c   : > { %10435 = vst [vmem:[#allocation131_spill] sm:$0xff] %v7551_v63  ;;  %5708 = vmatmul.mubr.f32.vlgmr.msra.gmra.mxu1 %v2760_v62  ;;  %v2043_v62 = vsub.f32 %v1915_v12, %v1979_v9  ;;  %v1917_v63 = vmul.f32 0.0078125, %v7326_v41  ;;  %v7586_v12 = vsub.s32 3, %v6629_v26  ;;  %v10440_v9 = vld [vmem:[#allocation17_spill] sm:$0xff]  ;;  %v2106_v35 = vmax.f32 %v2042_v36, 0.0 }
 0x30d   : > { %v7559_v34 = vpop.xlane.xlu1 %1820  ;;  %5711 = vmatpush3.msra.mxu1 %v7401_v43  ;;  %5742 = vmatprep.mubr.f32.mxu1 %v738_v22  ;;  %v391_v22 = vrot.slane %v7564_v2, %v6632_v27  ;;  %v406_v41 = vsub.f32 %v10440_v9, %v405_v11  ;;  %v10446_v9 = vld [vmem:[#allocation15_spill] sm:$0xff] }
 0x30e   : > { %10436 = vst [vmem:[#allocation132_spill] sm:$0xff] %v7559_v34  ;;  %5712 = vmatprep.subr.mxu1 %v340_v15  ;;  %10439 = vst [vmem:[#allocation135_spill] sm:$0xff] %v7586_v12  ;;  %v2045_v37 = vsub.f32 %v1917_v63, %v1981_v31  ;;  %v7608_v63 = vmul.f32 0.0078125, %v7335_v23  ;;  %v2234_v31 = vadd.f32 1e-05, %v2106_v35 }
 0x30f   : > { %v7577_v34 = vpop.xlane.xlu0 %1818  ;;  %5713 = vmatpush3.msra.mxu1 %v340_v15  ;;  %v2107_v15 = vmax.f32 %v2043_v62, 0.0  ;;  %v393_v3 = vsub.f32 %v10443_v49, %v391_v22  ;;  %v7600_v62 = vsub.s32 4, %v6629_v26  ;;  %v392_v57 = vsub.f32 %v10446_v9, %v391_v22  ;;  %v334_v22 = vld [vmem:[#allocation5 + $0x1c0] sm:$0xff]  ;;  %v10486_v26 = vld [vmem:[#allocation75_spill] sm:$0xff] }
 0x310   : > { %10437 = vst [vmem:[#allocation133_spill] sm:$0xff] %v7577_v34  ;;  %5714 = vmatprep.subr.mxu1 %v339_v7  ;;  %v410_v49 = vmul.f32 %v406_v41, %v406_v41  ;;  %v2109_v4 = vmax.f32 %v2045_v37, 0.0  ;;  %v2108_v9 = vmax.f32 %v2044_v51, 0.0  ;;  %v10449_v37 = vld [vmem:[#allocation68_spill] sm:$0xff]  ;;  %v1983_v51 = vmul.f32 %v7608_v63, %v7608_v63 }
 0x311   : > { %v7581_v43 = vpop.xlane.xlu1 %1632  ;;  %5715 = vmatpush3.msra.mxu1 %v339_v7  ;;  %10445 = vst [vmem:[#allocation20_spill] sm:$0xff] %v7600_v62  ;;  %v2235_v36 = vadd.f32 1e-05, %v2107_v15  ;;  %v408_v41 = vmul.f32 %v392_v57, %v392_v57  ;;  %v7618_v23 = vrot.slane %v7503_v1, %v7600_v62  ;;  %v333_v15 = vld [vmem:[#allocation5 + $0x1b8] sm:$0xff] }
 0x312   : > { %10438 = vst [vmem:[#allocation134_spill] sm:$0xff] %v7581_v43  ;;  %5716 = vmatprep.subr.mxu1 %v338_v6  ;;  %v10442_v43 = vld [vmem:[#allocation19_spill] sm:$0xff] }
 0x313   : > { %v7593_v16 = vpop.xlane.xlu0 %1630  ;;  %v407_v34 = vsub.f32 %v10442_v43, %v405_v11  ;;  %5717 = vmatpush3.msra.mxu1 %v338_v6  ;;  %v335_v11 = vld [vmem:[#allocation5 + $0x1c8] sm:$0xff]  ;;  %v409_v43 = vmul.f32 %v393_v3, %v393_v3  ;;  %6071 = vrsqrt.f32 %v2235_v36  ;;  %v332_v3 = vld [vmem:[#allocation5 + $0x1b0] sm:$0xff] }
 0x314   : > { %10441 = vst [vmem:[#allocation17_spill] sm:$0xff] %v7593_v16  ;;  %5718 = vmatprep.subr.mxu1 %v337_v58  ;;  %v7605_v16 = vrot.slane %v7503_v1, %v7586_v12  ;;  %6073 = vrsqrt.f32 %v2234_v31  ;;  %v2237_v1 = vadd.f32 1e-05, %v2109_v4 }
 0x315   : > { %v7597_v7 = vpop.xlane.xlu1 %1824  ;;  %5719 = vmatpush3.msra.mxu1 %v337_v58  ;;  %v411_v6 = vmul.f32 %v407_v34, %v407_v34  ;;  %v1919_v58 = vmul.f32 0.0078125, %v7348_v52  ;;  %v10448_v34 = vld [vmem:[#allocation69_spill] sm:$0xff] }
 0x316   : > { %10444 = vst [vmem:[#allocation19_spill] sm:$0xff] %v7597_v7  ;;  %5720 = vmatprep.subr.mxu1 %v336_v29  ;;  %v7613_v7 = vmul.f32 0.0078125, %v7342_v44  ;;  %v2414_v35 = vmul.f32 %v7605_v16, %v10448_v34  ;;  %v1918_v44 = vmul.f32 0.0078125, %v7354_v56  ;;  %v7633_v34 = vadd.f32 %v410_v49, %v408_v41 }
 0x317   : > { %v7610_v21 = vpop.xlane.xlu0 %1822  ;;  %5721 = vmatpush3.msra.mxu1 %v336_v29  ;;  %v2415_v29 = vmul.f32 %v7605_v16, %v10449_v37  ;;  %v2236_v37 = vadd.f32 1e-05, %v2108_v9  ;;  %v2417_v56 = vmul.f32 %v7605_v16, %v7217_v45  ;;  %v2416_v49 = vmul.f32 %v7605_v16, %v7219_v0  ;;  %v330_v0 = vld [vmem:[#allocation5 + $0x1a0] sm:$0xff] }
 0x318   : > { %10447 = vst [vmem:[#allocation15_spill] sm:$0xff] %v7610_v21  ;;  %5722 = vmatprep.subr.mxu1 %v335_v11  ;;  %v1982_v36 = vmul.f32 %v7613_v7, %v7613_v7  ;;  %v2047_v21 = vsub.f32 %v1919_v58, %v1983_v51  ;;  %v7640_v31 = vadd.f32 %v7618_v23, %v2414_v35  ;;  %6075 = vrsqrt.f32 %v2237_v1  ;;  %v328_v1 = vld [vmem:[#allocation5 + $0x190] sm:$0xff] }
 0x319   : > { %5723 = vmatpush3.msra.mxu1 %v335_v11  ;;  %v7627_v52 = vpop.xlane.xlu1 %1636  ;;  %v7631_v11 = vadd.f32 %v411_v6, %v409_v43  ;;  %v7643_v4 = vadd.f32 %v7618_v23, %v2415_v29  ;;  %v2419_v6 = vmul.f32 %v7605_v16, %v7241_v55  ;;  %v2418_v9 = vmul.f32 %v7605_v16, %v7243_v39  ;;  %v329_v29 = vld [vmem:[#allocation5 + $0x198] sm:$0xff] }
 0x31a   : > { %5724 = vmatprep.subr.mxu1 %v334_v22  ;;  %10450 = vst [vmem:[#allocation69_spill] sm:$0xff] %v7627_v52  ;;  %v331_v52 = vld [vmem:[#allocation5 + $0x1a8] sm:$0xff]  ;;  %v2046_v43 = vsub.f32 %v1918_v44, %v1982_v36  ;;  %v2421_v58 = vmul.f32 %v7605_v16, %v7263_v25  ;;  %v7659_v41 = vmul.f32 0.0078125, %v7362_v59  ;;  %v2420_v55 = vmul.f32 %v7605_v16, %v7265_v50 }
 0x31b   : > { %v7629_v57 = vpop.xlane.xlu0 %1634  ;;  %5725 = vmatpush3.msra.mxu1 %v334_v22  ;;  %v7650_v22 = vmul.f32 0.0078125, %v7357_v54  ;;  %v2423_v54 = vmul.f32 %v7605_v16, %v7285_v17  ;;  %6077 = vrsqrt.f32 %v2236_v37  ;;  %v1921_v35 = vmul.f32 0.0078125, %v7366_v10 }
 0x31c   : > { %10451 = vst [vmem:[#allocation68_spill] sm:$0xff] %v7629_v57  ;;  %5726 = vmatprep.subr.mxu1 %v333_v15  ;;  %v7669_v25 = vadd.f32 %v7618_v23, %v2417_v56  ;;  %v1920_v59 = vmul.f32 0.0078125, %v7368_v40  ;;  %v7673_v51 = vadd.f32 %v7618_v23, %v2416_v49  ;;  %v2422_v50 = vmul.f32 %v7605_v16, %v7287_v33 }
 0x31d   : > { %5727 = vmatpush3.msra.mxu1 %v333_v15  ;;  %v2111_v15 = vmax.f32 %v2047_v21, 0.0  ;;  %v7666_v39 = vpop.xlane.xlu1 %1828  ;;  %v2425_v17 = vmul.f32 %v7605_v16, %v7306_v32  ;;  %v2110_v10 = vmax.f32 %v2046_v43, 0.0  ;;  %v1985_v21 = vmul.f32 %v7650_v22, %v7650_v22 }
 0x31e   : > { %5728 = vmatprep.subr.mxu1 %v332_v3  ;;  %10453 = vst [vmem:[#allocation137_spill] sm:$0xff] %v7666_v39  ;;  %v7682_v44 = vadd.f32 %v7618_v23, %v2418_v9  ;;  %v7685_v40 = vadd.f32 %v7618_v23, %v2419_v6  ;;  %v7690_v33 = vadd.f32 %v7618_v23, %v2420_v55  ;;  %v327_v9 = vld [vmem:[#allocation5 + $0x188] sm:$0xff]  ;;  %vm414_vm0 = vcmp.le.f32.partialorder %v7633_v34, 4.0  ;;  %v10460_v39 = vld [vmem:[#allocation24_spill] sm:$0xff] }
 0x31f   : > { %v7652_v45 = vpop.xlane.xlu0 %1826  ;;  %5729 = vmatpush3.msra.mxu1 %v332_v3  ;;  %v7693_v32 = vadd.f32 %v7618_v23, %v2421_v58  ;;  %v7696_v3 = vadd.f32 %v7618_v23, %v2423_v54  ;;  %v2239_v37 = vadd.f32 1e-05, %v2111_v15  ;;  %v2049_v36 = vsub.f32 %v1921_v35, %v1985_v21  ;;  %v10456_v35 = vld [vmem:[#allocation21_spill] sm:$0xff] }
 0x320   : > { %10452 = vst [vmem:[#allocation136_spill] sm:$0xff] %v7652_v45  ;;  %5730 = vmatprep.subr.mxu1 %v331_v52  ;;  %v2424_v6 = vmul.f32 %v7605_v16, %v7308_v48  ;;  %v7705_v58 = vadd.f32 %v7618_v23, %v2422_v50  ;;  %v7708_v55 = vadd.f32 %v7618_v23, %v2425_v17  ;;  %v2238_v54 = vadd.f32 1e-05, %v2110_v10  ;;  %v10457_v48 = vld [vmem:[#allocation22_spill] sm:$0xff]  ;;  %v739_v10 = vld [vmem:[%s10154_s2 + $0x8] sm:$0xff] }
 0x321   : > { %5731 = vmatpush3.msra.mxu1 %v331_v52  ;;  %v1984_v52 = vmul.f32 %v7659_v41, %v7659_v41  ;;  %v7710_v15 = vpop.xlane.xlu1 %1640  ;;  %6079 = vrsqrt.f32 %v2239_v37  ;;  %v2113_v21 = vmax.f32 %v2049_v36, 0.0  ;;  %v740_v36 = vld [vmem:[%s10154_s2 + $0x10] sm:$0xff]  ;;  %vm415_vm1 = vcmp.le.f32.partialorder %v7631_v11, 4.0 }
 0x322   : > { %5732 = vmatprep.subr.mxu1 %v330_v0  ;;  %10455 = vst [vmem:[#allocation139_spill] sm:$0xff] %v7710_v15  ;;  %v2170_v15 = vsub.f32 %v10457_v48, %v7548_v53  ;;  %6081 = vrsqrt.f32 %v2238_v54  ;;  %v2426_v53 = vmul.f32 %v7605_v16, %v7330_v38  ;;  %v7744_v48 = vmul.f32 0.0078125, %v7371_v14  ;;  %v308_v54 = vld [vmem:[#allocation5 + $0xf0] sm:$0xff]  ;;  %v301_v14 = vld [vmem:[#allocation5 + $0xb8] sm:$0xff] }
 0x323   : > { %5733 = vmatpush3.msra.mxu1 %v330_v0  ;;  %v7698_v56 = vpop.xlane.xlu0 %1638  ;;  %v2048_v43 = vsub.f32 %v1920_v59, %v1984_v52  ;;  %v6072_v59 = vpop.eup %6071  ;;  %v2171_v0 = vsub.f32 %v10456_v35, %v7543_v19  ;;  %v309_v52 = vld [vmem:[#allocation5 + $0xf8] sm:$0xff]  ;;  %v2428_v19 = vmul.f32 %v7605_v16, %v7352_v60  ;;  %v2172_v38 = vsub.f32 %v10460_v39, %v7575_v8  ;;  %v10462_v60 = vld [vmem:[#allocation16_spill] sm:$0xff]  ;;  %v307_v8 = vld [vmem:[#allocation5 + $0xe8] sm:$0xff] }
 0x324   : > { %10454 = vst [vmem:[#allocation138_spill] sm:$0xff] %v7698_v56  ;;  %5734 = vmatprep.subr.mxu1 %v329_v29  ;;  %v6074_v49 = vpop.eup %6073  ;;  %v2241_v56 = vadd.f32 1e-05, %v2113_v21  ;;  %v2429_v39 = vmul.f32 %v7605_v16, %v7350_v46  ;;  %v306_v46 = vld [vmem:[#allocation5 + $0xe0] sm:$0xff] }
 0x325   : > { %5735 = vmatpush3.msra.mxu1 %v329_v29  ;;  %v326_v29 = vld [vmem:[#allocation5 + $0x180] sm:$0xff]  ;;  %v2112_v50 = vmax.f32 %v2048_v43, 0.0  ;;  %v2363_v43 = vmul.f32 %v6072_v59, %v2171_v0  ;;  %v2362_v17 = vmul.f32 %v6074_v49, %v2170_v15  ;;  %v7753_v0 = vpop.xlane.xlu1 %1832  ;;  %v7759_v49 = vrot.slane %v7564_v2, %v10462_v60 }
 0x326   : > { %5736 = vmatprep.subr.mxu1 %v328_v1  ;;  %10461 = vst [vmem:[#allocation22_spill] sm:$0xff] %v7753_v0  ;;  %v1922_v15 = vmul.f32 0.0078125, %v7382_v5  ;;  %v7779_v5 = vadd.f32 %v7618_v23, %v2428_v19  ;;  %6083 = vrsqrt.f32 %v2241_v56  ;;  %v10467_v19 = vmax.f32 %v7640_v31, 0.0  ;;  %v305_v56 = vld [vmem:[#allocation5 + $0xd8] sm:$0xff] }
 0x327   : > { %5737 = vmatpush3.msra.mxu1 %v328_v1  ;;  %v7723_v1 = vadd.f32 %v7618_v23, %v2424_v6  ;;  %v7732_v37 = vpop.xlane.xlu0 %1830  ;;  %v2427_v6 = vmul.f32 %v7605_v16, %v7328_v42  ;;  %v7751_v42 = vmul.f32 0.0078125, %v7376_v18  ;;  %v2240_v59 = vadd.f32 1e-05, %v2112_v50  ;;  %v741_v18 = vld [vmem:[%s10154_s2 + $0x18] sm:$0xff] }
 0x328   : > { %5738 = vmatprep.subr.mxu1 %v327_v9  ;;  %10458 = vst [vmem:[#allocation21_spill] sm:$0xff] %v7732_v37  ;;  %v6076_v37 = vpop.eup %6075  ;;  %v2431_v50 = vmul.f32 %v7605_v16, %v2363_v43  ;;  %10465 = vst [vmem:[#allocation140_spill] sm:$0xff] %v7779_v5 }
 0x329   : > { %5739 = vmatpush3.msra.mxu1 %v327_v9  ;;  %v10459_v9 = vld [vmem:[#allocation23_spill] sm:$0xff]  ;;  %v7771_v2 = vadd.f32 %v7618_v23, %v2427_v6  ;;  %6085 = vrsqrt.f32 %v2240_v59 }
 0x32a   : > { %5740 = vmatprep.subr.mxu1 %v326_v29  ;;  %v2173_v35 = vsub.f32 %v10459_v9, %v7569_v30  ;;  %v6078_v30 = vpop.eup %6077  ;;  %v10466_v9 = vmov 0.0  }
 0x32b   : > { %5741 = vmatpush3.msra.mxu1 %v326_v29  ;;  %v1923_v29 = vmul.f32 0.0078125, %v7380_v20  ;;  %v7768_v20 = vadd.f32 %v7618_v23, %v2426_v53  ;;  %10464 = vst [vmem:[#allocation24_spill] sm:$0xff] %v7771_v2  ;;  %v2364_v53 = vmul.f32 %v6078_v30, %v2172_v38  ;;  %v10470_v38 = vld [vmem:[#allocation25_spill] sm:$0xff]  ;;  %v10471_v30 = vld [vmem:[#allocation26_spill] sm:$0xff]  ;;  %v294_v2 = vld [vmem:[#allocation5 + $0x80] sm:$0xff] }
 0x32c   : > { %5743 = vmatmul.mubr.f32.vlgmr.msra.gmra.mxu1 %v739_v10  ;;  %5748 = vmatprep.subr.mxu1 %v309_v52  ;;  %v1987_v10 = vmul.f32 %v7744_v48, %v7744_v48  ;;  %v2365_v6 = vmul.f32 %v6076_v37, %v2173_v35  ;;  %v7800_v35 = vadd.f32 %v7618_v23, %v2431_v50 }
 0x32d   : > { %5749 = vmatpush3.msra.mxu1 %v309_v52  ;;  %5745 = vmatprep.mubr.f32.mxu1 %v740_v36  ;;  %10463 = vst [vmem:[#allocation23_spill] sm:$0xff] %v7768_v20  ;;  %v2430_v52 = vmul.f32 %v7605_v16, %v2362_v17  ;;  %v1986_v36 = vmul.f32 %v7751_v42, %v7751_v42 }
 0x32e   : > { %5750 = vmatprep.subr.mxu1 %v308_v54  ;;  %v2051_v43 = vsub.f32 %v1923_v29, %v1987_v10  ;;  %v7792_v17 = vadd.f32 %v7618_v23, %v2429_v39  ;;  %10469 = vst [vmem:[#allocation142_spill] sm:$0xff] %v7800_v35  ;;  %v2175_v31 = vsub.f32 %v10470_v38, %v7608_v63  ;;  %v10472_v29 = vld [vmem:[#allocation27_spill] sm:$0xff]  ;;  %v304_v39 = vld [vmem:[#allocation5 + $0xd0] sm:$0xff]  ;;  %v7817_v38 = vmul.f32 0.0078125, %v7385_v24  ;;  %v299_v24 = vld [vmem:[#allocation5 + $0xa8] sm:$0xff] }
 0x32f   : > { %v418_v21 = vpop.permute.xlu0 %417  ;;  %5751 = vmatpush3.msra.mxu1 %v308_v54  ;;  %v2174_v59 = vsub.f32 %v10471_v30, %v7613_v7  ;;  %v7812_v50 = vadd.f32 %v7618_v23, %v2430_v52  ;;  %v2432_v63 = vmul.f32 %v7605_v16, %v2364_v53  ;;  %v6080_v7 = vpop.eup %6079  ;;  %v10474_v52 = vld [vmem:[#allocation28_spill] sm:$0xff]  ;;  %v7834_v30 = vmul.f32 0.0078125, %v7390_v13 }
 0x330   : > { %vm428_vm2 = vcmp.eq.f32.partialorder %v418_v21, %v7759_v49  ;;  %5746 = vmatmul.mubr.f32.gmra.mxu1 %v741_v18  ;;  %5752 = vmatprep.subr.mxu1 %v307_v8  ;;  %10468 = vst [vmem:[#allocation141_spill] sm:$0xff] %v7792_v17  ;;  %v2050_v18 = vsub.f32 %v1922_v15, %v1986_v36  ;;  %v422_v21 = vpop.permute.xlu1 %421  ;;  %v10477_v15 = vld [vmem:[#allocation30_spill] sm:$0xff]  ;;  %v1926_v35 = vmul.f32 0.0078125, %v10486_v26  ;;  %v10490_v17 = vld [vmem:[#allocation80_spill] sm:$0xff] }
 0x331   : > { %vm430_vm3 = vmand %vm414_vm0, %vm428_vm2  ;;  %5753 = vmatpush3.msra.mxu1 %v307_v8  ;;  %5780 = vmatprep.mubr.f32.mxu1 %v10467_v19  ;;  %10473 = vst [vmem:[#allocation25_spill] sm:$0xff] %v7812_v50  ;;  %v2433_v36 = vmul.f32 %v7605_v16, %v2365_v6  ;;  %v2115_v19 = vmax.f32 %v2051_v43, 0.0  ;;  %vm429_vm4 = vcmp.eq.f32.partialorder %v422_v21, %v7759_v49  ;;  %v6082_v6 = vpop.eup %6081  ;;  %v10476_v43 = vld [vmem:[#allocation29_spill] sm:$0xff]  ;;  %v1925_v8 = vmul.f32 0.0078125, %v7394_v61  ;;  %v10482_v21 = vld [vmem:[#allocation72_spill] sm:$0xff] }
 0x332   : > { %v7787_v54 = vsel %vm430_vm3, 1.0, %v10466_v9  ;;  %5754 = vmatprep.subr.mxu1 %v306_v46  ;;  %v2114_v37 = vmax.f32 %v2050_v18, 0.0  ;;  %v302_v18 = vld [vmem:[#allocation5 + $0xc0] sm:$0xff]  ;;  %vm7841_vm5 = vmand %vm415_vm1, %vm429_vm4  ;;  %v7848_v13 = vadd.f32 %v7618_v23, %v2432_v63  ;;  %v1989_v11 = vmul.f32 %v7817_v38, %v7817_v38  ;;  %v10483_v63 = vld [vmem:[#allocation73_spill] sm:$0xff] }
 0x333   : > { %v7796_v34 = vrot.slane %v7787_v54, %v6632_v27  ;;  %5755 = vmatpush3.msra.mxu1 %v306_v46  ;;  %v303_v46 = vld [vmem:[#allocation5 + $0xc8] sm:$0xff]  ;;  %v7826_v53 = vrot.slane %v7787_v54, %v6635_v28  ;;  %v7851_v61 = vadd.f32 %v7618_v23, %v2433_v36  ;;  %v1924_v49 = vmul.f32 0.0078125, %v7396_v47 }
 0x334   : > { %5756 = vmatprep.subr.mxu1 %v305_v56  ;;  %10480 = vst [vmem:[#allocation27_spill] sm:$0xff] %v7848_v13  ;;  %v7857_v10 = vmul.f32 0.0078125, %v10482_v21  ;;  %v2242_v0 = vadd.f32 1e-05, %v2114_v37  ;;  %v7861_v45 = vmul.f32 0.0078125, %v10483_v63  ;;  %v2366_v36 = vmul.f32 %v6082_v6, %v2174_v59  ;;  %v300_v37 = vld [vmem:[#allocation5 + $0xb0] sm:$0xff]  ;;  %v6084_v6 = vpop.eup %6083 }
 0x335   : > { %443 = vbcast.lane.b32.xlu1 %v7796_v34, 264  ;;  %5757 = vmatpush3.msra.mxu1 %v305_v56  ;;  %10475 = vst [vmem:[#allocation26_spill] sm:$0xff] %v7826_v53  ;;  %10481 = vst [vmem:[#allocation28_spill] sm:$0xff] %v7851_v61  ;;  %v2243_v56 = vadd.f32 1e-05, %v2115_v19  ;;  %v1988_v47 = vmul.f32 %v7834_v30, %v7834_v30  ;;  %v10484_v19 = vld [vmem:[#allocation74_spill] sm:$0xff] }
 0x336   : > { %439 = vbcast.lane.b32.xlu0 %v7796_v34, 256  ;;  %5758 = vmatprep.subr.mxu1 %v304_v39  ;;  %v1927_v21 = vmul.f32 0.0078125, %v10484_v19  ;;  %v10485_v63 = vld [vmem:[#allocation31_spill] sm:$0xff]  ;;  %v6086_v26 = vpop.eup %6085  ;;  %v1990_v19 = vmul.f32 %v7861_v45, %v7861_v45  ;;  %v10487_v59 = vld [vmem:[#allocation76_spill] sm:$0xff]  ;;  %v10489_v13 = vld [vmem:[#allocation78_spill] sm:$0xff] }
 0x337   : > { %5759 = vmatpush3.msra.mxu1 %v304_v39  ;;  %v2367_v39 = vmul.f32 %v6080_v7, %v2175_v31  ;;  %v7865_v31 = vrot.slane %v7787_v54, %v10462_v60  ;;  %v2053_v7 = vsub.f32 %v1925_v8, %v1989_v11  ;;  %6087 = vrsqrt.f32 %v2243_v56 }
 0x338   : > { %5760 = vmatprep.subr.mxu1 %v303_v46  ;;  %v2052_v11 = vsub.f32 %v1924_v49, %v1988_v47  ;;  %6089 = vrsqrt.f32 %v2242_v0  ;;  %v7888_v57 = vmul.f32 0.0078125, %v10487_v59  ;;  %v10488_v49 = vld [vmem:[#allocation77_spill] sm:$0xff]  ;;  %v2434_v0 = vmul.f32 %v7605_v16, %v2366_v36 }
 0x339   : > { %458 = vbcast.lane.b32.xlu1 %v7826_v53, 256  ;;  %5761 = vmatpush3.msra.mxu1 %v303_v46  ;;  %v7873_v46 = vsel %vm7841_vm5, 1.0, %v10466_v9  ;;  %v2435_v8 = vmul.f32 %v7605_v16, %v2367_v39  ;;  %v1991_v9 = vmul.f32 %v7857_v10, %v7857_v10  ;;  %v2117_v39 = vmax.f32 %v2053_v7, 0.0 }
 0x33a   : > { %462 = vbcast.lane.b32.xlu0 %v7826_v53, 264  ;;  %5762 = vmatprep.subr.mxu1 %v302_v18  ;;  %v7892_v56 = vrot.slane %v7873_v46, %v6632_v27  ;;  %v7895_v47 = vmul.f32 0.0078125, %v10488_v49  ;;  %v2054_v61 = vsub.f32 %v1926_v35, %v1990_v19  ;;  %v1929_v50 = vmul.f32 0.0078125, %v10489_v13 }
 0x33b   : > { %5763 = vmatpush3.msra.mxu1 %v302_v18  ;;  %v298_v18 = vld [vmem:[#allocation5 + $0xa0] sm:$0xff]  ;;  %v7900_v59 = vmul.f32 0.0078125, %v10490_v17  ;;  %v7904_v27 = vadd.f32 %v7618_v23, %v2435_v8  ;;  %v2116_v7 = vmax.f32 %v2052_v11, 0.0  ;;  %v10493_v35 = vsub.f32 %v10474_v52, %v7659_v41  ;;  %v10495_v8 = vld [vmem:[#allocation81_spill] sm:$0xff]  ;;  %v10496_v11 = vld [vmem:[#allocation82_spill] sm:$0xff] }
 0x33c   : > { %5764 = vmatprep.subr.mxu1 %v301_v14  ;;  %v10494_v17 = vsub.f32 %v10472_v29, %v7650_v22  ;;  %v1993_v19 = vmul.f32 %v7888_v57, %v7888_v57  ;;  %v7917_v49 = vmul.f32 0.0078125, %v10495_v8  ;;  %v2245_v5 = vadd.f32 1e-05, %v2117_v39  ;;  %v296_v22 = vld [vmem:[#allocation5 + $0x90] sm:$0xff]  ;;  %v10499_v39 = vld [vmem:[#allocation32_spill] sm:$0xff] }
 0x33d   : > { %477 = vbcast.lane.b32.xlu1 %v7865_v31, 256  ;;  %5765 = vmatpush3.msra.mxu1 %v301_v14  ;;  %v2055_v14 = vsub.f32 %v1927_v21, %v1991_v9  ;;  %10491 = vst [vmem:[#allocation29_spill] sm:$0xff] %v7904_v27  ;;  %v10492_v21 = vld [vmem:[#allocation79_spill] sm:$0xff]  ;;  %v2368_v13 = vmul.f32 %v6086_v26, %v10493_v35 }
 0x33e   : > { %481 = vbcast.lane.b32.xlu0 %v7865_v31, 264  ;;  %5766 = vmatprep.subr.mxu1 %v300_v37  ;;  %v1928_v9 = vmul.f32 0.0078125, %v10492_v21  ;;  %v2369_v36 = vmul.f32 %v6084_v6, %v10494_v17  ;;  %v1931_v21 = vmul.f32 0.0078125, %v10496_v11  ;;  %v1992_v52 = vmul.f32 %v7895_v47, %v7895_v47  ;;  %v10498_v17 = vld [vmem:[#allocation83_spill] sm:$0xff] }
 0x33f   : > { %5767 = vmatpush3.msra.mxu1 %v300_v37  ;;  %v297_v37 = vld [vmem:[#allocation5 + $0x98] sm:$0xff]  ;;  %v2119_v41 = vmax.f32 %v2055_v14, 0.0  ;;  %v7927_v29 = vadd.f32 %v7618_v23, %v2434_v0  ;;  %v2118_v6 = vmax.f32 %v2054_v61, 0.0  ;;  %v2057_v26 = vsub.f32 %v1929_v50, %v1993_v19  ;;  %v10500_v14 = vld [vmem:[#allocation33_spill] sm:$0xff] }
 0x340   : > { %5768 = vmatprep.subr.mxu1 %v299_v24  ;;  %v1995_v35 = vmul.f32 %v7900_v59, %v7900_v59  ;;  %v1930_v8 = vmul.f32 0.0078125, %v10498_v17  ;;  %v2244_v11 = vadd.f32 1e-05, %v2116_v7  ;;  %v1994_v50 = vmul.f32 %v7917_v49, %v7917_v49  ;;  %v10507_v7 = vld [vmem:[#allocation89_spill] sm:$0xff] }
 0x341   : > { %591 = vbcast.lane.b32.xlu1 %v7892_v56, 256  ;;  %5769 = vmatpush3.msra.mxu1 %v299_v24  ;;  %v7922_v24 = vrot.slane %v7873_v46, %v6635_v28  ;;  %10497 = vst [vmem:[#allocation30_spill] sm:$0xff] %v7927_v29  ;;  %v2056_v28 = vsub.f32 %v1928_v9, %v1992_v52  ;;  %6091 = vrsqrt.f32 %v2245_v5  ;;  %v2247_v9 = vadd.f32 1e-05, %v2119_v41  ;;  %v10502_v5 = vld [vmem:[#allocation85_spill] sm:$0xff] }
 0x342   : > { %595 = vbcast.lane.b32.xlu0 %v7892_v56, 264  ;;  %5770 = vmatprep.subr.mxu1 %v298_v18  ;;  %v2059_v0 = vsub.f32 %v1931_v21, %v1995_v35  ;;  %v2436_v19 = vmul.f32 %v7605_v16, %v2368_v13  ;;  %v2437_v17 = vmul.f32 %v7605_v16, %v2369_v36  ;;  %v2246_v61 = vadd.f32 1e-05, %v2118_v6  ;;  %v10504_v35 = vld [vmem:[#allocation86_spill] sm:$0xff] }
 0x343   : > { %5771 = vmatpush3.msra.mxu1 %v298_v18  ;;  %v295_v18 = vld [vmem:[#allocation5 + $0x88] sm:$0xff]  ;;  %v2121_v27 = vmax.f32 %v2057_v26, 0.0  ;;  %v2058_v20 = vsub.f32 %v1930_v8, %v1994_v50  ;;  %6093 = vrsqrt.f32 %v2244_v11  ;;  %v2120_v36 = vmax.f32 %v2056_v28, 0.0 }
 0x344   : > { %5772 = vmatprep.subr.mxu1 %v297_v37  ;;  %v7949_v21 = vmul.f32 0.0078125, %v10502_v5  ;;  %v1933_v41 = vmul.f32 0.0078125, %v10504_v35  ;;  %v7955_v6 = vrot.slane %v7787_v54, %v7586_v12  ;;  %v7958_v26 = vadd.f32 %v7618_v23, %v2436_v19  ;;  %v10506_v5 = vld [vmem:[#allocation88_spill] sm:$0xff] }
 0x345   : > { %610 = vbcast.lane.b32.xlu1 %v7922_v24, 256  ;;  %5773 = vmatpush3.msra.mxu1 %v297_v37  ;;  %v10501_v37 = vld [vmem:[#allocation84_spill] sm:$0xff]  ;;  %v7961_v28 = vadd.f32 %v7618_v23, %v2437_v17  ;;  %6095 = vrsqrt.f32 %v2247_v9  ;;  %v2249_v35 = vadd.f32 1e-05, %v2121_v27  ;;  %v2122_v13 = vmax.f32 %v2058_v20, 0.0  ;;  %v10511_v20 = vld [vmem:[#allocation91_spill] sm:$0xff] }
 0x346   : > { %614 = vbcast.lane.b32.xlu0 %v7922_v24, 264  ;;  %5774 = vmatprep.subr.mxu1 %v296_v22  ;;  %v7944_v52 = vmul.f32 0.0078125, %v10501_v37  ;;  %10503 = vst [vmem:[#allocation72_spill] sm:$0xff] %v7949_v21  ;;  %v2123_v37 = vmax.f32 %v2059_v0, 0.0  ;;  %v7967_v0 = vmul.f32 0.0078125, %v10506_v5  ;;  %6097 = vrsqrt.f32 %v2246_v61 }
 0x347   : > { %5775 = vmatpush3.msra.mxu1 %v296_v22  ;;  %v6088_v22 = vpop.eup %6087  ;;  %v7970_v19 = vmul.f32 0.0078125, %v10507_v7  ;;  %v10508_v17 = vmax.f32 %v7643_v4, 0.0  ;;  %v2248_v9 = vadd.f32 1e-05, %v2120_v36  ;;  %v1996_v29 = vmul.f32 %v7949_v21, %v7949_v21 }
 0x348   : > { %5776 = vmatprep.subr.mxu1 %v295_v18  ;;  %v6090_v8 = vpop.eup %6089  ;;  %v1997_v11 = vmul.f32 %v7944_v52, %v7944_v52  ;;  %v2251_v27 = vadd.f32 1e-05, %v2123_v37  ;;  %v1934_v61 = vmul.f32 0.0078125, %v10511_v20  ;;  %v7984_v4 = vrot.slane %v7873_v46, %v10462_v60  ;;  %v10515_v60 = vld [vmem:[#allocation93_spill] sm:$0xff] }
 0x349   : > { %447 = vbcast.lane.b32.xlu1 %v7796_v34, 272  ;;  %5777 = vmatpush3.msra.mxu1 %v295_v18  ;;  %v10505_v18 = vld [vmem:[#allocation87_spill] sm:$0xff]  ;;  %v10512_v7 = vsub.f32 %v10476_v43, %v7744_v48  ;;  %v10514_v37 = vsub.f32 %v10477_v15, %v7751_v42  ;;  %6099 = vrsqrt.f32 %v2249_v35  ;;  %v1998_v20 = vmul.f32 %v7970_v19, %v7970_v19 }
 0x34a   : > { %466 = vbcast.lane.b32.xlu0 %v7826_v53, 272  ;;  %5778 = vmatprep.subr.mxu1 %v294_v2  ;;  %v1932_v50 = vmul.f32 0.0078125, %v10505_v18  ;;  %v2061_v18 = vsub.f32 %v1933_v41, %v1997_v11  ;;  %v10509_v53 = vld [vmem:[#allocation90_spill] sm:$0xff]  ;;  %v10513_v41 = vld [vmem:[#allocation92_spill] sm:$0xff]  ;;  %v8000_v21 = vmul.f32 0.0078125, %v10515_v60  ;;  %v10516_v48 = vmax.f32 %v7669_v25, 0.0 }
 0x34b   : > { %5779 = vmatpush3.msra.mxu1 %v294_v2  ;;  %v1935_v5 = vmul.f32 0.0078125, %v10509_v53  ;;  %v10510_v2 = vmax.f32 %v7673_v51, 0.0  ;;  %v2371_v36 = vmul.f32 %v6088_v22, %v10512_v7  ;;  %v1999_v53 = vmul.f32 %v7967_v0, %v7967_v0  ;;  %v10517_v22 = vld [vmem:[#allocation94_spill] sm:$0xff] }
 0x34c   : > { %5781 = vmatmul.mubr.f32.vlgmr.msra.gmra.mxu1 %v10508_v17  ;;  %v2060_v17 = vsub.f32 %v1932_v50, %v1996_v29  ;;  %v7992_v51 = vmul.f32 0.0078125, %v10513_v41  ;;  %v2370_v11 = vmul.f32 %v6090_v8, %v10514_v37  ;;  %6101 = vrsqrt.f32 %v2248_v9  ;;  %v10520_v8 = vld [vmem:[#allocation96_spill] sm:$0xff] }
 0x34d   : > { %496 = vbcast.lane.b32.xlu1 %v7955_v6, 256  ;;  %5783 = vmatprep.mubr.f32.mxu1 %v10510_v2  ;;  %v2250_v2 = vadd.f32 1e-05, %v2122_v13  ;;  %v2125_v43 = vmax.f32 %v2061_v18, 0.0  ;;  %v2063_v29 = vsub.f32 %v1935_v5, %v1999_v53  ;;  %v1937_v50 = vmul.f32 0.0078125, %v10517_v22  ;;  %v10519_v13 = vld [vmem:[#allocation95_spill] sm:$0xff] }
 0x34e   : > { %500 = vbcast.lane.b32.xlu0 %v7955_v6, 264  ;;  %v10518_v42 = vmax.f32 %v7682_v44, 0.0  ;;  %6103 = vrsqrt.f32 %v2251_v27  ;;  %v2062_v15 = vsub.f32 %v1934_v61, %v1998_v20  ;;  %v1936_v60 = vmul.f32 0.0078125, %v10519_v13  ;;  %v6092_v5 = vpop.eup %6091  ;;  %v10521_v61 = vld [vmem:[#allocation97_spill] sm:$0xff]  ;;  %v10522_v53 = vld [vmem:[#allocation98_spill] sm:$0xff] }
 0x34f   : > { %v8011_v35 = vmul.f32 0.0078125, %v10520_v8  ;;  %v2124_v25 = vmax.f32 %v2060_v17, 0.0  ;;  %v2001_v9 = vmul.f32 %v7992_v51, %v7992_v51  ;;  %v8017_v18 = vrot.slane %v7787_v54, %v7600_v62 }
 0x350   : > { %5784 = vmatmul.mubr.f32.gmra.mxu1 %v10516_v48  ;;  %v2439_v44 = vmul.f32 %v7605_v16, %v2371_v36  ;;  %6105 = vrsqrt.f32 %v2250_v2  ;;  %v2000_v27 = vmul.f32 %v8000_v21, %v8000_v21  ;;  %v8023_v7 = vmul.f32 0.0078125, %v10521_v61  ;;  %v6094_v22 = vpop.eup %6093 }
 0x351   : > { %629 = vbcast.lane.b32.xlu1 %v7984_v4, 256  ;;  %5786 = vmatprep.mubr.f32.mxu1 %v10518_v42  ;;  %v1939_v41 = vmul.f32 0.0078125, %v10522_v53  ;;  %v10523_v17 = vmax.f32 %v7685_v40, 0.0  ;;  %v2253_v37 = vadd.f32 1e-05, %v2125_v43  ;;  %v2127_v20 = vmax.f32 %v2063_v29, 0.0 }
 0x352   : > { %633 = vbcast.lane.b32.xlu0 %v7984_v4, 264  ;;  %v2065_v48 = vsub.f32 %v1937_v50, %v2001_v9  ;;  %v10524_v36 = vmax.f32 %v7690_v33, 0.0  ;;  %v2438_v2 = vmul.f32 %v7605_v16, %v2370_v11  ;;  %v2126_v42 = vmax.f32 %v2062_v15, 0.0  ;;  %v10525_v40 = vld [vmem:[#allocation99_spill] sm:$0xff]  ;;  %v10526_v53 = vld [vmem:[#allocation34_spill] sm:$0xff]  ;;  %v6096_v11 = vpop.eup %6095 }
 0x353   : > { %v2064_v13 = vsub.f32 %v1936_v60, %v2000_v27  ;;  %v2003_v8 = vmul.f32 %v8011_v35, %v8011_v35  ;;  %v1938_v61 = vmul.f32 0.0078125, %v10525_v40  ;;  %v2182_v43 = vsub.f32 %v10526_v53, %v7861_v45  ;;  %v10527_v29 = vld [vmem:[#allocation35_spill] sm:$0xff] }
 0x354   : > { %5787 = vmatmul.mubr.f32.gmra.mxu1 %v10523_v17  ;;  %v2185_v50 = vsub.f32 %v10527_v29, %v7888_v57  ;;  %v2252_v33 = vadd.f32 1e-05, %v2124_v25  ;;  %v10528_v9 = vsub.f32 %v10485_v63, %v7817_v38  ;;  %v2002_v15 = vmul.f32 %v8023_v7, %v8023_v7  ;;  %v6098_v57 = vpop.eup %6097 }
 0x355   : > { %485 = vbcast.lane.b32.xlu1 %v7865_v31, 272  ;;  %5789 = vmatprep.mubr.f32.mxu1 %v10524_v36  ;;  %v2067_v60 = vsub.f32 %v1939_v41, %v2003_v8  ;;  %v10529_v27 = vmax.f32 %v7693_v32, 0.0  ;;  %v2569_v45 = vmax.f32 %v7961_v28, 0.0  ;;  %v8050_v36 = vadd.f32 %v7618_v23, %v2439_v44  ;;  %v10591_v28 = vld [vmem:[#allocation48_spill] sm:$0xff] }
 0x356   : > { %515 = vbcast.lane.b32.xlu0 %v8017_v18, 256  ;;  %v2373_v17 = vmul.f32 %v6092_v5, %v10528_v9  ;;  %6107 = vrsqrt.f32 %v2253_v37  ;;  %v2255_v25 = vadd.f32 1e-05, %v2127_v20  ;;  %v2129_v38 = vmax.f32 %v2065_v48, 0.0  ;;  %v10532_v48 = vld [vmem:[#allocation36_spill] sm:$0xff] }
 0x357   : > { %v10530_v63 = vmax.f32 %v7705_v58, 0.0  ;;  %v2568_v5 = vmax.f32 %v7958_v26, 0.0  ;;  %v2254_v32 = vadd.f32 1e-05, %v2126_v42  ;;  %v2128_v41 = vmax.f32 %v2064_v13, 0.0 }
 0x358   : > { %5790 = vmatmul.mubr.f32.gmra.mxu1 %v10529_v27  ;;  %v2066_v8 = vsub.f32 %v1938_v61, %v2002_v15  ;;  %v8057_v40 = vadd.f32 %v7618_v23, %v2438_v2  ;;  %6109 = vrsqrt.f32 %v2252_v33  ;;  %v8061_v44 = vrot.slane %v7873_v46, %v7586_v12  ;;  %v6100_v33 = vpop.eup %6099 }
 0x359   : > { %519 = vbcast.lane.b32.xlu1 %v8017_v18, 264  ;;  %5792 = vmatprep.mubr.f32.mxu1 %v10530_v63  ;;  %v10531_v37 = vsub.f32 %v10499_v39, %v7834_v30  ;;  %v2441_v20 = vmul.f32 %v7605_v16, %v2373_v17  ;;  %v2184_v53 = vsub.f32 %v10532_v48, %v7895_v47  ;;  %v2131_v42 = vmax.f32 %v2067_v60, 0.0  ;;  %v10535_v39 = vld [vmem:[#allocation100_spill] sm:$0xff]  ;;  %v6102_v9 = vpop.eup %6101  ;;  %v10537_v17 = vld [vmem:[#allocation37_spill] sm:$0xff]  ;;  %v10539_v63 = vld [vmem:[#allocation38_spill] sm:$0xff] }
 0x35a   : > { %599 = vbcast.lane.b32.xlu0 %v7892_v56, 272  ;;  %v10533_v13 = vmax.f32 %v7696_v3, 0.0  ;;  %v10534_v61 = vsub.f32 %v10500_v14, %v7857_v10  ;;  %6111 = vrsqrt.f32 %v2255_v25  ;;  %v2257_v30 = vadd.f32 1e-05, %v2129_v38 }
 0x35b   : > { %v2372_v58 = vmul.f32 %v6094_v22, %v10531_v37  ;;  %v8077_v22 = vmul.f32 0.0078125, %v10535_v39  ;;  %v10536_v47 = vmax.f32 %v7723_v1, 0.0  ;;  %v2374_v3 = vmul.f32 %v6098_v57, %v2182_v43  ;;  %v6104_v14 = vpop.eup %6103 }
 0x35c   : > { %5793 = vmatmul.mubr.f32.gmra.mxu1 %v10533_v13  ;;  %v2375_v29 = vmul.f32 %v6096_v11, %v10534_v61  ;;  %v2187_v15 = vsub.f32 %v10537_v17, %v7900_v59  ;;  %6113 = vrsqrt.f32 %v2254_v32  ;;  %v2256_v60 = vadd.f32 1e-05, %v2128_v41  ;;  %v10538_v11 = vld [vmem:[#allocation102_spill] sm:$0xff] }
 0x35d   : > { %618 = vbcast.lane.b32.xlu1 %v7922_v24, 272  ;;  %5795 = vmatprep.mubr.f32.mxu1 %v10536_v47  ;;  %v2130_v10 = vmax.f32 %v2066_v8, 0.0  ;;  %v1941_v27 = vmul.f32 0.0078125, %v10538_v11  ;;  %v2570_v25 = vmax.f32 %v8057_v40, 0.0  ;;  %v2440_v38 = vmul.f32 %v7605_v16, %v2372_v58  ;;  %v6106_v41 = vpop.eup %6105  ;;  %v10541_v58 = vld [vmem:[#allocation23_spill] sm:$0xff] }
 0x35e   : > { %648 = vbcast.lane.b32.xlu0 %v8061_v44, 256  ;;  %v8088_v1 = vadd.f32 %v7618_v23, %v2441_v20  ;;  %v2186_v43 = vsub.f32 %v10539_v63, %v7917_v49  ;;  %v2259_v57 = vadd.f32 1e-05, %v2131_v42  ;;  %v10540_v37 = vmax.f32 %v7708_v55, 0.0  ;;  %v10543_v42 = vld [vmem:[#allocation101_spill] sm:$0xff] }
 0x35f   : > { %v2443_v59 = vmul.f32 %v7605_v16, %v2375_v29  ;;  %v2377_v32 = vmul.f32 %v6100_v33, %v2185_v50  ;;  %6115 = vrsqrt.f32 %v2257_v30  ;;  %v2005_v8 = vmul.f32 %v8077_v22, %v8077_v22  ;;  %v10544_v50 = vld [vmem:[#allocation39_spill] sm:$0xff] }
 0x360   : > { %5796 = vmatmul.mubr.f32.gmra.mxu1 %v10540_v37  ;;  %v10542_v20 = vmax.f32 %v10541_v58, 0.0  ;;  %v2442_v49 = vmul.f32 %v7605_v16, %v2374_v3  ;;  %v2376_v48 = vmul.f32 %v6102_v9, %v2184_v53  ;;  %6117 = vrsqrt.f32 %v2256_v60  ;;  %v10546_v3 = vld [vmem:[#allocation24_spill] sm:$0xff]  ;;  %v10548_v9 = vld [vmem:[#allocation26_spill] sm:$0xff]  ;;  %v10549_v60 = vld [vmem:[#allocation103_spill] sm:$0xff] }
 0x361   : > { %652 = vbcast.lane.b32.xlu1 %v8061_v44, 264  ;;  %v2258_v55 = vadd.f32 1e-05, %v2130_v10  ;;  %v8103_v13 = vmul.f32 0.0078125, %v10543_v42  ;;  %v2379_v61 = vmul.f32 %v6104_v14, %v2187_v15  ;;  %v2189_v29 = vsub.f32 %v10544_v50, %v7944_v52  ;;  %v10550_v52 = vld [vmem:[#allocation140_spill] sm:$0xff]  ;;  %v10556_v42 = vld [vmem:[#allocation105_spill] sm:$0xff] }
 0x362   : > { %5798 = vmatprep.mubr.f32.mxu1 %v10542_v20  ;;  %451 = vbcast.lane.b32.xlu0 %v7796_v34, 280  ;;  %v2069_v33 = vsub.f32 %v1941_v27, %v2005_v8  ;;  %v8108_v30 = vadd.f32 %v7618_v23, %v2440_v38  ;;  %6119 = vrsqrt.f32 %v2259_v57  ;;  %v10545_v34 = vld [vmem:[#allocation104_spill] sm:$0xff]  ;;  %v10547_v53 = vmax.f32 %v10546_v3, 0.0  ;;  %v10552_v57 = vld [vmem:[#allocation110_spill] sm:$0xff]  ;;  %v10555_v20 = vld [vmem:[#allocation41_spill] sm:$0xff] }
 0x363   : > { %v1940_v47 = vmul.f32 0.0078125, %v10545_v34  ;;  %v2445_v17 = vmul.f32 %v7605_v16, %v2377_v32  ;;  %v2378_v15 = vmul.f32 %v6106_v41, %v2186_v43  ;;  %v8117_v10 = vmul.f32 0.0078125, %v10549_v60  ;;  %v6108_v63 = vpop.eup %6107  ;;  %v10553_v41 = vld [vmem:[#allocation72_spill] sm:$0xff]  ;;  %v10557_v34 = vld [vmem:[#allocation141_spill] sm:$0xff] }
 0x364   : > { %5799 = vmatmul.mubr.f32.gmra.mxu1 %v10547_v53  ;;  %v10551_v14 = vmax.f32 %v10550_v52, 0.0  ;;  %v8123_v11 = vadd.f32 %v7618_v23, %v2442_v49  ;;  %v8126_v27 = vadd.f32 %v7618_v23, %v2443_v59  ;;  %v2444_v38 = vmul.f32 %v7605_v16, %v2376_v48  ;;  %v10554_v8 = vld [vmem:[#allocation40_spill] sm:$0xff] }
 0x365   : > { %470 = vbcast.lane.b32.xlu1 %v10548_v9, 280  ;;  %6121 = vrsqrt.f32 %v2258_v55  ;;  %v2004_v43 = vmul.f32 %v8103_v13, %v8103_v13  ;;  %v8133_v37 = vrot.slane %v7787_v54, %v10552_v57  ;;  %v2447_v32 = vmul.f32 %v7605_v16, %v2379_v61  ;;  %v6110_v50 = vpop.eup %6109 }
 0x366   : > { %5801 = vmatprep.mubr.f32.mxu1 %v10551_v14  ;;  %504 = vbcast.lane.b32.xlu0 %v7955_v6, 272  ;;  %v2188_v58 = vsub.f32 %v10554_v8, %v10553_v41  ;;  %v2191_v59 = vsub.f32 %v10555_v20, %v7967_v0  ;;  %v2133_v49 = vmax.f32 %v2069_v33, 0.0  ;;  %v1943_v48 = vmul.f32 0.0078125, %v10556_v42  ;;  %v10559_v33 = vld [vmem:[#allocation25_spill] sm:$0xff]  ;;  %v10562_v8 = vld [vmem:[#allocation106_spill] sm:$0xff] }
 0x367   : > { %v2068_v55 = vsub.f32 %v1940_v47, %v2004_v43  ;;  %v10558_v3 = vmax.f32 %v10557_v34, 0.0  ;;  %v8146_v61 = vadd.f32 %v7618_v23, %v2445_v17  ;;  %v2446_v9 = vmul.f32 %v7605_v16, %v2378_v15  ;;  %v6112_v43 = vpop.eup %6111  ;;  %v10561_v17 = vld [vmem:[#allocation42_spill] sm:$0xff] }
 0x368   : > { %v2007_v0 = vmul.f32 %v8117_v10, %v8117_v10  ;;  %v10560_v60 = vmax.f32 %v10559_v33, 0.0  ;;  %v8156_v52 = vadd.f32 %v7618_v23, %v2444_v38  ;;  %v2381_v14 = vmul.f32 %v6108_v63, %v2189_v29 }
 0x369   : > { %5802 = vmatmul.mubr.f32.gmra.mxu1 %v10558_v3  ;;  %534 = vbcast.lane.b32.xlu1 %v8133_v37, 256  ;;  %v2190_v41 = vsub.f32 %v10561_v17, %v7970_v19  ;;  %v8161_v15 = vmul.f32 0.0078125, %v10562_v8  ;;  %v8165_v42 = vadd.f32 %v7618_v23, %v2447_v32  ;;  %v6114_v34 = vpop.eup %6113  ;;  %v2261_v3 = vadd.f32 1e-05, %v2133_v49  ;;  %v10565_v19 = vld [vmem:[#allocation142_spill] sm:$0xff]  ;;  %v10567_v49 = vld [vmem:[#allocation43_spill] sm:$0xff] }
 0x36a   : > { %5804 = vmatprep.mubr.f32.mxu1 %v10560_v60  ;;  %538 = vbcast.lane.b32.xlu0 %v8133_v37, 264  ;;  %v2071_v33 = vsub.f32 %v1943_v48, %v2007_v0  ;;  %v8169_v38 = vrot.slane %v7873_v46, %v7600_v62  ;;  %v2380_v29 = vmul.f32 %v6110_v50, %v2188_v58  ;;  %v2132_v63 = vmax.f32 %v2068_v55, 0.0  ;;  %v10564_v60 = vld [vmem:[#allocation108_spill] sm:$0xff]  ;;  %v10568_v0 = vld [vmem:[#allocation27_spill] sm:$0xff] }
 0x36b   : > { %v1942_v47 = vmul.f32 0.0078125, %v10564_v60  ;;  %v10566_v17 = vmax.f32 %v10565_v19, 0.0  ;;  %v8177_v32 = vadd.f32 %v7618_v23, %v2446_v9  ;;  %v2193_v48 = vsub.f32 %v10567_v49, %v7992_v51  ;;  %v10570_v19 = vld [vmem:[#allocation44_spill] sm:$0xff]  ;;  %v10575_v8 = vld [vmem:[#allocation107_spill] sm:$0xff] }
 0x36c   : > { %10563 = vst [vmem:[#allocation73_spill] sm:$0xff] %v8169_v38  ;;  %v10569_v20 = vmax.f32 %v10568_v0, 0.0  ;;  %v2449_v50 = vmul.f32 %v7605_v16, %v2381_v14  ;;  %v2383_v55 = vmul.f32 %v6112_v43, %v2191_v59  ;;  %v6116_v60 = vpop.eup %6115  ;;  %v2006_v9 = vmul.f32 %v8161_v15, %v8161_v15  ;;  %v10572_v59 = vld [vmem:[#allocation46_spill] sm:$0xff] }
 0x36d   : > { %5805 = vmatmul.mubr.f32.gmra.mxu1 %v10566_v17  ;;  %637 = vbcast.lane.b32.xlu1 %v7984_v4, 272  ;;  %v2192_v17 = vsub.f32 %v10570_v19, %v8000_v21  ;;  %v2382_v51 = vmul.f32 %v6114_v34, %v2190_v41  ;;  %v6118_v49 = vpop.eup %6117  ;;  %6123 = vrsqrt.f32 %v2261_v3  ;;  %v2135_v39 = vmax.f32 %v2071_v33, 0.0  ;;  %v10573_v21 = vld [vmem:[#allocation28_spill] sm:$0xff] }
 0x36e   : > { %5807 = vmatprep.mubr.f32.mxu1 %v10569_v20  ;;  %667 = vbcast.lane.b32.xlu0 %v8169_v38, 256  ;;  %v10571_v20 = vld [vmem:[#allocation45_spill] sm:$0xff]  ;;  %v2448_v58 = vmul.f32 %v7605_v16, %v2380_v29  ;;  %v2194_v14 = vsub.f32 %v10572_v59, %v8023_v7  ;;  %v2260_v43 = vadd.f32 1e-05, %v2132_v63  ;;  %v2070_v53 = vsub.f32 %v1942_v47, %v2006_v9  ;;  %v10578_v29 = vld [vmem:[#allocation111_spill] sm:$0xff]  ;;  %v10579_v9 = vld [vmem:[#allocation12_spill] sm:$0xff] }
 0x36f   : > { %v2195_v0 = vsub.f32 %v10571_v20, %v8011_v35  ;;  %v10574_v19 = vmax.f32 %v10573_v21, 0.0  ;;  %v6120_v34 = vpop.eup %6119  ;;  %v8201_v2 = vmul.f32 0.0078125, %v10575_v8  ;;  %v10576_v35 = vld [vmem:[#allocation30_spill] sm:$0xff]  ;;  %v8207_v7 = vadd.f32 %v7618_v23, %v2449_v50 }
 0x370   : > { %v10577_v3 = vmax.f32 %v10576_v35, 0.0  ;;  %v2451_v47 = vmul.f32 %v7605_v16, %v2383_v55  ;;  %v2385_v33 = vmul.f32 %v6116_v60, %v2193_v48  ;;  %v8211_v63 = vmul.f32 0.0078125, %v10578_v29  ;;  %v10580_v35 = vld [vmem:[#allocation109_spill] sm:$0xff]  ;;  %v10583_v60 = vld [vmem:[#allocation114_spill] sm:$0xff] }
 0x371   : > { %5808 = vmatmul.mubr.f32.gmra.mxu1 %v10574_v19  ;;  %671 = vbcast.lane.b32.xlu1 %v8169_v38, 264  ;;  %v8214_v20 = vsub.s32 7, %v10579_v9  ;;  %v2450_v8 = vmul.f32 %v7605_v16, %v2382_v51  ;;  %v2384_v59 = vmul.f32 %v6118_v49, %v2192_v17  ;;  %v2263_v19 = vadd.f32 1e-05, %v2135_v39  ;;  %v10584_v9 = vld [vmem:[#allocation29_spill] sm:$0xff] }
 0x372   : > { %5810 = vmatprep.mubr.f32.mxu1 %v10577_v3  ;;  %489 = vbcast.lane.b32.xlu0 %v7865_v31, 280  ;;  %v6122_v21 = vpop.eup %6121  ;;  %v1945_v3 = vmul.f32 0.0078125, %v10580_v35  ;;  %v10581_v31 = vld [vmem:[#allocation112_spill] sm:$0xff]  ;;  %v8223_v55 = vadd.f32 %v7618_v23, %v2448_v58  ;;  %6125 = vrsqrt.f32 %v2260_v43  ;;  %v2134_v48 = vmax.f32 %v2070_v53, 0.0 }
 0x373   : > { %v8220_v50 = vrot.slane %v7787_v54, %v10581_v31  ;;  %v1944_v29 = vmul.f32 0.0078125, %v10583_v60  ;;  %v10585_v41 = vmax.f32 %v10584_v9, 0.0  ;;  %v2387_v17 = vmul.f32 %v6120_v34, %v2195_v0  ;;  %v10587_v35 = vld [vmem:[#allocation116_spill] sm:$0xff] }
 0x374   : > { %v2009_v39 = vmul.f32 %v8201_v2, %v8201_v2  ;;  %v8236_v53 = vadd.f32 %v7618_v23, %v2451_v47  ;;  %v2453_v51 = vmul.f32 %v7605_v16, %v2385_v33  ;;  %v2008_v49 = vmul.f32 %v8211_v63, %v8211_v63  ;;  %v10588_v47 = vld [vmem:[#allocation47_spill] sm:$0xff] }
 0x375   : > { %10582 = vst [vmem:[#allocation74_spill] sm:$0xff] %v8220_v50  ;;  %5811 = vmatmul.mubr.f32.gmra.mxu1 %v10585_v41  ;;  %523 = vbcast.lane.b32.xlu1 %v8017_v18, 272  ;;  %v8242_v0 = vadd.f32 %v7618_v23, %v2450_v8  ;;  %v2452_v43 = vmul.f32 %v7605_v16, %v2384_v59  ;;  %6127 = vrsqrt.f32 %v2263_v19  ;;  %v8249_v60 = vmul.f32 0.0078125, %v10587_v35  ;;  %v10589_v8 = vld [vmem:[#allocation115_spill] sm:$0xff] }
 0x376   : > { %5813 = vmatprep.mubr.f32.mxu1 %v2568_v5  ;;  %553 = vbcast.lane.b32.xlu0 %v8220_v50, 256  ;;  %v2386_v41 = vmul.f32 %v6122_v21, %v2194_v14  ;;  %v2073_v26 = vsub.f32 %v1945_v3, %v2009_v39  ;;  %v10586_v5 = vld [vmem:[#allocation113_spill] sm:$0xff]  ;;  %v2197_v33 = vsub.f32 %v10588_v47, %v8077_v22  ;;  %v2262_v9 = vadd.f32 1e-05, %v2134_v48  ;;  %v10607_v48 = vld [vmem:[#allocation122_spill] sm:$0xff]  ;;  %v10609_v22 = vld [vmem:[#allocation124_spill] sm:$0xff] }
 0x377   : > { %v8246_v34 = vmul.f32 0.0078125, %v10586_v5  ;;  %v2072_v58 = vsub.f32 %v1944_v29, %v2008_v49  ;;  %v2455_v14 = vmul.f32 %v7605_v16, %v2387_v17  ;;  %v1947_v59 = vmul.f32 0.0078125, %v10589_v8  ;;  %v10590_v21 = vld [vmem:[#allocation117_spill] sm:$0xff] }
 0x378   : > { %v1946_v19 = vmul.f32 0.0078125, %v10590_v21  ;;  %v8264_v3 = vadd.f32 %v7618_v23, %v2453_v51  ;;  %v8271_v17 = vadd.f32 %v7618_v23, %v2452_v43  ;;  %v2137_v39 = vmax.f32 %v2073_v26, 0.0  ;;  %v10594_v26 = vld [vmem:[#allocation49_spill] sm:$0xff] }
 0x379   : > { %5814 = vmatmul.mubr.f32.gmra.mxu1 %v2569_v45  ;;  %557 = vbcast.lane.b32.xlu1 %v8220_v50, 264  ;;  %v2196_v45 = vsub.f32 %v10591_v28, %v8103_v13  ;;  %v2011_v40 = vmul.f32 %v8246_v34, %v8246_v34  ;;  %6129 = vrsqrt.f32 %v2262_v9  ;;  %v2136_v49 = vmax.f32 %v2072_v58, 0.0  ;;  %v10592_v13 = vld [vmem:[#allocation119_spill] sm:$0xff]  ;;  %v10597_v28 = vld [vmem:[#allocation121_spill] sm:$0xff] }
 0x37a   : > { %5816 = vmatprep.mubr.f32.mxu1 %v2570_v25  ;;  %603 = vbcast.lane.b32.xlu0 %v7892_v56, 280  ;;  %v2010_v56 = vmul.f32 %v8249_v60, %v8249_v60  ;;  %v2454_v25 = vmul.f32 %v7605_v16, %v2386_v41  ;;  %v6124_v51 = vpop.eup %6123  ;;  %v8279_v5 = vmul.f32 0.0078125, %v10592_v13  ;;  %v10593_v35 = vmax.f32 %v8050_v36, 0.0  ;;  %v10596_v36 = vld [vmem:[#allocation50_spill] sm:$0xff] }
 0x37b   : > { %v8285_v43 = vadd.f32 %v7618_v23, %v2455_v14  ;;  %v2199_v47 = vsub.f32 %v10594_v26, %v8117_v10  ;;  %v2075_v8 = vsub.f32 %v1947_v59, %v2011_v40  ;;  %v10595_v41 = vmax.f32 %v8108_v30, 0.0  ;;  %v10599_v59 = vld [vmem:[#allocation51_spill] sm:$0xff]  ;;  %v10600_v40 = vld [vmem:[#allocation118_spill] sm:$0xff] }
 0x37c   : > { %v2074_v21 = vsub.f32 %v1946_v19, %v2010_v56  ;;  %v8298_v14 = vrot.slane %v7873_v46, %v10552_v57  ;;  %v2265_v30 = vadd.f32 1e-05, %v2137_v39  ;;  %v8304_v56 = vmul.f32 0.0078125, %v10600_v40  ;;  %v10602_v40 = vld [vmem:[#allocation120_spill] sm:$0xff] }
 0x37d   : > { %5817 = vmatmul.mubr.f32.gmra.mxu1 %v10593_v35  ;;  %622 = vbcast.lane.b32.xlu1 %v7922_v24, 280  ;;  %v1948_v24 = vmul.f32 0.0078125, %v10597_v28  ;;  %v2389_v13 = vmul.f32 %v6124_v51, %v2197_v33  ;;  %v2264_v35 = vadd.f32 1e-05, %v2136_v49  ;;  %v2012_v26 = vmul.f32 %v8279_v5, %v8279_v5  ;;  %v10603_v33 = vld [vmem:[#allocation123_spill] sm:$0xff] }
 0x37e   : > { %5819 = vmatprep.mubr.f32.mxu1 %v10595_v41  ;;  %656 = vbcast.lane.b32.xlu0 %v8061_v44, 272  ;;  %10598 = vst [vmem:[#allocation31_spill] sm:$0xff] %v8298_v14  ;;  %v10601_v41 = vmax.f32 %v8088_v1, 0.0  ;;  %v8312_v57 = vadd.f32 %v7618_v23, %v2454_v25  ;;  %v2139_v39 = vmax.f32 %v2075_v8, 0.0  ;;  %v2138_v19 = vmax.f32 %v2074_v21, 0.0  ;;  %v10605_v1 = vld [vmem:[#allocation52_spill] sm:$0xff] }
 0x37f   : > { %v6126_v58 = vpop.eup %6125  ;;  %v1949_v10 = vmul.f32 0.0078125, %v10602_v40  ;;  %v8317_v51 = vmul.f32 0.0078125, %v10603_v33  ;;  %v10604_v49 = vmax.f32 %v8123_v11, 0.0  ;;  %v10606_v25 = vld [vmem:[#allocation53_spill] sm:$0xff]  ;;  %v2076_v28 = vsub.f32 %v1948_v24, %v2012_v26 }
 0x380   : > { %v8327_v8 = vmul.f32 0.0078125, %v10607_v48  ;;  %6131 = vrsqrt.f32 %v2265_v30  ;;  %v2013_v21 = vmul.f32 %v8304_v56, %v8304_v56  ;;  %v10608_v40 = vld [vmem:[#allocation125_spill] sm:$0xff]  ;;  %v2457_v11 = vmul.f32 %v7605_v16, %v2389_v13 }
 0x381   : > { %5820 = vmatmul.mubr.f32.gmra.mxu1 %v10601_v41  ;;  %686 = vbcast.lane.b32.xlu1 %v8298_v14, 256  ;;  %v1950_v33 = vmul.f32 0.0078125, %v10608_v40  ;;  %6133 = vrsqrt.f32 %v2264_v35  ;;  %v1951_v9 = vmul.f32 0.0078125, %v10609_v22  ;;  %v10610_v41 = vld [vmem:[#allocation127_spill] sm:$0xff]  ;;  %v10611_v24 = vmax.f32 %v8126_v27, 0.0  ;;  %v10613_v27 = vld [vmem:[#allocation129_spill] sm:$0xff] }
 0x382   : > { %5822 = vmatprep.mubr.f32.mxu1 %v10604_v49  ;;  %690 = vbcast.lane.b32.xlu0 %v8298_v14, 264  ;;  %v6128_v49 = vpop.eup %6127  ;;  %v8335_v62 = vmul.f32 0.0078125, %v10610_v41  ;;  %v2388_v48 = vmul.f32 %v6126_v58, %v2196_v45  ;;  %v2267_v30 = vadd.f32 1e-05, %v2139_v39  ;;  %v2266_v26 = vadd.f32 1e-05, %v2138_v19 }
 0x383   : > { %v2077_v29 = vsub.f32 %v1949_v10, %v2013_v21  ;;  %v2014_v40 = vmul.f32 %v8317_v51, %v8317_v51  ;;  %v10612_v13 = vmax.f32 %v8156_v52, 0.0  ;;  %v2140_v22 = vmax.f32 %v2076_v28, 0.0  ;;  %v10615_v58 = vld [vmem:[#allocation126_spill] sm:$0xff] }
 0x384   : > { %v2015_v35 = vmul.f32 %v8327_v8, %v8327_v8  ;;  %v1952_v41 = vmul.f32 0.0078125, %v10613_v27  ;;  %v8353_v10 = vmul.f32 0.0078125, %v10615_v58  ;;  %v8356_v19 = vadd.f32 %v7618_v23, %v2457_v11  ;;  %v10618_v11 = vld [vmem:[#allocation128_spill] sm:$0xff] }
 0x385   : > { %5823 = vmatmul.mubr.f32.gmra.mxu1 %v10611_v24  ;;  %508 = vbcast.lane.b32.xlu1 %v7955_v6, 280  ;;  %v8350_v6 = vrot.slane %v7787_v54, %v8214_v20  ;;  %v2078_v45 = vsub.f32 %v1950_v33, %v2014_v40  ;;  %v2391_v52 = vmul.f32 %v6128_v49, %v2199_v47  ;;  %v10616_v21 = vmax.f32 %v8146_v61, 0.0  ;;  %v10617_v40 = vld [vmem:[#allocation54_spill] sm:$0xff] }
 0x386   : > { %5825 = vmatprep.mubr.f32.mxu1 %v10612_v13  ;;  %542 = vbcast.lane.b32.xlu0 %v8133_v37, 272  ;;  %v2079_v39 = vsub.f32 %v1951_v9, %v2015_v35  ;;  %v2016_v28 = vmul.f32 %v8335_v62, %v8335_v62  ;;  %v2456_v33 = vmul.f32 %v7605_v16, %v2388_v48  ;;  %v6130_v24 = vpop.eup %6129  ;;  %6135 = vrsqrt.f32 %v2266_v26  ;;  %v10619_v9 = vld [vmem:[#allocation131_spill] sm:$0xff]  ;;  %v10621_v13 = vld [vmem:[#allocation130_spill] sm:$0xff] }
 0x387   : > { %10614 = vst [vmem:[#allocation75_spill] sm:$0xff] %v8350_v6  ;;  %v1953_v47 = vmul.f32 0.0078125, %v10618_v11  ;;  %v8369_v49 = vmul.f32 0.0078125, %v10619_v9  ;;  %v10620_v35 = vmax.f32 %v8177_v32, 0.0  ;;  %6137 = vrsqrt.f32 %v2267_v30  ;;  %v10622_v11 = vld [vmem:[#allocation133_spill] sm:$0xff] }
 0x388   : > { %v2141_v61 = vmax.f32 %v2077_v29, 0.0  ;;  %v2268_v27 = vadd.f32 1e-05, %v2140_v22  ;;  %v2080_v58 = vsub.f32 %v1952_v41, %v2016_v28  ;;  %v2142_v48 = vmax.f32 %v2078_v45, 0.0  ;;  %v10625_v28 = vld [vmem:[#allocation132_spill] sm:$0xff] }
 0x389   : > { %5826 = vmatmul.mubr.f32.gmra.mxu1 %v10616_v21  ;;  %572 = vbcast.lane.b32.xlu1 %v8350_v6, 256  ;;  %v2017_v21 = vmul.f32 %v8353_v10, %v8353_v10  ;;  %v8377_v26 = vmul.f32 0.0078125, %v10621_v13  ;;  %v1954_v54 = vmul.f32 0.0078125, %v10622_v11  ;;  %v2143_v9 = vmax.f32 %v2079_v39, 0.0  ;;  %v10626_v13 = vld [vmem:[#allocation17_spill] sm:$0xff] }
 0x38a   : > { %5828 = vmatprep.mubr.f32.mxu1 %v10620_v35  ;;  %576 = vbcast.lane.b32.xlu0 %v8350_v6, 264  ;;  %v10623_v12 = vmax.f32 %v8165_v42, 0.0  ;;  %v8384_v32 = vadd.f32 %v7618_v23, %v2456_v33  ;;  %v10624_v29 = vsub.f32 %v10596_v36, %v8161_v15  ;;  %v2459_v22 = vmul.f32 %v7605_v16, %v2391_v52 }
 0x38b   : > { %v2081_v41 = vsub.f32 %v1953_v47, %v2017_v21  ;;  %v2018_v45 = vmul.f32 %v8369_v49, %v8369_v49  ;;  %v1955_v39 = vmul.f32 0.0078125, %v10625_v28  ;;  %v8394_v42 = vmul.f32 0.0078125, %v10626_v13  ;;  %v10629_v47 = vld [vmem:[#allocation15_spill] sm:$0xff] }
 0x38c   : > { %v2390_v30 = vmul.f32 %v6130_v24, %v10624_v29  ;;  %6139 = vrsqrt.f32 %v2268_v27  ;;  %v2144_v15 = vmax.f32 %v2080_v58, 0.0  ;;  %v8401_v36 = vrot.slane %v7873_v46, %v10581_v31 }
 0x38d   : > { %5829 = vmatmul.mubr.f32.gmra.mxu1 %v10623_v12  ;;  %641 = vbcast.lane.b32.xlu1 %v7984_v4, 280  ;;  %v10627_v12 = vmax.f32 %v8223_v55, 0.0  ;;  %v2269_v4 = vadd.f32 1e-05, %v2141_v61  ;;  %v2270_v52 = vadd.f32 1e-05, %v2142_v48  ;;  %v2019_v33 = vmul.f32 %v8377_v26, %v8377_v26  ;;  %v6132_v21 = vpop.eup %6131 }
 0x38e   : > { %675 = vbcast.lane.b32.xlu0 %v8169_v38, 272  ;;  %10628 = vst [vmem:[#allocation76_spill] sm:$0xff] %v8401_v36  ;;  %v2082_v24 = vsub.f32 %v1954_v54, %v2018_v45  ;;  %v1956_v35 = vmul.f32 0.0078125, %v10629_v47  ;;  %v2271_v11 = vadd.f32 1e-05, %v2143_v9  ;;  %v10630_v55 = vld [vmem:[#allocation134_spill] sm:$0xff]  ;;  %v8414_v27 = vadd.f32 %v7618_v23, %v2459_v22  ;;  %v6134_v58 = vpop.eup %6133 }
 0x38f   : > { %5831 = vmatprep.mubr.f32.mxu1 %v10627_v12  ;;  %v8407_v29 = vmul.f32 0.0078125, %v10630_v55  ;;  %v10631_v61 = vmax.f32 %v8207_v7, 0.0  ;;  %v2588_v31 = vmax.f32 %v8384_v32, 0.0  ;;  %v2145_v48 = vmax.f32 %v2081_v41, 0.0  ;;  %v10632_v9 = vld [vmem:[#allocation68_spill] sm:$0xff]  ;;  %v10634_v12 = vld [vmem:[#allocation19_spill] sm:$0xff] }
 0x390   : > { %v2083_v54 = vsub.f32 %v1955_v39, %v2019_v33  ;;  %v2020_v45 = vmul.f32 %v8394_v42, %v8394_v42  ;;  %v8419_v28 = vmul.f32 0.0078125, %v10632_v9  ;;  %v10633_v13 = vmax.f32 %v8242_v0, 0.0  ;;  %v10635_v33 = vld [vmem:[#allocation136_spill] sm:$0xff]  ;;  %v10636_v9 = vld [vmem:[#allocation69_spill] sm:$0xff] }
 0x391   : > { %5832 = vmatmul.mubr.f32.gmra.mxu1 %v10631_v61  ;;  %705 = vbcast.lane.b32.xlu1 %v8401_v36, 256  ;;  %6141 = vrsqrt.f32 %v2269_v4  ;;  %v2272_v7 = vadd.f32 1e-05, %v2144_v15  ;;  %v1957_v47 = vmul.f32 0.0078125, %v10634_v12  ;;  %v2458_v22 = vmul.f32 %v7605_v16, %v2390_v30  ;;  %v10641_v12 = vld [vmem:[#allocation137_spill] sm:$0xff] }
 0x392   : > { %5834 = vmatprep.mubr.f32.mxu1 %v10633_v13  ;;  %709 = vbcast.lane.b32.xlu0 %v8401_v36, 264  ;;  %6143 = vrsqrt.f32 %v2270_v52  ;;  %v2146_v41 = vmax.f32 %v2082_v24, 0.0  ;;  %v2084_v39 = vsub.f32 %v1956_v35, %v2020_v45  ;;  %v1958_v55 = vmul.f32 0.0078125, %v10635_v33  ;;  %v10639_v35 = vld [vmem:[#allocation138_spill] sm:$0xff] }
 0x393   : > { %6145 = vrsqrt.f32 %v2271_v11  ;;  %v2021_v61 = vmul.f32 %v8407_v29, %v8407_v29  ;;  %v8430_v0 = vmul.f32 0.0078125, %v10636_v9  ;;  %v10637_v13 = vmax.f32 %v8236_v53, 0.0  ;;  %v6136_v53 = vpop.eup %6135 }
 0x394   : > { %v10638_v30 = vsub.f32 %v10605_v1, %v8211_v63  ;;  %v2273_v15 = vadd.f32 1e-05, %v2145_v48  ;;  %v2147_v52 = vmax.f32 %v2083_v54, 0.0  ;;  %v2022_v24 = vmul.f32 %v8419_v28, %v8419_v28 }
 0x395   : > { %5835 = vmatmul.mubr.f32.gmra.mxu1 %v10637_v13  ;;  %527 = vbcast.lane.b32.xlu1 %v8017_v18, 280  ;;  %v8441_v11 = vmul.f32 0.0078125, %v10639_v35  ;;  %v10640_v45 = vmax.f32 %v8271_v17, 0.0  ;;  %6147 = vrsqrt.f32 %v2272_v7  ;;  %v2085_v18 = vsub.f32 %v1957_v47, %v2021_v61  ;;  %v10643_v13 = vld [vmem:[#allocation21_spill] sm:$0xff]  ;;  %v10644_v35 = vld [vmem:[#allocation139_spill] sm:$0xff]  ;;  %v10648_v61 = vld [vmem:[#allocation22_spill] sm:$0xff] }
 0x396   : > { %v2392_v4 = vmul.f32 %v6134_v58, %v10638_v30  ;;  %561 = vbcast.lane.b32.xlu0 %v8220_v50, 272  ;;  %v1959_v33 = vmul.f32 0.0078125, %v10641_v12  ;;  %v10642_v63 = vsub.f32 %v10599_v59, %v8201_v2  ;;  %v6138_v58 = vpop.eup %6137  ;;  %v2274_v48 = vadd.f32 1e-05, %v2146_v41  ;;  %v10650_v12 = vld [vmem:[#allocation56_spill] sm:$0xff] }
 0x397   : > { %5837 = vmatprep.mubr.f32.mxu1 %v10640_v45  ;;  %v2148_v54 = vmax.f32 %v2084_v39, 0.0  ;;  %v2086_v9 = vsub.f32 %v1958_v55, %v2022_v24  ;;  %v1960_v30 = vmul.f32 0.0078125, %v10643_v13  ;;  %v2023_v17 = vmul.f32 %v8430_v0, %v8430_v0 }
 0x398   : > { %v2393_v1 = vmul.f32 %v6132_v21, %v10642_v63  ;;  %v8454_v45 = vmul.f32 0.0078125, %v10644_v35  ;;  %v10645_v7 = vmax.f32 %v8264_v3, 0.0  ;;  %v2526_v2 = vadd.f32 %v7618_v23, %v2458_v22 }
 0x399   : > { %660 = vbcast.lane.b32.xlu1 %v8061_v44, 280  ;;  %v2460_v59 = vmul.f32 %v7605_v16, %v2392_v4  ;;  %6149 = vrsqrt.f32 %v2273_v15  ;;  %v2275_v21 = vadd.f32 1e-05, %v2147_v52  ;;  %v2024_v47 = vmul.f32 %v8441_v11, %v8441_v11  ;;  %v6140_v15 = vpop.eup %6139 }
 0x39a   : > { %5838 = vmatmul.mubr.f32.gmra.mxu1 %v10645_v7  ;;  %v10646_v41 = vmax.f32 %v8312_v57, 0.0  ;;  %694 = vbcast.lane.b32.xlu0 %v8298_v14, 272  ;;  %v10647_v3 = vsub.f32 %v10617_v40, %v8249_v60  ;;  %v2149_v55 = vmax.f32 %v2085_v18, 0.0  ;;  %v2087_v44 = vsub.f32 %v1959_v33, %v2023_v17  ;;  %v10653_v17 = vld [vmem:[#allocation55_spill] sm:$0xff] }
 0x39b   : > { %v1961_v22 = vmul.f32 0.0078125, %v10648_v61  ;;  %v8472_v4 = vrot.slane %v7873_v46, %v8214_v20  ;;  %6151 = vrsqrt.f32 %v2274_v48  ;;  %v2276_v52 = vadd.f32 1e-05, %v2148_v54 }
 0x39c   : > { %5840 = vmatprep.mubr.f32.mxu1 %v10646_v41  ;;  %v2394_v39 = vmul.f32 %v6136_v53, %v10647_v3  ;;  %v2150_v24 = vmax.f32 %v2086_v9, 0.0  ;;  %v2088_v57 = vsub.f32 %v1960_v30, %v2024_v47  ;;  %v2204_v63 = vsub.f32 %v10650_v12, %v8279_v5 }
 0x39d   : > { %10649 = vst [vmem:[#allocation77_spill] sm:$0xff] %v8472_v4  ;;  %v2025_v60 = vmul.f32 %v8454_v45, %v8454_v45  ;;  %v10651_v40 = vmax.f32 %v8285_v43, 0.0  ;;  %724 = vbcast.lane.b32.xlu1 %v8472_v4, 256  ;;  %v2589_v53 = vmax.f32 %v8356_v19, 0.0  ;;  %v2461_v46 = vmul.f32 %v7605_v16, %v2393_v1 }
 0x39e   : > { %728 = vbcast.lane.b32.xlu0 %v8472_v4, 264  ;;  %v2590_v18 = vmax.f32 %v2526_v2, 0.0  ;;  %v2528_v5 = vadd.f32 %v7618_v23, %v2460_v59  ;;  %v2462_v33 = vmul.f32 %v7605_v16, %v2394_v39  ;;  %v10652_v43 = vsub.f32 %v10606_v25, %v8246_v34  ;;  %v6142_v13 = vpop.eup %6141 }
 0x39f   : > { %5841 = vmatmul.mubr.f32.gmra.mxu1 %v10651_v40  ;;  %6153 = vrsqrt.f32 %v2275_v21  ;;  %v2277_v54 = vadd.f32 1e-05, %v2149_v55  ;;  %v2151_v9 = vmax.f32 %v2087_v44, 0.0  ;;  %v2089_v19 = vsub.f32 %v1961_v22, %v2025_v60  ;;  %v6144_v30 = vpop.eup %6143  ;;  %v10655_v44 = vld [vmem:[#allocation57_spill] sm:$0xff] }
 0x3a0   : > { %5843 = vmatprep.mubr.f32.mxu1 %v2588_v31  ;;  %v2395_v48 = vmul.f32 %v6138_v58, %v10652_v43  ;;  %6155 = vrsqrt.f32 %v2276_v52  ;;  %v2278_v1 = vadd.f32 1e-05, %v2150_v24  ;;  %v2152_v32 = vmax.f32 %v2088_v57, 0.0  ;;  %v6146_v25 = vpop.eup %6145  ;;  %v10654_v58 = vld [vmem:[#allocation58_spill] sm:$0xff] }
 0x3a1   : > { %v2396_v31 = vmul.f32 %v6140_v15, %v2204_v63  ;;  %v2205_v35 = vsub.f32 %v10653_v17, %v8304_v56  ;;  %546 = vbcast.lane.b32.xlu1 %v8133_v37, 280  ;;  %v2591_v7 = vmax.f32 %v8414_v27, 0.0  ;;  %v2529_v34 = vadd.f32 %v7618_v23, %v2461_v46 }
 0x3a2   : > { %v2206_v2 = vsub.f32 %v10654_v58, %v8317_v51  ;;  %v2592_v59 = vmax.f32 %v2528_v5, 0.0  ;;  %v2530_v21 = vadd.f32 %v7618_v23, %v2462_v33  ;;  %v2463_v47 = vmul.f32 %v7605_v16, %v2395_v48  ;;  %v6148_v39 = vpop.eup %6147  ;;  %v10656_v51 = vld [vmem:[#allocation60_spill] sm:$0xff]  ;;  %v10658_v5 = vld [vmem:[#allocation62_spill] sm:$0xff] }
 0x3a3   : > { %5844 = vmatmul.mubr.f32.gmra.mxu1 %v2589_v53  ;;  %6157 = vrsqrt.f32 %v2277_v54  ;;  %v2279_v41 = vadd.f32 1e-05, %v2151_v9  ;;  %v2153_v56 = vmax.f32 %v2089_v19, 0.0  ;;  %v2397_v3 = vmul.f32 %v6142_v13, %v2205_v35 }
 0x3a4   : > { %5846 = vmatprep.mubr.f32.mxu1 %v2590_v18  ;;  %6159 = vrsqrt.f32 %v2278_v1  ;;  %v2280_v37 = vadd.f32 1e-05, %v2152_v32  ;;  %v2464_v27 = vmul.f32 %v7605_v16, %v2396_v31  ;;  %v2398_v55 = vmul.f32 %v6144_v30, %v2206_v2  ;;  %v10659_v30 = vld [vmem:[#allocation61_spill] sm:$0xff] }
 0x3a5   : > { %v2207_v61 = vsub.f32 %v10655_v44, %v8327_v8  ;;  %v2208_v22 = vsub.f32 %v10656_v51, %v8335_v62  ;;  %v2593_v15 = vmax.f32 %v2529_v34, 0.0  ;;  %v2594_v52 = vmax.f32 %v2530_v21, 0.0  ;;  %v10657_v62 = vld [vmem:[#allocation59_spill] sm:$0xff] }
 0x3a6   : > { %v2531_v24 = vadd.f32 %v7618_v23, %v2463_v47  ;;  %v6150_v57 = vpop.eup %6149  ;;  %6161 = vrsqrt.f32 %v2279_v41  ;;  %v2281_v12 = vadd.f32 1e-05, %v2153_v56  ;;  %v2465_v63 = vmul.f32 %v7605_v16, %v2397_v3 }
 0x3a7   : > { %5847 = vmatmul.mubr.f32.gmra.mxu1 %v2591_v7  ;;  %v2399_v60 = vmul.f32 %v6146_v25, %v2207_v61  ;;  %6163 = vrsqrt.f32 %v2280_v37  ;;  %v2532_v40 = vadd.f32 %v7618_v23, %v2464_v27  ;;  %v2466_v8 = vmul.f32 %v7605_v16, %v2398_v55 }
 0x3a8   : > { %5849 = vmatprep.mubr.f32.mxu1 %v2592_v59  ;;  %v2400_v53 = vmul.f32 %v6148_v39, %v2208_v22  ;;  %v6152_v46 = vpop.eup %6151  ;;  %v2209_v18 = vsub.f32 %v10657_v62, %v8353_v10  ;;  %v2210_v33 = vsub.f32 %v10658_v5, %v8369_v49  ;;  %v2595_v43 = vmax.f32 %v2531_v24, 0.0  ;;  %v10660_v49 = vld [vmem:[#allocation64_spill] sm:$0xff] }
 0x3a9   : > { %6165 = vrsqrt.f32 %v2281_v12  ;;  %v2533_v48 = vadd.f32 %v7618_v23, %v2465_v63  ;;  %v2467_v54 = vmul.f32 %v7605_v16, %v2399_v60  ;;  %v2596_v13 = vmax.f32 %v2532_v40, 0.0 }
 0x3aa   : > { %v2401_v9 = vmul.f32 %v6150_v57, %v2209_v18  ;;  %v2534_v1 = vadd.f32 %v7618_v23, %v2466_v8  ;;  %v2468_v32 = vmul.f32 %v7605_v16, %v2400_v53  ;;  %v2402_v31 = vmul.f32 %v6152_v46, %v2210_v33 }
 0x3ab   : > { %5850 = vmatmul.mubr.f32.gmra.mxu1 %v2593_v15  ;;  %v2211_v17 = vsub.f32 %v10659_v30, %v8377_v26  ;;  %v2212_v35 = vsub.f32 %v10660_v49, %v8394_v42  ;;  %v2597_v7 = vmax.f32 %v2533_v48, 0.0  ;;  %v2535_v34 = vadd.f32 %v7618_v23, %v2467_v54  ;;  %v10661_v26 = vld [vmem:[#allocation63_spill] sm:$0xff]  ;;  %v10662_v42 = vld [vmem:[#allocation66_spill] sm:$0xff] }
 0x3ac   : > { %5852 = vmatprep.mubr.f32.mxu1 %v2594_v52  ;;  %v6154_v19 = vpop.eup %6153  ;;  %v2469_v25 = vmul.f32 %v7605_v16, %v2401_v9  ;;  %v2598_v59 = vmax.f32 %v2534_v1, 0.0  ;;  %v2536_v21 = vadd.f32 %v7618_v23, %v2468_v32  ;;  %v2470_v47 = vmul.f32 %v7605_v16, %v2402_v31 }
 0x3ad   : > { %v6156_v10 = vpop.eup %6155  ;;  %v2403_v58 = vmul.f32 %v6154_v19, %v2211_v17  ;;  %v2213_v3 = vsub.f32 %v10661_v26, %v8407_v29  ;;  %v2214_v39 = vsub.f32 %v10662_v42, %v8419_v28  ;;  %v2599_v37 = vmax.f32 %v2535_v34, 0.0  ;;  %v10663_v29 = vld [vmem:[#allocation65_spill] sm:$0xff]  ;;  %v10664_v28 = vld [vmem:[#allocation70_spill] sm:$0xff]  ;;  %v8553_v34 = vpop.permute.xlu0 %439 }
 0x3ae   : > { %v2404_v41 = vmul.f32 %v6156_v10, %v2212_v35  ;;  %v2537_v27 = vadd.f32 %v7618_v23, %v2469_v25  ;;  %v2600_v51 = vmax.f32 %v2536_v21, 0.0  ;;  %v2538_v22 = vadd.f32 %v7618_v23, %v2470_v47  ;;  %v10667_v21 = vld [vmem:[#allocation18_spill] sm:$0xff] }
 0x3af   : > { %5853 = vmatmul.mubr.f32.gmra.mxu1 %v2595_v43  ;;  %v2471_v55 = vmul.f32 %v7605_v16, %v2403_v58  ;;  %v2215_v57 = vsub.f32 %v10663_v29, %v8430_v0  ;;  %v2216_v12 = vsub.f32 %v10664_v28, %v8441_v11  ;;  %v10665_v0 = vld [vmem:[#allocation67_spill] sm:$0xff] }
 0x3b0   : > { %5855 = vmatprep.mubr.f32.mxu1 %v2596_v13  ;;  %v6158_v2 = vpop.eup %6157  ;;  %v2472_v15 = vmul.f32 %v7605_v16, %v2404_v41  ;;  %v2601_v63 = vmax.f32 %v2537_v27, 0.0  ;;  %v2602_v46 = vmax.f32 %v2538_v22, 0.0  ;;  %v2217_v33 = vsub.f32 %v10665_v0, %v8454_v45 }
 0x3b1   : > { %v6160_v56 = vpop.eup %6159  ;;  %v2405_v44 = vmul.f32 %v6158_v2, %v2213_v3  ;;  %v2539_v60 = vadd.f32 %v7618_v23, %v2471_v55  ;;  %v8561_v2 = vpop.permute.xlu0 %462 }
 0x3b2   : > { %v2406_v52 = vmul.f32 %v6160_v56, %v2214_v39  ;;  %v2540_v62 = vadd.f32 %v7618_v23, %v2472_v15 }
 0x3b3   : > { %5856 = vmatmul.mubr.f32.gmra.mxu1 %v2597_v7  ;;  %v6162_v61 = vpop.eup %6161  ;;  %v2473_v40 = vmul.f32 %v7605_v16, %v2405_v44  ;;  %v2603_v11 = vmax.f32 %v2539_v60, 0.0  ;;  %v8551_v7 = vpop.permute.xlu1 %443 }
 0x3b4   : > { %5858 = vmatprep.mubr.f32.mxu1 %v2598_v59  ;;  %v6164_v24 = vpop.eup %6163  ;;  %v2407_v8 = vmul.f32 %v6162_v61, %v2215_v57  ;;  %v2474_v18 = vmul.f32 %v7605_v16, %v2406_v52  ;;  %v2604_v9 = vmax.f32 %v2540_v62, 0.0 }
 0x3b5   : > { %v2408_v5 = vmul.f32 %v6164_v24, %v2216_v12  ;;  %v2541_v43 = vadd.f32 %v7618_v23, %v2473_v40  ;;  %v8571_v56 = vpop.permute.xlu0 %481 }
 0x3b6   : > { %v6166_v53 = vpop.eup %6165  ;;  %v2475_v48 = vmul.f32 %v7605_v16, %v2407_v8  ;;  %v2542_v19 = vadd.f32 %v7618_v23, %v2474_v18  ;;  %10668 = vst [vmem:[#allocation80_spill] sm:$0xff] %v8571_v56 }
 0x3b7   : > { %5859 = vmatmul.mubr.f32.gmra.mxu1 %v2599_v37  ;;  %v2409_v54 = vmul.f32 %v6166_v53, %v2217_v33  ;;  %v2476_v13 = vmul.f32 %v7605_v16, %v2408_v5  ;;  %v2605_v1 = vmax.f32 %v2541_v43, 0.0  ;;  %v10670_v37 = vld [vmem:[#allocation13_spill] sm:$0xff] }
 0x3b8   : > { %5861 = vmatprep.mubr.f32.mxu1 %v2600_v51  ;;  %v2543_v32 = vadd.f32 %v7618_v23, %v2475_v48  ;;  %v2606_v31 = vmax.f32 %v2542_v19, 0.0 }
 0x3b9   : > { %v2477_v45 = vmul.f32 %v7605_v16, %v2409_v54  ;;  %v2544_v10 = vadd.f32 %v7618_v23, %v2476_v13  ;;  %v8557_v16 = vpop.permute.xlu1 %458  ;;  %v8581_v55 = vpop.permute.xlu0 %595 }
 0x3ba   : > { %v2607_v30 = vmax.f32 %v2543_v32, 0.0  ;;  %10671 = vst [vmem:[#allocation81_spill] sm:$0xff] %v8581_v55 }
 0x3bb   : > { %5862 = vmatmul.mubr.f32.gmra.mxu1 %v2601_v63  ;;  %v2545_v17 = vadd.f32 %v7618_v23, %v2477_v45  ;;  %v2608_v49 = vmax.f32 %v2544_v10, 0.0 }
 0x3bc   : > { %5864 = vmatprep.mubr.f32.mxu1 %v2602_v46 }
 0x3bd   : > { %v2609_v35 = vmax.f32 %v2545_v17, 0.0  ;;  %v8565_v23 = vpop.permute.xlu1 %477  ;;  %v8595_v12 = vpop.permute.xlu0 %614 }
 0x3be   : > { %10666 = vst [vmem:[#allocation78_spill] sm:$0xff] %v8565_v23  ;;  %10673 = vst [vmem:[#allocation83_spill] sm:$0xff] %v8595_v12 }
 0x3bf   : > { %5865 = vmatmul.mubr.f32.gmra.mxu1 %v2603_v11 }
 0x3c0   : > { %5867 = vmatprep.mubr.f32.mxu1 %v2604_v9 }
 0x3c1   : > { %v8576_v42 = vpop.permute.xlu1 %591  ;;  %v8609_v11 = vpop.permute.xlu0 %466 }
 0x3c2   : > { %10669 = vst [vmem:[#allocation79_spill] sm:$0xff] %v8576_v42  ;;  %10674 = vst [vmem:[#allocation32_spill] sm:$0xff] %v8609_v11 }
 0x3c3   : > { %5868 = vmatmul.mubr.f32.gmra.mxu1 %v2605_v1 }
 0x3c4   : > { %5870 = vmatprep.mubr.f32.mxu1 %v2606_v31 }
 0x3c5   : > { %v8583_v22 = vpop.permute.xlu1 %610 }
 0x3c6   : > { %10672 = vst [vmem:[#allocation82_spill] sm:$0xff] %v8583_v22 }
 0x3c7   : > { %5871 = vmatmul.mubr.f32.gmra.mxu1 %v2607_v30  ;;  %v8625_v30 = vpop.permute.xlu0 %500 }
 0x3c8   : > { %5873 = vmatprep.mubr.f32.mxu1 %v2608_v49  ;;  %10676 = vst [vmem:[#allocation84_spill] sm:$0xff] %v8625_v30 }
 0x3c9   : > { %v8600_v8 = vpop.permute.xlu1 %447 }
 0x3cb   : > { %5874 = vmatmul.mubr.f32.gmra.mxu1 %v2609_v35 }
 0x3cc   : > { %v8555_v25 = vpop.f32.mrf.mxu1 }
 0x3cd   : > { %v8618_v9 = vpop.permute.xlu1 %496 }
 0x3ce   : > { %v8559_v58 = vpop.f32.mrf.mxu1  ;;  %10675 = vst [vmem:[#allocation33_spill] sm:$0xff] %v8618_v9 }
 0x3cf   : > { %v3315_v47 = vrot.slane %v8559_v58, %v10667_v21 }
 0x3d1   : > { %v3331_v3 = vrot.slane %v3315_v47, %v10667_v21  ;;  %v3323_v61 = vcombine.high %v3315_v47, %v3315_v47  ;;  %v8630_v47 = vpop.permute.xlu1 %629 }
 0x3d2   : > { %10677 = vst [vmem:[#allocation85_spill] sm:$0xff] %v8630_v47 }
 0x3d3   : > { %v3409_v27 = vrot.slane %v3331_v3, %v10670_v37  ;;  %v8589_v57 = vrot.slane %v3323_v61, %v10667_v21  ;;  %v3353_v45 = vcombine.high %v3331_v3, %v3331_v3 }
 0x3d5   : > { %v3413_v46 = vrot.slane %v8589_v57, %v10670_v37 }
 0x3ec   : > { %v8563_v59 = vpop.f32.mrf.mxu1 }
 0x3ee   : > { %v8569_v41 = vpop.f32.mrf.mxu1 }
 0x3f0   : > { %v8573_v26 = vpop.f32.mrf.mxu1 }
 0x3f2   : > { %v8578_v39 = vpop.f32.mrf.mxu1 }
 0x40c   : > { %v5782_v44 = vpop.f32.mrf.mxu1 }
 0x40d   : > { %v3487_v51 = vadd.f32 %v5782_v44, %v3409_v27  ;;  %v8635_v44 = vrot.slane %v3353_v45, %v10670_v37 }
 0x40e   : > { %v2987_v15 = vpop.f32.mrf.mxu1 }
 0x40f   : > { %v8586_v52 = vadd.f32 %v8563_v59, %v3487_v51  ;;  %v3486_v24 = vadd.f32 %v3409_v27, %v2987_v15 }
 0x410   : > { %v5785_v29 = vpop.f32.mrf.mxu1 }
 0x411   : > { %v8592_v28 = vadd.f32 %v3486_v24, %v8569_v41  ;;  %3616 = vadd.xlane.f32.xlu0 %v8586_v52  ;;  %v3489_v62 = vadd.f32 %v5785_v29, %v3409_v27  ;;  %v3743_v18 = vmul.f32 %v8586_v52, %v8586_v52  ;;  %v8648_v29 = vpop.permute.xlu0 %633 }
 0x412   : > { %v2997_v63 = vpop.f32.mrf.mxu1  ;;  %10678 = vst [vmem:[#allocation86_spill] sm:$0xff] %v8648_v29 }
 0x413   : > { %v3488_v60 = vadd.f32 %v3409_v27, %v2997_v63  ;;  %3614 = vadd.xlane.f32.xlu1 %v8592_v28  ;;  %v3742_v40 = vmul.f32 %v8592_v28, %v8592_v28  ;;  %v8612_v48 = vadd.f32 %v8573_v26, %v3489_v62 }
 0x414   : > { %v5788_v53 = vpop.f32.mrf.mxu1 }
 0x415   : > { %3806 = vadd.xlane.f32.xlu0 %v3742_v40  ;;  %v8607_v0 = vadd.f32 %v3488_v60, %v8578_v39  ;;  %v3491_v31 = vadd.f32 %v5788_v53, %v3413_v46  ;;  %v3745_v10 = vmul.f32 %v8612_v48, %v8612_v48  ;;  %v8652_v40 = vpop.permute.xlu1 %485 }
 0x416   : > { %v3007_v5 = vpop.f32.mrf.mxu1  ;;  %10679 = vst [vmem:[#allocation87_spill] sm:$0xff] %v8652_v40 }
 0x417   : > { %v3490_v33 = vadd.f32 %v3413_v46, %v3007_v5  ;;  %3808 = vadd.xlane.f32.xlu1 %v3743_v18  ;;  %v8638_v3 = vadd.f32 %v8563_v59, %v3491_v31  ;;  %v3744_v60 = vmul.f32 %v8607_v0, %v8607_v0  ;;  %v8659_v5 = vpop.permute.xlu0 %515 }
 0x418   : > { %v5791_v43 = vpop.f32.mrf.mxu1  ;;  %10680 = vst [vmem:[#allocation88_spill] sm:$0xff] %v8659_v5 }
 0x419   : > { %v8615_v54 = vadd.f32 %v3490_v33, %v8569_v41  ;;  %3618 = vadd.xlane.f32.xlu0 %v8607_v0  ;;  %v3493_v13 = vadd.f32 %v5791_v43, %v3413_v46  ;;  %v3747_v45 = vmul.f32 %v8638_v3, %v8638_v3 }
 0x41a   : > { %v3017_v19 = vpop.f32.mrf.mxu1 }
 0x41b   : > { %3620 = vadd.xlane.f32.xlu1 %v8612_v48  ;;  %v3746_v1 = vmul.f32 %v8615_v54, %v8615_v54  ;;  %v8628_v49 = vadd.f32 %v8573_v26, %v3493_v13  ;;  %v3492_v35 = vadd.f32 %v3413_v46, %v3017_v19  ;;  %v8667_v13 = vpop.permute.xlu1 %519 }
 0x41c   : > { %v5794_v32 = vpop.f32.mrf.mxu1  ;;  %10681 = vst [vmem:[#allocation89_spill] sm:$0xff] %v8667_v13 }
 0x41d   : > { %3814 = vadd.xlane.f32.xlu0 %v3746_v1  ;;  %v8642_v51 = vadd.f32 %v3492_v35, %v8578_v39  ;;  %v3495_v15 = vadd.f32 %v5794_v32, %v8635_v44  ;;  %v3749_v24 = vmul.f32 %v8628_v49, %v8628_v49  ;;  %v3355_v32 = vcombine.high %v8589_v57, %v8589_v57  ;;  %v8678_v35 = vpop.permute.xlu0 %599 }
 0x41e   : > { %v3027_v17 = vpop.f32.mrf.mxu1  ;;  %10682 = vst [vmem:[#allocation90_spill] sm:$0xff] %v8678_v35 }
 0x41f   : > { %3812 = vadd.xlane.f32.xlu1 %v3745_v10  ;;  %v8655_v46 = vadd.f32 %v8563_v59, %v3495_v15  ;;  %v3748_v62 = vmul.f32 %v8642_v51, %v8642_v51  ;;  %v3308_v15 = vcombine.high %v8559_v58, %v8559_v58  ;;  %v8688_v57 = vpop.permute.xlu1 %618 }
 0x420   : > { %v8632_v27 = vpop.f32.mrf.mxu1  ;;  %10683 = vst [vmem:[#allocation91_spill] sm:$0xff] %v8688_v57 }
 0x421   : > { %3628 = vadd.xlane.f32.xlu0 %v8628_v49  ;;  %v3751_v19 = vmul.f32 %v8655_v46, %v8655_v46  ;;  %v3322_v58 = vrot.slane %v3308_v15, %v10667_v21  ;;  %v8699_v47 = vpop.permute.xlu0 %648 }
 0x422   : > { %v3037_v61 = vpop.f32.mrf.mxu1  ;;  %10684 = vst [vmem:[#allocation92_spill] sm:$0xff] %v8699_v47 }
 0x423   : > { %3624 = vadd.xlane.f32.xlu1 %v8638_v3  ;;  %v3496_v43 = vadd.f32 %v8635_v44, %v3037_v61  ;;  %v8709_v22 = vpop.permute.xlu1 %652  ;;  %v8712_v15 = vrot.slane %v3322_v58, %v10667_v21 }
 0x424   : > { %v5800_v63 = vpop.f32.mrf.mxu1  ;;  %10687 = vst [vmem:[#allocation95_spill] sm:$0xff] %v8709_v22 }
 0x425   : > { %3820 = vadd.xlane.f32.xlu0 %v3749_v24  ;;  %v8676_v10 = vadd.f32 %v3496_v43, %v8578_v39  ;;  %v8685_v24 = vrot.slane %v3355_v32, %v10670_v37  ;;  %v3494_v32 = vadd.f32 %v8635_v44, %v3027_v17  ;;  %v8728_v47 = vrot.slane %v8712_v15, %v10670_v37 }
 0x426   : > { %v3047_v53 = vpop.f32.mrf.mxu1 }
 0x427   : > { %3810 = vadd.xlane.f32.xlu1 %v3744_v60  ;;  %v3498_v43 = vadd.f32 %v8685_v24, %v3047_v53  ;;  %v8715_v17 = vadd.f32 %v3494_v32, %v8569_v41  ;;  %v3497_v32 = vadd.f32 %v8632_v27, %v8635_v44  ;;  %v8734_v22 = vpop.permute.xlu1 %470 }
 0x428   : > { %10690 = vst [vmem:[#allocation98_spill] sm:$0xff] %v8734_v22 }
 0x429   : > { %v5803_v18 = vpop.f32.mrf.mxu1  ;;  %3818 = vadd.xlane.f32.xlu0 %v3748_v62  ;;  %v3499_v62 = vadd.f32 %v5800_v63, %v8685_v24  ;;  %v8705_v63 = vadd.f32 %v3498_v43, %v8569_v41  ;;  %10688 = vst [vmem:[#allocation96_spill] sm:$0xff] %v8715_v17  ;;  %v8724_v43 = vpop.permute.xlu0 %451  ;;  %v8740_v50 = vadd.f32 %v8573_v26, %v3497_v32 }
 0x42a   : > { %v3501_v53 = vadd.f32 %v5803_v18, %v8685_v24 }
 0x42b   : > { %v8661_v33 = vpop.f32.mrf.mxu1  ;;  %3622 = vadd.xlane.f32.xlu1 %v8615_v54  ;;  %v8702_v57 = vadd.f32 %v8563_v59, %v3499_v62  ;;  %10686 = vst [vmem:[#allocation94_spill] sm:$0xff] %v8705_v63  ;;  %10691 = vst [vmem:[#allocation99_spill] sm:$0xff] %v8740_v50  ;;  %v8748_v44 = vpop.permute.xlu1 %534 }
 0x42c   : > { %v8719_v62 = vadd.f32 %v8573_v26, %v3501_v53  ;;  %v3750_v53 = vmul.f32 %v8715_v17, %v8715_v17  ;;  %10694 = vst [vmem:[#allocation36_spill] sm:$0xff] %v8748_v44  ;;  %v3500_v6 = vadd.f32 %v8685_v24, %v8661_v33 }
 0x42d   : > { %v5806_v1 = vpop.f32.mrf.mxu1  ;;  %3824 = vadd.xlane.f32.xlu0 %v3751_v19  ;;  %v3752_v19 = vmul.f32 %v8676_v10, %v8676_v10  ;;  %10685 = vst [vmem:[#allocation93_spill] sm:$0xff] %v8702_v57  ;;  %v3755_v18 = vmul.f32 %v8702_v57, %v8702_v57  ;;  %v8742_v38 = vpop.permute.xlu0 %504 }
 0x42e   : > { %10689 = vst [vmem:[#allocation97_spill] sm:$0xff] %v8719_v62  ;;  %v3503_v35 = vadd.f32 %v5806_v1, %v8728_v47  ;;  %v3757_v42 = vmul.f32 %v8719_v62, %v8719_v62  ;;  %10692 = vst [vmem:[#allocation34_spill] sm:$0xff] %v8742_v38  ;;  %v3324_v1 = vcombine.high %v3322_v58, %v3322_v58 }
 0x42f   : > { %v8673_v31 = vpop.f32.mrf.mxu1  ;;  %3816 = vadd.xlane.f32.xlu1 %v3747_v45  ;;  %v8763_v44 = vpop.permute.xlu1 %637 }
 0x430   : > { %v8745_v27 = vadd.f32 %v8563_v59, %v3503_v35  ;;  %v8761_v14 = vrot.slane %v3324_v1, %v10667_v21  ;;  %10696 = vst [vmem:[#allocation37_spill] sm:$0xff] %v8763_v44 }
 0x431   : > { %v8680_v61 = vpop.f32.mrf.mxu1  ;;  %3634 = vadd.xlane.f32.xlu0 %v8676_v10  ;;  %v8758_v35 = vpop.permute.xlu0 %538 }
 0x432   : > { %10693 = vst [vmem:[#allocation35_spill] sm:$0xff] %v8745_v27  ;;  %10695 = vst [vmem:[#allocation100_spill] sm:$0xff] %v8758_v35 }
 0x433   : > { %v3077_v60 = vpop.f32.mrf.mxu1  ;;  %3626 = vadd.xlane.f32.xlu1 %v8642_v51 }
 0x434   : > { %v3504_v32 = vadd.f32 %v8728_v47, %v3077_v60  ;;  %v3429_v60 = vrot.slane %v8761_v14, %v10670_v37 }
 0x435   : > { %v8695_v45 = vpop.f32.mrf.mxu1  ;;  %3826 = vadd.xlane.f32.xlu0 %v3752_v19  ;;  %v8774_v35 = vpop.permute.xlu0 %667 }
 0x436   : > { %v8766_v58 = vadd.f32 %v3504_v32, %v8578_v39  ;;  %10698 = vst [vmem:[#allocation38_spill] sm:$0xff] %v8774_v35  ;;  %v8778_v32 = vpop.permute.xlu1 %671 }
 0x437   : > { %v3087_v29 = vpop.f32.mrf.mxu1  ;;  %3632 = vadd.xlane.f32.xlu1 %v8655_v46  ;;  %10699 = vst [vmem:[#allocation23_spill] sm:$0xff] %v8778_v32 }
 0x438   : > { %10697 = vst [vmem:[#allocation102_spill] sm:$0xff] %v8766_v58  ;;  %v3506_v1 = vadd.f32 %v3429_v60, %v3087_v29 }
 0x439   : > { %v5815_v12 = vpop.f32.mrf.mxu1  ;;  %3638 = vadd.xlane.f32.xlu0 %v8705_v63  ;;  %v8788_v13 = vpop.permute.xlu0 %489 }
 0x43a   : > { %v8785_v5 = vadd.f32 %v3506_v1, %v8569_v41  ;;  %10701 = vst [vmem:[#allocation39_spill] sm:$0xff] %v8788_v13  ;;  %v8796_v32 = vpop.permute.xlu1 %523  ;;  %v3509_v35 = vadd.f32 %v5815_v12, %v3429_v60  ;;  %v3354_v1 = vcombine.high %v8712_v15, %v8712_v15 }
 0x43b   : > { %3630 = vadd.xlane.f32.xlu1 %v8715_v17  ;;  %v3097_v19 = vpop.f32.mrf.mxu1  ;;  %10703 = vst [vmem:[#allocation24_spill] sm:$0xff] %v8796_v32 }
 0x43c   : > { %10700 = vst [vmem:[#allocation101_spill] sm:$0xff] %v8785_v5  ;;  %v3762_v33 = vmul.f32 %v8785_v5, %v8785_v5  ;;  %v8812_v12 = vadd.f32 %v8573_v26, %v3509_v35  ;;  %v3508_v32 = vadd.f32 %v3429_v60, %v3097_v19  ;;  %v3433_v15 = vrot.slane %v3354_v1, %v10670_v37 }
 0x43d   : > { %3832 = vadd.xlane.f32.xlu0 %v3755_v18  ;;  %v5818_v55 = vpop.f32.mrf.mxu1  ;;  %v8809_v38 = vpop.permute.xlu0 %553 }
 0x43e   : > { %10704 = vst [vmem:[#allocation26_spill] sm:$0xff] %v8809_v38  ;;  %10705 = vst [vmem:[#allocation103_spill] sm:$0xff] %v8812_v12  ;;  %v8814_v30 = vpop.permute.xlu1 %557 }
 0x43f   : > { %3822 = vadd.xlane.f32.xlu1 %v3750_v53  ;;  %v8750_v18 = vpop.f32.mrf.mxu1  ;;  %v3753_v53 = vmul.f32 %v8740_v50, %v8740_v50  ;;  %10706 = vst [vmem:[#allocation140_spill] sm:$0xff] %v8814_v30 }
 0x441   : > { %3836 = vadd.xlane.f32.xlu0 %v3757_v42  ;;  %v3759_v42 = vmul.f32 %v8745_v27, %v8745_v27  ;;  %v5821_v4 = vpop.f32.mrf.mxu1  ;;  %v8825_v35 = vpop.permute.xlu0 %603 }
 0x442   : > { %10709 = vst [vmem:[#allocation40_spill] sm:$0xff] %v8825_v35 }
 0x443   : > { %3636 = vadd.xlane.f32.xlu1 %v8740_v50  ;;  %v3117_v36 = vpop.f32.mrf.mxu1 }
 0x445   : > { %3648 = vadd.xlane.f32.xlu0 %v8745_v27  ;;  %v8780_v44 = vpop.f32.mrf.mxu1  ;;  %v8845_v38 = vpop.permute.xlu0 %656 }
 0x446   : > { %10713 = vst [vmem:[#allocation25_spill] sm:$0xff] %v8845_v38  ;;  %v3512_v38 = vadd.f32 %v3433_v15, %v3117_v36 }
 0x447   : > { %3828 = vadd.xlane.f32.xlu1 %v3753_v53  ;;  %v3754_v53 = vmul.f32 %v8705_v63, %v8705_v63  ;;  %v8790_v29 = vpop.f32.mrf.mxu1 }
 0x449   : > { %3840 = vadd.xlane.f32.xlu0 %v3759_v42  ;;  %v3760_v42 = vmul.f32 %v8766_v58, %v8766_v58  ;;  %v8801_v24 = vpop.f32.mrf.mxu1 }
 0x44b   : > { %3640 = vadd.xlane.f32.xlu1 %v8702_v57  ;;  %v3137_v9 = vpop.f32.mrf.mxu1 }
 0x44d   : > { %3650 = vadd.xlane.f32.xlu0 %v8766_v58  ;;  %v8827_v19 = vpop.f32.mrf.mxu1 }
 0x44f   : > { %3830 = vadd.xlane.f32.xlu1 %v3754_v53  ;;  %v8793_v53 = vadd.f32 %v3500_v6, %v8578_v39 }
 0x451   : > { %3842 = vadd.xlane.f32.xlu0 %v3760_v42  ;;  %10702 = vst [vmem:[#allocation104_spill] sm:$0xff] %v8793_v53  ;;  %v3502_v42 = vadd.f32 %v8728_v47, %v8673_v31  ;;  %v3756_v6 = vmul.f32 %v8793_v53, %v8793_v53  ;;  %v8822_v31 = vadd.f32 %v3508_v32, %v8578_v39 }
 0x453   : > { %3644 = vadd.xlane.f32.xlu1 %v8719_v62  ;;  %10708 = vst [vmem:[#allocation72_spill] sm:$0xff] %v8822_v31 }
 0x455   : > { %3654 = vadd.xlane.f32.xlu0 %v8785_v5  ;;  %v8817_v5 = vadd.f32 %v3502_v42, %v8569_v41  ;;  %v8834_v42 = vpop.permute.xlu1 %622 }
 0x456   : > { %10710 = vst [vmem:[#allocation41_spill] sm:$0xff] %v8834_v42 }
 0x457   : > { %3642 = vadd.xlane.f32.xlu1 %v8793_v53  ;;  %10707 = vst [vmem:[#allocation110_spill] sm:$0xff] %v8817_v5  ;;  %v3758_v1 = vmul.f32 %v8817_v5, %v8817_v5 }
 0x459   : > { %3846 = vadd.xlane.f32.xlu0 %v3762_v33  ;;  %v3511_v33 = vadd.f32 %v5818_v55, %v3433_v15  ;;  %v8839_v55 = vpop.f32.mrf.mxu1  ;;  %v8850_v42 = vpop.permute.xlu1 %686 }
 0x45a   : > { %10714 = vst [vmem:[#allocation42_spill] sm:$0xff] %v8850_v42  ;;  %v3356_v42 = vcombine.high %v8761_v14, %v8761_v14 }
 0x45b   : > { %3834 = vadd.xlane.f32.xlu1 %v3756_v6  ;;  %v3505_v6 = vadd.f32 %v8680_v61, %v8728_v47  ;;  %v8837_v32 = vadd.f32 %v8563_v59, %v3511_v33  ;;  %v3513_v47 = vadd.f32 %v5821_v4, %v3433_v15  ;;  %v8852_v33 = vpop.f32.mrf.mxu1  ;;  %v8860_v4 = vpop.permute.xlu0 %690 }
 0x45c   : > { %10716 = vst [vmem:[#allocation108_spill] sm:$0xff] %v8860_v4 }
 0x45d   : > { %3660 = vadd.xlane.f32.xlu0 %v8812_v12  ;;  %10711 = vst [vmem:[#allocation105_spill] sm:$0xff] %v8837_v32  ;;  %v8842_v35 = vadd.f32 %v8573_v26, %v3505_v6  ;;  %v3767_v61 = vmul.f32 %v8837_v32, %v8837_v32  ;;  %v8858_v30 = vadd.f32 %v8573_v26, %v3513_v47 }
 0x45e   : > { %v3437_v47 = vrot.slane %v3356_v42, %v10670_v37  ;;  %v3765_v42 = vmul.f32 %v8812_v12, %v8812_v12 }
 0x45f   : > { %3646 = vadd.xlane.f32.xlu1 %v8817_v5  ;;  %10712 = vst [vmem:[#allocation141_spill] sm:$0xff] %v8842_v35  ;;  %v3761_v6 = vmul.f32 %v8842_v35, %v8842_v35  ;;  %10715 = vst [vmem:[#allocation106_spill] sm:$0xff] %v8858_v30  ;;  %v8862_v5 = vpop.f32.mrf.mxu1 }
 0x461   : > { %3658 = vadd.xlane.f32.xlu0 %v8822_v31  ;;  %v5836_v36 = vpop.f32.mrf.mxu1 }
 0x463   : > { %3838 = vadd.xlane.f32.xlu1 %v3758_v1  ;;  %v3507_v1 = vadd.f32 %v8695_v45, %v3429_v60  ;;  %v8870_v45 = vpop.permute.xlu1 %508  ;;  %v8873_v60 = vadd.f32 %v3512_v38, %v8578_v39  ;;  %v3167_v4 = vpop.f32.mrf.mxu1 }
 0x464   : > { %10718 = vst [vmem:[#allocation43_spill] sm:$0xff] %v8870_v45  ;;  %v3364_v45 = vrot.slane %v8555_v25, %v10667_v21 }
 0x465   : > { %3664 = vadd.xlane.f32.xlu0 %v8837_v32  ;;  %v8867_v32 = vadd.f32 %v8563_v59, %v3507_v1  ;;  %10719 = vst [vmem:[#allocation27_spill] sm:$0xff] %v8873_v60  ;;  %v3515_v1 = vadd.f32 %v8780_v44, %v3437_v47 }
 0x467   : > { %3652 = vadd.xlane.f32.xlu1 %v8842_v35  ;;  %10717 = vst [vmem:[#allocation142_spill] sm:$0xff] %v8867_v32  ;;  %v3763_v14 = vmul.f32 %v8867_v32, %v8867_v32  ;;  %v8885_v38 = vpop.permute.xlu1 %572  ;;  %v3372_v35 = vcombine.high %v3364_v45, %v3364_v45 }
 0x468   : > { %10721 = vst [vmem:[#allocation45_spill] sm:$0xff] %v8885_v38  ;;  %v3510_v38 = vadd.f32 %v3433_v15, %v8750_v18 }
 0x469   : > { %3856 = vadd.xlane.f32.xlu0 %v3767_v61  ;;  %v8880_v61 = vpop.permute.xlu0 %542 }
 0x46a   : > { %10720 = vst [vmem:[#allocation44_spill] sm:$0xff] %v8880_v61  ;;  %v3514_v61 = vadd.f32 %v3437_v47, %v8790_v29  ;;  %v3516_v29 = vadd.f32 %v3437_v47, %v3137_v9  ;;  %v8916_v15 = vadd.f32 %v3510_v38, %v8569_v41  ;;  %v8931_v38 = vrot.slane %v3372_v35, %v10667_v21 }
 0x46b   : > { %3844 = vadd.xlane.f32.xlu1 %v3761_v6  ;;  %v3769_v6 = vmul.f32 %v8858_v30, %v8858_v30  ;;  %v8904_v12 = vpop.permute.xlu1 %641 }
 0x46c   : > { %10724 = vst [vmem:[#allocation107_spill] sm:$0xff] %v8904_v12  ;;  %10726 = vst [vmem:[#allocation111_spill] sm:$0xff] %v8916_v15  ;;  %v3404_v23 = vcombine.high %v8931_v38, %v8931_v38 }
 0x46d   : > { %3668 = vadd.xlane.f32.xlu0 %v8858_v30  ;;  %v8895_v44 = vpop.permute.xlu0 %576  ;;  %v8898_v30 = vrot.slane %v3364_v45, %v10667_v21 }
 0x46e   : > { %10723 = vst [vmem:[#allocation28_spill] sm:$0xff] %v8895_v44 }
 0x46f   : > { %3656 = vadd.xlane.f32.xlu1 %v8867_v32  ;;  %v8892_v32 = vadd.f32 %v8563_v59, %v3515_v1  ;;  %v8907_v1 = vadd.f32 %v3514_v61, %v8569_v41  ;;  %v8913_v18 = vrot.slane %v8898_v30, %v10670_v37  ;;  %v8921_v61 = vadd.f32 %v3516_v29, %v8578_v39 }
 0x471   : > { %3666 = vadd.xlane.f32.xlu0 %v8873_v60  ;;  %10722 = vst [vmem:[#allocation46_spill] sm:$0xff] %v8892_v32  ;;  %10725 = vst [vmem:[#allocation30_spill] sm:$0xff] %v8907_v1  ;;  %v3519_v9 = vadd.f32 %v8827_v19, %v8913_v18  ;;  %v3770_v45 = vmul.f32 %v8907_v1, %v8907_v1  ;;  %v3772_v19 = vmul.f32 %v8921_v61, %v8921_v61 }
 0x472   : > { %10728 = vst [vmem:[#allocation109_spill] sm:$0xff] %v8921_v61 }
 0x473   : > { %3848 = vadd.xlane.f32.xlu1 %v3763_v14  ;;  %v5839_v14 = vpop.f32.mrf.mxu1  ;;  %v8936_v29 = vadd.f32 %v8563_v59, %v3519_v9 }
 0x475   : > { %3860 = vadd.xlane.f32.xlu0 %v3769_v6  ;;  %v3764_v6 = vmul.f32 %v8822_v31, %v8822_v31  ;;  %v3177_v44 = vpop.f32.mrf.mxu1  ;;  %v8918_v31 = vpop.permute.xlu0 %675  ;;  %10730 = vst [vmem:[#allocation114_spill] sm:$0xff] %v8936_v29  ;;  %v3775_v9 = vmul.f32 %v8936_v29, %v8936_v29 }
 0x476   : > { %10727 = vst [vmem:[#allocation12_spill] sm:$0xff] %v8918_v31 }
 0x477   : > { %3852 = vadd.xlane.f32.xlu1 %v3765_v42  ;;  %v3768_v42 = vmul.f32 %v8873_v60, %v8873_v60  ;;  %v5842_v12 = vpop.f32.mrf.mxu1 }
 0x479   : > { %3672 = vadd.xlane.f32.xlu0 %v8892_v32  ;;  %v8940_v31 = vpop.permute.xlu0 %709  ;;  %v3187_v60 = vpop.f32.mrf.mxu1 }
 0x47a   : > { %10731 = vst [vmem:[#allocation29_spill] sm:$0xff] %v8940_v31  ;;  %v3771_v31 = vmul.f32 %v8892_v32, %v8892_v32 }
 0x47b   : > { %3850 = vadd.xlane.f32.xlu1 %v3764_v6  ;;  %v8928_v6 = vpop.permute.xlu1 %705 }
 0x47c   : > { %10729 = vst [vmem:[#allocation112_spill] sm:$0xff] %v8928_v6  ;;  %v3445_v6 = vrot.slane %v8931_v38, %v10670_v37 }
 0x47d   : > { %3858 = vadd.xlane.f32.xlu0 %v3768_v42  ;;  %v3766_v42 = vmul.f32 %v8916_v15, %v8916_v15  ;;  %v8954_v58 = vpop.permute.xlu0 %561 }
 0x47e   : > { %v3522_v53 = vadd.f32 %v3445_v6, %v3167_v4  ;;  %10733 = vst [vmem:[#allocation116_spill] sm:$0xff] %v8954_v58 }
 0x47f   : > { %3662 = vadd.xlane.f32.xlu1 %v8916_v15  ;;  %v8944_v35 = vpop.permute.xlu1 %527  ;;  %v3517_v15 = vadd.f32 %v8801_v24, %v3437_v47  ;;  %v3525_v24 = vadd.f32 %v5839_v14, %v3445_v6 }
 0x480   : > { %10732 = vst [vmem:[#allocation113_spill] sm:$0xff] %v8944_v35  ;;  %v8960_v4 = vadd.f32 %v3522_v53, %v8569_v41 }
 0x481   : > { %3862 = vadd.xlane.f32.xlu0 %v3770_v45  ;;  %v3523_v45 = vadd.f32 %v5836_v36, %v3445_v6  ;;  %v8967_v35 = vadd.f32 %v8573_v26, %v3517_v15  ;;  %v3524_v15 = vadd.f32 %v3445_v6, %v3177_v44  ;;  %v3518_v6 = vadd.f32 %v8913_v18, %v8839_v55 }
 0x482   : > { %10735 = vst [vmem:[#allocation115_spill] sm:$0xff] %v8960_v4 }
 0x483   : > { %3854 = vadd.xlane.f32.xlu1 %v3766_v42  ;;  %v8949_v42 = vpop.f32.mrf.mxu1  ;;  %v8962_v36 = vpop.permute.xlu1 %660  ;;  %10737 = vst [vmem:[#allocation48_spill] sm:$0xff] %v8967_v35  ;;  %v3773_v14 = vmul.f32 %v8967_v35, %v8967_v35 }
 0x484   : > { %10736 = vst [vmem:[#allocation117_spill] sm:$0xff] %v8962_v36 }
 0x485   : > { %3866 = vadd.xlane.f32.xlu0 %v3772_v19  ;;  %v8957_v19 = vadd.f32 %v8563_v59, %v3523_v45  ;;  %v8973_v45 = vpop.permute.xlu0 %694 }
 0x486   : > { %10738 = vst [vmem:[#allocation119_spill] sm:$0xff] %v8973_v45  ;;  %v8991_v45 = vadd.f32 %v3524_v15, %v8578_v39 }
 0x487   : > { %3670 = vadd.xlane.f32.xlu1 %v8907_v1  ;;  %10734 = vst [vmem:[#allocation47_spill] sm:$0xff] %v8957_v19  ;;  %v8964_v1 = vpop.f32.mrf.mxu1  ;;  %v3779_v47 = vmul.f32 %v8957_v19, %v8957_v19 }
 0x488   : > { %10742 = vst [vmem:[#allocation51_spill] sm:$0xff] %v8991_v45 }
 0x489   : > { %3872 = vadd.xlane.f32.xlu0 %v3775_v9  ;;  %v8975_v53 = vpop.f32.mrf.mxu1  ;;  %v8980_v9 = vadd.f32 %v8573_v26, %v3525_v24  ;;  %v8988_v58 = vpop.permute.xlu0 %728  ;;  %v3402_v24 = vcombine.high %v8898_v30, %v8898_v30 }
 0x48a   : > { %10741 = vst [vmem:[#allocation121_spill] sm:$0xff] %v8988_v58 }
 0x48b   : > { %3864 = vadd.xlane.f32.xlu1 %v3771_v31  ;;  %v8977_v31 = vpop.permute.xlu1 %724  ;;  %10740 = vst [vmem:[#allocation50_spill] sm:$0xff] %v8980_v9  ;;  %v8983_v36 = vpop.f32.mrf.mxu1  ;;  %v3781_v15 = vmul.f32 %v8980_v9, %v8980_v9  ;;  %v3449_v30 = vrot.slane %v3402_v24, %v10670_v37 }
 0x48c   : > { %10739 = vst [vmem:[#allocation49_spill] sm:$0xff] %v8977_v31  ;;  %v3357_v31 = vcombine.high %v8555_v25, %v8555_v25 }
 0x48d   : > { %3686 = vadd.xlane.f32.xlu0 %v8960_v4  ;;  %v8997_v44 = vpop.f32.mrf.mxu1  ;;  %v3527_v32 = vadd.f32 %v5842_v12, %v3449_v30  ;;  %v3526_v13 = vadd.f32 %v3449_v30, %v3187_v60 }
 0x48e   : > { %v3371_v25 = vrot.slane %v3357_v31, %v10667_v21 }
 0x48f   : > { %3676 = vadd.xlane.f32.xlu1 %v8967_v35  ;;  %v9032_v63 = vadd.f32 %v8563_v59, %v3527_v32 }
 0x490   : > { %v3373_v62 = vcombine.high %v3371_v25, %v3371_v25 }
 0x491   : > { %3880 = vadd.xlane.f32.xlu0 %v3779_v47  ;;  %v8995_v47 = vpop.permute.xlu1 %546 }
 0x492   : > { %10743 = vst [vmem:[#allocation118_spill] sm:$0xff] %v8995_v47 }
 0x493   : > { %3674 = vadd.xlane.f32.xlu1 %v8921_v61  ;;  %v9011_v61 = vadd.f32 %v3518_v6, %v8569_v41  ;;  %v3780_v6 = vmul.f32 %v8991_v45, %v8991_v45 }
 0x495   : > { %3692 = vadd.xlane.f32.xlu0 %v8980_v9  ;;  %10744 = vst [vmem:[#allocation120_spill] sm:$0xff] %v9011_v61 }
 0x497   : > { %3868 = vadd.xlane.f32.xlu1 %v3773_v14  ;;  %v9008_v14 = vpop.f32.mrf.mxu1 }
 0x499   : > { %3690 = vadd.xlane.f32.xlu0 %v8991_v45  ;;  %v9035_v45 = vadd.f32 %v3526_v13, %v8569_v41  ;;  %v3387_v13 = vrot.slane %v3371_v25, %v10667_v21 }
 0x49a   : > { %v3617_v58 = vpop.xlane.xlu0 %3616 }
 0x49b   : > { %3680 = vadd.xlane.f32.xlu1 %v8936_v29  ;;  %v9013_v55 = vmul.f32 0.0078125, %v3617_v58  ;;  %v3521_v58 = vadd.f32 %v8852_v33, %v8913_v18  ;;  %10745 = vst [vmem:[#allocation123_spill] sm:$0xff] %v9035_v45 }
 0x49c   : > { %v3615_v35 = vpop.xlane.xlu1 %3614 }
 0x49d   : > { %v9015_v47 = vmul.f32 0.0078125, %v3615_v35  ;;  %3884 = vadd.xlane.f32.xlu0 %v3781_v15  ;;  %v9025_v35 = vpop.f32.mrf.mxu1  ;;  %v4063_v12 = vmul.f32 %v9013_v55, %v9013_v55 }
 0x49e   : > { %v3807_v29 = vpop.xlane.xlu0 %3806 }
 0x49f   : > { %v4062_v9 = vmul.f32 %v9015_v47, %v9015_v47  ;;  %v3998_v24 = vmul.f32 0.0078125, %v3807_v29  ;;  %3678 = vadd.xlane.f32.xlu1 %v9011_v61  ;;  %v3774_v29 = vmul.f32 %v9011_v61, %v9011_v61 }
 0x4a0   : > { %v3809_v15 = vpop.xlane.xlu1 %3808 }
 0x4a1   : > { %v4126_v31 = vsub.f32 %v3998_v24, %v4062_v9  ;;  %v3999_v60 = vmul.f32 0.0078125, %v3809_v15  ;;  %3882 = vadd.xlane.f32.xlu0 %v3780_v6  ;;  %v9039_v9 = vpop.f32.mrf.mxu1  ;;  %v9042_v6 = vadd.f32 %v8573_v26, %v3521_v58  ;;  %v3520_v15 = vadd.f32 %v8913_v18, %v8862_v5 }
 0x4a2   : > { %v3619_v40 = vpop.xlane.xlu0 %3618  ;;  %v3528_v58 = vadd.f32 %v3449_v30, %v8964_v1  ;;  %v3453_v5 = vrot.slane %v3404_v23, %v10670_v37 }
 0x4a3   : > { %v4190_v33 = vmax.f32 %v4126_v31, 0.0  ;;  %v4127_v56 = vsub.f32 %v3999_v60, %v4063_v12  ;;  %3870 = vadd.xlane.f32.xlu1 %v3774_v29  ;;  %10746 = vst [vmem:[#allocation52_spill] sm:$0xff] %v9042_v6  ;;  %v3401_v12 = vrot.slane %v3373_v62, %v10667_v21  ;;  %v3529_v31 = vadd.f32 %v8949_v42, %v3449_v30  ;;  %v9059_v18 = vpop.f32.mrf.mxu1 }
 0x4a4   : > { %v3621_v24 = vpop.xlane.xlu1 %3620  ;;  %v9062_v62 = vadd.f32 %v3520_v15, %v8578_v39  ;;  %v9070_v23 = vadd.f32 %v3528_v58, %v8578_v39 }
 0x4a5   : > { %v4318_v32 = vadd.f32 1e-05, %v4190_v33  ;;  %v4191_v61 = vmax.f32 %v4127_v56, 0.0  ;;  %3694 = vadd.xlane.f32.xlu0 %v9035_v45  ;;  %v9050_v38 = vmul.f32 0.0078125, %v3621_v24  ;;  %v3783_v56 = vmul.f32 %v9032_v63, %v9032_v63  ;;  %v3237_v27 = vpop.f32.mrf.mxu1 }
 0x4a6   : > { %v9052_v60 = vpop.xlane.xlu0 %3814  ;;  %10747 = vst [vmem:[#allocation53_spill] sm:$0xff] %v9062_v62  ;;  %v3405_v30 = vcombine.high %v3401_v12, %v3401_v12  ;;  %v9067_v25 = vadd.f32 %v8573_v26, %v3529_v31  ;;  %10748 = vst [vmem:[#allocation122_spill] sm:$0xff] %v9070_v23  ;;  %v3531_v24 = vadd.f32 %v8975_v53, %v3453_v5  ;;  %v9086_v53 = vmul.f32 0.0078125, %v3619_v40 }
 0x4a7   : > { %6167 = vrsqrt.f32 %v4318_v32  ;;  %v4319_v29 = vadd.f32 1e-05, %v4191_v61  ;;  %3684 = vadd.xlane.f32.xlu1 %v9042_v6  ;;  %v4065_v42 = vmul.f32 %v9050_v38, %v9050_v38  ;;  %v3403_v61 = vcombine.high %v3387_v13, %v3387_v13  ;;  %v277_v32 = vld [vmem:[#allocation2 + $0x8] sm:$0x1f] }
 0x4a8   : > { %v3813_v21 = vpop.xlane.xlu1 %3812  ;;  %v3530_v31 = vadd.f32 %v3453_v5, %v8983_v36  ;;  %v9084_v50 = vrot.slane %v3401_v12, %v10670_v37  ;;  %v9098_v36 = vrot.slane %v277_v32, %v10670_v37  ;;  %v3785_v40 = vmul.f32 %v9067_v25, %v9067_v25 }
 0x4a9   : > { %6169 = vrsqrt.f32 %v4319_v29  ;;  %v4001_v1 = vmul.f32 0.0078125, %v3813_v21  ;;  %3888 = vadd.xlane.f32.xlu0 %v3783_v56  ;;  %v6306_v29 = vld [vmem:[#allocation2] sm:$0xff]  ;;  %v9080_v21 = vrot.slane %v3387_v13, %v10670_v37  ;;  %v9095_v13 = vrot.slane %v3405_v30, %v10670_v37 }
 0x4aa   : > { %v3629_v33 = vpop.xlane.xlu0 %3628  ;;  %v9077_v56 = vrot.slane %v6306_v29, %v8214_v20  ;;  %v9092_v20 = vrot.slane %v3403_v61, %v10670_v37  ;;  %v9103_v12 = vadd.f32 %v8563_v59, %v3531_v24  ;;  %v9108_v61 = vadd.f32 %v3530_v31, %v8569_v41  ;;  %v9111_v37 = vpop.f32.mrf.mxu1 }
 0x4ab   : > { %v4129_v15 = vsub.f32 %v4001_v1, %v4065_v42  ;;  %v9073_v57 = vmul.f32 0.0078125, %v3629_v33  ;;  %3682 = vadd.xlane.f32.xlu1 %v9062_v62  ;;  %v3777_v1 = vmul.f32 %v9042_v6, %v9042_v6  ;;  %10749 = vst [vmem:[#allocation125_spill] sm:$0xff] %v9095_v13  ;;  %v3533_v30 = vadd.f32 %v8997_v44, %v3453_v5 }
 0x4ac   : > { %v3625_v58 = vpop.xlane.xlu1 %3624  ;;  %10750 = vst [vmem:[#allocation124_spill] sm:$0xff] %v9103_v12  ;;  %v3776_v22 = vmul.f32 %v9062_v62, %v9062_v62  ;;  %v3778_v24 = vmul.f32 %v8960_v4, %v8960_v4  ;;  %v3532_v31 = vadd.f32 %v3453_v5, %v9008_v14  ;;  %v3535_v44 = vadd.f32 %v9025_v35, %v9080_v21 }
 0x4ad   : > { %v4193_v42 = vmax.f32 %v4129_v15, 0.0  ;;  %3698 = vadd.xlane.f32.xlu0 %v9070_v23  ;;  %v4069_v29 = vmul.f32 %v9073_v57, %v9073_v57  ;;  %v3784_v62 = vmul.f32 %v9070_v23, %v9070_v23  ;;  %v9128_v4 = vmul.f32 %v9035_v45, %v9035_v45 }
 0x4ae   : > { %v3821_v33 = vpop.xlane.xlu0 %3820  ;;  %v3787_v14 = vmul.f32 %v9103_v12, %v9103_v12  ;;  %v9136_v5 = vadd.f32 %v8573_v26, %v3533_v30  ;;  %v9142_v45 = vmul.f32 0.0078125, %v3625_v58  ;;  %v3537_v58 = vadd.f32 %v9059_v18, %v9080_v21 }
 0x4af   : > { %v4321_v15 = vadd.f32 1e-05, %v4193_v42  ;;  %v4005_v6 = vmul.f32 0.0078125, %v3821_v33  ;;  %3876 = vadd.xlane.f32.xlu1 %v3777_v1  ;;  %v4064_v42 = vmul.f32 %v9086_v53, %v9086_v53 }
 0x4b0   : > { %v3811_v32 = vpop.xlane.xlu1 %3810 }
 0x4b1   : > { %6171 = vrsqrt.f32 %v4321_v15  ;;  %v4133_v33 = vsub.f32 %v4005_v6, %v4069_v29  ;;  %v4000_v1 = vmul.f32 0.0078125, %v3811_v32  ;;  %3892 = vadd.xlane.f32.xlu0 %v3785_v40  ;;  %v4254_v15 = vsub.f32 %v8592_v28, %v9015_v47  ;;  %v9138_v40 = vpop.f32.mrf.mxu1 }
 0x4b2   : > { %v9122_v11 = vpop.xlane.xlu0 %3818  ;;  %v4255_v32 = vsub.f32 %v8586_v52, %v9013_v55  ;;  %v9146_v28 = vmul.f32 %v9108_v61, %v9108_v61  ;;  %v9155_v52 = vadd.f32 %v8563_v59, %v3535_v44  ;;  %v3534_v55 = vadd.f32 %v9080_v21, %v9039_v9 }
 0x4b3   : > { %v4197_v6 = vmax.f32 %v4133_v33, 0.0  ;;  %v4128_v29 = vsub.f32 %v4000_v1, %v4064_v42  ;;  %3688 = vadd.xlane.f32.xlu1 %v8957_v19  ;;  %v9152_v19 = vadd.f32 %v3532_v31, %v8578_v39  ;;  %v3536_v31 = vadd.f32 %v9080_v21, %v3237_v27 }
 0x4b4   : > { %v6168_v35 = vpop.eup %6167  ;;  %v3623_v23 = vpop.xlane.xlu1 %3622  ;;  %10751 = vst [vmem:[#allocation127_spill] sm:$0xff] %v9155_v52  ;;  %v4002_v44 = vmul.f32 0.0078125, %v9052_v60  ;;  %v4067_v9 = vmul.f32 %v9142_v45, %v9142_v45  ;;  %v9179_v60 = vmul.f32 %v9136_v5, %v9136_v5 }
 0x4b5   : > { %v4446_v47 = vmul.f32 %v6168_v35, %v4254_v15  ;;  %v4325_v42 = vadd.f32 1e-05, %v4197_v6  ;;  %v4192_v33 = vmax.f32 %v4128_v29, 0.0  ;;  %v9148_v1 = vmul.f32 0.0078125, %v3623_v23  ;;  %3704 = vadd.xlane.f32.xlu0 %v9103_v12  ;;  %v9165_v35 = vpop.f32.mrf.mxu1 }
 0x4b6   : > { %v6170_v30 = vpop.eup %6169  ;;  %v9161_v15 = vpop.xlane.xlu0 %3824  ;;  %10753 = vst [vmem:[#allocation126_spill] sm:$0xff] %v9179_v60 }
 0x4b7   : > { %v4514_v23 = vmul.f32 %v9077_v56, %v4446_v47  ;;  %v4447_v6 = vmul.f32 %v6170_v30, %v4255_v32  ;;  %6173 = vrsqrt.f32 %v4325_v42  ;;  %v4320_v29 = vadd.f32 1e-05, %v4192_v33  ;;  %3874 = vadd.xlane.f32.xlu1 %v3776_v22 }
 0x4b8   : > { %v4066_v18 = vmul.f32 %v9148_v1, %v9148_v1  ;;  %v3817_v12 = vpop.xlane.xlu1 %3816  ;;  %v9175_v22 = vadd.f32 %v3534_v55, %v8569_v41  ;;  %v9183_v42 = vmul.f32 %v9152_v19, %v9152_v19  ;;  %v3257_v55 = vpop.f32.mrf.mxu1 }
 0x4b9   : > { %v4582_v17 = vadd.f32 %v9098_v36, %v4514_v23  ;;  %v4515_v32 = vmul.f32 %v9077_v56, %v4447_v6  ;;  %6175 = vrsqrt.f32 %v4320_v29  ;;  %v4003_v47 = vmul.f32 0.0078125, %v3817_v12  ;;  %3890 = vadd.xlane.f32.xlu0 %v3784_v62 }
 0x4ba   : > { %10752 = vst [vmem:[#allocation129_spill] sm:$0xff] %v9175_v22  ;;  %v4130_v27 = vsub.f32 %v4002_v44, %v4066_v18  ;;  %v3635_v21 = vpop.xlane.xlu0 %3634  ;;  %10754 = vst [vmem:[#allocation54_spill] sm:$0xff] %v9183_v42  ;;  %v9189_v62 = vadd.f32 %v8573_v26, %v3537_v58  ;;  %v9192_v12 = vadd.f32 %v3536_v31, %v8578_v39 }
 0x4bb   : > { %v4646_v33 = vmax.f32 %v4582_v17, 0.0  ;;  %v4583_v30 = vadd.f32 %v9098_v36, %v4515_v32  ;;  %v4131_v23 = vsub.f32 %v4003_v47, %v4067_v9  ;;  %v9186_v6 = vmul.f32 0.0078125, %v3635_v21  ;;  %3878 = vadd.xlane.f32.xlu1 %v3778_v24 }
 0x4bc   : > { %10755 = vst [vmem:[#allocation128_spill] sm:$0xff] %v9189_v62  ;;  %10756 = vst [vmem:[#allocation131_spill] sm:$0xff] %v9192_v12  ;;  %v4194_v29 = vmax.f32 %v4130_v27, 0.0  ;;  %v3627_v44 = vpop.xlane.xlu1 %3626  ;;  %v3791_v18 = vmul.f32 %v9155_v52, %v9155_v52  ;;  %v3539_v17 = vadd.f32 %v9111_v37, %v9084_v50  ;;  %v4257_v9 = vsub.f32 %v8612_v48, %v9050_v38  ;;  %v5866_v48 = vpop.f32.mrf.mxu1 }
 0x4bd   : > { %v4647_v32 = vmax.f32 %v4583_v30, 0.0  ;;  %v4195_v24 = vmax.f32 %v4131_v23, 0.0  ;;  %3896 = vadd.xlane.f32.xlu0 %v3787_v14  ;;  %v4710_v47 = vmul.f32 %v4646_v33, %v8553_v34  ;;  %v4072_v27 = vmul.f32 %v9186_v6, %v9186_v6 }
 0x4be   : > { %v6172_v58 = vpop.eup %6171  ;;  %v4322_v31 = vadd.f32 1e-05, %v4194_v29  ;;  %v9203_v21 = vmul.f32 0.0078125, %v3627_v44  ;;  %v3827_v42 = vpop.xlane.xlu0 %3826  ;;  %v4004_v38 = vmul.f32 0.0078125, %v9122_v11  ;;  %v9212_v33 = vmul.f32 %v9175_v22, %v9175_v22 }
 0x4bf   : > { %v4711_v60 = vmul.f32 %v4647_v32, %v8551_v7  ;;  %v4449_v13 = vmul.f32 %v6172_v58, %v4257_v9  ;;  %v4323_v37 = vadd.f32 1e-05, %v4195_v24  ;;  %v4008_v30 = vmul.f32 0.0078125, %v3827_v42  ;;  %3696 = vadd.xlane.f32.xlu1 %v9032_v63 }
 0x4c0   : > { %6177 = vrsqrt.f32 %v4322_v31  ;;  %v4068_v34 = vmul.f32 %v9203_v21, %v9203_v21  ;;  %v3633_v14 = vpop.xlane.xlu1 %3632  ;;  %v9219_v29 = vadd.f32 %v8563_v59, %v3539_v17  ;;  %v9227_v9 = vmul.f32 %v9189_v62, %v9189_v62  ;;  %v3267_v31 = vpop.f32.mrf.mxu1 }
 0x4c1   : > { %v9214_v23 = vadd.f32 %v4711_v60, %v4710_v47  ;;  %v4517_v7 = vmul.f32 %v9077_v56, %v4449_v13  ;;  %6179 = vrsqrt.f32 %v4323_v37  ;;  %v4136_v42 = vsub.f32 %v4008_v30, %v4072_v27  ;;  %3712 = vadd.xlane.f32.xlu0 %v9155_v52 }
 0x4c2   : > { %v4132_v11 = vsub.f32 %v4004_v38, %v4068_v34  ;;  %v9221_v44 = vmul.f32 0.0078125, %v3633_v14  ;;  %v9223_v32 = vpop.xlane.xlu0 %3638  ;;  %v3538_v60 = vadd.f32 %v9084_v50, %v9138_v40  ;;  %v4261_v13 = vsub.f32 %v8628_v49, %v9073_v57 }
 0x4c3   : > { %v4200_v24 = vmax.f32 %v4136_v42, 0.0  ;;  %3886 = vadd.xlane.f32.xlu1 %v9128_v4  ;;  %v9236_v17 = vmul.f32 %v9192_v12, %v9192_v12  ;;  %v3541_v47 = vadd.f32 %v9165_v35, %v9084_v50  ;;  %v4007_v27 = vmul.f32 0.0078125, %v9161_v15 }
 0x4c4   : > { %v6174_v58 = vpop.eup %6173  ;;  %v4196_v37 = vmax.f32 %v4132_v11, 0.0  ;;  %v4071_v40 = vmul.f32 %v9221_v44, %v9221_v44  ;;  %v3631_v30 = vpop.xlane.xlu1 %3630  ;;  %v3540_v49 = vadd.f32 %v9084_v50, %v3257_v55  ;;  %v4256_v57 = vsub.f32 %v8607_v0, %v9086_v53 }
 0x4c5   : > { %v4453_v4 = vmul.f32 %v6174_v58, %v4261_v13  ;;  %v4328_v38 = vadd.f32 1e-05, %v4200_v24  ;;  %3904 = vadd.xlane.f32.xlu0 %v3791_v18  ;;  %v3543_v14 = vadd.f32 %v5866_v48, %v9092_v20  ;;  %v9247_v52 = vmul.f32 0.0078125, %v3631_v30  ;;  %v5869_v53 = vpop.f32.mrf.mxu1 }
 0x4c6   : > { %v6176_v34 = vpop.eup %6175  ;;  %v4324_v35 = vadd.f32 1e-05, %v4196_v37  ;;  %v4135_v42 = vsub.f32 %v4007_v27, %v4071_v40  ;;  %v9249_v15 = vpop.xlane.xlu0 %3832  ;;  %v9252_v11 = vadd.f32 %v3538_v60, %v8569_v41  ;;  %v9259_v0 = vadd.f32 %v8573_v26, %v3541_v47 }
 0x4c7   : > { %v9255_v50 = vmul.f32 %v9077_v56, %v4453_v4  ;;  %v4448_v55 = vmul.f32 %v6176_v34, %v4256_v57  ;;  %6181 = vrsqrt.f32 %v4328_v38  ;;  %3700 = vadd.xlane.f32.xlu1 %v9067_v25  ;;  %v4585_v18 = vadd.f32 %v9098_v36, %v4517_v7 }
 0x4c8   : > { %6183 = vrsqrt.f32 %v4324_v35  ;;  %v4199_v48 = vmax.f32 %v4135_v42, 0.0  ;;  %v3823_v13 = vpop.xlane.xlu1 %3822  ;;  %v4070_v60 = vmul.f32 %v9247_v52, %v9247_v52  ;;  %v9268_v27 = vmul.f32 %v9219_v29, %v9219_v29 }
 0x4c9   : > { %v4516_v24 = vmul.f32 %v9077_v56, %v4448_v55  ;;  %v4006_v58 = vmul.f32 0.0078125, %v3823_v13  ;;  %3716 = vadd.xlane.f32.xlu0 %v9189_v62  ;;  %v9271_v47 = vadd.f32 %v3540_v49, %v8578_v39  ;;  %v9274_v7 = vadd.f32 %v8563_v59, %v3543_v14 }
 0x4ca   : > { %v3542_v37 = vadd.f32 %v9092_v20, %v3267_v31  ;;  %v4327_v40 = vadd.f32 1e-05, %v4199_v48  ;;  %v9277_v30 = vpop.xlane.xlu0 %3836  ;;  %v3545_v57 = vadd.f32 %v5869_v53, %v9092_v20  ;;  %v3794_v34 = vmul.f32 %v9252_v11, %v9252_v11 }
 0x4cb   : > { %10757 = vst [vmem:[#allocation130_spill] sm:$0xff] %v9271_v47  ;;  %10758 = vst [vmem:[#allocation133_spill] sm:$0xff] %v9274_v7  ;;  %v4584_v4 = vadd.f32 %v9098_v36, %v4516_v24  ;;  %v4134_v38 = vsub.f32 %v4006_v58, %v4070_v60  ;;  %3702 = vadd.xlane.f32.xlu1 %v9108_v61  ;;  %v4649_v49 = vmax.f32 %v4585_v18, 0.0 }
 0x4cc   : > { %v4258_v14 = vsub.f32 %v8615_v54, %v9148_v1  ;;  %6185 = vrsqrt.f32 %v4327_v40  ;;  %v3637_v35 = vpop.xlane.xlu1 %3636  ;;  %v9288_v31 = vmul.f32 %v9259_v0, %v9259_v0  ;;  %v4259_v55 = vsub.f32 %v8638_v3, %v9142_v45  ;;  %v3277_v45 = vpop.f32.mrf.mxu1 }
 0x4cd   : > { %v6178_v42 = vpop.eup %6177  ;;  %v4648_v53 = vmax.f32 %v4584_v4, 0.0  ;;  %v4198_v48 = vmax.f32 %v4134_v38, 0.0  ;;  %v9292_v13 = vmul.f32 0.0078125, %v3637_v35  ;;  %3714 = vadd.xlane.f32.xlu0 %v9192_v12  ;;  %v9296_v24 = vadd.f32 %v3542_v37, %v8569_v41 }
 0x4ce   : > { %v6180_v18 = vpop.eup %6179  ;;  %v4450_v54 = vmul.f32 %v6178_v42, %v4258_v14  ;;  %v3649_v1 = vpop.xlane.xlu0 %3648  ;;  %v9300_v60 = vmul.f32 %v9271_v47, %v9271_v47  ;;  %v9304_v58 = vmul.f32 %v9274_v7, %v9274_v7  ;;  %v9307_v3 = vadd.f32 %v8573_v26, %v3545_v57 }
 0x4cf   : > { %v4712_v40 = vmul.f32 %v4648_v53, %v8600_v8  ;;  %v4451_v4 = vmul.f32 %v6180_v18, %v4259_v55  ;;  %v4326_v38 = vadd.f32 1e-05, %v4198_v48  ;;  %3894 = vadd.xlane.f32.xlu1 %v9146_v28  ;;  %v4713_v37 = vmul.f32 %v4649_v49, %v8724_v43 }
 0x4d0   : > { %10759 = vst [vmem:[#allocation132_spill] sm:$0xff] %v9307_v3  ;;  %v4518_v14 = vmul.f32 %v9077_v56, %v4450_v54  ;;  %v4073_v35 = vmul.f32 %v9292_v13, %v9292_v13  ;;  %v9315_v42 = vmul.f32 0.0078125, %v3649_v1  ;;  %v3829_v12 = vpop.xlane.xlu1 %3828  ;;  %v3544_v28 = vadd.f32 %v9092_v20, %v3277_v45 }
 0x4d1   : > { %v4519_v57 = vmul.f32 %v9077_v56, %v4451_v4  ;;  %6187 = vrsqrt.f32 %v4326_v38  ;;  %v4009_v62 = vmul.f32 0.0078125, %v3829_v12  ;;  %3718 = vadd.xlane.f32.xlu0 %v9252_v11  ;;  %v4775_v8 = vadd.f32 %v9214_v23, %v4712_v40 }
 0x4d2   : > { %v4586_v43 = vadd.f32 %v9098_v36, %v4518_v14  ;;  %v4264_v49 = vsub.f32 %v8676_v10, %v9186_v6  ;;  %v4079_v55 = vmul.f32 %v9315_v42, %v9315_v42  ;;  %v3841_v53 = vpop.xlane.xlu0 %3840  ;;  %v4260_v20 = vsub.f32 %v8642_v51, %v9203_v21 }
 0x4d3   : > { %v4587_v48 = vadd.f32 %v9098_v36, %v4519_v57  ;;  %v4137_v18 = vsub.f32 %v4009_v62, %v4073_v35  ;;  %v4015_v54 = vmul.f32 0.0078125, %v3841_v53  ;;  %3708 = vadd.xlane.f32.xlu1 %v9136_v5  ;;  %v9328_v12 = vadd.f32 %v4775_v8, %v4713_v37  ;;  %v5872_v62 = vpop.f32.mrf.mxu1 }
 0x4d4   : > { %v6182_v23 = vpop.eup %6181  ;;  %v4650_v1 = vmax.f32 %v4586_v43, 0.0  ;;  %v9333_v45 = vmul.f32 0.0078125, %v9223_v32  ;;  %v3641_v10 = vpop.xlane.xlu1 %3640  ;;  %v9337_v6 = vmul.f32 %v9296_v24, %v9296_v24  ;;  %v4589_v51 = vadd.f32 %v9098_v36, %v9255_v50 }
 0x4d5   : > { %v6184_v40 = vpop.eup %6183  ;;  %v4651_v4 = vmax.f32 %v4587_v48, 0.0  ;;  %v4456_v38 = vmul.f32 %v6182_v23, %v4264_v49  ;;  %v4201_v14 = vmax.f32 %v4137_v18, 0.0  ;;  %v4143_v37 = vsub.f32 %v4015_v54, %v4079_v55  ;;  %3910 = vadd.xlane.f32.xlu0 %v3794_v34  ;;  %v3287_v54 = vpop.f32.mrf.mxu1 }
 0x4d6   : > { %v4714_v35 = vmul.f32 %v4650_v1, %v8557_v16  ;;  %v4452_v57 = vmul.f32 %v6184_v40, %v4260_v20  ;;  %v9342_v21 = vmul.f32 0.0078125, %v3641_v10  ;;  %v3651_v32 = vpop.xlane.xlu0 %3650  ;;  %v4263_v16 = vsub.f32 %v8655_v46, %v9221_v44  ;;  %v10760_v40 = vld [vmem:[#allocation125_spill] sm:$0xff] }
 0x4d7   : > { %v4715_v8 = vmul.f32 %v4651_v4, %v8561_v2  ;;  %v9346_v43 = vmul.f32 %v9077_v56, %v4456_v38  ;;  %v4329_v53 = vadd.f32 1e-05, %v4201_v14  ;;  %v4207_v48 = vmax.f32 %v4143_v37, 0.0  ;;  %3706 = vadd.xlane.f32.xlu1 %v9152_v19  ;;  %v10761_v37 = vld [vmem:[#allocation126_spill] sm:$0xff] }
 0x4d8   : > { %v4520_v34 = vmul.f32 %v9077_v56, %v4452_v57  ;;  %v4011_v49 = vmul.f32 0.0078125, %v9249_v15  ;;  %v4075_v50 = vmul.f32 %v9342_v21, %v9342_v21  ;;  %v3831_v55 = vpop.xlane.xlu1 %3830  ;;  %v9356_v2 = vadd.f32 %v3544_v28, %v8578_v39 }
 0x4d9   : > { %v6186_v18 = vpop.eup %6185  ;;  %v4783_v23 = vadd.f32 %v4715_v8, %v4714_v35  ;;  %6189 = vrsqrt.f32 %v4329_v53  ;;  %v9358_v1 = vmul.f32 0.0078125, %v3651_v32  ;;  %3722 = vadd.xlane.f32.xlu0 %v9271_v47  ;;  %v4335_v44 = vadd.f32 1e-05, %v4207_v48  ;;  %v10762_v48 = vld [vmem:[#allocation96_spill] sm:$0xff] }
 0x4da   : > { %v4588_v20 = vadd.f32 %v9098_v36, %v4520_v34  ;;  %v4455_v46 = vmul.f32 %v6186_v18, %v4263_v16  ;;  %v4139_v15 = vsub.f32 %v4011_v49, %v4075_v50  ;;  %v3843_v10 = vpop.xlane.xlu0 %3842  ;;  %v3547_v4 = vadd.f32 %v5872_v62, %v10760_v40  ;;  %v9367_v34 = vpop.f32.mrf.mxu1 }
 0x4db   : > { %v4653_v38 = vmax.f32 %v4589_v51, 0.0  ;;  %v4074_v28 = vmul.f32 %v9333_v45, %v9333_v45  ;;  %v4010_v14 = vmul.f32 0.0078125, %v3831_v55  ;;  %3900 = vadd.xlane.f32.xlu1 %v10761_v37  ;;  %v4016_v8 = vmul.f32 0.0078125, %v3843_v10  ;;  %v10763_v55 = vld [vmem:[#allocation32_spill] sm:$0xff] }
 0x4dc   : > { %v4652_v35 = vmax.f32 %v4588_v20, 0.0  ;;  %v4523_v57 = vmul.f32 %v9077_v56, %v4455_v46  ;;  %v4203_v32 = vmax.f32 %v4139_v15, 0.0  ;;  %v3645_v53 = vpop.xlane.xlu1 %3644  ;;  %v4262_v16 = vsub.f32 %v10762_v48, %v9247_v52  ;;  %v10764_v48 = vld [vmem:[#allocation54_spill] sm:$0xff] }
 0x4dd   : > { %v4080_v62 = vmul.f32 %v9358_v1, %v9358_v1  ;;  %v4138_v51 = vsub.f32 %v4010_v14, %v4074_v28  ;;  %v9373_v49 = vmul.f32 0.0078125, %v3645_v53  ;;  %3728 = vadd.xlane.f32.xlu0 %v9274_v7  ;;  %v4013_v20 = vmul.f32 0.0078125, %v9277_v30  ;;  %v10765_v28 = vld [vmem:[#allocation98_spill] sm:$0xff]  ;;  %v3297_v30 = vpop.f32.mrf.mxu1 }
 0x4de   : > { %v6188_v50 = vpop.eup %6187  ;;  %v4716_v18 = vmul.f32 %v4652_v35, %v10763_v55  ;;  %6191 = vrsqrt.f32 %v4335_v44  ;;  %v4331_v46 = vadd.f32 1e-05, %v4203_v32  ;;  %v3655_v15 = vpop.xlane.xlu0 %3654  ;;  %v4717_v14 = vmul.f32 %v4653_v38, %v10765_v28 }
 0x4df   : > { %v4454_v10 = vmul.f32 %v6188_v50, %v4262_v16  ;;  %v4202_v37 = vmax.f32 %v4138_v51, 0.0  ;;  %v4144_v47 = vsub.f32 %v4016_v8, %v4080_v62  ;;  %v4077_v52 = vmul.f32 %v9373_v49, %v9373_v49  ;;  %3898 = vadd.xlane.f32.xlu1 %v10764_v48 }
 0x4e0   : > { %v4784_v53 = vadd.f32 %v4783_v23, %v4716_v18  ;;  %6193 = vrsqrt.f32 %v4331_v46  ;;  %v3643_v7 = vpop.xlane.xlu1 %3642  ;;  %v9384_v35 = vmul.f32 %v9307_v3, %v9307_v3  ;;  %v9387_v8 = vmul.f32 0.0078125, %v3655_v15 }
 0x4e1   : > { %v4522_v44 = vmul.f32 %v9077_v56, %v4454_v10  ;;  %v4330_v32 = vadd.f32 1e-05, %v4202_v37  ;;  %v4141_v16 = vsub.f32 %v4013_v20, %v4077_v52  ;;  %3914 = vadd.xlane.f32.xlu0 %v9300_v60  ;;  %v9391_v62 = vadd.f32 %v8563_v59, %v3547_v4  ;;  %v10766_v4 = vld [vmem:[#allocation99_spill] sm:$0xff] }
 0x4e2   : > { %v4785_v38 = vadd.f32 %v4784_v53, %v4717_v14  ;;  %v9393_v23 = vmul.f32 0.0078125, %v3643_v7  ;;  %v3847_v51 = vpop.xlane.xlu0 %3846  ;;  %v4777_v50 = vrot.slane %v9328_v12, 4  ;;  %v9397_v55 = vadd.f32 %v10760_v40, %v3287_v54 }
 0x4e3   : > { %6195 = vrsqrt.f32 %v4330_v32  ;;  %v4208_v18 = vmax.f32 %v4144_v47, 0.0  ;;  %v4205_v46 = vmax.f32 %v4141_v16, 0.0  ;;  %3710 = vadd.xlane.f32.xlu1 %v9175_v22  ;;  %v3548_v20 = vadd.f32 %v10760_v40, %v3297_v30 }
 0x4e4   : > { %v4786_v60 = vrot.slane %v4785_v38, 4  ;;  %v4590_v59 = vadd.f32 %v9098_v36, %v4522_v44  ;;  %v4265_v7 = vsub.f32 %v10766_v4, %v9292_v13  ;;  %v3835_v15 = vpop.xlane.xlu1 %3834  ;;  %v4591_v10 = vadd.f32 %v9098_v36, %v4523_v57 }
 0x4e5   : > { %v4333_v37 = vadd.f32 1e-05, %v4205_v46  ;;  %v4082_v54 = vmul.f32 %v9387_v8, %v9387_v8  ;;  %v4018_v52 = vmul.f32 0.0078125, %v3847_v51  ;;  %3918 = vadd.xlane.f32.xlu0 %v9337_v6  ;;  %v4076_v28 = vmul.f32 %v9393_v23, %v9393_v23 }
 0x4e6   : > { %v6190_v47 = vpop.eup %6189  ;;  %v4787_v48 = vadd.f32 %v4786_v60, %v4785_v38  ;;  %v4012_v14 = vmul.f32 0.0078125, %v3835_v15  ;;  %v9410_v53 = vpop.xlane.xlu0 %3660  ;;  %v4778_v13 = vadd.f32 %v4777_v50, %v9328_v12  ;;  %v4336_v44 = vadd.f32 1e-05, %v4208_v18 }
 0x4e7   : > { %v4457_v30 = vmul.f32 %v6190_v47, %v4265_v7  ;;  %6197 = vrsqrt.f32 %v4333_v37  ;;  %v4146_v57 = vsub.f32 %v4018_v52, %v4082_v54  ;;  %3902 = vadd.xlane.f32.xlu1 %v9212_v33  ;;  %v4654_v16 = vmax.f32 %v4590_v59, 0.0  ;;  %v10768_v37 = vld [vmem:[#allocation93_spill] sm:$0xff] }
 0x4e8   : > { %v4788_v32 = vrot.slane %v4787_v48, 2  ;;  %v4140_v51 = vsub.f32 %v4012_v14, %v4076_v28  ;;  %v3647_v6 = vpop.xlane.xlu1 %3646  ;;  %v9416_v38 = vmul.f32 %v9356_v2, %v9356_v2  ;;  %v4592_v46 = vadd.f32 %v9098_v36, %v9346_v43  ;;  %v10767_v43 = vld [vmem:[#allocation35_spill] sm:$0xff] }
 0x4e9   : > { %v4655_v60 = vmax.f32 %v4591_v10, 0.0  ;;  %v4525_v12 = vmul.f32 %v9077_v56, %v4457_v30  ;;  %v9421_v50 = vmul.f32 0.0078125, %v3647_v6  ;;  %3732 = vadd.xlane.f32.xlu0 %v9307_v3  ;;  %v9425_v33 = vadd.f32 %v3548_v20, %v8578_v39  ;;  %v10769_v20 = vld [vmem:[#allocation78_spill] sm:$0xff]  ;;  %v10770_v3 = vld [vmem:[#allocation80_spill] sm:$0xff] }
 0x4ea   : > { %v4204_v18 = vmax.f32 %v4140_v51, 0.0  ;;  %v9427_v59 = vpop.xlane.xlu0 %3658  ;;  %v9431_v4 = vmul.f32 %v9391_v62, %v9391_v62  ;;  %v4779_v7 = vrot.slane %v4778_v13, 2  ;;  %v4271_v10 = vsub.f32 %v10767_v43, %v9315_v42 }
 0x4eb   : > { %v6192_v15 = vpop.eup %6191  ;;  %v4267_v54 = vsub.f32 %v10768_v37, %v9342_v21  ;;  %6199 = vrsqrt.f32 %v4336_v44  ;;  %v4210_v52 = vmax.f32 %v4146_v57, 0.0  ;;  %3908 = vadd.xlane.f32.xlu1 %v9227_v9  ;;  %v4789_v39 = vadd.f32 %v4788_v32, %v4787_v48  ;;  %v10771_v57 = vld [vmem:[#allocation94_spill] sm:$0xff] }
 0x4ec   : > { %v4718_v47 = vmul.f32 %v4654_v16, %v10769_v20  ;;  %v4593_v28 = vadd.f32 %v9098_v36, %v4525_v12  ;;  %v4332_v14 = vadd.f32 1e-05, %v4204_v18  ;;  %v3839_v30 = vpop.xlane.xlu1 %3838  ;;  %v4656_v6 = vmax.f32 %v4592_v46, 0.0 }
 0x4ed   : > { %v6194_v51 = vpop.eup %6193  ;;  %v4719_v22 = vmul.f32 %v4655_v60, %v10770_v3  ;;  %v4078_v42 = vmul.f32 %v9421_v50, %v9421_v50  ;;  %v4014_v43 = vmul.f32 0.0078125, %v3839_v30  ;;  %3924 = vadd.xlane.f32.xlu0 %v9384_v35  ;;  %v4463_v21 = vmul.f32 %v6192_v15, %v4271_v10  ;;  %v10772_v10 = vld [vmem:[#allocation87_spill] sm:$0xff] }
 0x4ee   : > { %v4459_v9 = vmul.f32 %v6194_v51, %v4267_v54  ;;  %6201 = vrsqrt.f32 %v4332_v14  ;;  %v3665_v48 = vpop.xlane.xlu0 %3664  ;;  %v4780_v44 = vadd.f32 %v4779_v7, %v4778_v13  ;;  %v4266_v32 = vsub.f32 %v10771_v57, %v9333_v45 }
 0x4ef   : > { %v4338_v16 = vadd.f32 1e-05, %v4210_v52  ;;  %v4142_v12 = vsub.f32 %v4014_v43, %v4078_v42  ;;  %v9446_v46 = vmul.f32 0.0078125, %v3665_v48  ;;  %3720 = vadd.xlane.f32.xlu1 %v9219_v29  ;;  %v4657_v60 = vmax.f32 %v4593_v28, 0.0  ;;  %v10773_v52 = vld [vmem:[#allocation97_spill] sm:$0xff]  ;;  %v10774_v48 = vld [vmem:[#allocation39_spill] sm:$0xff] }
 0x4f0   : > { %v6196_v3 = vpop.eup %6195  ;;  %v4527_v18 = vmul.f32 %v9077_v56, %v4459_v9  ;;  %v3653_v35 = vpop.xlane.xlu1 %3652  ;;  %v4790_v37 = vrot.slane %v4789_v39, 1  ;;  %v4792_v15 = vadd.f32 %v4719_v22, %v4718_v47  ;;  %v4720_v54 = vmul.f32 %v4656_v6, %v10772_v10 }
 0x4f1   : > { %v4458_v20 = vmul.f32 %v6196_v3, %v4266_v32  ;;  %v4206_v13 = vmax.f32 %v4142_v12, 0.0  ;;  %3736 = vadd.xlane.f32.xlu0 %v9391_v62  ;;  %v9454_v45 = vmul.f32 %v9425_v33, %v9425_v33  ;;  %v4531_v7 = vmul.f32 %v9077_v56, %v4463_v21 }
 0x4f2   : > { %v4269_v28 = vsub.f32 %v10773_v52, %v9373_v49  ;;  %v9459_v14 = vmul.f32 0.0078125, %v3653_v35  ;;  %v3857_v30 = vpop.xlane.xlu0 %3856  ;;  %v4781_v51 = vrot.slane %v4780_v44, 1  ;;  %v4087_v6 = vmul.f32 %v9446_v46, %v9446_v46 }
 0x4f3   : > { %v4526_v22 = vmul.f32 %v9077_v56, %v4458_v20  ;;  %v4334_v47 = vadd.f32 1e-05, %v4206_v13  ;;  %v4023_v42 = vmul.f32 0.0078125, %v3857_v30  ;;  %3906 = vadd.xlane.f32.xlu1 %v9236_v17  ;;  %v4595_v9 = vadd.f32 %v9098_v36, %v4527_v18 }
 0x4f4   : > { %v6198_v43 = vpop.eup %6197  ;;  %6203 = vrsqrt.f32 %v4338_v16  ;;  %v3845_v21 = vpop.xlane.xlu1 %3844  ;;  %v4721_v49 = vmul.f32 %v4657_v60, %v10774_v48  ;;  %v4791_v57 = vadd.f32 %v4790_v37, %v4789_v39  ;;  %v4081_v35 = vmul.f32 %v9459_v14, %v9459_v14  ;;  %v10775_v16 = vld [vmem:[#allocation102_spill] sm:$0xff] }
 0x4f5   : > { %v4594_v32 = vadd.f32 %v9098_v36, %v4526_v22  ;;  %v4461_v12 = vmul.f32 %v6198_v43, %v4269_v28  ;;  %6205 = vrsqrt.f32 %v4334_v47  ;;  %v4151_v3 = vsub.f32 %v4023_v42, %v4087_v6  ;;  %3922 = vadd.xlane.f32.xlu0 %v9416_v38 }
 0x4f6   : > { %v4017_v10 = vmul.f32 0.0078125, %v3845_v21  ;;  %v3669_v17 = vpop.xlane.xlu0 %3668  ;;  %v4782_v20 = vadd.f32 %v4781_v51, %v4780_v44  ;;  %v4793_v13 = vadd.f32 %v4792_v15, %v4720_v54  ;;  %v4272_v18 = vsub.f32 %v10775_v16, %v9358_v1  ;;  %v10777_v51 = vld [vmem:[#allocation104_spill] sm:$0xff] }
 0x4f7   : > { %v4658_v52 = vmax.f32 %v4594_v32, 0.0  ;;  %v4529_v39 = vmul.f32 %v9077_v56, %v4461_v12  ;;  %v4215_v60 = vmax.f32 %v4151_v3, 0.0  ;;  %3912 = vadd.xlane.f32.xlu1 %v9268_v27  ;;  %v9476_v28 = vmul.f32 0.0078125, %v9410_v53  ;;  %v10776_v27 = vld [vmem:[#allocation101_spill] sm:$0xff] }
 0x4f8   : > { %v6200_v37 = vpop.eup %6199  ;;  %v4145_v38 = vsub.f32 %v4017_v10, %v4081_v35  ;;  %v3657_v30 = vpop.xlane.xlu1 %3656  ;;  %v4794_v22 = vadd.f32 %v4793_v13, %v4721_v49  ;;  %v9479_v47 = vsel %vm4934_vm6, %v4791_v57, %v4782_v20  ;;  %v9482_v44 = vadd.f32 %v9098_v36, %v4531_v7  ;;  %v10778_v7 = vld [vmem:[#allocation33_spill] sm:$0xff]  ;;  %v10779_v57 = vld [vmem:[#allocation110_spill] sm:$0xff]  ;;  %v10780_v35 = vld [vmem:[#allocation84_spill] sm:$0xff] }
 0x4f9   : > { %v4659_v1 = vmax.f32 %v4595_v9, 0.0  ;;  %v9485_v15 = vmul.f32 0.0078125, %v9427_v59  ;;  %v4343_v54 = vadd.f32 1e-05, %v4215_v60  ;;  %3928 = vadd.xlane.f32.xlu0 %v9431_v4  ;;  %v4274_v53 = vsub.f32 %v10776_v27, %v9387_v8 }
 0x4fa   : > { %v4268_v6 = vsub.f32 %v10777_v51, %v9393_v23  ;;  %v4209_v42 = vmax.f32 %v4145_v38, 0.0  ;;  %v9492_v43 = vmul.f32 0.0078125, %v3657_v30  ;;  %v3667_v21 = vpop.xlane.xlu0 %3666  ;;  %v4722_v49 = vmul.f32 %v4658_v52, %v10778_v7  ;;  %v10782_v7 = vld [vmem:[#allocation141_spill] sm:$0xff] }
 0x4fb   : > { %v6202_v48 = vpop.eup %6201  ;;  %v4464_v9 = vmul.f32 %v6200_v37, %v4272_v18  ;;  %6207 = vrsqrt.f32 %v4343_v54  ;;  %v9495_v59 = vmul.f32 0.0078125, %v3669_v17  ;;  %3724 = vadd.xlane.f32.xlu1 %v9259_v0  ;;  %v4085_v8 = vmul.f32 %v9476_v28, %v9476_v28 }
 0x4fc   : > { %v4460_v4 = vmul.f32 %v6202_v48, %v4268_v6  ;;  %v4270_v23 = vsub.f32 %v10779_v57, %v9421_v50  ;;  %v4337_v32 = vadd.f32 1e-05, %v4209_v42  ;;  %v3849_v12 = vpop.xlane.xlu1 %3848  ;;  %v4663_v3 = vmax.f32 %v9482_v44, 0.0  ;;  %v10781_v42 = vld [vmem:[#allocation105_spill] sm:$0xff] }
 0x4fd   : > { %v4723_v10 = vmul.f32 %v4659_v1, %v10780_v35  ;;  %v9506_v20 = vmul.f32 %v9485_v15, %v9485_v15  ;;  %v4083_v17 = vmul.f32 %v9492_v43, %v9492_v43  ;;  %3738 = vadd.xlane.f32.xlu0 %v9425_v33  ;;  %v4019_v16 = vmul.f32 0.0078125, %v3849_v12 }
 0x4fe   : > { %v4528_v13 = vmul.f32 %v9077_v56, %v4460_v4  ;;  %6209 = vrsqrt.f32 %v4337_v32  ;;  %v3861_v50 = vpop.xlane.xlu0 %3860  ;;  %v4795_v18 = vrot.slane %v4794_v22, 4  ;;  %v4532_v52 = vmul.f32 %v9077_v56, %v4464_v9 }
 0x4ff   : > { %v4089_v60 = vmul.f32 %v9495_v59, %v9495_v59  ;;  %v4025_v37 = vmul.f32 0.0078125, %v3861_v50  ;;  %3916 = vadd.xlane.f32.xlu1 %v9288_v31  ;;  %v4801_v38 = vadd.f32 %v4723_v10, %v4722_v49  ;;  %v4597_v30 = vadd.f32 %v9098_v36, %v4529_v39  ;;  %v10783_v50 = vld [vmem:[#allocation34_spill] sm:$0xff] }
 0x500   : > { %v4596_v1 = vadd.f32 %v9098_v36, %v4528_v13  ;;  %v4147_v54 = vsub.f32 %v4019_v16, %v4083_v17  ;;  %v3853_v27 = vpop.xlane.xlu1 %3852  ;;  %v4796_v51 = vadd.f32 %v4795_v18, %v4794_v22  ;;  %v4279_v48 = vsub.f32 %v10781_v42, %v9446_v46 }
 0x501   : > { %v6204_v6 = vpop.eup %6203  ;;  %v4273_v9 = vsub.f32 %v10782_v7, %v9459_v14  ;;  %v4153_v4 = vsub.f32 %v4025_v37, %v4089_v60  ;;  %v4021_v57 = vmul.f32 0.0078125, %v3853_v27  ;;  %3930 = vadd.xlane.f32.xlu0 %v9454_v45  ;;  %v9523_v32 = vmul.f32 0.0078125, %v3667_v21 }
 0x502   : > { %v6206_v31 = vpop.eup %6205  ;;  %v4660_v49 = vmax.f32 %v4596_v1, 0.0  ;;  %v4211_v39 = vmax.f32 %v4147_v54, 0.0  ;;  %v3673_v12 = vpop.xlane.xlu0 %3672  ;;  %v4797_v35 = vrot.slane %v4796_v51, 2  ;;  %v9526_v22 = vadd.f32 %v9098_v36, %v4532_v52 }
 0x503   : > { %v4462_v10 = vmul.f32 %v6206_v31, %v4270_v23  ;;  %v4217_v17 = vmax.f32 %v4153_v4, 0.0  ;;  %v4149_v46 = vsub.f32 %v4021_v57, %v4085_v8  ;;  %3726 = vadd.xlane.f32.xlu1 %v9296_v24  ;;  %v4661_v14 = vmax.f32 %v4597_v30, 0.0 }
 0x504   : > { %v4339_v13 = vadd.f32 1e-05, %v4211_v39  ;;  %v3851_v16 = vpop.xlane.xlu1 %3850  ;;  %v4724_v45 = vmul.f32 %v4660_v49, %v10783_v50  ;;  %v4798_v18 = vadd.f32 %v4797_v35, %v4796_v51  ;;  %v4466_v60 = vmul.f32 %v6204_v6, %v4274_v53  ;;  %v10784_v53 = vld [vmem:[#allocation43_spill] sm:$0xff]  ;;  %v10785_v50 = vld [vmem:[#allocation89_spill] sm:$0xff] }
 0x505   : > { %v4530_v21 = vmul.f32 %v9077_v56, %v4462_v10  ;;  %v4345_v37 = vadd.f32 1e-05, %v4217_v17  ;;  %v4213_v1 = vmax.f32 %v4149_v46, 0.0  ;;  %v4088_v52 = vmul.f32 %v9523_v32, %v9523_v32 }
 0x506   : > { %6211 = vrsqrt.f32 %v4339_v13  ;;  %v4020_v23 = vmul.f32 0.0078125, %v3851_v16  ;;  %v3859_v54 = vpop.xlane.xlu0 %3858  ;;  %v4799_v8 = vrot.slane %v4798_v18, 1  ;;  %v4725_v6 = vmul.f32 %v4661_v14, %v10784_v53 }
 0x507   : > { %v4598_v27 = vadd.f32 %v9098_v36, %v4530_v21  ;;  %6213 = vrsqrt.f32 %v4345_v37  ;;  %v4341_v30 = vadd.f32 1e-05, %v4213_v1  ;;  %v4024_v42 = vmul.f32 0.0078125, %v3859_v54  ;;  %3920 = vadd.xlane.f32.xlu1 %v9304_v58  ;;  %v10786_v37 = vld [vmem:[#allocation88_spill] sm:$0xff] }
 0x508   : > { %v6208_v51 = vpop.eup %6207  ;;  %v4148_v7 = vsub.f32 %v4020_v23, %v9506_v20  ;;  %v3663_v4 = vpop.xlane.xlu1 %3662  ;;  %v4800_v57 = vadd.f32 %v4799_v8, %v4798_v18  ;;  %v4802_v31 = vadd.f32 %v4801_v38, %v4724_v45  ;;  %v9545_v20 = vadd.f32 %v9397_v55, %v8569_v41 }
 0x509   : > { %v4662_v49 = vmax.f32 %v4598_v27, 0.0  ;;  %6215 = vrsqrt.f32 %v4341_v30  ;;  %v4152_v39 = vsub.f32 %v4024_v42, %v4088_v52  ;;  %v9537_v35 = vmul.f32 0.0078125, %v3663_v4 }
 0x50a   : > { %v4212_v10 = vmax.f32 %v4148_v7, 0.0  ;;  %v3863_v17 = vpop.xlane.xlu0 %3862  ;;  %v4471_v46 = vmul.f32 %v6208_v51, %v4279_v48  ;;  %v4803_v13 = vadd.f32 %v4802_v31, %v4725_v6  ;;  %v9541_v58 = vsel %vm4936_vm7, %v4800_v57, %v9479_v47  ;;  %v10787_v51 = vld [vmem:[#allocation106_spill] sm:$0xff] }
 0x50b   : > { %v6210_v16 = vpop.eup %6209  ;;  %v3549_v38 = vadd.f32 %v9367_v34, %v10760_v40  ;;  %v4216_v14 = vmax.f32 %v4152_v39, 0.0  ;;  %3730 = vadd.xlane.f32.xlu1 %v9356_v2  ;;  %v4727_v48 = vmul.f32 %v4663_v3, %v10785_v50  ;;  %v4726_v1 = vmul.f32 %v4662_v49, %v10786_v37  ;;  %v10788_v57 = vld [vmem:[#allocation142_spill] sm:$0xff]  ;;  %v10789_v39 = vld [vmem:[#allocation24_spill] sm:$0xff] }
 0x50c   : > { %v4465_v45 = vmul.f32 %v6210_v16, %v4273_v9  ;;  %v4340_v18 = vadd.f32 1e-05, %v4212_v10  ;;  %v3855_v21 = vpop.xlane.xlu1 %3854  ;;  %v4539_v47 = vmul.f32 %v9077_v56, %v4471_v46  ;;  %v4086_v41 = vmul.f32 %v9537_v35, %v9537_v35 }
 0x50d   : > { %v4344_v52 = vadd.f32 1e-05, %v4216_v14  ;;  %v4022_v55 = vmul.f32 0.0078125, %v3855_v21  ;;  %v4804_v40 = vrot.slane %v4803_v13, 4  ;;  %v4664_v34 = vmax.f32 %v9526_v22, 0.0 }
 0x50e   : > { %v4534_v23 = vmul.f32 %v9077_v56, %v4466_v60  ;;  %v4533_v44 = vmul.f32 %v9077_v56, %v4465_v45  ;;  %6217 = vrsqrt.f32 %v4340_v18  ;;  %v9560_v3 = vpop.xlane.xlu0 %3866  ;;  %v9562_v9 = vmul.f32 0.0078125, %v3673_v12  ;;  %v10790_v45 = vld [vmem:[#allocation113_spill] sm:$0xff] }
 0x50f   : > { %6219 = vrsqrt.f32 %v4344_v52  ;;  %v4150_v54 = vsub.f32 %v4022_v55, %v4086_v41  ;;  %3734 = vadd.xlane.f32.xlu1 %v9545_v20  ;;  %v4805_v8 = vadd.f32 %v4804_v40, %v4803_v13  ;;  %v9566_v27 = vadd.f32 %v8573_v26, %v3549_v38  ;;  %v10791_v55 = vld [vmem:[#allocation103_spill] sm:$0xff] }
 0x510   : > { %v4601_v30 = vadd.f32 %v9098_v36, %v4533_v44  ;;  %v3671_v22 = vpop.xlane.xlu1 %3670  ;;  %v3802_v60 = vmul.f32 %v9545_v20, %v9545_v20  ;;  %v4810_v42 = vadd.f32 %v4727_v48, %v4726_v1  ;;  %v4281_v53 = vsub.f32 %v10787_v51, %v9495_v59 }
 0x511   : > { %v4214_v12 = vmax.f32 %v4150_v54, 0.0  ;;  %v9573_v6 = vmul.f32 0.0078125, %v3671_v22  ;;  %v4806_v7 = vrot.slane %v4805_v8, 2  ;;  %v4602_v4 = vadd.f32 %v9098_v36, %v4534_v23 }
 0x512   : > { %v4275_v26 = vsub.f32 %v10788_v57, %v9492_v43  ;;  %v9578_v31 = vpop.xlane.xlu0 %3872  ;;  %v4665_v49 = vmax.f32 %v4601_v30, 0.0  ;;  %v4728_v10 = vmul.f32 %v4664_v34, %v10789_v39  ;;  %v4091_v13 = vmul.f32 %v9562_v9, %v9562_v9  ;;  %v10793_v57 = vld [vmem:[#allocation72_spill] sm:$0xff] }
 0x513   : > { %v6212_v46 = vpop.eup %6211  ;;  %v4026_v16 = vmul.f32 0.0078125, %v3863_v17  ;;  %v4342_v59 = vadd.f32 1e-05, %v4214_v12  ;;  %v4090_v38 = vmul.f32 %v9573_v6, %v9573_v6  ;;  %3926 = vadd.xlane.f32.xlu1 %v3802_v60  ;;  %v4807_v18 = vadd.f32 %v4806_v7, %v4805_v8  ;;  %v10792_v8 = vld [vmem:[#allocation75_spill] sm:$0xff] }
 0x514   : > { %v6214_v14 = vpop.eup %6213  ;;  %v4467_v50 = vmul.f32 %v6212_v46, %v4275_v26  ;;  %v3865_v48 = vpop.xlane.xlu1 %3864  ;;  %v4729_v43 = vmul.f32 %v4665_v49, %v10790_v45  ;;  %v4811_v21 = vadd.f32 %v4810_v42, %v4728_v10  ;;  %v4277_v17 = vsub.f32 %v10791_v55, %v9476_v28  ;;  %v10794_v49 = vld [vmem:[#allocation27_spill] sm:$0xff] }
 0x515   : > { %6221 = vrsqrt.f32 %v4342_v59  ;;  %v4154_v37 = vsub.f32 %v4026_v16, %v4090_v38  ;;  %v4027_v1 = vmul.f32 0.0078125, %v3865_v48  ;;  %v4473_v52 = vmul.f32 %v6214_v14, %v4281_v53  ;;  %v10795_v59 = vld [vmem:[#allocation76_spill] sm:$0xff]  ;;  %v10798_v55 = vld [vmem:[#allocation111_spill] sm:$0xff] }
 0x516   : > { %v6216_v41 = vpop.eup %6215  ;;  %v4535_v40 = vmul.f32 %v9077_v56, %v4467_v50  ;;  %v9589_v34 = vpop.xlane.xlu0 %3686  ;;  %v4808_v23 = vrot.slane %v4807_v18, 1  ;;  %v4812_v44 = vadd.f32 %v4811_v21, %v4729_v43  ;;  %v4666_v54 = vmax.f32 %v4602_v4, 0.0  ;;  %v10796_v14 = vld [vmem:[#allocation36_spill] sm:$0xff]  ;;  %v10797_v43 = vld [vmem:[#allocation46_spill] sm:$0xff] }
 0x517   : > { %v4218_v30 = vmax.f32 %v4154_v37, 0.0  ;;  %v4155_v22 = vsub.f32 %v4027_v1, %v4091_v13  ;;  %3740 = vadd.xlane.f32.xlu1 %v9566_v27  ;;  %580 = vbcast.lane.b32.xlu0 %v10792_v8, 272  ;;  %v4607_v60 = vadd.f32 %v9098_v36, %v4539_v47  ;;  %v4469_v51 = vmul.f32 %v6216_v41, %v4277_v17 }
 0x518   : > { %v4603_v42 = vadd.f32 %v9098_v36, %v4535_v40  ;;  %v3677_v53 = vpop.xlane.xlu1 %3676  ;;  %v9596_v28 = vmul.f32 %v9077_v56, %v4473_v52  ;;  %v3805_v4 = vmul.f32 %v9566_v27, %v9566_v27  ;;  %v4276_v26 = vsub.f32 %v10793_v57, %v9485_v15 }
 0x519   : > { %v4346_v12 = vadd.f32 1e-05, %v4218_v30  ;;  %v4219_v7 = vmax.f32 %v4155_v22, 0.0  ;;  %v4280_v39 = vsub.f32 %v10794_v49, %v9523_v32  ;;  %v4809_v10 = vadd.f32 %v4808_v23, %v4807_v18 }
 0x51a   : > { %v9604_v47 = vpop.xlane.xlu0 %3880  ;;  %v4813_v46 = vrot.slane %v4812_v44, 4  ;;  %v4671_v38 = vmax.f32 %v4607_v60, 0.0  ;;  %v4730_v50 = vmul.f32 %v4666_v54, %v10796_v14  ;;  %v4667_v45 = vmax.f32 %v4603_v42, 0.0  ;;  %v10799_v60 = vld [vmem:[#allocation31_spill] sm:$0xff] }
 0x51b   : > { %v6218_v13 = vpop.eup %6217  ;;  %6223 = vrsqrt.f32 %v4346_v12  ;;  %v4347_v16 = vadd.f32 1e-05, %v4219_v7  ;;  %3932 = vadd.xlane.f32.xlu1 %v3805_v4  ;;  %713 = vbcast.lane.b32.xlu0 %v10795_v59, 272  ;;  %v4537_v15 = vmul.f32 %v9077_v56, %v4469_v51  ;;  %v4283_v32 = vsub.f32 %v10797_v43, %v9562_v9  ;;  %v10800_v51 = vld [vmem:[#allocation140_spill] sm:$0xff]  ;;  %v10809_v43 = vld [vmem:[#allocation74_spill] sm:$0xff] }
 0x51c   : > { %v6220_v48 = vpop.eup %6219  ;;  %v4468_v21 = vmul.f32 %v6218_v13, %v4276_v26  ;;  %v3675_v37 = vpop.xlane.xlu1 %3674  ;;  %v9611_v18 = vmul.f32 0.0078125, %v3677_v53  ;;  %v4278_v17 = vsub.f32 %v10798_v55, %v9537_v35  ;;  %v4814_v23 = vadd.f32 %v4813_v46, %v4812_v44  ;;  %v10801_v7 = vld [vmem:[#allocation100_spill] sm:$0xff]  ;;  %v10802_v46 = vld [vmem:[#allocation30_spill] sm:$0xff] }
 0x51d   : > { %6225 = vrsqrt.f32 %v4347_v16  ;;  %v9613_v1 = vmul.f32 0.0078125, %v3675_v37  ;;  %v4472_v52 = vmul.f32 %v6220_v48, %v4280_v39  ;;  %v4939_v54 = vsel %vm4938_vm8, %v4809_v10, %v9541_v58 }
 0x51e   : > { %v4536_v41 = vmul.f32 %v9077_v56, %v4468_v21  ;;  %v3693_v40 = vpop.xlane.xlu0 %3692  ;;  %v4028_v30 = vmul.f32 0.0078125, %v9560_v3  ;;  %v9626_v53 = vmul.f32 %v4671_v38, %v10800_v51  ;;  %v4605_v44 = vadd.f32 %v9098_v36, %v4537_v15 }
 0x51f   : > { %v4092_v22 = vmul.f32 %v9613_v1, %v9613_v1  ;;  %698 = vbcast.lane.b32.xlu0 %v10799_v60, 280  ;;  %v4540_v42 = vmul.f32 %v9077_v56, %v4472_v52  ;;  %v4731_v4 = vmul.f32 %v4667_v45, %v10801_v7  ;;  %v4815_v58 = vrot.slane %v4814_v23, 2 }
 0x520   : > { %v4604_v12 = vadd.f32 %v9098_v36, %v4536_v41  ;;  %v3869_v35 = vpop.xlane.xlu1 %3868  ;;  %v4093_v3 = vmul.f32 %v9611_v18, %v9611_v18  ;;  %v9633_v26 = vmul.f32 0.0078125, %v3693_v40  ;;  %v4282_v13 = vsub.f32 %v10802_v46, %v9573_v6  ;;  %v10803_v41 = vld [vmem:[#allocation44_spill] sm:$0xff] }
 0x521   : > { %v4156_v57 = vsub.f32 %v4028_v30, %v4092_v22  ;;  %v4029_v49 = vmul.f32 0.0078125, %v3869_v35  ;;  %v4608_v38 = vadd.f32 %v9098_v36, %v4540_v42  ;;  %v4816_v14 = vadd.f32 %v4815_v58, %v4814_v23 }
 0x522   : > { %v6222_v39 = vpop.eup %6221  ;;  %v4668_v10 = vmax.f32 %v4604_v12, 0.0  ;;  %v3691_v16 = vpop.xlane.xlu0 %3690  ;;  %v4031_v48 = vmul.f32 0.0078125, %v9578_v31  ;;  %v4669_v52 = vmax.f32 %v4605_v44, 0.0  ;;  %v4819_v30 = vadd.f32 %v4731_v4, %v4730_v50  ;;  %v10804_v44 = vld [vmem:[#allocation77_spill] sm:$0xff] }
 0x523   : > { %v4220_v45 = vmax.f32 %v4156_v57, 0.0  ;;  %v4157_v15 = vsub.f32 %v4029_v49, %v4093_v3  ;;  %584 = vbcast.lane.b32.xlu0 %v10792_v8, 280  ;;  %v4470_v21 = vmul.f32 %v6222_v39, %v4278_v17  ;;  %v4817_v40 = vrot.slane %v4816_v14, 1  ;;  %v10805_v57 = vld [vmem:[#allocation118_spill] sm:$0xff] }
 0x524   : > { %v3681_v37 = vpop.xlane.xlu1 %3680  ;;  %v4732_v55 = vmul.f32 %v4668_v10, %v10803_v41  ;;  %v4101_v6 = vmul.f32 %v9633_v26, %v9633_v26  ;;  %v9643_v42 = vmul.f32 0.0078125, %v3691_v16  ;;  %v4672_v8 = vmax.f32 %v4608_v38, 0.0 }
 0x525   : > { %v4348_v22 = vadd.f32 1e-05, %v4220_v45  ;;  %v4221_v60 = vmax.f32 %v4157_v15, 0.0  ;;  %v9645_v23 = vmul.f32 0.0078125, %v3681_v37  ;;  %v4538_v51 = vmul.f32 %v9077_v56, %v4470_v21 }
 0x526   : > { %v3885_v31 = vpop.xlane.xlu0 %3884  ;;  %v4818_v17 = vadd.f32 %v4817_v40, %v4816_v14  ;;  %v4820_v50 = vadd.f32 %v4819_v30, %v4732_v55  ;;  %v4733_v49 = vmul.f32 %v4669_v52, %v10805_v57  ;;  %v4100_v14 = vmul.f32 %v9643_v42, %v9643_v42  ;;  %v10806_v52 = vld [vmem:[#allocation116_spill] sm:$0xff] }
 0x527   : > { %6227 = vrsqrt.f32 %v4348_v22  ;;  %v4349_v12 = vadd.f32 1e-05, %v4221_v60  ;;  %v4037_v35 = vmul.f32 0.0078125, %v3885_v31  ;;  %736 = vbcast.lane.b32.xlu0 %v10804_v44, 280  ;;  %v4095_v4 = vmul.f32 %v9645_v23, %v9645_v23  ;;  %v10807_v22 = vld [vmem:[#allocation73_spill] sm:$0xff]  ;;  %v10808_v60 = vld [vmem:[#allocation26_spill] sm:$0xff] }
 0x528   : > { %v6224_v7 = vpop.eup %6223  ;;  %v3679_v58 = vpop.xlane.xlu1 %3678  ;;  %v4606_v3 = vadd.f32 %v9098_v36, %v4538_v51  ;;  %v9654_v39 = vsel %vm4940_vm9, %v4818_v17, %v4939_v54  ;;  %v4821_v37 = vadd.f32 %v4820_v50, %v4733_v49 }
 0x529   : > { %v4474_v10 = vmul.f32 %v6224_v7, %v4282_v13  ;;  %6229 = vrsqrt.f32 %v4349_v12  ;;  %v4165_v46 = vsub.f32 %v4037_v35, %v4101_v6  ;;  %v9656_v16 = vmul.f32 0.0078125, %v3679_v58 }
 0x52a   : > { %v6226_v38 = vpop.eup %6225  ;;  %v4159_v45 = vsub.f32 %v4031_v48, %v4095_v4  ;;  %v3883_v15 = vpop.xlane.xlu0 %3882  ;;  %v4670_v21 = vmax.f32 %v4606_v3, 0.0  ;;  %v4736_v13 = vmul.f32 %v4672_v8, %v10806_v52  ;;  %v4822_v35 = vrot.slane %v4821_v37, 4  ;;  %v10811_v52 = vld [vmem:[#allocation45_spill] sm:$0xff] }
 0x52b   : > { %v4542_v41 = vmul.f32 %v9077_v56, %v4474_v10  ;;  %v4229_v55 = vmax.f32 %v4165_v46, 0.0  ;;  %v4094_v54 = vmul.f32 %v9656_v16, %v9656_v16  ;;  %v4036_v30 = vmul.f32 0.0078125, %v3883_v15 }
 0x52c   : > { %v4223_v40 = vmax.f32 %v4159_v45, 0.0  ;;  %679 = vbcast.lane.b32.xlu1 %v10807_v22, 280  ;;  %v3871_v6 = vpop.xlane.xlu1 %3870  ;;  %v4475_v48 = vmul.f32 %v6226_v38, %v4283_v32  ;;  %v4734_v31 = vmul.f32 %v4670_v21, %v10808_v60  ;;  %v4823_v15 = vadd.f32 %v4822_v35, %v4821_v37  ;;  %v10813_v37 = vld [vmem:[#allocation48_spill] sm:$0xff] }
 0x52d   : > { %v4610_v51 = vadd.f32 %v9098_v36, %v4542_v41  ;;  %v4357_v17 = vadd.f32 1e-05, %v4229_v55  ;;  %v4030_v12 = vmul.f32 0.0078125, %v3871_v6  ;;  %v4164_v7 = vsub.f32 %v4036_v30, %v4100_v14  ;;  %v10812_v30 = vld [vmem:[#allocation28_spill] sm:$0xff] }
 0x52e   : > { %v4351_v50 = vadd.f32 1e-05, %v4223_v40  ;;  %v9670_v4 = vpop.xlane.xlu0 %3694  ;;  %v4543_v8 = vmul.f32 %v9077_v56, %v4475_v48  ;;  %v4828_v58 = vadd.f32 %v9626_v53, %v4734_v31  ;;  %v10810_v53 = vld [vmem:[#allocation109_spill] sm:$0xff]  ;;  %v4824_v22 = vrot.slane %v4823_v15, 2 }
 0x52f   : > { %6231 = vrsqrt.f32 %v4357_v17  ;;  %v4158_v3 = vsub.f32 %v4030_v12, %v4094_v54  ;;  %v4674_v57 = vmax.f32 %v4610_v51, 0.0  ;;  %v4228_v9 = vmax.f32 %v4164_v7, 0.0 }
 0x530   : > { %6233 = vrsqrt.f32 %v4351_v50  ;;  %565 = vbcast.lane.b32.xlu1 %v10809_v43, 280  ;;  %v3685_v32 = vpop.xlane.xlu1 %3684  ;;  %v4611_v49 = vadd.f32 %v9098_v36, %v4543_v8  ;;  %v9676_v10 = vadd.f32 %v4828_v58, %v4736_v13  ;;  %v4284_v21 = vsub.f32 %v10810_v53, %v9613_v1 }
 0x531   : > { %v4222_v46 = vmax.f32 %v4158_v3, 0.0  ;;  %v4356_v38 = vadd.f32 1e-05, %v4228_v9  ;;  %v4738_v40 = vmul.f32 %v4674_v57, %v10811_v52  ;;  %v9685_v48 = vmul.f32 0.0078125, %v3685_v32  ;;  %v10814_v57 = vld [vmem:[#allocation50_spill] sm:$0xff] }
 0x532   : > { %v9678_v14 = vpop.xlane.xlu0 %3888  ;;  %v4675_v45 = vmax.f32 %v4611_v49, 0.0  ;;  %v4285_v31 = vsub.f32 %v10813_v37, %v9611_v18  ;;  %v4825_v17 = vadd.f32 %v4824_v22, %v4823_v15  ;;  %v4293_v9 = vsub.f32 %v10814_v57, %v9633_v26 }
 0x533   : > { %v4350_v41 = vadd.f32 1e-05, %v4222_v46  ;;  %6235 = vrsqrt.f32 %v4356_v38  ;;  %v4097_v7 = vmul.f32 %v9685_v48, %v9685_v48 }
 0x534   : > { %v6228_v55 = vpop.eup %6227  ;;  %732 = vbcast.lane.b32.xlu1 %v10804_v44, 272  ;;  %v3683_v54 = vpop.xlane.xlu1 %3682  ;;  %v4739_v13 = vmul.f32 %v4675_v45, %v10812_v30  ;;  %v4826_v50 = vrot.slane %v4825_v17, 1 }
 0x535   : > { %v4476_v6 = vmul.f32 %v6228_v55, %v4284_v21  ;;  %6237 = vrsqrt.f32 %v4350_v41  ;;  %v9710_v53 = vmul.f32 0.0078125, %v3683_v54  ;;  %v9715_v55 = vmul.f32 0.0078125, %v9589_v34  ;;  %v10816_v54 = vld [vmem:[#allocation51_spill] sm:$0xff] }
 0x536   : > { %v6230_v60 = vpop.eup %6229  ;;  %v3699_v1 = vpop.xlane.xlu0 %3698  ;;  %v9689_v51 = vadd.f32 %v4739_v13, %v4738_v40  ;;  %v4827_v3 = vadd.f32 %v4826_v50, %v4825_v17  ;;  %v4035_v40 = vmul.f32 0.0078125, %v9604_v47  ;;  %v4292_v13 = vsub.f32 %v10816_v54, %v9643_v42 }
 0x537   : > { %v9692_v44 = vmul.f32 %v9077_v56, %v4476_v6  ;;  %v4477_v35 = vmul.f32 %v6230_v60, %v4285_v31  ;;  %v10817_v6 = vld [vmem:[#allocation120_spill] sm:$0xff]  ;;  %v9728_v60 = vmul.f32 0.0078125, %v3699_v1  ;;  %v4096_v47 = vmul.f32 %v9710_v53, %v9710_v53 }
 0x538   : > { %717 = vbcast.lane.b32.xlu1 %v10795_v59, 280  ;;  %v3877_v12 = vpop.xlane.xlu1 %3876  ;;  %v10815_v59 = vld [vmem:[#allocation114_spill] sm:$0xff]  ;;  %v9708_v38 = vsel %vm4942_vm10, %v4827_v3, %v9654_v39  ;;  %v4286_v34 = vsub.f32 %v10817_v6, %v9656_v16 }
 0x539   : > { %v4033_v8 = vmul.f32 0.0078125, %v3877_v12  ;;  %v9700_v18 = vmul.f32 %v9077_v56, %v4477_v35  ;;  %v4287_v49 = vsub.f32 %v10815_v59, %v9645_v23  ;;  %v4098_v59 = vmul.f32 %v9715_v55, %v9715_v55 }
 0x53a   : > { %v9697_v58 = vpop.xlane.xlu0 %3892 }
 0x53b   : > { %v4161_v43 = vsub.f32 %v4033_v8, %v4097_v7 }
 0x53c   : > { %v6232_v32 = vpop.eup %6231  ;;  %v3689_v46 = vpop.xlane.xlu1 %3688 }
 0x53d   : > { %v6234_v45 = vpop.eup %6233  ;;  %v4485_v15 = vmul.f32 %v6232_v32, %v4293_v9  ;;  %v4225_v21 = vmax.f32 %v4161_v43, 0.0  ;;  %v9712_v41 = vmul.f32 0.0078125, %v3689_v46  ;;  %v4104_v9 = vmul.f32 %v9728_v60, %v9728_v60 }
 0x53e   : > { %v4479_v26 = vmul.f32 %v6234_v45, %v4287_v49  ;;  %v3705_v52 = vpop.xlane.xlu0 %3704 }
 0x53f   : > { %v9719_v23 = vmul.f32 %v9077_v56, %v4485_v15  ;;  %v4353_v30 = vadd.f32 1e-05, %v4225_v21  ;;  %v4099_v39 = vmul.f32 %v9712_v41, %v9712_v41  ;;  %v9733_v42 = vmul.f32 0.0078125, %v3705_v52 }
 0x540   : > { %v4547_v22 = vmul.f32 %v9077_v56, %v4479_v26  ;;  %v3875_v37 = vpop.xlane.xlu1 %3874  ;;  %v6236_v31 = vpop.eup %6235 }
 0x541   : > { %6239 = vrsqrt.f32 %v4353_v30  ;;  %v4163_v17 = vsub.f32 %v4035_v40, %v4099_v39  ;;  %v4032_v12 = vmul.f32 0.0078125, %v3875_v37  ;;  %v4484_v7 = vmul.f32 %v6236_v31, %v4292_v13 }
 0x542   : > { %v6238_v35 = vpop.eup %6237  ;;  %v4615_v50 = vadd.f32 %v9098_v36, %v4547_v22  ;;  %v3891_v8 = vpop.xlane.xlu0 %3890  ;;  %v4107_v21 = vmul.f32 %v9733_v42, %v9733_v42  ;;  %v9747_v13 = vmul.f32 0.0078125, %v9670_v4 }
 0x543   : > { %v4478_v3 = vmul.f32 %v6238_v35, %v4286_v34  ;;  %v4227_v57 = vmax.f32 %v4163_v17, 0.0  ;;  %v4160_v16 = vsub.f32 %v4032_v12, %v4096_v47  ;;  %v9736_v1 = vmul.f32 %v9077_v56, %v4484_v7  ;;  %v10818_v7 = vld [vmem:[#allocation81_spill] sm:$0xff] }
 0x544   : > { %v4040_v43 = vmul.f32 0.0078125, %v3891_v8  ;;  %v3879_v32 = vpop.xlane.xlu1 %3878  ;;  %v4679_v15 = vmax.f32 %v4615_v50, 0.0  ;;  %v4039_v17 = vmul.f32 0.0078125, %v9678_v14 }
 0x545   : > { %v4546_v49 = vmul.f32 %v9077_v56, %v4478_v3  ;;  %v4355_v46 = vadd.f32 1e-05, %v4227_v57  ;;  %v4224_v45 = vmax.f32 %v4160_v16, 0.0  ;;  %v4034_v52 = vmul.f32 0.0078125, %v3879_v32  ;;  %v10819_v3 = vld [vmem:[#allocation79_spill] sm:$0xff] }
 0x546   : > { %v4168_v26 = vsub.f32 %v4040_v43, %v4104_v9  ;;  %v3897_v40 = vpop.xlane.xlu0 %3896  ;;  %v4743_v8 = vmul.f32 %v4679_v15, %v10818_v7  ;;  %v4102_v9 = vmul.f32 %v9747_v13, %v9747_v13  ;;  %v10820_v43 = vld [vmem:[#allocation52_spill] sm:$0xff] }
 0x547   : > { %v4614_v30 = vadd.f32 %v9098_v36, %v4546_v49  ;;  %6241 = vrsqrt.f32 %v4355_v46  ;;  %v4352_v39 = vadd.f32 1e-05, %v4224_v45  ;;  %v4043_v54 = vmul.f32 0.0078125, %v3897_v40 }
 0x548   : > { %v4232_v22 = vmax.f32 %v4168_v26, 0.0  ;;  %v4162_v6 = vsub.f32 %v4034_v52, %v4098_v59  ;;  %v3697_v34 = vpop.xlane.xlu1 %3696  ;;  %v4289_v32 = vsub.f32 %v10820_v43, %v9685_v48  ;;  %v356_v48 = vld [vmem:[#allocation5 + $0x270] sm:$0xff] }
 0x549   : > { %v4678_v37 = vmax.f32 %v4614_v30, 0.0  ;;  %6243 = vrsqrt.f32 %v4352_v39  ;;  %v4171_v31 = vsub.f32 %v4043_v54, %v4107_v21  ;;  %v9749_v47 = vmul.f32 0.0078125, %v3697_v34  ;;  %v357_v39 = vld [vmem:[#allocation5 + $0x278] sm:$0xff] }
 0x54a   : > { %v4360_v12 = vadd.f32 1e-05, %v4232_v22  ;;  %v4226_v35 = vmax.f32 %v4162_v6, 0.0  ;;  %v9752_v50 = vpop.xlane.xlu0 %3712  ;;  %5876 = vmatprep.subr.mxu0 %v357_v39 }
 0x54b   : > { %v4742_v57 = vmul.f32 %v4678_v37, %v10819_v3  ;;  %v4235_v4 = vmax.f32 %v4171_v31, 0.0  ;;  %v4103_v16 = vmul.f32 %v9749_v47, %v9749_v47  ;;  %5877 = vmatpush3.msra.mxu0 %v357_v39  ;;  %v355_v31 = vld [vmem:[#allocation5 + $0x268] sm:$0xff] }
 0x54c   : > { %6245 = vrsqrt.f32 %v4360_v12  ;;  %v4354_v14 = vadd.f32 1e-05, %v4226_v35  ;;  %v3887_v59 = vpop.xlane.xlu1 %3886  ;;  %5878 = vmatprep.subr.mxu0 %v356_v48  ;;  %v10821_v35 = vld [vmem:[#allocation47_spill] sm:$0xff] }
 0x54d   : > { %v9762_v49 = vadd.f32 %v4743_v8, %v4742_v57  ;;  %v4363_v46 = vadd.f32 1e-05, %v4235_v4  ;;  %v4167_v45 = vsub.f32 %v4039_v17, %v4103_v16  ;;  %v4038_v15 = vmul.f32 0.0078125, %v3887_v59  ;;  %5879 = vmatpush3.msra.mxu0 %v356_v48  ;;  %v354_v57 = vld [vmem:[#allocation5 + $0x260] sm:$0xff] }
 0x54e   : > { %v6240_v21 = vpop.eup %6239  ;;  %6247 = vrsqrt.f32 %v4354_v14  ;;  %v9764_v26 = vpop.xlane.xlu0 %3904  ;;  %v4041_v17 = vmul.f32 0.0078125, %v9697_v58  ;;  %v4291_v7 = vsub.f32 %v10821_v35, %v9712_v41  ;;  %5880 = vmatprep.subr.mxu0 %v355_v31  ;;  %v353_v14 = vld [vmem:[#allocation5 + $0x258] sm:$0xff] }
 0x54f   : > { %v4481_v52 = vmul.f32 %v6240_v21, %v4289_v32  ;;  %6249 = vrsqrt.f32 %v4363_v46  ;;  %v4231_v40 = vmax.f32 %v4167_v45, 0.0  ;;  %v4166_v30 = vsub.f32 %v4038_v15, %v4102_v9  ;;  %v10822_v9 = vld [vmem:[#allocation53_spill] sm:$0xff]  ;;  %5881 = vmatpush3.msra.mxu0 %v355_v31  ;;  %v10824_v35 = vld [vmem:[#allocation115_spill] sm:$0xff] }
 0x550   : > { %v3701_v54 = vpop.xlane.xlu1 %3700  ;;  %v4288_v43 = vsub.f32 %v10822_v9, %v9710_v53  ;;  %5882 = vmatprep.subr.mxu0 %v354_v57  ;;  %v350_v9 = vld [vmem:[#allocation5 + $0x240] sm:$0xff] }
 0x551   : > { %v4549_v22 = vmul.f32 %v9077_v56, %v4481_v52  ;;  %v4359_v6 = vadd.f32 1e-05, %v4231_v40  ;;  %v4230_v34 = vmax.f32 %v4166_v30, 0.0  ;;  %v9767_v37 = vmul.f32 0.0078125, %v3701_v54  ;;  %5883 = vmatpush3.msra.mxu0 %v354_v57  ;;  %v352_v52 = vld [vmem:[#allocation5 + $0x250] sm:$0xff] }
 0x552   : > { %v9770_v12 = vpop.xlane.xlu0 %3716  ;;  %v10823_v40 = vld [vmem:[#allocation122_spill] sm:$0xff]  ;;  %5884 = vmatprep.subr.mxu0 %v353_v14 }
 0x553   : > { %6251 = vrsqrt.f32 %v4359_v6  ;;  %v4358_v8 = vadd.f32 1e-05, %v4230_v34  ;;  %v4105_v3 = vmul.f32 %v9767_v37, %v9767_v37  ;;  %v4296_v53 = vsub.f32 %v10823_v40, %v9728_v60  ;;  %5885 = vmatpush3.msra.mxu0 %v353_v14 }
 0x554   : > { %v6242_v4 = vpop.eup %6241  ;;  %v3703_v16 = vpop.xlane.xlu1 %3702  ;;  %v4617_v30 = vadd.f32 %v9098_v36, %v4549_v22  ;;  %5886 = vmatprep.subr.mxu0 %v352_v52  ;;  %v10825_v22 = vld [vmem:[#allocation124_spill] sm:$0xff] }
 0x555   : > { %v4483_v58 = vmul.f32 %v6242_v4, %v4291_v7  ;;  %6253 = vrsqrt.f32 %v4358_v8  ;;  %v4169_v32 = vsub.f32 %v4041_v17, %v4105_v3  ;;  %v9778_v41 = vmul.f32 0.0078125, %v3703_v16  ;;  %v351_v17 = vld [vmem:[#allocation5 + $0x248] sm:$0xff]  ;;  %5887 = vmatpush3.msra.mxu0 %v352_v52 }
 0x556   : > { %v6244_v59 = vpop.eup %6243  ;;  %v9780_v46 = vpop.xlane.xlu0 %3714  ;;  %v4290_v7 = vsub.f32 %v10824_v35, %v9715_v55  ;;  %v4299_v57 = vsub.f32 %v10825_v22, %v9733_v42  ;;  %5888 = vmatprep.subr.mxu0 %v351_v17  ;;  %v349_v42 = vld [vmem:[#allocation5 + $0x238] sm:$0xff]  ;;  %v4620_v52 = vadd.f32 %v9098_v36, %v9736_v1  ;;  %v10828_v22 = vld [vmem:[#allocation40_spill] sm:$0xff] }
 0x557   : > { %v4551_v45 = vmul.f32 %v9077_v56, %v4483_v58  ;;  %v4480_v15 = vmul.f32 %v6244_v59, %v4288_v43  ;;  %v4233_v21 = vmax.f32 %v4169_v32, 0.0  ;;  %v4106_v34 = vmul.f32 %v9778_v41, %v9778_v41  ;;  %5889 = vmatpush3.msra.mxu0 %v351_v17  ;;  %v10827_v17 = vld [vmem:[#allocation123_spill] sm:$0xff] }
 0x558   : > { %v3895_v39 = vpop.xlane.xlu1 %3894  ;;  %v4681_v59 = vmax.f32 %v4617_v30, 0.0  ;;  %5890 = vmatprep.subr.mxu0 %v350_v9  ;;  %v10826_v30 = vld [vmem:[#allocation90_spill] sm:$0xff]  ;;  %v4294_v35 = vsub.f32 %v10827_v17, %v9747_v13  ;;  %v345_v17 = vld [vmem:[#allocation5 + $0x218] sm:$0xff] }
 0x559   : > { %v6246_v54 = vpop.eup %6245  ;;  %v4548_v48 = vmul.f32 %v9077_v56, %v4480_v15  ;;  %v4361_v6 = vadd.f32 1e-05, %v4233_v21  ;;  %v4042_v31 = vmul.f32 0.0078125, %v3895_v39  ;;  %v4619_v58 = vadd.f32 %v9098_v36, %v4551_v45  ;;  %5891 = vmatpush3.msra.mxu0 %v350_v9 }
 0x55a   : > { %v4488_v8 = vmul.f32 %v6246_v54, %v4296_v53  ;;  %v9791_v3 = vpop.xlane.xlu0 %3718  ;;  %v4621_v53 = vadd.f32 %v9098_v36, %v9719_v23  ;;  %v9804_v45 = vmul.f32 0.0078125, %v9752_v50  ;;  %5892 = vmatprep.subr.mxu0 %v349_v42  ;;  %v4684_v9 = vmax.f32 %v4620_v52, 0.0  ;;  %v10830_v52 = vld [vmem:[#allocation82_spill] sm:$0xff] }
 0x55b   : > { %v6248_v60 = vpop.eup %6247  ;;  %v4616_v4 = vadd.f32 %v9098_v36, %v4548_v48  ;;  %6255 = vrsqrt.f32 %v4361_v6  ;;  %v4170_v16 = vsub.f32 %v4042_v31, %v4106_v34  ;;  %v4295_v34 = vsub.f32 %v9032_v63, %v9749_v47  ;;  %v348_v31 = vld [vmem:[#allocation5 + $0x230] sm:$0xff]  ;;  %5893 = vmatpush3.msra.mxu0 %v349_v42  ;;  %v347_v63 = vld [vmem:[#allocation5 + $0x228] sm:$0xff] }
 0x55c   : > { %v6250_v43 = vpop.eup %6249  ;;  %v4556_v32 = vmul.f32 %v9077_v56, %v4488_v8  ;;  %v4482_v55 = vmul.f32 %v6248_v60, %v4290_v7  ;;  %v3709_v14 = vpop.xlane.xlu1 %3708  ;;  %v4683_v50 = vmax.f32 %v4619_v58, 0.0  ;;  %v4047_v8 = vmul.f32 0.0078125, %v9764_v26  ;;  %5894 = vmatprep.subr.mxu0 %v348_v31 }
 0x55d   : > { %v4680_v15 = vmax.f32 %v4616_v4, 0.0  ;;  %v4491_v21 = vmul.f32 %v6250_v43, %v4299_v57  ;;  %v4234_v40 = vmax.f32 %v4170_v16, 0.0  ;;  %v4745_v57 = vmul.f32 %v4681_v59, %v10828_v22  ;;  %5895 = vmatpush3.msra.mxu0 %v348_v31  ;;  %v10831_v31 = vld [vmem:[#allocation91_spill] sm:$0xff]  ;;  %v10832_v22 = vld [vmem:[#allocation41_spill] sm:$0xff] }
 0x55e   : > { %v4550_v39 = vmul.f32 %v9077_v56, %v4482_v55  ;;  %v9806_v54 = vpop.xlane.xlu0 %3910  ;;  %v4111_v13 = vmul.f32 %v9804_v45, %v9804_v45  ;;  %v9822_v58 = vmul.f32 0.0078125, %v3709_v14  ;;  %v4685_v26 = vmax.f32 %v4621_v53, 0.0  ;;  %5896 = vmatprep.subr.mxu0 %v347_v63 }
 0x55f   : > { %v4744_v48 = vmul.f32 %v4680_v15, %v10826_v30  ;;  %v9810_v6 = vmul.f32 %v9077_v56, %v4491_v21  ;;  %v4362_v23 = vadd.f32 1e-05, %v4234_v40  ;;  %v346_v21 = vld [vmem:[#allocation5 + $0x220] sm:$0xff]  ;;  %v10829_v40 = vld [vmem:[#allocation83_spill] sm:$0xff]  ;;  %5897 = vmatpush3.msra.mxu0 %v347_v63  ;;  %v344_v63 = vld [vmem:[#allocation5 + $0x210] sm:$0xff] }
 0x560   : > { %v6252_v1 = vpop.eup %6251  ;;  %v4618_v7 = vadd.f32 %v9098_v36, %v4550_v39  ;;  %v3707_v60 = vpop.xlane.xlu1 %3706  ;;  %v4747_v42 = vmul.f32 %v4683_v50, %v10829_v40  ;;  %v4175_v30 = vsub.f32 %v4047_v8, %v4111_v13  ;;  %v9838_v50 = vmul.f32 0.0078125, %v9791_v3  ;;  %5898 = vmatprep.subr.mxu0 %v346_v21 }
 0x561   : > { %v4847_v4 = vadd.f32 %v9762_v49, %v4744_v48  ;;  %v4487_v16 = vmul.f32 %v6252_v1, %v4295_v34  ;;  %6257 = vrsqrt.f32 %v4362_v23  ;;  %v4624_v48 = vadd.f32 %v9098_v36, %v4556_v32  ;;  %5899 = vmatpush3.msra.mxu0 %v346_v21 }
 0x562   : > { %v6254_v47 = vpop.eup %6253  ;;  %v4682_v43 = vmax.f32 %v4618_v7, 0.0  ;;  %v9824_v55 = vpop.xlane.xlu0 %3722  ;;  %v9834_v23 = vmul.f32 0.0078125, %v3707_v60  ;;  %v4109_v32 = vmul.f32 %v9822_v58, %v9822_v58  ;;  %v4297_v60 = vsub.f32 %v9067_v25, %v9767_v37  ;;  %5900 = vmatprep.subr.mxu0 %v345_v17 }
 0x563   : > { %v9826_v15 = vadd.f32 %v4847_v4, %v4745_v57  ;;  %v4555_v49 = vmul.f32 %v9077_v56, %v4487_v16  ;;  %v4486_v59 = vmul.f32 %v6254_v47, %v4294_v35  ;;  %v4748_v35 = vmul.f32 %v4684_v9, %v10831_v31  ;;  %5901 = vmatpush3.msra.mxu0 %v345_v17  ;;  %v342_v17 = vld [vmem:[#allocation5 + $0x200] sm:$0xff] }
 0x564   : > { %v4746_v39 = vmul.f32 %v4682_v43, %v10830_v52  ;;  %v3901_v14 = vpop.xlane.xlu1 %3900  ;;  %v4749_v57 = vmul.f32 %v4685_v26, %v10832_v22  ;;  %v4239_v3 = vmax.f32 %v4175_v30, 0.0  ;;  %v4688_v43 = vmax.f32 %v4624_v48, 0.0  ;;  %v343_v52 = vld [vmem:[#allocation5 + $0x208] sm:$0xff]  ;;  %5902 = vmatprep.subr.mxu0 %v344_v63  ;;  %v10833_v48 = vld [vmem:[#allocation86_spill] sm:$0xff] }
 0x565   : > { %v4623_v34 = vadd.f32 %v9098_v36, %v4555_v49  ;;  %v4554_v53 = vmul.f32 %v9077_v56, %v4486_v59  ;;  %v4045_v1 = vmul.f32 0.0078125, %v3901_v14  ;;  %v4108_v26 = vmul.f32 %v9834_v23, %v9834_v23  ;;  %5903 = vmatpush3.msra.mxu0 %v344_v63 }
 0x566   : > { %v4855_v7 = vadd.f32 %v4747_v42, %v4746_v39  ;;  %v9842_v8 = vpop.xlane.xlu0 %3728  ;;  %v4298_v25 = vsub.f32 %v9108_v61, %v9778_v41  ;;  %v4114_v37 = vmul.f32 %v9838_v50, %v9838_v50  ;;  %v4050_v21 = vmul.f32 0.0078125, %v9806_v54  ;;  %v10835_v41 = vld [vmem:[#allocation37_spill] sm:$0xff]  ;;  %5904 = vmatprep.subr.mxu0 %v343_v52 }
 0x567   : > { %v4687_v4 = vmax.f32 %v4623_v34, 0.0  ;;  %v4622_v16 = vadd.f32 %v9098_v36, %v4554_v53  ;;  %v4173_v13 = vsub.f32 %v4045_v1, %v4109_v32  ;;  %v10834_v53 = vld [vmem:[#allocation85_spill] sm:$0xff]  ;;  %v4627_v61 = vadd.f32 %v9098_v36, %v9810_v6  ;;  %5905 = vmatpush3.msra.mxu0 %v343_v52 }
 0x568   : > { %v6256_v47 = vpop.eup %6255  ;;  %v4856_v9 = vadd.f32 %v4855_v7, %v4748_v35  ;;  %v3899_v49 = vpop.xlane.xlu1 %3898  ;;  %v4752_v35 = vmul.f32 %v4688_v43, %v10835_v41  ;;  %v4178_v63 = vsub.f32 %v4050_v21, %v4114_v37  ;;  %5906 = vmatprep.subr.mxu0 %v342_v17  ;;  %v4849_v6 = vrot.slane %v9826_v15, 4 }
 0x569   : > { %v4489_v59 = vmul.f32 %v6256_v47, %v4297_v60  ;;  %v4686_v40 = vmax.f32 %v4622_v16, 0.0  ;;  %v4044_v42 = vmul.f32 0.0078125, %v3899_v49  ;;  %v4237_v39 = vmax.f32 %v4173_v13, 0.0  ;;  %5907 = vmatpush3.msra.mxu0 %v342_v17 }
 0x56a   : > { %v3915_v30 = vpop.xlane.xlu0 %3914  ;;  %v4751_v14 = vmul.f32 %v4687_v4, %v10833_v48  ;;  %v4857_v54 = vadd.f32 %v4856_v9, %v4749_v57  ;;  %v9863_v4 = vmul.f32 0.0078125, %v9824_v55 }
 0x56b   : > { %v4557_v34 = vmul.f32 %v9077_v56, %v4489_v59  ;;  %v4750_v1 = vmul.f32 %v4686_v40, %v10834_v53  ;;  %v4172_v31 = vsub.f32 %v4044_v42, %v4108_v26  ;;  %v4365_v7 = vadd.f32 1e-05, %v4237_v39  ;;  %v10836_v42 = vld [vmem:[#allocation107_spill] sm:$0xff] }
 0x56c   : > { %v3711_v32 = vpop.xlane.xlu1 %3710  ;;  %v4052_v13 = vmul.f32 0.0078125, %v3915_v30  ;;  %v4367_v40 = vadd.f32 1e-05, %v4239_v3  ;;  %v4116_v21 = vmul.f32 %v9863_v4, %v9863_v4  ;;  %v4691_v39 = vmax.f32 %v4627_v61, 0.0 }
 0x56d   : > { %v4625_v22 = vadd.f32 %v9098_v36, %v4557_v34  ;;  %v4864_v60 = vadd.f32 %v4751_v14, %v4750_v1  ;;  %v4236_v16 = vmax.f32 %v4172_v31, 0.0  ;;  %6259 = vrsqrt.f32 %v4365_v7 }
 0x56e   : > { %v6258_v47 = vpop.eup %6257  ;;  %v9865_v49 = vpop.xlane.xlu0 %3918  ;;  %v9868_v26 = vmul.f32 0.0078125, %v3711_v32  ;;  %v4242_v30 = vmax.f32 %v4178_v63, 0.0  ;;  %v4180_v53 = vsub.f32 %v4052_v13, %v4116_v21  ;;  %v4850_v1 = vadd.f32 %v4849_v6, %v9826_v15 }
 0x56f   : > { %v4689_v43 = vmax.f32 %v4625_v22, 0.0  ;;  %v4865_v59 = vadd.f32 %v4864_v60, %v4752_v35  ;;  %v4490_v57 = vmul.f32 %v6258_v47, %v4298_v25  ;;  %v4364_v9 = vadd.f32 1e-05, %v4236_v16  ;;  %v10837_v60 = vld [vmem:[#allocation95_spill] sm:$0xff]  ;;  %v10838_v47 = vld [vmem:[#allocation92_spill] sm:$0xff] }
 0x570   : > { %v3903_v55 = vpop.xlane.xlu1 %3902  ;;  %v4858_v25 = vrot.slane %v4857_v54, 4  ;;  %v4110_v31 = vmul.f32 %v9868_v26, %v9868_v26  ;;  %v4370_v61 = vadd.f32 1e-05, %v4242_v30  ;;  %v4755_v16 = vmul.f32 %v4691_v39, %v10837_v60 }
 0x571   : > { %v4753_v52 = vmul.f32 %v4689_v43, %v10836_v42  ;;  %v4558_v37 = vmul.f32 %v9077_v56, %v4490_v57  ;;  %6261 = vrsqrt.f32 %v4364_v9  ;;  %v4046_v48 = vmul.f32 0.0078125, %v3903_v55 }
 0x572   : > { %v9874_v14 = vpop.xlane.xlu0 %3732  ;;  %v4859_v41 = vadd.f32 %v4858_v25, %v4857_v54  ;;  %6263 = vrsqrt.f32 %v4367_v40  ;;  %v4244_v43 = vmax.f32 %v4180_v53, 0.0  ;;  %v4851_v13 = vrot.slane %v4850_v1, 2 }
 0x573   : > { %v4866_v34 = vadd.f32 %v4865_v59, %v4753_v52  ;;  %v4626_v3 = vadd.f32 %v9098_v36, %v4558_v37  ;;  %v4174_v32 = vsub.f32 %v4046_v48, %v4110_v31  ;;  %v9885_v15 = vmul.f32 0.0078125, %v9770_v12 }
 0x574   : > { %v3909_v17 = vpop.xlane.xlu1 %3908  ;;  %v4860_v57 = vrot.slane %v4859_v41, 2  ;;  %v9888_v54 = vmul.f32 0.0078125, %v9780_v46  ;;  %v4301_v40 = vsub.f32 %v9136_v5, %v9822_v58  ;;  %6265 = vrsqrt.f32 %v4370_v61 }
 0x575   : > { %v4867_v35 = vrot.slane %v4866_v34, 4  ;;  %v4690_v7 = vmax.f32 %v4626_v3, 0.0  ;;  %v4238_v55 = vmax.f32 %v4174_v32, 0.0  ;;  %v4049_v42 = vmul.f32 0.0078125, %v3909_v17 }
 0x576   : > { %v9880_v22 = vpop.xlane.xlu0 %3924  ;;  %v4372_v21 = vadd.f32 1e-05, %v4244_v43  ;;  %v9898_v12 = vadd.f32 %v9098_v36, %v9692_v44  ;;  %v4852_v39 = vadd.f32 %v4851_v13, %v4850_v1  ;;  %v4113_v46 = vmul.f32 %v9885_v15, %v9885_v15 }
 0x577   : > { %v4754_v63 = vmul.f32 %v4690_v7, %v10838_v47  ;;  %v4868_v59 = vadd.f32 %v4867_v35, %v4866_v34  ;;  %v4861_v34 = vadd.f32 %v4860_v57, %v4859_v41  ;;  %v4112_v5 = vmul.f32 %v9888_v54, %v9888_v54 }
 0x578   : > { %v3721_v6 = vpop.xlane.xlu1 %3720  ;;  %v4300_v58 = vsub.f32 %v9152_v19, %v9834_v23  ;;  %v9910_v44 = vadd.f32 %v9098_v36, %v9700_v18  ;;  %v4366_v31 = vadd.f32 1e-05, %v4238_v55  ;;  %v4177_v17 = vsub.f32 %v4049_v42, %v4113_v46 }
 0x579   : > { %v9890_v9 = vadd.f32 %v4755_v16, %v4754_v63  ;;  %v4869_v30 = vrot.slane %v4868_v59, 2  ;;  %v9906_v3 = vmul.f32 0.0078125, %v3721_v6  ;;  %6267 = vrsqrt.f32 %v4372_v21 }
 0x57a   : > { %v9894_v52 = vpop.xlane.xlu0 %3736  ;;  %v6260_v37 = vpop.eup %6259  ;;  %v4853_v61 = vrot.slane %v4852_v39, 1  ;;  %v4862_v16 = vrot.slane %v4861_v34, 1  ;;  %v4676_v43 = vmax.f32 %v9898_v12, 0.0  ;;  %6269 = vrsqrt.f32 %v4366_v31 }
 0x57b   : > { %v4493_v48 = vmul.f32 %v6260_v37, %v4301_v40  ;;  %v4870_v32 = vadd.f32 %v4869_v30, %v4868_v59  ;;  %v4115_v47 = vmul.f32 %v9906_v3, %v9906_v3  ;;  %v4241_v13 = vmax.f32 %v4177_v17, 0.0 }
 0x57c   : > { %v3907_v25 = vpop.xlane.xlu1 %3906  ;;  %v4677_v40 = vmax.f32 %v9910_v44, 0.0  ;;  %v9923_v42 = vmul.f32 0.0078125, %v9874_v14  ;;  %v4863_v21 = vadd.f32 %v4862_v16, %v4861_v34 }
 0x57d   : > { %v4561_v1 = vmul.f32 %v9077_v56, %v4493_v48  ;;  %v4048_v35 = vmul.f32 0.0078125, %v3907_v25  ;;  %v4871_v30 = vrot.slane %v4870_v32, 1 }
 0x57e   : > { %v6262_v53 = vpop.eup %6261  ;;  %v9913_v7 = vpop.xlane.xlu0 %3922 }
 0x57f   : > { %v4492_v41 = vmul.f32 %v6262_v53, %v4300_v58  ;;  %v4629_v19 = vadd.f32 %v9098_v36, %v4561_v1  ;;  %v4176_v23 = vsub.f32 %v4048_v35, %v4112_v5  ;;  %v6264_v59 = vpop.eup %6263  ;;  %v4854_v5 = vadd.f32 %v4853_v61, %v4852_v39  ;;  %v10839_v58 = vld [vmem:[#allocation127_spill] sm:$0xff] }
 0x580   : > { %v3913_v60 = vpop.xlane.xlu1 %3912  ;;  %v4303_v53 = vsub.f32 %v10839_v58, %v9804_v45  ;;  %v4369_v35 = vadd.f32 1e-05, %v4241_v13  ;;  %v4872_v45 = vadd.f32 %v4871_v30, %v4870_v32  ;;  %v9944_v32 = vmul.f32 0.0078125, %v9894_v52  ;;  %v10844_v58 = vld [vmem:[#allocation130_spill] sm:$0xff] }
 0x581   : > { %v4560_v18 = vmul.f32 %v9077_v56, %v4492_v41  ;;  %v4051_v63 = vmul.f32 0.0078125, %v3913_v60  ;;  %v4240_v6 = vmax.f32 %v4176_v23, 0.0  ;;  %v4693_v46 = vmax.f32 %v4629_v19, 0.0  ;;  %v6266_v34 = vpop.eup %6265  ;;  %v10840_v60 = vld [vmem:[#allocation25_spill] sm:$0xff] }
 0x582   : > { %v3929_v57 = vpop.xlane.xlu0 %3928  ;;  %v4057_v41 = vmul.f32 0.0078125, %v9880_v22  ;;  %v4948_v23 = vsel %vm4934_vm6, %v4863_v21, %v4854_v5  ;;  %v4306_v19 = vsub.f32 %v9252_v11, %v9838_v50  ;;  %v4495_v16 = vmul.f32 %v6264_v59, %v4303_v53 }
 0x583   : > { %v4628_v55 = vadd.f32 %v9098_v36, %v4560_v18  ;;  %v4179_v37 = vsub.f32 %v4051_v63, %v4115_v47  ;;  %v4368_v48 = vadd.f32 1e-05, %v4240_v6  ;;  %v10841_v18 = vld [vmem:[#allocation117_spill] sm:$0xff]  ;;  %v9936_v63 = vmul.f32 0.0078125, %v9842_v8  ;;  %v10842_v8 = vld [vmem:[#allocation128_spill] sm:$0xff] }
 0x584   : > { %v3725_v25 = vpop.xlane.xlu1 %3724  ;;  %v4757_v47 = vmul.f32 %v4693_v46, %v10841_v18  ;;  %v4121_v22 = vmul.f32 %v9923_v42, %v9923_v42  ;;  %v4305_v21 = vsub.f32 %v10842_v8, %v9885_v15  ;;  %v4563_v46 = vmul.f32 %v9077_v56, %v4495_v16 }
 0x585   : > { %v4692_v1 = vmax.f32 %v4628_v55, 0.0  ;;  %v4243_v31 = vmax.f32 %v4179_v37, 0.0  ;;  %v9927_v17 = vmul.f32 0.0078125, %v3725_v25  ;;  %6271 = vrsqrt.f32 %v4368_v48  ;;  %v10843_v25 = vld [vmem:[#allocation131_spill] sm:$0xff] }
 0x586   : > { %v3739_v14 = vpop.xlane.xlu0 %3738  ;;  %v4185_v55 = vsub.f32 %v4057_v41, %v4121_v22  ;;  %v4498_v37 = vmul.f32 %v6266_v34, %v4306_v19  ;;  %v4304_v5 = vsub.f32 %v10843_v25, %v9888_v54  ;;  %v4308_v53 = vsub.f32 %v10844_v58, %v9863_v4  ;;  %v10845_v41 = vld [vmem:[#allocation129_spill] sm:$0xff] }
 0x587   : > { %v4756_v39 = vmul.f32 %v4692_v1, %v10840_v60  ;;  %v4371_v61 = vadd.f32 1e-05, %v4243_v31  ;;  %v4117_v11 = vmul.f32 %v9927_v17, %v9927_v17  ;;  %v4059_v1 = vmul.f32 0.0078125, %v3929_v57 }
 0x588   : > { %v3917_v13 = vpop.xlane.xlu1 %3916  ;;  %v9954_v52 = vsel %vm4936_vm7, %v4872_v45, %v4948_v23  ;;  %v4302_v34 = vsub.f32 %v10845_v41, %v9868_v26  ;;  %v4249_v54 = vmax.f32 %v4185_v55, 0.0  ;;  %v4123_v4 = vmul.f32 %v9944_v32, %v9944_v32 }
 0x589   : > { %v4874_v6 = vadd.f32 %v9890_v9, %v4756_v39  ;;  %6273 = vrsqrt.f32 %v4371_v61  ;;  %v4053_v50 = vmul.f32 0.0078125, %v3917_v13  ;;  %v6268_v9 = vpop.eup %6267  ;;  %v4054_v39 = vmul.f32 0.0078125, %v9865_v49 }
 0x58a   : > { %6275 = vrsqrt.f32 %v4369_v35  ;;  %v3931_v59 = vpop.xlane.xlu0 %3930  ;;  %v4119_v35 = vmul.f32 %v9936_v63, %v9936_v63  ;;  %v4566_v61 = vmul.f32 %v9077_v56, %v4498_v37  ;;  %v6270_v23 = vpop.eup %6269  ;;  %v9969_v18 = vadd.f32 %v9098_v36, %v4563_v46 }
 0x58b   : > { %v4181_v30 = vsub.f32 %v4053_v50, %v4117_v11  ;;  %v4875_v48 = vadd.f32 %v4874_v6, %v4757_v47  ;;  %v4187_v47 = vsub.f32 %v4059_v1, %v4123_v4  ;;  %v9971_v22 = vmul.f32 0.0078125, %v3739_v14 }
 0x58c   : > { %v3727_v31 = vpop.xlane.xlu1 %3726  ;;  %v4500_v6 = vmul.f32 %v6268_v9, %v4308_v53  ;;  %v4307_v11 = vsub.f32 %v9219_v29, %v9906_v3  ;;  %v4377_v37 = vadd.f32 1e-05, %v4249_v54  ;;  %v9981_v25 = vadd.f32 %v9098_v36, %v4566_v61 }
 0x58d   : > { %v4245_v19 = vmax.f32 %v4181_v30, 0.0  ;;  %v9960_v60 = vmul.f32 0.0078125, %v3727_v31  ;;  %v4876_v26 = vrot.slane %v4875_v48, 4  ;;  %v4494_v14 = vmul.f32 %v6270_v23, %v4302_v34 }
 0x58e   : > { %v581_v57 = vpop.permute.xlu0 %580  ;;  %v4060_v12 = vmul.f32 0.0078125, %v3931_v59  ;;  %v4251_v53 = vmax.f32 %v4187_v47, 0.0  ;;  %v4124_v29 = vmul.f32 %v9971_v22, %v9971_v22  ;;  %v4568_v31 = vmul.f32 %v9077_v56, %v4500_v6 }
 0x58f   : > { %v4373_v16 = vadd.f32 1e-05, %v4245_v19  ;;  %v4118_v45 = vmul.f32 %v9960_v60, %v9960_v60  ;;  %v4740_v49 = vmul.f32 %v4676_v43, %v581_v57  ;;  %v4877_v9 = vadd.f32 %v4876_v26, %v4875_v48 }
 0x590   : > { %v3921_v13 = vpop.xlane.xlu1 %3920  ;;  %v4056_v59 = vmul.f32 0.0078125, %v9913_v7  ;;  %v4562_v34 = vmul.f32 %v9077_v56, %v4494_v14  ;;  %v4188_v61 = vsub.f32 %v4060_v12, %v4124_v29  ;;  %v4309_v14 = vsub.f32 %v9259_v0, %v9927_v17 }
 0x591   : > { %6277 = vrsqrt.f32 %v4373_v16  ;;  %v4182_v50 = vsub.f32 %v4054_v39, %v4118_v45  ;;  %v4055_v55 = vmul.f32 0.0078125, %v3921_v13  ;;  %v4838_v30 = vadd.f32 %v9689_v51, %v4740_v49 }
 0x592   : > { %v9978_v46 = vpop.permute.xlu0 %713  ;;  %v6272_v58 = vpop.eup %6271  ;;  %v4878_v54 = vrot.slane %v4877_v9, 2  ;;  %6279 = vrsqrt.f32 %v4377_v37  ;;  %v4379_v16 = vadd.f32 1e-05, %v4251_v53  ;;  %v4636_v13 = vadd.f32 %v9098_v36, %v4568_v31 }
 0x593   : > { %v4246_v43 = vmax.f32 %v4182_v50, 0.0  ;;  %v4183_v1 = vsub.f32 %v4055_v55, %v4119_v35  ;;  %v4496_v41 = vmul.f32 %v6272_v58, %v4304_v5  ;;  %v4698_v35 = vmax.f32 %v9981_v25, 0.0 }
 0x594   : > { %v3731_v3 = vpop.xlane.xlu1 %3730  ;;  %v4879_v49 = vadd.f32 %v4878_v54, %v4877_v9  ;;  %v4630_v37 = vadd.f32 %v9098_v36, %v4562_v34  ;;  %v4252_v58 = vmax.f32 %v4188_v61, 0.0  ;;  %v4700_v54 = vmax.f32 %v4636_v13, 0.0  ;;  %v10847_v61 = vld [vmem:[#allocation42_spill] sm:$0xff] }
 0x595   : > { %v4374_v51 = vadd.f32 1e-05, %v4246_v43  ;;  %v4247_v19 = vmax.f32 %v4183_v1, 0.0  ;;  %v9986_v39 = vmul.f32 0.0078125, %v3731_v3  ;;  %v4564_v47 = vmul.f32 %v9077_v56, %v4496_v41 }
 0x596   : > { %v6274_v4 = vpop.eup %6273  ;;  %v9990_v48 = vpop.permute.xlu0 %698  ;;  %v4694_v31 = vmax.f32 %v4630_v37, 0.0  ;;  %v4380_v41 = vadd.f32 1e-05, %v4252_v58 }
 0x597   : > { %v6276_v57 = vpop.eup %6275  ;;  %6281 = vrsqrt.f32 %v4374_v51  ;;  %v4375_v23 = vadd.f32 1e-05, %v4247_v19  ;;  %v4120_v5 = vmul.f32 %v9986_v39, %v9986_v39  ;;  %v4499_v45 = vmul.f32 %v6274_v4, %v4307_v11  ;;  %v10846_v4 = vld [vmem:[#allocation108_spill] sm:$0xff] }
 0x598   : > { %v3735_v26 = vpop.xlane.xlu1 %3734  ;;  %v4497_v25 = vmul.f32 %v6276_v57, %v4305_v21  ;;  %v4880_v11 = vrot.slane %v4879_v49, 1  ;;  %v4632_v53 = vadd.f32 %v9098_v36, %v4564_v47  ;;  %v10848_v47 = vld [vmem:[#allocation38_spill] sm:$0xff] }
 0x599   : > { %6283 = vrsqrt.f32 %v4375_v23  ;;  %v4184_v7 = vsub.f32 %v4056_v59, %v4120_v5  ;;  %v9997_v6 = vmul.f32 0.0078125, %v3735_v26  ;;  %v4567_v50 = vmul.f32 %v9077_v56, %v4499_v45 }
 0x59a   : > { %v585_v55 = vpop.permute.xlu0 %584  ;;  %6285 = vrsqrt.f32 %v4379_v16  ;;  %v4881_v29 = vadd.f32 %v4880_v11, %v4879_v49  ;;  %v4565_v44 = vmul.f32 %v9077_v56, %v4497_v25  ;;  %v4762_v23 = vmul.f32 %v4698_v35, %v10847_v61  ;;  %v10849_v35 = vld [vmem:[#allocation133_spill] sm:$0xff]  ;;  %v10850_v25 = vld [vmem:[#allocation119_spill] sm:$0xff] }
 0x59b   : > { %v4248_v12 = vmax.f32 %v4184_v7, 0.0  ;;  %v4741_v43 = vmul.f32 %v4677_v40, %v585_v55  ;;  %v4635_v1 = vadd.f32 %v9098_v36, %v4567_v50  ;;  %v4122_v15 = vmul.f32 %v9997_v6, %v9997_v6 }
 0x59c   : > { %v3927_v9 = vpop.xlane.xlu1 %3926  ;;  %v10017_v40 = vsel %vm4938_vm8, %v4881_v29, %v9954_v52  ;;  %v4696_v16 = vmax.f32 %v4632_v53, 0.0  ;;  %v4310_v52 = vsub.f32 %v9296_v24, %v9960_v60  ;;  %v4633_v26 = vadd.f32 %v9098_v36, %v4565_v44  ;;  %v10851_v24 = vld [vmem:[#allocation23_spill] sm:$0xff] }
 0x59d   : > { %v4376_v3 = vadd.f32 1e-05, %v4248_v12  ;;  %v10012_v8 = vadd.f32 %v4838_v30, %v4741_v43  ;;  %v4058_v21 = vmul.f32 0.0078125, %v3927_v9  ;;  %v4699_v17 = vmax.f32 %v4635_v1, 0.0  ;;  %v10852_v43 = vld [vmem:[#allocation12_spill] sm:$0xff] }
 0x59e   : > { %v6278_v0 = vpop.eup %6277  ;;  %v4695_v30 = vmax.f32 %v9969_v18, 0.0  ;;  %v4758_v49 = vmul.f32 %v4694_v31, %v10848_v47  ;;  %v4311_v37 = vsub.f32 %v10849_v35, %v9936_v63  ;;  %v4764_v11 = vmul.f32 %v4700_v54, %v10850_v25  ;;  %v10853_v31 = vld [vmem:[#allocation132_spill] sm:$0xff] }
 0x59f   : > { %6287 = vrsqrt.f32 %v4376_v3  ;;  %v4501_v51 = vmul.f32 %v6278_v0, %v4309_v14  ;;  %v4186_v19 = vsub.f32 %v4058_v21, %v4122_v15  ;;  %v4763_v59 = vmul.f32 %v4699_v17, %v10846_v4  ;;  %v6280_v7 = vpop.eup %6279 }
 0x5a0   : > { %v3741_v34 = vpop.xlane.xlu1 %3740  ;;  %6289 = vrsqrt.f32 %v4380_v41  ;;  %v4759_v60 = vmul.f32 %v4695_v30, %v10851_v24  ;;  %v4760_v1 = vmul.f32 %v4696_v16, %v10852_v43  ;;  %v4697_v3 = vmax.f32 %v4633_v26, 0.0 }
 0x5a1   : > { %v4569_v57 = vmul.f32 %v9077_v56, %v4501_v51  ;;  %v4250_v5 = vmax.f32 %v4186_v19, 0.0  ;;  %v10025_v45 = vmul.f32 0.0078125, %v3741_v34  ;;  %v4891_v18 = vadd.f32 %v4763_v59, %v4762_v23 }
 0x5a2   : > { %v4609_v15 = vadd.f32 %v9098_v36, %v9596_v28  ;;  %v4882_v0 = vadd.f32 %v4759_v60, %v4758_v49  ;;  %v4313_v44 = vsub.f32 %v10853_v31, %v9923_v42  ;;  %v4840_v51 = vrot.slane %v10012_v8, 4  ;;  %v10855_v31 = vld [vmem:[#allocation112_spill] sm:$0xff] }
 0x5a3   : > { %v4637_v13 = vadd.f32 %v9098_v36, %v4569_v57  ;;  %v4378_v50 = vadd.f32 1e-05, %v4250_v5  ;;  %v4125_v53 = vmul.f32 %v10025_v45, %v10025_v45  ;;  %v4892_v63 = vadd.f32 %v4891_v18, %v4764_v11 }
 0x5a4   : > { %v6282_v55 = vpop.eup %6281  ;;  %v3933_v14 = vpop.xlane.xlu1 %3932  ;;  %v4883_v30 = vadd.f32 %v4882_v0, %v4760_v1  ;;  %v4673_v61 = vmax.f32 %v4609_v15, 0.0  ;;  %v4312_v23 = vsub.f32 %v9356_v2, %v9986_v39  ;;  %v4315_v26 = vsub.f32 %v9391_v62, %v9944_v32  ;;  %v10854_v15 = vld [vmem:[#allocation29_spill] sm:$0xff] }
 0x5a5   : > { %v4502_v58 = vmul.f32 %v6282_v55, %v4310_v52  ;;  %v4701_v12 = vmax.f32 %v4637_v13, 0.0  ;;  %6291 = vrsqrt.f32 %v4378_v50  ;;  %v4061_v29 = vmul.f32 0.0078125, %v3933_v14 }
 0x5a6   : > { %v6284_v9 = vpop.eup %6283  ;;  %v4841_v49 = vadd.f32 %v4840_v51, %v10012_v8  ;;  %v4316_v8 = vsub.f32 %v9425_v33, %v9971_v22  ;;  %v4314_v60 = vsub.f32 %v9545_v20, %v9997_v6 }
 0x5a7   : > { %v4765_v21 = vmul.f32 %v4701_v12, %v9990_v48  ;;  %v4503_v17 = vmul.f32 %v6284_v9, %v4311_v37  ;;  %v4570_v41 = vmul.f32 %v9077_v56, %v4502_v58  ;;  %v4189_v19 = vsub.f32 %v4061_v29, %v4125_v53  ;;  %v6286_v4 = vpop.eup %6285 }
 0x5a8   : > { %v680_v54 = vpop.permute.xlu1 %679  ;;  %v4505_v48 = vmul.f32 %v6280_v7, %v4313_v44  ;;  %v4507_v2 = vmul.f32 %v6286_v4, %v4315_v26  ;;  %v4842_v58 = vrot.slane %v4841_v49, 2 }
 0x5a9   : > { %v4893_v59 = vadd.f32 %v4892_v63, %v4765_v21  ;;  %v4761_v34 = vmul.f32 %v4697_v3, %v680_v54  ;;  %v4571_v28 = vmul.f32 %v9077_v56, %v4503_v17  ;;  %v4253_v57 = vmax.f32 %v4189_v19, 0.0 }
 0x5aa   : > { %v4638_v47 = vadd.f32 %v9098_v36, %v4570_v41  ;;  %v4573_v39 = vmul.f32 %v9077_v56, %v4505_v48  ;;  %v4575_v3 = vmul.f32 %v9077_v56, %v4507_v2  ;;  %v4843_v20 = vadd.f32 %v4842_v58, %v4841_v49  ;;  %v10856_v2 = vld [vmem:[#allocation49_spill] sm:$0xff] }
 0x5ab   : > { %v4894_v5 = vrot.slane %v4893_v59, 4  ;;  %v4884_v42 = vadd.f32 %v4883_v30, %v4761_v34  ;;  %v4639_v16 = vadd.f32 %v9098_v36, %v4571_v28  ;;  %v4381_v13 = vadd.f32 1e-05, %v4253_v57 }
 0x5ac   : > { %v6288_v52 = vpop.eup %6287  ;;  %v566_v18 = vpop.permute.xlu1 %565  ;;  %v4702_v24 = vmax.f32 %v4638_v47, 0.0  ;;  %v4643_v4 = vadd.f32 %v9098_v36, %v4575_v3 }
 0x5ad   : > { %v4504_v50 = vmul.f32 %v6288_v52, %v4312_v23  ;;  %v4895_v55 = vadd.f32 %v4894_v5, %v4893_v59  ;;  %v4885_v7 = vrot.slane %v4884_v42, 4  ;;  %v4737_v35 = vmul.f32 %v4673_v61, %v566_v18  ;;  %v6290_v32 = vpop.eup %6289 }
 0x5ae   : > { %6293 = vrsqrt.f32 %v4381_v13  ;;  %v4703_v37 = vmax.f32 %v4639_v16, 0.0  ;;  %v4508_v0 = vmul.f32 %v6290_v32, %v4316_v8  ;;  %v4766_v44 = vmul.f32 %v4702_v24, %v10855_v31  ;;  %v10858_v31 = vld [vmem:[#allocation71_spill] sm:$0xff] }
 0x5af   : > { %v4572_v25 = vmul.f32 %v9077_v56, %v4504_v50  ;;  %v4896_v11 = vrot.slane %v4895_v55, 2  ;;  %v4886_v14 = vadd.f32 %v4885_v7, %v4884_v42  ;;  %v4830_v62 = vadd.f32 %v9676_v10, %v4737_v35 }
 0x5b0   : > { %v733_v12 = vpop.permute.xlu1 %732  ;;  %v4641_v10 = vadd.f32 %v9098_v36, %v4573_v39  ;;  %v4767_v63 = vmul.f32 %v4703_v37, %v10854_v15  ;;  %v4576_v48 = vmul.f32 %v9077_v56, %v4508_v0  ;;  %v4844_v16 = vrot.slane %v4843_v20, 1 }
 0x5b1   : > { %v4640_v43 = vadd.f32 %v9098_v36, %v4572_v25  ;;  %v4897_v1 = vadd.f32 %v4896_v11, %v4895_v55  ;;  %v4887_v9 = vrot.slane %v4886_v14, 2  ;;  %v4831_v53 = vrot.slane %v4830_v62, 4 }
 0x5b2   : > { %v6292_v29 = vpop.eup %6291  ;;  %v4705_v59 = vmax.f32 %v4641_v10, 0.0  ;;  %v4900_v30 = vadd.f32 %v4767_v63, %v4766_v44  ;;  %v4707_v49 = vmax.f32 %v4643_v4, 0.0  ;;  %v4644_v55 = vadd.f32 %v9098_v36, %v4576_v48  ;;  %v371_v4 = vld [vmem:[#allocation5 + $0x2e8] sm:$0xff]  ;;  %v364_v48 = vld [vmem:[#allocation5 + $0x2b0] sm:$0xff] }
 0x5b3   : > { %v4888_v21 = vadd.f32 %v4887_v9, %v4886_v14  ;;  %v4832_v33 = vadd.f32 %v4831_v53, %v4830_v62  ;;  %v4506_v22 = vmul.f32 %v6292_v29, %v4314_v60  ;;  %v4898_v17 = vrot.slane %v4897_v1, 1  ;;  %v737_v9 = vpop.permute.xlu0 %736 }
 0x5b4   : > { %v4704_v6 = vmax.f32 %v4640_v43, 0.0  ;;  %v718_v54 = vpop.permute.xlu1 %717  ;;  %v4845_v25 = vadd.f32 %v4844_v16, %v4843_v20  ;;  %v4708_v8 = vmax.f32 %v4644_v55, 0.0  ;;  %v360_v16 = vld [vmem:[#allocation5 + $0x290] sm:$0xff] }
 0x5b5   : > { %v4889_v41 = vrot.slane %v4888_v21, 1  ;;  %v4833_v51 = vrot.slane %v4832_v33, 2  ;;  %v4574_v19 = vmul.f32 %v9077_v56, %v4506_v22  ;;  %v4899_v23 = vadd.f32 %v4898_v17, %v4897_v1  ;;  %v2716_v17 = vpop.f32.mrf.mxu0 }
 0x5b6   : > { %v4768_v34 = vmul.f32 %v4704_v6, %v9978_v46  ;;  %v4769_v5 = vmul.f32 %v4705_v59, %v718_v54  ;;  %v4317_v46 = vsub.f32 %v9566_v27, %v10025_v45  ;;  %v10857_v27 = vld [vmem:[#allocation121_spill] sm:$0xff]  ;;  %v4772_v43 = vmul.f32 %v4708_v8, %v733_v12  ;;  %v372_v54 = vld [vmem:[#allocation5 + $0x2f0] sm:$0xff]  ;;  %v370_v59 = vld [vmem:[#allocation5 + $0x2e0] sm:$0xff] }
 0x5b7   : > { %v4890_v28 = vadd.f32 %v4889_v41, %v4888_v21  ;;  %v4834_v57 = vadd.f32 %v4833_v51, %v4832_v33  ;;  %v4642_v61 = vadd.f32 %v9098_v36, %v4574_v19  ;;  %v4771_v45 = vmul.f32 %v4707_v49, %v10857_v27  ;;  %v373_v19 = vld [vmem:[#allocation5 + $0x2f8] sm:$0xff] }
 0x5b8   : > { %v4901_v42 = vadd.f32 %v4900_v30, %v4768_v34  ;;  %5911 = vmatprep.subr.mxu0 %v373_v19  ;;  %v369_v34 = vld [vmem:[#allocation5 + $0x2d8] sm:$0xff]  ;;  %v368_v30 = vld [vmem:[#allocation5 + $0x2d0] sm:$0xff] }
 0x5b9   : > { %v4835_v52 = vrot.slane %v4834_v57, 1  ;;  %v4706_v26 = vmax.f32 %v4642_v61, 0.0  ;;  %v4951_v47 = vsel %vm4940_vm9, %v4890_v28, %v10017_v40  ;;  %v367_v28 = vld [vmem:[#allocation5 + $0x2c8] sm:$0xff]  ;;  %v365_v61 = vld [vmem:[#allocation5 + $0x2b8] sm:$0xff] }
 0x5ba   : > { %v4902_v13 = vadd.f32 %v4901_v42, %v4769_v5  ;;  %v4952_v18 = vsel %vm4942_vm10, %v4899_v23, %v4951_v47  ;;  %v363_v23 = vld [vmem:[#allocation5 + $0x2a8] sm:$0xff]  ;;  %v362_v5 = vld [vmem:[#allocation5 + $0x2a0] sm:$0xff]  ;;  %v361_v42 = vld [vmem:[#allocation5 + $0x298] sm:$0xff] }
 0x5bb   : > { %v6294_v50 = vpop.eup %6293  ;;  %v4836_v7 = vadd.f32 %v4835_v52, %v4834_v57  ;;  %v4770_v39 = vmul.f32 %v4706_v26, %v10856_v2  ;;  %v366_v57 = vld [vmem:[#allocation5 + $0x2c0] sm:$0xff]  ;;  %v359_v52 = vld [vmem:[#allocation5 + $0x288] sm:$0xff] }
 0x5bc   : > { %v4509_v35 = vmul.f32 %v6294_v50, %v4317_v46  ;;  %v4903_v37 = vrot.slane %v4902_v13, 4  ;;  %v358_v26 = vld [vmem:[#allocation5 + $0x280] sm:$0xff] }
 0x5bd   : > { %v4945_v40 = vsel %vm4944_vm11, %v4836_v7, %v9708_v38  ;;  %v4909_v24 = vadd.f32 %v4771_v45, %v4770_v39 }
 0x5be   : > { %v4577_v11 = vmul.f32 %v9077_v56, %v4509_v35  ;;  %v4904_v14 = vadd.f32 %v4903_v37, %v4902_v13  ;;  %v4947_v62 = vsel %vm4946_vm12, %v4845_v25, %v4945_v40 }
 0x5bf   : > { %5908 = vmatprep.mubr.f32.mxu0 %v4947_v62  ;;  %v4910_v29 = vadd.f32 %v4909_v24, %v4772_v43  ;;  %v10859_v62 = vld [vmem:[#allocation14_spill] sm:$0xff] }
 0x5c0   : > { %v4645_v32 = vadd.f32 %v9098_v36, %v4577_v11  ;;  %v4905_v60 = vrot.slane %v4904_v14, 2 }
 0x5c2   : > { %v4709_v58 = vmax.f32 %v4645_v32, 0.0  ;;  %v4906_v1 = vadd.f32 %v4905_v60, %v4904_v14  ;;  %v6307_v14 = vld [vmem:[#allocation2 + $0x8] sm:$0x1f] }
 0x5c3   : > { %v5065_v32 = vrot.slane %v6307_v14, %v10859_v62 }
 0x5c4   : > { %v4773_v53 = vmul.f32 %v4709_v58, %v737_v9  ;;  %v4907_v38 = vrot.slane %v4906_v1, 1  ;;  %v10860_v58 = vld [vmem:[#allocation16_spill] sm:$0xff] }
 0x5c5   : > { %v5071_v43 = vrot.slane %v6307_v14, %v10860_v58 }
 0x5c6   : > { %v4911_v3 = vadd.f32 %v4910_v29, %v4773_v53  ;;  %v4908_v56 = vadd.f32 %v4907_v38, %v4906_v1 }
 0x5c8   : > { %v4912_v10 = vrot.slane %v4911_v3, 4  ;;  %v4953_v15 = vsel %vm4944_vm11, %v4908_v56, %v4952_v18 }
 0x5ca   : > { %v4913_v63 = vadd.f32 %v4912_v10, %v4911_v3 }
 0x5cc   : > { %v4914_v21 = vrot.slane %v4913_v63, 2 }
 0x5ce   : > { %v4915_v33 = vadd.f32 %v4914_v21, %v4913_v63 }
 0x5d0   : > { %v4916_v22 = vrot.slane %v4915_v33, 1 }
 0x5d2   : > { %v4917_v36 = vadd.f32 %v4916_v22, %v4915_v33 }
 0x5d4   : > { %v4954_v0 = vsel %vm4946_vm12, %v4917_v36, %v4953_v15 }
 0x5d5   : > { %5909 = vmatmul.mubr.f32.vlgmr.msra.gmra.mxu0 %v4954_v0 }
 0x5d6   : > { %5912 = vmatpush3.msra.mxu0 %v373_v19 }
 0x5d7   : > { %5913 = vmatprep.subr.mxu0 %v372_v54 }
 0x5d8   : > { %5914 = vmatpush3.msra.mxu0 %v372_v54 }
 0x5d9   : > { %5915 = vmatprep.subr.mxu0 %v371_v4 }
 0x5da   : > { %5916 = vmatpush3.msra.mxu0 %v371_v4 }
 0x5db   : > { %5917 = vmatprep.subr.mxu0 %v370_v59 }
 0x5dc   : > { %5918 = vmatpush3.msra.mxu0 %v370_v59 }
 0x5dd   : > { %5919 = vmatprep.subr.mxu0 %v369_v34 }
 0x5de   : > { %5920 = vmatpush3.msra.mxu0 %v369_v34 }
 0x5df   : > { %5921 = vmatprep.subr.mxu0 %v368_v30 }
 0x5e0   : > { %5922 = vmatpush3.msra.mxu0 %v368_v30 }
 0x5e1   : > { %5923 = vmatprep.subr.mxu0 %v367_v28 }
 0x5e2   : > { %5924 = vmatpush3.msra.mxu0 %v367_v28  ;;  %v10861_v28 = vld [vmem:[#allocation135_spill] sm:$0xff] }
 0x5e3   : > { %5925 = vmatprep.subr.mxu0 %v366_v57 }
 0x5e4   : > { %5926 = vmatpush3.msra.mxu0 %v366_v57  ;;  %v5182_v57 = vrot.slane %v6307_v14, %v10861_v28 }
 0x5e5   : > { %5927 = vmatprep.subr.mxu0 %v365_v61 }
 0x5e6   : > { %5928 = vmatpush3.msra.mxu0 %v365_v61 }
 0x5e7   : > { %5929 = vmatprep.subr.mxu0 %v364_v48 }
 0x5e8   : > { %5930 = vmatpush3.msra.mxu0 %v364_v48 }
 0x5e9   : > { %5931 = vmatprep.subr.mxu0 %v363_v23 }
 0x5ea   : > { %5932 = vmatpush3.msra.mxu0 %v363_v23  ;;  %v10862_v23 = vld [vmem:[#allocation20_spill] sm:$0xff] }
 0x5eb   : > { %5933 = vmatprep.subr.mxu0 %v362_v5 }
 0x5ec   : > { %5934 = vmatpush3.msra.mxu0 %v362_v5  ;;  %v5188_v5 = vrot.slane %v6307_v14, %v10862_v23 }
 0x5ed   : > { %5935 = vmatprep.subr.mxu0 %v361_v42 }
 0x5ee   : > { %5936 = vmatpush3.msra.mxu0 %v361_v42 }
 0x5ef   : > { %5937 = vmatprep.subr.mxu0 %v360_v16 }
 0x5f0   : > { %5938 = vmatpush3.msra.mxu0 %v360_v16 }
 0x5f1   : > { %5939 = vmatprep.subr.mxu0 %v359_v52 }
 0x5f2   : > { %5940 = vmatpush3.msra.mxu0 %v359_v52 }
 0x5f3   : > { %5941 = vmatprep.subr.mxu0 %v358_v26 }
 0x5f4   : > { %5942 = vmatpush3.msra.mxu0 %v358_v26 }
 0x695   : > { %v5910_v12 = vpop.f32.mrf.mxu0 }
 0x696   : > { %v10084_v20 = vadd.f32 %v5910_v12, %v2716_v17 }
 0x697   : > { %v5023_v6 = vpop.f32.mrf.mxu0 }
 0x698   : > { %v10087_v44 = vadd.f32 %v5023_v6, %v10858_v31  ;;  %5036 = vadd.xlane.f32.xlu0 %v10084_v20  ;;  %v5039_v51 = vmul.f32 %v10084_v20, %v10084_v20 }
 0x69a   : > { %5034 = vadd.xlane.f32.xlu1 %v10087_v44  ;;  %v5038_v41 = vmul.f32 %v10087_v44, %v10087_v44 }
 0x69c   : > { %5040 = vadd.xlane.f32.xlu0 %v5038_v41 }
 0x69e   : > { %5042 = vadd.xlane.f32.xlu1 %v5039_v51 }
 0x721   : > { %v5037_v47 = vpop.xlane.xlu0 %5036 }
 0x722   : > { %v5045_v49 = vmul.f32 0.0078125, %v5037_v47 }
 0x723   : > { %v5035_v46 = vpop.xlane.xlu1 %5034 }
 0x724   : > { %v5044_v13 = vmul.f32 0.0078125, %v5035_v46  ;;  %v5049_v35 = vmul.f32 %v5045_v49, %v5045_v49  ;;  %v5055_v24 = vsub.f32 %v10084_v20, %v5045_v49 }
 0x725   : > { %v5041_v18 = vpop.xlane.xlu0 %5040 }
 0x726   : > { %v5048_v50 = vmul.f32 %v5044_v13, %v5044_v13  ;;  %v5046_v55 = vmul.f32 0.0078125, %v5041_v18  ;;  %v5054_v45 = vsub.f32 %v10087_v44, %v5044_v13  ;;  %v6308_v13 = vld [vmem:[%s6895_s20 + $0x8] sm:$0xff] }
 0x727   : > { %v5043_v7 = vpop.xlane.xlu1 %5042 }
 0x728   : > { %v5050_v2 = vsub.f32 %v5046_v55, %v5048_v50  ;;  %v5047_v39 = vmul.f32 0.0078125, %v5043_v7  ;;  %v6309_v50 = vld [vmem:[%s6895_s20] sm:$0xff]  ;;  %s6470_s20 = smov [#allocation8]  }
 0x729   : > { %s6392_s19 = sshll.u32 %s6470_s20, 4  ;;  %s6393_s19 = int_to_ptr.vmem [resolvable:$false] %s6392_s19 }
 0x72a   : > { %v5052_v37 = vmax.f32 %v5050_v2, 0.0  ;;  %v5051_v25 = vsub.f32 %v5047_v39, %v5049_v35  ;;  %s6394_s26 = scalar_lea.vmem %s6393_s19, 512  ;;  %p6395_p4 = scmp.lt.s32.totalorder %s10110_s12, %s6393_s19 }
 0x72b   : > { %p6396_p7 = scmp.lt.s32.totalorder %s6394_s26, %s6388_s25 }
 0x72c   : > { %v5056_v40 = vadd.f32 1e-05, %v5052_v37  ;;  %v5053_v11 = vmax.f32 %v5051_v25, 0.0 }
 0x72d   : > { %p6397_p8 = por %p6396_p7, %p6395_p4 }
 0x72e   : > { %6295 = vrsqrt.f32 %v5056_v40  ;;  %v5057_v27 = vadd.f32 1e-05, %v5053_v11 }
 0x72f   : > { %p6398_p11 = pnand %p6397_p8, %p6391_p2 }
 0x730   : > { %6297 = vrsqrt.f32 %v5057_v27 }
 0x73b   : > { %v6296_v8 = vpop.eup %6295 }
 0x73c   : > { %v5060_v60 = vmul.f32 %v6296_v8, %v5054_v45 }
 0x73d   : > { %v6298_v1 = vpop.eup %6297 }
 0x73e   : > { %v5066_v9 = vmul.f32 %v5065_v32, %v5060_v60  ;;  %v5061_v53 = vmul.f32 %v6298_v1, %v5055_v24 }
 0x740   : > { %v5072_v29 = vadd.f32 %v5071_v43, %v5066_v9  ;;  %v5067_v38 = vmul.f32 %v5065_v32, %v5061_v53 }
 0x742   : > { %v5074_v3 = vmax.f32 %v5072_v29, 0.0  ;;  %v5073_v56 = vadd.f32 %v5071_v43, %v5067_v38 }
 0x744   : > { %5943 = vmatprep.mubr.f32.mxu0 %v5074_v3  ;;  %v5075_v10 = vmax.f32 %v5073_v56, 0.0 }
 0x746   : > { %5944 = vmatmul.mubr.f32.vlgmr.msra.gmra.mxu0 %v5075_v10 }
 0x806   : > { %v5945_v15 = vpop.f32.mrf.mxu0 }
 0x807   : > { %5153 = vadd.xlane.f32.xlu1 %v5945_v15  ;;  %v5156_v21 = vmul.f32 %v5945_v15, %v5945_v15 }
 0x808   : > { %v5142_v63 = vpop.f32.mrf.mxu0 }
 0x809   : > { %5151 = vadd.xlane.f32.xlu0 %v5142_v63  ;;  %v5155_v33 = vmul.f32 %v5142_v63, %v5142_v63 }
 0x80b   : > { %5159 = vadd.xlane.f32.xlu1 %v5156_v21 }
 0x80d   : > { %5157 = vadd.xlane.f32.xlu0 %v5155_v33 }
 0x890   : > { %v5154_v22 = vpop.xlane.xlu1 %5153 }
 0x891   : > { %v5162_v36 = vmul.f32 0.0078125, %v5154_v22 }
 0x892   : > { %v5152_v0 = vpop.xlane.xlu0 %5151 }
 0x893   : > { %v5161_v17 = vmul.f32 0.0078125, %v5152_v0  ;;  %v5166_v20 = vmul.f32 %v5162_v36, %v5162_v36  ;;  %v5172_v30 = vsub.f32 %v5945_v15, %v5162_v36 }
 0x894   : > { %v5160_v12 = vpop.xlane.xlu1 %5159 }
 0x895   : > { %v5164_v6 = vmul.f32 0.0078125, %v5160_v12  ;;  %v5165_v44 = vmul.f32 %v5161_v17, %v5161_v17  ;;  %v5171_v48 = vsub.f32 %v5142_v63, %v5161_v17 }
 0x896   : > { %v5158_v31 = vpop.xlane.xlu0 %5157 }
 0x897   : > { %v5168_v41 = vsub.f32 %v5164_v6, %v5166_v20  ;;  %v5163_v51 = vmul.f32 0.0078125, %v5158_v31 }
 0x899   : > { %v5170_v19 = vmax.f32 %v5168_v41, 0.0  ;;  %v5167_v54 = vsub.f32 %v5163_v51, %v5165_v44 }
 0x89b   : > { %v5174_v4 = vadd.f32 1e-05, %v5170_v19  ;;  %v5169_v59 = vmax.f32 %v5167_v54, 0.0 }
 0x89d   : > { %6299 = vrsqrt.f32 %v5174_v4  ;;  %v5173_v34 = vadd.f32 1e-05, %v5169_v59 }
 0x89f   : > { %6301 = vrsqrt.f32 %v5173_v34 }
 0x8aa   : > { %v6300_v61 = vpop.eup %6299 }
 0x8ab   : > { %v5178_v42 = vmul.f32 %v6300_v61, %v5172_v30 }
 0x8ac   : > { %v6302_v16 = vpop.eup %6301 }
 0x8ad   : > { %v5184_v52 = vmul.f32 %v5182_v57, %v5178_v42  ;;  %v5177_v26 = vmul.f32 %v6302_v16, %v5171_v48 }
 0x8af   : > { %v5190_v47 = vadd.f32 %v5188_v5, %v5184_v52  ;;  %v5183_v46 = vmul.f32 %v5182_v57, %v5177_v26 }
 0x8b1   : > { %v5189_v49 = vadd.f32 %v5188_v5, %v5183_v46  ;;  %v5192_v18 = vadd.f32 %v6308_v13, %v5190_v47 }
 0x8b3   : > { %v5191_v55 = vadd.f32 %v6309_v50, %v5189_v49  ;;  %v5194_v7 = vmax.f32 %v5192_v18, 0.0 }
 0x8b5   : > { %v5193_v35 = vmax.f32 %v5191_v55, 0.0  ;;  %5196 = vst [vmem:[%s273_s17 + $0x8] sm:$0xff] %v5194_v7 }
 0x8b7   : > { %5195 = vst [vmem:[%s273_s17] sm:$0xff] %v5193_v35 }
 0x8b8   : > { %6401 = shalt.err (!%p6398_p11)
}
 0x8b9   : > { %s6402_s28 = scalar_lea.hbm %s10108_s16, 256  ;;  %s6406_s11 = scalar_lea.hbm %s10158_s6, 512 }
 0x8ba   : > { %p6403_p0 = scmp.ne.s32.totalorder %s10108_s16, %s6402_s28  ;;  %p6407_p13 = scmp.lt.s32.totalorder %s10108_s16, %s10158_s6 }
 0x8bb   : > { %p6408_p5 = scmp.lt.s32.totalorder %s6406_s11, %s6402_s28 }
 0x8bc   : > { %p6404_p6 = pnand %p6403_p0, %p10863_p12 }
 0x8bd   : > { %p6409_p1 = por %p6408_p5, %p6407_p13 }
 0x8be   : > { %p6405_p9 = pneg %p6404_p6 }
 0x8c0   : > { %p6410_p10 = pnand %p6409_p1, %p6405_p9 }
 0x8c2   : > { %6413 = shalt.err (!%p6410_p10)
}
 0x8c3   : > { %s6471_s17 = smov 128   ;;  %s6472_s9 = smov 8  }
 0x8c4   : > { %5958 = dma.vmem_to_hbm [thread:$0]  (%p10863_p12), %s10110_s12, 256, %s10108_s16, %s10112_s18, %s6471_s17, %s6471_s17, %s6472_s9  }
 0x8c5 PF: > { %p5980_p3 = scmp.ge.s32.totalorder %s6456_s24, 2  ;;  %s5226_s14 = sand.u32 1, %s6444_s21  }
 0x8c6   : > { %p10864_p2 = scmp.ne.s32.totalorder %s10308_s8, 0  ;;  %s5227_s25 = scalar_lea.sflag [#allocation4], %s5226_s14 }
 0x8c8   : > { %p5971_p4 = pnand %p5980_p3, %p10864_p2 }
 0x8ca   : > { %p5972_p7 = pneg %p5971_p4 }
 0x8cc   : > { %6439 = dma.done.wait (%p5972_p7), %s5227_s25, 256  }
 0x8cd   : > { %6441 = vsyncadd (%p5972_p7), %s5227_s25, 4294967040  ;;  %p18_p8 = scmp.ge.s32.totalorder %s6533_s27, 4   ;;  %s10865_s21 = smov %s6448_s22 }
 0x8ce   : > { %s10866_s22 = smov %s6452_s23  ;;  %s10867_s23 = smov %s6544_s30 }
 0x8cf   : > { %s10868_s24 = smov %s6533_s27  ;;  %20 = sbr.rel (!%p18_p8) target bundleno = 5 (0x5), region = 91 }
 0x8d4   :  { %5232 = vsyncpa [#allocation3], 1 }
 0x8d5   :  { %5234 = vsyncpa [#allocation3 + $0x1], 1 }
 0x8d6   :  { %5235 = vsyncpa [#allocation6], 1 }
 0x8d7   :  { %5236 = vsyncpa [#allocation4], 1 }
 0x8d8   :  { %5238 = vsyncpa [#allocation4 + $0x1], 1 }

</bundles_post_ra>
